<compile_context>
chip_gen: v5e
topology: v5e:2x2
jax: 0.10.0
libtpu: 0.0.40
codegen_flags: <defaults>
</compile_context>

<pallas_src>
import math

import jax
import jax.numpy as jnp
from jax.experimental import pallas as pl
from jax.experimental.pallas import tpu as pltpu


def _round_up(x, m):
    return (x + m - 1) // m * m


# ---------------------------------------------------------------------------
# Pallas kernels
# ---------------------------------------------------------------------------
def _conv_gemm_kernel(a_ref, w_ref, b_ref, o_ref):
    """o = relu(a @ w + shift), bf16 store.  BN scale is pre-folded into w."""
    acc = jnp.dot(a_ref[...], w_ref[...], preferred_element_type=jnp.float32)
    acc = jnp.maximum(acc + b_ref[...], 0.0)
    o_ref[...] = acc.astype(o_ref.dtype)


def conv_gemm(a, w, shift, *, tm=128):
    """a:(Mp,K) bf16 @ w:(K,N) bf16 + shift:(1,N) f32, ReLU, bf16 out."""
    M, K = a.shape
    K2, N = w.shape
    assert K == K2 and M % tm == 0, (a.shape, w.shape, tm)
    n_m = M // tm
    return pl.pallas_call(
        _conv_gemm_kernel,
        out_shape=jax.ShapeDtypeStruct((M, N), jnp.bfloat16),
        grid_spec=pltpu.PrefetchScalarGridSpec(
            num_scalar_prefetch=0,
            grid=(n_m,),
            in_specs=[
                pl.BlockSpec((tm, K), lambda i: (i, 0)),
                pl.BlockSpec((K, N), lambda i: (0, 0)),
                pl.BlockSpec((1, N), lambda i: (0, 0)),
            ],
            out_specs=pl.BlockSpec((tm, N), lambda i: (i, 0)),
        ),
        compiler_params=pltpu.CompilerParams(
            dimension_semantics=("parallel",),
        ),
    )(a, w, shift)


def _fc_head_kernel(feat_ref, w_ref, b_ref, hw_ref, hb_ref, o_ref, acc_ref,
                    *, n_actions):
    """Merged fc1|fc3 (ReLU) + block-diag fc2|fc4 head + dueling combine.

    Grid axis 1 tiles the 1024-wide hidden dimension; acc_ref accumulates the
    (tm, n_actions+1) head output across hidden tiles.
    """
    j = pl.program_id(1)

    @pl.when(j == 0)
    def _():
        acc_ref[...] = jnp.zeros_like(acc_ref)

    hidden = jnp.dot(feat_ref[...], w_ref[...],
                     preferred_element_type=jnp.float32)
    hidden = jnp.maximum(hidden + b_ref[...], 0.0)
    acc_ref[...] += jnp.dot(hidden.astype(hw_ref.dtype), hw_ref[...],
                            preferred_element_type=jnp.float32)

    @pl.when(j == pl.num_programs(1) - 1)
    def _():
        heads = acc_ref[...] + hb_ref[...]
        col = jax.lax.broadcasted_iota(jnp.int32, heads.shape, 1)
        adv = jnp.where(col < n_actions, heads, 0.0)
        adv_mean = jnp.sum(adv, axis=1, keepdims=True) / n_actions
        value = jnp.sum(jnp.where(col == n_actions, heads, 0.0),
                        axis=1, keepdims=True)
        # Column n_actions is zeroed (the caller slices it off anyway).
        o_ref[...] = jnp.where(col < n_actions, value + heads - adv_mean, 0.0)


def fc_dueling_head(feat, w_hidden, b_hidden, w_head, b_head, *, tn=256):
    """feat:(Bp,6400) bf16 -> q:(Bp, n_actions) f32, one pallas_call."""
    Bp, K = feat.shape
    K2, H = w_hidden.shape
    assert K == K2 and H % tn == 0, (feat.shape, w_hidden.shape, tn)
    n_out = w_head.shape[1]            # n_actions + 1
    n_actions = n_out - 1
    tm = 128 if Bp % 128 == 0 else Bp
    n_m, n_n = Bp // tm, H // tn

    import functools
    kernel = functools.partial(_fc_head_kernel, n_actions=n_actions)
    out = pl.pallas_call(
        kernel,
        out_shape=jax.ShapeDtypeStruct((Bp, n_out), jnp.float32),
        grid_spec=pltpu.PrefetchScalarGridSpec(
            num_scalar_prefetch=0,
            grid=(n_m, n_n),
            in_specs=[
                pl.BlockSpec((tm, K), lambda i, j: (i, 0)),      # feat
                pl.BlockSpec((K, tn), lambda i, j: (0, j)),      # fc1|fc3 weight
                pl.BlockSpec((1, tn), lambda i, j: (0, j)),      # fc1|fc3 bias
                pl.BlockSpec((tn, n_out), lambda i, j: (j, 0)),  # head weight
                pl.BlockSpec((1, n_out), lambda i, j: (0, 0)),   # head bias
            ],
            out_specs=pl.BlockSpec((tm, n_out), lambda i, j: (i, 0)),
            scratch_shapes=[pltpu.VMEM((tm, n_out), jnp.float32)],
        ),
        compiler_params=pltpu.CompilerParams(
            dimension_semantics=("parallel", "arbitrary"),
        ),
    )(feat, w_hidden, b_hidden, w_head, b_head)
    return out[:, :n_actions]


# ---------------------------------------------------------------------------
# Glue: NHWC im2col (XLA slices, bf16), conv wrapper, parameter construction
# ---------------------------------------------------------------------------
def im2col_nhwc(x, kh, kw, stride, pad):
    """x:(B,H,W,C) -> (B*OH*OW, kh*kw*C), feature ordering (kh, kw, C)."""
    B, H, W, C = x.shape
    xp = jnp.pad(x, ((0, 0), (pad, pad), (pad, pad), (0, 0)))
    OH = (H + 2 * pad - kh) // stride + 1
    OW = (W + 2 * pad - kw) // stride + 1
    patches = []
    for i in range(kh):
        for j in range(kw):
            patches.append(
                xp[:, i:i + stride * OH:stride, j:j + stride * OW:stride, :])
    cols = jnp.concatenate(patches, axis=-1)          # (B, OH, OW, kh*kw*C)
    return cols.reshape(B * OH * OW, kh * kw * C), B, OH, OW


def conv_bn_relu(x, wmat, shift, *, kh, kw, stride, pad):
    """x NHWC bf16; wmat (kh*kw*C, OC) bf16 with BN scale folded; shift (1,OC) f32."""
    oc = wmat.shape[1]
    cols, B, OH, OW = im2col_nhwc(x, kh, kw, stride, pad)
    M = cols.shape[0]
    Mp = _round_up(M, 128)
    cols = jnp.pad(cols, ((0, Mp - M), (0, 0)))       # already bf16
    out = conv_gemm(cols, wmat, shift, tm=128)        # (Mp, oc) bf16
    return out[:M].reshape(B, OH, OW, oc)             # stay NHWC


def kaiming_normal_fan_out(key, shape, fan_out):
    std = math.sqrt(2.0 / fan_out)
    return std * jax.random.normal(key, shape, dtype=jnp.float32)


def make_params(key, input_channels=4, output_dim=7):
    conv_oh = 10                               # conv-stack spatial for 84x84 input
    feature_size = 64 * conv_oh * conv_oh      # 6400
    ks = jax.random.split(key, 7)
    p = {}

    eps = 1e-5
    # Eval-mode BN, PyTorch-default stats: gamma=1, beta=0, mean=0, var=1.
    bn_scale = 1.0 / math.sqrt(1.0 + eps)

    def conv_block(k, oc, ic, ksz):
        w = kaiming_normal_fan_out(k, (oc, ic, ksz, ksz), oc * ksz * ksz)
        # (OC, C, kh, kw) -> (kh*kw*C, OC) to match NHWC im2col feature order;
        # BN scale folded directly into the weight columns.
        wmat = w.transpose(2, 3, 1, 0).reshape(ksz * ksz * ic, oc)
        wmat = (wmat * bn_scale).astype(jnp.bfloat16)
        conv_bias = jnp.zeros((oc,), jnp.float32)
        shift = (conv_bias - 0.0) * bn_scale + 0.0     # beta + (bias - mean)*scale
        return wmat, shift.reshape(1, oc)

    p["conv1_w"], p["bn1_shift"] = conv_block(ks[0], 32, input_channels, 8)
    p["conv2_w"], p["bn2_shift"] = conv_block(ks[1], 64, 32, 4)
    p["conv3_w"], p["bn3_shift"] = conv_block(ks[2], 64, 64, 3)

    def nchw_cols_to_nhwc_cols(w):
        # Torch flattens NCHW (c, h, w); our feat is NHWC (h, w, c): permute columns.
        return w.reshape(w.shape[0], 64, conv_oh, conv_oh).transpose(0, 2, 3, 1) \
                .reshape(w.shape[0], -1)

    # fc1 (advantage hidden) and fc3 (value hidden) merged: (6400, 1024) bf16,
    # pre-transposed to (K, N).
    fc1_w = kaiming_normal_fan_out(ks[3], (512, feature_size), 512)
    fc3_w = kaiming_normal_fan_out(ks[4], (512, feature_size), 512)
    hidden_w = jnp.concatenate(
        [nchw_cols_to_nhwc_cols(fc1_w).T, nchw_cols_to_nhwc_cols(fc3_w).T], axis=1)
    p["fc_hidden_w"] = hidden_w.astype(jnp.bfloat16)          # (6400, 1024)
    p["fc_hidden_b"] = jnp.zeros((1, 1024), jnp.float32)      # fc1_b ++ fc3_b (zeros)

    # fc2 (7 actions) and fc4 (1 value) merged block-diagonally: (1024, 8) bf16.
    fc2_w = kaiming_normal_fan_out(ks[5], (output_dim, 512), output_dim)
    fc4_w = kaiming_normal_fan_out(ks[6], (1, 512), 1)
    head_w = jnp.zeros((1024, output_dim + 1), jnp.float32)
    head_w = head_w.at[:512, :output_dim].set(fc2_w.T)
    head_w = head_w.at[512:, output_dim:].set(fc4_w.T)
    p["fc_head_w"] = head_w.astype(jnp.bfloat16)              # (1024, output_dim+1)
    p["fc_head_b"] = jnp.zeros((1, output_dim + 1), jnp.float32)
    return p


# ---------------------------------------------------------------------------
# Forward pass
# ---------------------------------------------------------------------------
def dqn_forward(params, x):
    # x: (B, C, 84, 84) NCHW (uint8-able), like the PyTorch module.
    x = (x.astype(jnp.float32) / 255.0).astype(jnp.bfloat16)
    x = jnp.transpose(x, (0, 2, 3, 1))                    # NHWC internally, bf16
    x = conv_bn_relu(x, params["conv1_w"], params["bn1_shift"],
                     kh=8, kw=8, stride=4, pad=2)         # (B, 21, 21, 32)
    x = conv_bn_relu(x, params["conv2_w"], params["bn2_shift"],
                     kh=4, kw=4, stride=2, pad=1)         # (B, 10, 10, 64)
    x = conv_bn_relu(x, params["conv3_w"], params["bn3_shift"],
                     kh=3, kw=3, stride=1, pad=1)         # (B, 10, 10, 64)

    B = x.shape[0]
    feat = x.reshape(B, -1)                               # (B, 6400) NHWC flatten, bf16
    Bp = _round_up(B, 16)                                 # bf16 packs 16 sublanes/vreg
    feat = jnp.pad(feat, ((0, Bp - B), (0, 0)))

    # Single fused kernel: fc1|fc3 + ReLU + block-diag fc2|fc4 + dueling combine.
    q = fc_dueling_head(feat, params["fc_hidden_w"], params["fc_hidden_b"],
                        params["fc_head_w"], params["fc_head_b"], tn=256)
    return q[:B]                                          # (B, output_dim) f32


if __name__ == "__main__":
    key = jax.random.PRNGKey(0)
    pkey, xkey = jax.random.split(key)
    params = make_params(pkey, input_channels=4, output_dim=7)

    # batch=2, channels=4, spatial=84 (fc1's in_features = 6400 implies 84x84).
    x = jax.random.randint(xkey, (2, 4, 84, 84), 0, 256,
                           dtype=jnp.int32).astype(jnp.uint8)

    out = jax.jit(dqn_forward)(params, x)
    out = jax.block_until_ready(out)
    assert out.shape == (2, 7) and out.dtype == jnp.float32
    print("KERNEL_OK")
</pallas_src>

<mosaic_0001>
module attributes {stable_mosaic.version = 11 : i64} {
  func.func @_conv_gemm_kernel(%arg0: i32, %arg1: memref<128x256xbf16, #tpu.memory_space<vmem>>, %arg2: memref<256x32xbf16, #tpu.memory_space<vmem>>, %arg3: memref<1x32xf32, #tpu.memory_space<vmem>>, %arg4: memref<128x32xbf16, #tpu.memory_space<vmem>>) attributes {dimension_semantics = [#tpu.dimension_semantics<parallel>], iteration_bounds = array<i64: 7>, scalar_prefetch = 0 : i64, scratch_operands = 0 : i64, tpu.core_type = #tpu.core_type<tc>, window_params = [{transform_indices = @transform_0, window_bounds = array<i64: 128, 256>}, {pipeline_mode = #tpu.pipeline_mode<synchronous>, transform_indices = @transform_1, window_bounds = array<i64: 256, 32>}, {pipeline_mode = #tpu.pipeline_mode<synchronous>, transform_indices = @transform_2, window_bounds = array<i64: 1, 32>}, {transform_indices = @transform_3, window_bounds = array<i64: 128, 32>}]} {
    %c0 = arith.constant 0 : index
    %c0_0 = arith.constant 0 : index
    %0 = vector.load %arg1[%c0, %c0_0] : memref<128x256xbf16, #tpu.memory_space<vmem>>, vector<128x256xbf16>
    %c0_1 = arith.constant 0 : index
    %c0_2 = arith.constant 0 : index
    %1 = vector.load %arg2[%c0_1, %c0_2] : memref<256x32xbf16, #tpu.memory_space<vmem>>, vector<256x32xbf16>
    %cst = arith.constant dense<0.000000e+00> : vector<128x32xf32>
    %2 = tpu.matmul %0, %1, %cst {dimension_numbers = #tpu.dot_dimension_numbers<[1], [0], [0], [1], [0, 0, 1, 1], [], []>} : vector<128x256xbf16>, vector<256x32xbf16>, vector<128x32xf32> -> vector<128x32xf32>
    %c0_3 = arith.constant 0 : index
    %c0_4 = arith.constant 0 : index
    %3 = vector.load %arg3[%c0_3, %c0_4] : memref<1x32xf32, #tpu.memory_space<vmem>>, vector<1x32xf32>
    %4 = vector.broadcast %3 : vector<1x32xf32> to vector<128x32xf32>
    %5 = arith.addf %2, %4 : vector<128x32xf32>
    %cst_5 = arith.constant 0.000000e+00 : f32
    %6 = vector.broadcast %cst_5 : f32 to vector<128x32xf32>
    %7 = arith.maximumf %5, %6 : vector<128x32xf32>
    %8 = arith.truncf %7 : vector<128x32xf32> to vector<128x32xbf16>
    %c0_6 = arith.constant 0 : index
    %c0_7 = arith.constant 0 : index
    %9 = vector.load %arg4[%c0_6, %c0_7] : memref<128x32xbf16, #tpu.memory_space<vmem>>, vector<128x32xbf16>
    tpu.vector_store %arg4[%c0_6, %c0_7], %8 {strides = array<i32>} : memref<128x32xbf16, #tpu.memory_space<vmem>>, vector<128x32xbf16>,
    return
  }
  func.func @transform_0(%arg0: i32) -> (i32, i32) {
    %c0_i32 = arith.constant 0 : i32
    %c0_i32_0 = arith.constant 0 : i32
    return %arg0, %c0_i32 : i32, i32
  }
  func.func @transform_1(%arg0: i32) -> (i32, i32) {
    %c0_i32 = arith.constant 0 : i32
    %c0_i32_0 = arith.constant 0 : i32
    %c0_i32_1 = arith.constant 0 : i32
    return %c0_i32, %c0_i32_0 : i32, i32
  }
  func.func @transform_2(%arg0: i32) -> (i32, i32) {
    %c0_i32 = arith.constant 0 : i32
    %c0_i32_0 = arith.constant 0 : i32
    %c0_i32_1 = arith.constant 0 : i32
    return %c0_i32, %c0_i32_0 : i32, i32
  }
  func.func @transform_3(%arg0: i32) -> (i32, i32) {
    %c0_i32 = arith.constant 0 : i32
    %c0_i32_0 = arith.constant 0 : i32
    return %arg0, %c0_i32 : i32, i32
  }
}

module attributes {stable_mosaic.version = 11 : i64} {
  func.func @_conv_gemm_kernel(%arg0: i32, %arg1: memref<128x512xbf16, #tpu.memory_space<vmem>>, %arg2: memref<512x64xbf16, #tpu.memory_space<vmem>>, %arg3: memref<1x64xf32, #tpu.memory_space<vmem>>, %arg4: memref<128x64xbf16, #tpu.memory_space<vmem>>) attributes {dimension_semantics = [#tpu.dimension_semantics<parallel>], iteration_bounds = array<i64: 2>, scalar_prefetch = 0 : i64, scratch_operands = 0 : i64, tpu.core_type = #tpu.core_type<tc>, window_params = [{transform_indices = @transform_0, window_bounds = array<i64: 128, 512>}, {pipeline_mode = #tpu.pipeline_mode<synchronous>, transform_indices = @transform_1, window_bounds = array<i64: 512, 64>}, {pipeline_mode = #tpu.pipeline_mode<synchronous>, transform_indices = @transform_2, window_bounds = array<i64: 1, 64>}, {transform_indices = @transform_3, window_bounds = array<i64: 128, 64>}]} {
    %c0 = arith.constant 0 : index
    %c0_0 = arith.constant 0 : index
    %0 = vector.load %arg1[%c0, %c0_0] : memref<128x512xbf16, #tpu.memory_space<vmem>>, vector<128x512xbf16>
    %c0_1 = arith.constant 0 : index
    %c0_2 = arith.constant 0 : index
    %1 = vector.load %arg2[%c0_1, %c0_2] : memref<512x64xbf16, #tpu.memory_space<vmem>>, vector<512x64xbf16>
    %cst = arith.constant dense<0.000000e+00> : vector<128x64xf32>
    %2 = tpu.matmul %0, %1, %cst {dimension_numbers = #tpu.dot_dimension_numbers<[1], [0], [0], [1], [0, 0, 1, 1], [], []>} : vector<128x512xbf16>, vector<512x64xbf16>, vector<128x64xf32> -> vector<128x64xf32>
    %c0_3 = arith.constant 0 : index
    %c0_4 = arith.constant 0 : index
    %3 = vector.load %arg3[%c0_3, %c0_4] : memref<1x64xf32, #tpu.memory_space<vmem>>, vector<1x64xf32>
    %4 = vector.broadcast %3 : vector<1x64xf32> to vector<128x64xf32>
    %5 = arith.addf %2, %4 : vector<128x64xf32>
    %cst_5 = arith.constant 0.000000e+00 : f32
    %6 = vector.broadcast %cst_5 : f32 to vector<128x64xf32>
    %7 = arith.maximumf %5, %6 : vector<128x64xf32>
    %8 = arith.truncf %7 : vector<128x64xf32> to vector<128x64xbf16>
    %c0_6 = arith.constant 0 : index
    %c0_7 = arith.constant 0 : index
    %9 = vector.load %arg4[%c0_6, %c0_7] : memref<128x64xbf16, #tpu.memory_space<vmem>>, vector<128x64xbf16>
    tpu.vector_store %arg4[%c0_6, %c0_7], %8 {strides = array<i32>} : memref<128x64xbf16, #tpu.memory_space<vmem>>, vector<128x64xbf16>,
    return
  }
  func.func @transform_0(%arg0: i32) -> (i32, i32) {
    %c0_i32 = arith.constant 0 : i32
    %c0_i32_0 = arith.constant 0 : i32
    return %arg0, %c0_i32 : i32, i32
  }
  func.func @transform_1(%arg0: i32) -> (i32, i32) {
    %c0_i32 = arith.constant 0 : i32
    %c0_i32_0 = arith.constant 0 : i32
    %c0_i32_1 = arith.constant 0 : i32
    return %c0_i32, %c0_i32_0 : i32, i32
  }
  func.func @transform_2(%arg0: i32) -> (i32, i32) {
    %c0_i32 = arith.constant 0 : i32
    %c0_i32_0 = arith.constant 0 : i32
    %c0_i32_1 = arith.constant 0 : i32
    return %c0_i32, %c0_i32_0 : i32, i32
  }
  func.func @transform_3(%arg0: i32) -> (i32, i32) {
    %c0_i32 = arith.constant 0 : i32
    %c0_i32_0 = arith.constant 0 : i32
    return %arg0, %c0_i32 : i32, i32
  }
}

module attributes {stable_mosaic.version = 11 : i64} {
  func.func @_conv_gemm_kernel(%arg0: i32, %arg1: memref<128x576xbf16, #tpu.memory_space<vmem>>, %arg2: memref<576x64xbf16, #tpu.memory_space<vmem>>, %arg3: memref<1x64xf32, #tpu.memory_space<vmem>>, %arg4: memref<128x64xbf16, #tpu.memory_space<vmem>>) attributes {dimension_semantics = [#tpu.dimension_semantics<parallel>], iteration_bounds = array<i64: 2>, scalar_prefetch = 0 : i64, scratch_operands = 0 : i64, tpu.core_type = #tpu.core_type<tc>, window_params = [{transform_indices = @transform_0, window_bounds = array<i64: 128, 576>}, {pipeline_mode = #tpu.pipeline_mode<synchronous>, transform_indices = @transform_1, window_bounds = array<i64: 576, 64>}, {pipeline_mode = #tpu.pipeline_mode<synchronous>, transform_indices = @transform_2, window_bounds = array<i64: 1, 64>}, {transform_indices = @transform_3, window_bounds = array<i64: 128, 64>}]} {
    %c0 = arith.constant 0 : index
    %c0_0 = arith.constant 0 : index
    %0 = vector.load %arg1[%c0, %c0_0] : memref<128x576xbf16, #tpu.memory_space<vmem>>, vector<128x576xbf16>
    %c0_1 = arith.constant 0 : index
    %c0_2 = arith.constant 0 : index
    %1 = vector.load %arg2[%c0_1, %c0_2] : memref<576x64xbf16, #tpu.memory_space<vmem>>, vector<576x64xbf16>
    %cst = arith.constant dense<0.000000e+00> : vector<128x64xf32>
    %2 = tpu.matmul %0, %1, %cst {dimension_numbers = #tpu.dot_dimension_numbers<[1], [0], [0], [1], [0, 0, 1, 1], [], []>} : vector<128x576xbf16>, vector<576x64xbf16>, vector<128x64xf32> -> vector<128x64xf32>
    %c0_3 = arith.constant 0 : index
    %c0_4 = arith.constant 0 : index
    %3 = vector.load %arg3[%c0_3, %c0_4] : memref<1x64xf32, #tpu.memory_space<vmem>>, vector<1x64xf32>
    %4 = vector.broadcast %3 : vector<1x64xf32> to vector<128x64xf32>
    %5 = arith.addf %2, %4 : vector<128x64xf32>
    %cst_5 = arith.constant 0.000000e+00 : f32
    %6 = vector.broadcast %cst_5 : f32 to vector<128x64xf32>
    %7 = arith.maximumf %5, %6 : vector<128x64xf32>
    %8 = arith.truncf %7 : vector<128x64xf32> to vector<128x64xbf16>
    %c0_6 = arith.constant 0 : index
    %c0_7 = arith.constant 0 : index
    %9 = vector.load %arg4[%c0_6, %c0_7] : memref<128x64xbf16, #tpu.memory_space<vmem>>, vector<128x64xbf16>
    tpu.vector_store %arg4[%c0_6, %c0_7], %8 {strides = array<i32>} : memref<128x64xbf16, #tpu.memory_space<vmem>>, vector<128x64xbf16>,
    return
  }
  func.func @transform_0(%arg0: i32) -> (i32, i32) {
    %c0_i32 = arith.constant 0 : i32
    %c0_i32_0 = arith.constant 0 : i32
    return %arg0, %c0_i32 : i32, i32
  }
  func.func @transform_1(%arg0: i32) -> (i32, i32) {
    %c0_i32 = arith.constant 0 : i32
    %c0_i32_0 = arith.constant 0 : i32
    %c0_i32_1 = arith.constant 0 : i32
    return %c0_i32, %c0_i32_0 : i32, i32
  }
  func.func @transform_2(%arg0: i32) -> (i32, i32) {
    %c0_i32 = arith.constant 0 : i32
    %c0_i32_0 = arith.constant 0 : i32
    %c0_i32_1 = arith.constant 0 : i32
    return %c0_i32, %c0_i32_0 : i32, i32
  }
  func.func @transform_3(%arg0: i32) -> (i32, i32) {
    %c0_i32 = arith.constant 0 : i32
    %c0_i32_0 = arith.constant 0 : i32
    return %arg0, %c0_i32 : i32, i32
  }
}

module attributes {stable_mosaic.version = 11 : i64} {
  func.func @_fc_head_kernel(%arg0: i32, %arg1: i32, %arg2: memref<16x6400xbf16, #tpu.memory_space<vmem>>, %arg3: memref<6400x256xbf16, #tpu.memory_space<vmem>>, %arg4: memref<1x256xf32, #tpu.memory_space<vmem>>, %arg5: memref<256x8xbf16, #tpu.memory_space<vmem>>, %arg6: memref<1x8xf32, #tpu.memory_space<vmem>>, %arg7: memref<16x8xf32, #tpu.memory_space<vmem>>, %arg8: memref<16x8xf32, #tpu.memory_space<vmem>>) attributes {dimension_semantics = [#tpu.dimension_semantics<parallel>, #tpu.dimension_semantics<arbitrary>], iteration_bounds = array<i64: 1, 4>, scalar_prefetch = 0 : i64, scratch_operands = 1 : i64, tpu.core_type = #tpu.core_type<tc>, window_params = [{transform_indices = @transform_0, window_bounds = array<i64: 16, 6400>}, {transform_indices = @transform_1, window_bounds = array<i64: 6400, 256>}, {transform_indices = @transform_2, window_bounds = array<i64: 1, 256>}, {transform_indices = @transform_3, window_bounds = array<i64: 256, 8>}, {pipeline_mode = #tpu.pipeline_mode<synchronous>, transform_indices = @transform_4, window_bounds = array<i64: 1, 8>}, {transform_indices = @transform_5, window_bounds = array<i64: 16, 8>}]} {
    %c0_i32 = arith.constant 0 : i32
    %0 = arith.cmpi eq, %arg1, %c0_i32 : i32
    %1 = arith.extui %0 : i1 to i32
    %c0_i32_0 = arith.constant 0 : i32
    %2 = arith.cmpi ne, %1, %c0_i32_0 : i32
    scf.if %2 {
      %cst_15 = arith.constant 0.000000e+00 : f32
      %20 = vector.broadcast %cst_15 : f32 to vector<16x8xf32>
      %c0_16 = arith.constant 0 : index
      %c0_17 = arith.constant 0 : index
      %21 = vector.load %arg8[%c0_16, %c0_17] : memref<16x8xf32, #tpu.memory_space<vmem>>, vector<16x8xf32>
      tpu.vector_store %arg8[%c0_16, %c0_17], %20 {strides = array<i32>} : memref<16x8xf32, #tpu.memory_space<vmem>>, vector<16x8xf32>,
    } else {
    }
    %c0 = arith.constant 0 : index
    %c0_1 = arith.constant 0 : index
    %3 = vector.load %arg2[%c0, %c0_1] : memref<16x6400xbf16, #tpu.memory_space<vmem>>, vector<16x6400xbf16>
    %c0_2 = arith.constant 0 : index
    %c0_3 = arith.constant 0 : index
    %4 = vector.load %arg3[%c0_2, %c0_3] : memref<6400x256xbf16, #tpu.memory_space<vmem>>, vector<6400x256xbf16>
    %cst = arith.constant dense<0.000000e+00> : vector<16x256xf32>
    %5 = tpu.matmul %3, %4, %cst {dimension_numbers = #tpu.dot_dimension_numbers<[1], [0], [0], [1], [0, 0, 1, 1], [], []>} : vector<16x6400xbf16>, vector<6400x256xbf16>, vector<16x256xf32> -> vector<16x256xf32>
    %c0_4 = arith.constant 0 : index
    %c0_5 = arith.constant 0 : index
    %6 = vector.load %arg4[%c0_4, %c0_5] : memref<1x256xf32, #tpu.memory_space<vmem>>, vector<1x256xf32>
    %7 = vector.broadcast %6 : vector<1x256xf32> to vector<16x256xf32>
    %8 = arith.addf %5, %7 : vector<16x256xf32>
    %cst_6 = arith.constant 0.000000e+00 : f32
    %9 = vector.broadcast %cst_6 : f32 to vector<16x256xf32>
    %10 = arith.maximumf %8, %9 : vector<16x256xf32>
    %c0_7 = arith.constant 0 : index
    %c0_8 = arith.constant 0 : index
    %11 = vector.load %arg8[%c0_7, %c0_8] : memref<16x8xf32, #tpu.memory_space<vmem>>, vector<16x8xf32>
    %12 = arith.truncf %10 : vector<16x256xf32> to vector<16x256xbf16>
    %c0_9 = arith.constant 0 : index
    %c0_10 = arith.constant 0 : index
    %13 = vector.load %arg5[%c0_9, %c0_10] : memref<256x8xbf16, #tpu.memory_space<vmem>>, vector<256x8xbf16>
    %cst_11 = arith.constant dense<0.000000e+00> : vector<16x8xf32>
    %14 = tpu.matmul %12, %13, %cst_11 {dimension_numbers = #tpu.dot_dimension_numbers<[1], [0], [0], [1], [0, 0, 1, 1], [], []>} : vector<16x256xbf16>, vector<256x8xbf16>, vector<16x8xf32> -> vector<16x8xf32>
    %15 = arith.addf %11, %14 : vector<16x8xf32>
    %c0_12 = arith.constant 0 : index
    %c0_13 = arith.constant 0 : index
    %16 = vector.load %arg8[%c0_12, %c0_13] : memref<16x8xf32, #tpu.memory_space<vmem>>, vector<16x8xf32>
    tpu.vector_store %arg8[%c0_12, %c0_13], %15 {strides = array<i32>} : memref<16x8xf32, #tpu.memory_space<vmem>>, vector<16x8xf32>,
    %c3_i32 = arith.constant 3 : i32
    %17 = arith.cmpi eq, %arg1, %c3_i32 : i32
    %18 = arith.extui %17 : i1 to i32
    %c0_i32_14 = arith.constant 0 : i32
    %19 = arith.cmpi ne, %18, %c0_i32_14 : i32
    scf.if %19 {
      %c0_15 = arith.constant 0 : index
      %c0_16 = arith.constant 0 : index
      %20 = vector.load %arg8[%c0_15, %c0_16] : memref<16x8xf32, #tpu.memory_space<vmem>>, vector<16x8xf32>
      %c0_17 = arith.constant 0 : index
      %c0_18 = arith.constant 0 : index
      %21 = vector.load %arg6[%c0_17, %c0_18] : memref<1x8xf32, #tpu.memory_space<vmem>>, vector<1x8xf32>
      %22 = vector.broadcast %21 : vector<1x8xf32> to vector<16x8xf32>
      %23 = arith.addf %20, %22 : vector<16x8xf32>
      %24 = tpu.iota {dimensions = array<i32: 1>} : vector<16x8xi32>
      %c7_i32 = arith.constant 7 : i32
      %25 = vector.broadcast %c7_i32 : i32 to vector<16x8xi32>
      %26 = arith.cmpi slt, %24, %25 : vector<16x8xi32>
      %cst_19 = arith.constant 0.000000e+00 : f32
      %27 = vector.broadcast %cst_19 : f32 to vector<16x8xf32>
      %28 = arith.select %26, %23, %27 : vector<16x8xi1>, vector<16x8xf32>
      %cst_20 = arith.constant dense<0.000000e+00> : vector<16xf32>
      %29 = vector.multi_reduction <add>, %28, %cst_20 [1] : vector<16x8xf32> to vector<16xf32>
      %30 = vector.shape_cast %29 : vector<16xf32> to vector<16x1xf32>
      %cst_21 = arith.constant 7.000000e+00 : f32
      %31 = vector.broadcast %cst_21 : f32 to vector<16x1xf32>
      %32 = arith.divf %30, %31 : vector<16x1xf32>
      %c7_i32_22 = arith.constant 7 : i32
      %33 = vector.broadcast %c7_i32_22 : i32 to vector<16x8xi32>
      %34 = arith.cmpi eq, %24, %33 : vector<16x8xi32>
      %cst_23 = arith.constant 0.000000e+00 : f32
      %35 = vector.broadcast %cst_23 : f32 to vector<16x8xf32>
      %36 = arith.select %34, %23, %35 : vector<16x8xi1>, vector<16x8xf32>
      %cst_24 = arith.constant dense<0.000000e+00> : vector<16xf32>
      %37 = vector.multi_reduction <add>, %36, %cst_24 [1] : vector<16x8xf32> to vector<16xf32>
      %38 = vector.shape_cast %37 : vector<16xf32> to vector<16x1xf32>
      %c7_i32_25 = arith.constant 7 : i32
      %39 = vector.broadcast %c7_i32_25 : i32 to vector<16x8xi32>
      %40 = arith.cmpi slt, %24, %39 : vector<16x8xi32>
      %41 = vector.broadcast %38 : vector<16x1xf32> to vector<16x8xf32>
      %42 = arith.addf %41, %23 : vector<16x8xf32>
      %43 = vector.broadcast %32 : vector<16x1xf32> to vector<16x8xf32>
      %44 = arith.subf %42, %43 : vector<16x8xf32>
      %cst_26 = arith.constant 0.000000e+00 : f32
      %45 = vector.broadcast %cst_26 : f32 to vector<16x8xf32>
      %46 = arith.select %40, %44, %45 : vector<16x8xi1>, vector<16x8xf32>
      %c0_27 = arith.constant 0 : index
      %c0_28 = arith.constant 0 : index
      %47 = vector.load %arg7[%c0_27, %c0_28] : memref<16x8xf32, #tpu.memory_space<vmem>>, vector<16x8xf32>
      tpu.vector_store %arg7[%c0_27, %c0_28], %46 {strides = array<i32>} : memref<16x8xf32, #tpu.memory_space<vmem>>, vector<16x8xf32>,
    } else {
    }
    return
  }
  func.func @transform_0(%arg0: i32, %arg1: i32) -> (i32, i32) {
    %c0_i32 = arith.constant 0 : i32
    %c0_i32_0 = arith.constant 0 : i32
    return %arg0, %c0_i32 : i32, i32
  }
  func.func @transform_1(%arg0: i32, %arg1: i32) -> (i32, i32) {
    %c0_i32 = arith.constant 0 : i32
    %c0_i32_0 = arith.constant 0 : i32
    return %c0_i32, %arg1 : i32, i32
  }
  func.func @transform_2(%arg0: i32, %arg1: i32) -> (i32, i32) {
    %c0_i32 = arith.constant 0 : i32
    %c0_i32_0 = arith.constant 0 : i32
    return %c0_i32, %arg1 : i32, i32
  }
  func.func @transform_3(%arg0: i32, %arg1: i32) -> (i32, i32) {
    %c0_i32 = arith.constant 0 : i32
    %c0_i32_0 = arith.constant 0 : i32
    return %arg1, %c0_i32 : i32, i32
  }
  func.func @transform_4(%arg0: i32, %arg1: i32) -> (i32, i32) {
    %c0_i32 = arith.constant 0 : i32
    %c0_i32_0 = arith.constant 0 : i32
    %c0_i32_1 = arith.constant 0 : i32
    return %c0_i32, %c0_i32_0 : i32, i32
  }
  func.func @transform_5(%arg0: i32, %arg1: i32) -> (i32, i32) {
    %c0_i32 = arith.constant 0 : i32
    %c0_i32_0 = arith.constant 0 : i32
    return %arg0, %c0_i32 : i32, i32
  }
}

</mosaic_0001>

<bundles_post_ra>
// kernel: dqn_forward.4
= control target key start
LH: loop header
LB: loop body
LE: loop exit
PB: predicated region body
PF: predicated region fallthrough
CT: control target
= control target key end

     0   :  { %s834_s12 = smov 0   ;;  %s992_s0 = inlined_call_operand.vmem [shape: bf16[896,256], index: 0, kind: input, shape index: {}]   ;;  %s993_s1 = inlined_call_operand.vmem [shape: bf16[256,32], index: 1, kind: input, shape index: {}]   ;;  %s994_s2 = inlined_call_operand.vmem [shape: f32[1,32], index: 2, kind: input, shape index: {}]   ;;  %s995_s3 = inlined_call_operand.vmem [shape: bf16[896,32], index: 3, kind: output, shape index: {}]  }
   0x1 LB: > { %s608_s13 = sadd.s32 4294967295, %s812_s12   ;;  %p612_p0 = scmp.ge.s32.totalorder %s812_s12, 1  ;;  %s812_s12 = sphi %s834_s12, %s13_s12  }
   0x2   : > { %p139_p1 = scmp.lt.s32.totalorder %s812_s12, 8 }
   0x4   : > { %p140_p2 = pnand %p612_p0, %p139_p1 }
   0x5   : > { %s613_s26 = sshll.u32 (!%p140_p2), %s608_s13, 4 }
   0x6   : > { %143 = sbr.rel (%p140_p2) target bundleno = 240 (0xf0), region = 32  ;;  %p165_p3 = scmp.lt.s32.totalorder (!%p140_p2), %s613_s26, 111 }
   0xb   : > { %v772_v0 = vld [vmem:[%s993_s1 + $0x38] sm:$0xff]  ;;  %v771_v2 = vld [vmem:[%s993_s1 + $0x30] sm:$0xff]  ;;  %v770_v4 = vld [vmem:[%s993_s1 + $0x28] sm:$0xff]  ;;  %s997_s26 = smov (!%p165_p3, %s613_s26), 111  ;;  %vm535_vm0 = vcmask 257024  }
   0xc   : > { %v780_v1 = vld [vmem:[%s993_s1 + $0x78] sm:$0xff]  ;;  %405 = vmatpush.bf16.msra.mxu0 %v772_v0  ;;  %781 = vmatpush.bf16.msra.mxu2 %v772_v0  ;;  %v779_v3 = vld [vmem:[%s993_s1 + $0x70] sm:$0xff]  ;;  %v778_v5 = vld [vmem:[%s993_s1 + $0x68] sm:$0xff]  ;;  %s748_s13 = sshll.u32 %s997_s26, 3  ;;  %s617_s28 = sshll.u32 %s997_s26, 2 }
   0xd   : > { %454 = vmatpush.bf16.msra.mxu1 %v780_v1  ;;  %789 = vmatpush.bf16.msra.mxu3 %v780_v1  ;;  %v769_v6 = vld [vmem:[%s993_s1 + $0x20] sm:$0xff]  ;;  %v768_v8 = vld [vmem:[%s993_s1 + $0x18] sm:$0xff]  ;;  %v767_v10 = vld [vmem:[%s993_s1 + $0x10] sm:$0xff]  ;;  %s887_s18 = scalar_lea.vmem %s992_s0, %s748_s13  ;;  %s940_s4 = scalar_lea.vmem %s995_s3, %s617_s28 }
   0xe   : > { %v777_v7 = vld [vmem:[%s993_s1 + $0x60] sm:$0xff]  ;;  %v776_v9 = vld [vmem:[%s993_s1 + $0x58] sm:$0xff]  ;;  %v775_v11 = vld [vmem:[%s993_s1 + $0x50] sm:$0xff] }
   0xf   : > { %v766_v12 = vld [vmem:[%s993_s1 + $0x8] sm:$0xff]  ;;  %v765_v14 = vld [vmem:[%s993_s1] sm:$0xff]  ;;  %v628_v28 = vld [vmem:[%s887_s18 + $0x10] sm:$0xf] }
  0x10   : > { %406 = vmatpush.bf16.msra.mxu0 %v771_v2  ;;  %782 = vmatpush.bf16.msra.mxu2 %v771_v2  ;;  %v774_v13 = vld [vmem:[%s993_s1 + $0x48] sm:$0xff]  ;;  %v773_v15 = vld [vmem:[%s993_s1 + $0x40] sm:$0xff]  ;;  %v752_v29 = vld [vmem:[%s887_s18 + $0x14] sm:$0xf0] }
  0x11   : > { %455 = vmatpush.bf16.msra.mxu1 %v779_v3  ;;  %790 = vmatpush.bf16.msra.mxu3 %v779_v3  ;;  %v620_v16 = vld [vmem:[%s887_s18] sm:$0xf]  ;;  %v750_v17 = vld [vmem:[%s887_s18 + $0x4] sm:$0xf0]  ;;  %v749_v20 = vld [vmem:[%s887_s18 + $0x4] sm:$0xf]  ;;  %v629_v36 = vor.u32 %v752_v29, %v628_v28 }
  0x12   : > { %v652_v18 = vld [vmem:[%s887_s18 + $0x40] sm:$0xf]  ;;  %v758_v19 = vld [vmem:[%s887_s18 + $0x44] sm:$0xf0]  ;;  %v622_v21 = vld [vmem:[%s887_s18 + $0x8] sm:$0xf0]  ;;  %v621_v24 = vor.u32 %v750_v17, %v620_v16 }
  0x13   : > { %v757_v22 = vld [vmem:[%s887_s18 + $0x44] sm:$0xf]  ;;  %v654_v23 = vld [vmem:[%s887_s18 + $0x48] sm:$0xf0]  ;;  %v653_v25 = vor.u32 %v758_v19, %v652_v18  ;;  %v625_v26 = vor.u32 %v749_v20, %v622_v21  ;;  %v660_v30 = vld [vmem:[%s887_s18 + $0x50] sm:$0xf] }
  0x14   : > { %407 = vmatpush.bf16.msra.mxu0 %v770_v4  ;;  %783 = vmatpush.bf16.msra.mxu2 %v770_v4  ;;  %v657_v27 = vor.u32 %v757_v22, %v654_v23  ;;  %v760_v31 = vld [vmem:[%s887_s18 + $0x54] sm:$0xf0]  ;;  %v751_v32 = vld [vmem:[%s887_s18 + $0x14] sm:$0xf]  ;;  %v630_v33 = vld [vmem:[%s887_s18 + $0x18] sm:$0xf0] }
  0x15   : > { %456 = vmatpush.bf16.msra.mxu1 %v778_v5  ;;  %791 = vmatpush.bf16.msra.mxu3 %v778_v5  ;;  %v759_v34 = vld [vmem:[%s887_s18 + $0x54] sm:$0xf]  ;;  %v662_v35 = vld [vmem:[%s887_s18 + $0x58] sm:$0xf0]  ;;  %v661_v37 = vor.u32 %v760_v31, %v660_v30  ;;  %v633_v38 = vor.u32 %v751_v32, %v630_v33  ;;  %v636_v40 = vld [vmem:[%s887_s18 + $0x20] sm:$0xf] }
  0x16   : > { %v665_v39 = vor.u32 %v759_v34, %v662_v35  ;;  %v754_v41 = vld [vmem:[%s887_s18 + $0x24] sm:$0xf0]  ;;  %v668_v42 = vld [vmem:[%s887_s18 + $0x60] sm:$0xf]  ;;  %v753_v44 = vld [vmem:[%s887_s18 + $0x24] sm:$0xf] }
  0x17   : > { %v762_v43 = vld [vmem:[%s887_s18 + $0x64] sm:$0xf0]  ;;  %v638_v45 = vld [vmem:[%s887_s18 + $0x28] sm:$0xf0]  ;;  %v761_v46 = vld [vmem:[%s887_s18 + $0x64] sm:$0xf]  ;;  %v637_v48 = vor.u32 %v754_v41, %v636_v40 }
  0x18   : > { %408 = vmatpush.bf16.msra.mxu0 %v769_v6  ;;  %784 = vmatpush.bf16.msra.mxu2 %v769_v6  ;;  %v670_v47 = vld [vmem:[%s887_s18 + $0x68] sm:$0xf0]  ;;  %v669_v49 = vor.u32 %v762_v43, %v668_v42  ;;  %v641_v50 = vor.u32 %v753_v44, %v638_v45  ;;  %v644_v52 = vld [vmem:[%s887_s18 + $0x30] sm:$0xf]  ;;  %v756_v53 = vld [vmem:[%s887_s18 + $0x34] sm:$0xf0] }
  0x19   : > { %457 = vmatpush.bf16.msra.mxu1 %v777_v7  ;;  %792 = vmatpush.bf16.msra.mxu3 %v777_v7  ;;  %v673_v51 = vor.u32 %v761_v46, %v670_v47  ;;  %v676_v54 = vld [vmem:[%s887_s18 + $0x70] sm:$0xf]  ;;  %v764_v55 = vld [vmem:[%s887_s18 + $0x74] sm:$0xf0]  ;;  %v755_v56 = vld [vmem:[%s887_s18 + $0x34] sm:$0xf]  ;;  %v645_v60 = vor.u32 %v756_v53, %v644_v52 }
  0x1a   : > { %v646_v57 = vld [vmem:[%s887_s18 + $0x38] sm:$0xf0]  ;;  %v763_v58 = vld [vmem:[%s887_s18 + $0x74] sm:$0xf]  ;;  %v677_v61 = vor.u32 %v764_v55, %v676_v54  ;;  %v933_v0 = vld [vmem:[%s994_s2] ss:$0 sm:$0xff] }
  0x1b   : > { %v678_v59 = vld [vmem:[%s887_s18 + $0x78] sm:$0xf0]  ;;  %v649_v62 = vor.u32 %v755_v56, %v646_v57 }
  0x1c   : > { %409 = vmatpush.bf16.msra.mxu0 %v768_v8  ;;  %785 = vmatpush.bf16.msra.mxu2 %v768_v8  ;;  %v681_v63 = vor.u32 %v763_v58, %v678_v59 }
  0x1d   : > { %458 = vmatpush.bf16.msra.mxu1 %v776_v9  ;;  %793 = vmatpush.bf16.msra.mxu3 %v776_v9 }
  0x20   : > { %410 = vmatpush.bf16.msra.mxu0 %v767_v10  ;;  %786 = vmatpush.bf16.msra.mxu2 %v767_v10 }
  0x21   : > { %459 = vmatpush.bf16.msra.mxu1 %v775_v11  ;;  %794 = vmatpush.bf16.msra.mxu3 %v775_v11 }
  0x24   : > { %411 = vmatpush.bf16.msra.mxu0 %v766_v12  ;;  %787 = vmatpush.bf16.msra.mxu2 %v766_v12 }
  0x25   : > { %460 = vmatpush.bf16.msra.mxu1 %v774_v13  ;;  %795 = vmatpush.bf16.msra.mxu3 %v774_v13 }
  0x28   : > { %412 = vmatpush.bf16.msra.mxu0 %v765_v14  ;;  %788 = vmatpush.bf16.msra.mxu2 %v765_v14 }
  0x29   : > { %461 = vmatpush.bf16.msra.mxu1 %v773_v15  ;;  %796 = vmatpush.bf16.msra.mxu3 %v773_v15 }
  0x2b   : > { %413 = vmatmul.bf16.vlgmr.msra.gmra.mxu0 %v621_v24  ;;  %433 = vmatmul.bf16.vlgmr.msra.gmra.mxu2 %v653_v25 }
  0x2c   : > { %462 = vmatmul.bf16.vlgmr.msra.gmra.mxu1 %v625_v26  ;;  %482 = vmatmul.bf16.vlgmr.msra.gmra.mxu3 %v657_v27 }
  0x3b   : > { %418 = vmatmul.bf16.gmra.mxu0 %v629_v36  ;;  %438 = vmatmul.bf16.gmra.mxu2 %v661_v37 }
  0x3c   : > { %467 = vmatmul.bf16.gmra.mxu1 %v633_v38  ;;  %487 = vmatmul.bf16.gmra.mxu3 %v665_v39 }
  0x4b   : > { %423 = vmatmul.bf16.gmra.mxu0 %v637_v48  ;;  %443 = vmatmul.bf16.gmra.mxu2 %v669_v49 }
  0x4c   : > { %472 = vmatmul.bf16.gmra.mxu1 %v641_v50  ;;  %492 = vmatmul.bf16.gmra.mxu3 %v673_v51 }
  0x5b   : > { %428 = vmatmul.bf16.gmra.mxu0 %v645_v60  ;;  %448 = vmatmul.bf16.gmra.mxu2 %v677_v61 }
  0x5c   : > { %477 = vmatmul.bf16.gmra.mxu1 %v649_v62  ;;  %497 = vmatmul.bf16.gmra.mxu3 %v681_v63 }
  0xa8   : > { %v414_v1 = vpop.f32.mrf.mxu0 }
  0xa9   : > { %v415_v2 = vadd.f32 %v933_v0, %v414_v1  ;;  %v463_v3 = vpop.f32.mrf.mxu1 }
  0xab   : > { %v464_v4 = vadd.f32 %v463_v3, %v415_v2 }
  0xad   : > { %v503_v5 = vmax.f32 %v464_v4, 0.0 }
  0xae   : > { %v434_v6 = vpop.f32.mrf.mxu2 }
  0xaf   : > { %v519_v7 = vpack.c.bf16 %v503_v5, %v503_v5  ;;  %v435_v8 = vadd.f32 %v933_v0, %v434_v6  ;;  %v483_v9 = vpop.f32.mrf.mxu3 }
  0xb0   : > { %v416_v10 = vpop.f32.mrf.mxu0 }
  0xb1   : > { %536 = vst.msk [vmem:[%s940_s4] sm:$0xf] %vm535_vm0, %v519_v7  ;;  %v484_v11 = vadd.f32 %v483_v9, %v435_v8  ;;  %v417_v12 = vadd.f32 %v933_v0, %v416_v10  ;;  %v465_v13 = vpop.f32.mrf.mxu1 }
  0xb3   : > { %v511_v14 = vmax.f32 %v484_v11, 0.0  ;;  %v466_v15 = vadd.f32 %v465_v13, %v417_v12 }
  0xb5   : > { %v527_v16 = vpack.c.bf16 %v511_v14, %v511_v14  ;;  %v504_v17 = vmax.f32 %v466_v15, 0.0 }
  0xb6   : > { %v436_v18 = vpop.f32.mrf.mxu2 }
  0xb7   : > { %544 = vst.msk [vmem:[%s940_s4 + $0x20] sm:$0xf] %vm535_vm0, %v527_v16  ;;  %v520_v19 = vpack.c.bf16 %v504_v17, %v504_v17  ;;  %v437_v20 = vadd.f32 %v933_v0, %v436_v18  ;;  %v485_v21 = vpop.f32.mrf.mxu3 }
  0xb8   : > { %v419_v22 = vpop.f32.mrf.mxu0 }
  0xb9   : > { %537 = vst.msk [vmem:[%s940_s4 + $0x4] sm:$0xf] %vm535_vm0, %v520_v19  ;;  %v486_v23 = vadd.f32 %v485_v21, %v437_v20  ;;  %v420_v24 = vadd.f32 %v933_v0, %v419_v22  ;;  %v468_v25 = vpop.f32.mrf.mxu1 }
  0xbb   : > { %v512_v26 = vmax.f32 %v486_v23, 0.0  ;;  %v469_v27 = vadd.f32 %v468_v25, %v420_v24 }
  0xbd   : > { %v528_v28 = vpack.c.bf16 %v512_v26, %v512_v26  ;;  %v505_v29 = vmax.f32 %v469_v27, 0.0 }
  0xbe   : > { %v439_v30 = vpop.f32.mrf.mxu2 }
  0xbf   : > { %545 = vst.msk [vmem:[%s940_s4 + $0x24] sm:$0xf] %vm535_vm0, %v528_v28  ;;  %v521_v31 = vpack.c.bf16 %v505_v29, %v505_v29  ;;  %v440_v32 = vadd.f32 %v933_v0, %v439_v30  ;;  %v488_v33 = vpop.f32.mrf.mxu3 }
  0xc0   : > { %v421_v34 = vpop.f32.mrf.mxu0 }
  0xc1   : > { %538 = vst.msk [vmem:[%s940_s4 + $0x8] sm:$0xf] %vm535_vm0, %v521_v31  ;;  %v489_v35 = vadd.f32 %v488_v33, %v440_v32  ;;  %v422_v36 = vadd.f32 %v933_v0, %v421_v34  ;;  %v470_v37 = vpop.f32.mrf.mxu1 }
  0xc3   : > { %v513_v38 = vmax.f32 %v489_v35, 0.0  ;;  %v471_v39 = vadd.f32 %v470_v37, %v422_v36 }
  0xc5   : > { %v529_v40 = vpack.c.bf16 %v513_v38, %v513_v38  ;;  %v506_v41 = vmax.f32 %v471_v39, 0.0 }
  0xc6   : > { %v441_v42 = vpop.f32.mrf.mxu2 }
  0xc7   : > { %546 = vst.msk [vmem:[%s940_s4 + $0x28] sm:$0xf] %vm535_vm0, %v529_v40  ;;  %v522_v43 = vpack.c.bf16 %v506_v41, %v506_v41  ;;  %v442_v44 = vadd.f32 %v933_v0, %v441_v42  ;;  %v490_v45 = vpop.f32.mrf.mxu3 }
  0xc8   : > { %v424_v46 = vpop.f32.mrf.mxu0 }
  0xc9   : > { %539 = vst.msk [vmem:[%s940_s4 + $0xc] sm:$0xf] %vm535_vm0, %v522_v43  ;;  %v491_v47 = vadd.f32 %v490_v45, %v442_v44  ;;  %v425_v48 = vadd.f32 %v933_v0, %v424_v46  ;;  %v473_v49 = vpop.f32.mrf.mxu1 }
  0xcb   : > { %v514_v50 = vmax.f32 %v491_v47, 0.0  ;;  %v474_v51 = vadd.f32 %v473_v49, %v425_v48 }
  0xcd   : > { %v530_v52 = vpack.c.bf16 %v514_v50, %v514_v50  ;;  %v507_v53 = vmax.f32 %v474_v51, 0.0 }
  0xce   : > { %v444_v54 = vpop.f32.mrf.mxu2 }
  0xcf   : > { %547 = vst.msk [vmem:[%s940_s4 + $0x2c] sm:$0xf] %vm535_vm0, %v530_v52  ;;  %v523_v55 = vpack.c.bf16 %v507_v53, %v507_v53  ;;  %v445_v56 = vadd.f32 %v933_v0, %v444_v54  ;;  %v493_v57 = vpop.f32.mrf.mxu3 }
  0xd0   : > { %v426_v58 = vpop.f32.mrf.mxu0 }
  0xd1   : > { %540 = vst.msk [vmem:[%s940_s4 + $0x10] sm:$0xf] %vm535_vm0, %v523_v55  ;;  %v494_v59 = vadd.f32 %v493_v57, %v445_v56  ;;  %v427_v60 = vadd.f32 %v933_v0, %v426_v58  ;;  %v475_v61 = vpop.f32.mrf.mxu1 }
  0xd3   : > { %v515_v62 = vmax.f32 %v494_v59, 0.0  ;;  %v476_v63 = vadd.f32 %v475_v61, %v427_v60 }
  0xd5   : > { %v531_v1 = vpack.c.bf16 %v515_v62, %v515_v62  ;;  %v508_v2 = vmax.f32 %v476_v63, 0.0 }
  0xd6   : > { %v446_v3 = vpop.f32.mrf.mxu2 }
  0xd7   : > { %548 = vst.msk [vmem:[%s940_s4 + $0x30] sm:$0xf] %vm535_vm0, %v531_v1  ;;  %v524_v4 = vpack.c.bf16 %v508_v2, %v508_v2  ;;  %v447_v5 = vadd.f32 %v933_v0, %v446_v3  ;;  %v495_v6 = vpop.f32.mrf.mxu3 }
  0xd8   : > { %v429_v7 = vpop.f32.mrf.mxu0 }
  0xd9   : > { %541 = vst.msk [vmem:[%s940_s4 + $0x14] sm:$0xf] %vm535_vm0, %v524_v4  ;;  %v496_v8 = vadd.f32 %v495_v6, %v447_v5  ;;  %v430_v9 = vadd.f32 %v933_v0, %v429_v7  ;;  %v478_v10 = vpop.f32.mrf.mxu1 }
  0xdb   : > { %v516_v11 = vmax.f32 %v496_v8, 0.0  ;;  %v479_v12 = vadd.f32 %v478_v10, %v430_v9 }
  0xdd   : > { %v532_v13 = vpack.c.bf16 %v516_v11, %v516_v11  ;;  %v509_v14 = vmax.f32 %v479_v12, 0.0 }
  0xde   : > { %v449_v15 = vpop.f32.mrf.mxu2 }
  0xdf   : > { %549 = vst.msk [vmem:[%s940_s4 + $0x34] sm:$0xf] %vm535_vm0, %v532_v13  ;;  %v525_v16 = vpack.c.bf16 %v509_v14, %v509_v14  ;;  %v450_v17 = vadd.f32 %v933_v0, %v449_v15  ;;  %v498_v18 = vpop.f32.mrf.mxu3 }
  0xe0   : > { %v431_v19 = vpop.f32.mrf.mxu0 }
  0xe1   : > { %542 = vst.msk [vmem:[%s940_s4 + $0x18] sm:$0xf] %vm535_vm0, %v525_v16  ;;  %v499_v20 = vadd.f32 %v498_v18, %v450_v17  ;;  %v432_v21 = vadd.f32 %v933_v0, %v431_v19  ;;  %v480_v22 = vpop.f32.mrf.mxu1 }
  0xe3   : > { %v517_v23 = vmax.f32 %v499_v20, 0.0  ;;  %v481_v24 = vadd.f32 %v480_v22, %v432_v21 }
  0xe5   : > { %v533_v25 = vpack.c.bf16 %v517_v23, %v517_v23  ;;  %v510_v26 = vmax.f32 %v481_v24, 0.0 }
  0xe6   : > { %v451_v27 = vpop.f32.mrf.mxu2 }
  0xe7   : > { %550 = vst.msk [vmem:[%s940_s4 + $0x38] sm:$0xf] %vm535_vm0, %v533_v25  ;;  %v526_v28 = vpack.c.bf16 %v510_v26, %v510_v26  ;;  %v452_v29 = vadd.f32 %v933_v0, %v451_v27  ;;  %v500_v30 = vpop.f32.mrf.mxu3 }
  0xe9   : > { %543 = vst.msk [vmem:[%s940_s4 + $0x1c] sm:$0xf] %vm535_vm0, %v526_v28  ;;  %v501_v31 = vadd.f32 %v500_v30, %v452_v29 }
  0xeb   : > { %v518_v32 = vmax.f32 %v501_v31, 0.0 }
  0xed   : > { %v534_v33 = vpack.c.bf16 %v518_v32, %v518_v32 }
  0xef   : > { %551 = vst.msk [vmem:[%s940_s4 + $0x3c] sm:$0xf] %vm535_vm0, %v534_v33 }
  0xf0 PF: > { %s13_s12 = sadd.s32 1, %s812_s12  }
  0xf1   : > { %p10_p4 = scmp.ge.s32.totalorder %s13_s12, 9  }
  0xf3   :  { %12 = sbr.rel (!%p10_p4) target bundleno = 1 (0x1), region = 62 }

// kernel: dqn_forward.5
= control target key start
LH: loop header
LB: loop body
LE: loop exit
PB: predicated region body
PF: predicated region fallthrough
CT: control target
= control target key end

     0   :  { %s1300_s12 = smov 0   ;;  %s1538_s0 = inlined_call_operand.vmem [shape: bf16[256,512], index: 0, kind: input, shape index: {}]   ;;  %s1539_s1 = inlined_call_operand.vmem [shape: bf16[512,64], index: 1, kind: input, shape index: {}]   ;;  %s1540_s2 = inlined_call_operand.vmem [shape: f32[1,64], index: 2, kind: input, shape index: {}]   ;;  %s1541_s3 = inlined_call_operand.vmem [shape: bf16[256,64], index: 3, kind: output, shape index: {}]  }
   0x1 LB: > { %s930_s13 = sadd.s32 4294967295, %s1278_s12   ;;  %p934_p0 = scmp.ge.s32.totalorder %s1278_s12, 1  ;;  %s1278_s12 = sphi %s1300_s12, %s13_s12  }
   0x2   : > { %p139_p1 = scmp.lt.s32.totalorder %s1278_s12, 3 }
   0x4   : > { %p140_p2 = pnand %p934_p0, %p139_p1 }
   0x5   : > { %s935_s11 = sshll.u32 (!%p140_p2), %s930_s13, 4 }
   0x6   : > { %143 = sbr.rel (%p140_p2) target bundleno = 306 (0x132), region = 32  ;;  %p165_p3 = scmp.lt.s32.totalorder (!%p140_p2), %s935_s11, 31 }
   0xb   : > { %v1238_v0 = vld [vmem:[%s1539_s1 + $0x38] sm:$0xff]  ;;  %v1237_v4 = vld [vmem:[%s1539_s1 + $0x30] sm:$0xff]  ;;  %v1236_v8 = vld [vmem:[%s1539_s1 + $0x28] sm:$0xff]  ;;  %s1543_s11 = smov (!%p165_p3, %s935_s11), 31  ;;  %vm857_vm0 = vcmask 519168  }
   0xc   : > { %v1246_v1 = vld [vmem:[%s1539_s1 + $0x78] sm:$0xff]  ;;  %629 = vmatpush.bf16.msra.mxu0 %v1238_v0  ;;  %v1245_v5 = vld [vmem:[%s1539_s1 + $0x70] sm:$0xff]  ;;  %v1244_v9 = vld [vmem:[%s1539_s1 + $0x68] sm:$0xff]  ;;  %s1198_s10 = sshll.u32 %s1543_s11, 4  ;;  %s939_s7 = sshll.u32 %s1543_s11, 2 }
   0xd   : > { %v1254_v2 = vld [vmem:[%s1539_s1 + $0xb8] sm:$0xff]  ;;  %678 = vmatpush.bf16.msra.mxu1 %v1246_v1  ;;  %v1253_v6 = vld [vmem:[%s1539_s1 + $0xb0] sm:$0xff]  ;;  %v1252_v10 = vld [vmem:[%s1539_s1 + $0xa8] sm:$0xff]  ;;  %s1392_s20 = scalar_lea.vmem %s1538_s0, %s1198_s10  ;;  %s1487_s10 = scalar_lea.vmem %s1541_s3, %s939_s7 }
   0xe   : > { %v1262_v3 = vld [vmem:[%s1539_s1 + $0xf8] sm:$0xff]  ;;  %727 = vmatpush.bf16.msra.mxu2 %v1254_v2  ;;  %v1261_v7 = vld [vmem:[%s1539_s1 + $0xf0] sm:$0xff]  ;;  %v1260_v11 = vld [vmem:[%s1539_s1 + $0xe8] sm:$0xff] }
   0xf   : > { %776 = vmatpush.bf16.msra.mxu3 %v1262_v3  ;;  %v1235_v12 = vld [vmem:[%s1539_s1 + $0x20] sm:$0xff]  ;;  %v1234_v16 = vld [vmem:[%s1539_s1 + $0x18] sm:$0xff]  ;;  %v1233_v20 = vld [vmem:[%s1539_s1 + $0x10] sm:$0xff] }
  0x10   : > { %630 = vmatpush.bf16.msra.mxu0 %v1237_v4  ;;  %v1243_v13 = vld [vmem:[%s1539_s1 + $0x60] sm:$0xff]  ;;  %v1242_v17 = vld [vmem:[%s1539_s1 + $0x58] sm:$0xff]  ;;  %v1241_v21 = vld [vmem:[%s1539_s1 + $0x50] sm:$0xff] }
  0x11   : > { %679 = vmatpush.bf16.msra.mxu1 %v1245_v5  ;;  %v1251_v14 = vld [vmem:[%s1539_s1 + $0xa0] sm:$0xff]  ;;  %v1250_v18 = vld [vmem:[%s1539_s1 + $0x98] sm:$0xff]  ;;  %v1249_v22 = vld [vmem:[%s1539_s1 + $0x90] sm:$0xff] }
  0x12   : > { %728 = vmatpush.bf16.msra.mxu2 %v1253_v6  ;;  %v1259_v15 = vld [vmem:[%s1539_s1 + $0xe0] sm:$0xff]  ;;  %v1258_v19 = vld [vmem:[%s1539_s1 + $0xd8] sm:$0xff]  ;;  %v1257_v23 = vld [vmem:[%s1539_s1 + $0xd0] sm:$0xff] }
  0x13   : > { %777 = vmatpush.bf16.msra.mxu3 %v1261_v7  ;;  %v1232_v24 = vld [vmem:[%s1539_s1 + $0x8] sm:$0xff]  ;;  %v1231_v28 = vld [vmem:[%s1539_s1] sm:$0xff]  ;;  %v1201_v33 = vld [vmem:[%s1392_s20 + $0xc] sm:$0xf0] }
  0x14   : > { %631 = vmatpush.bf16.msra.mxu0 %v1236_v8  ;;  %v1240_v25 = vld [vmem:[%s1539_s1 + $0x48] sm:$0xff]  ;;  %v1239_v29 = vld [vmem:[%s1539_s1 + $0x40] sm:$0xff]  ;;  %v944_v35 = vld [vmem:[%s1392_s20 + $0x10] sm:$0xf0] }
  0x15   : > { %680 = vmatpush.bf16.msra.mxu1 %v1244_v9  ;;  %v1248_v26 = vld [vmem:[%s1539_s1 + $0x88] sm:$0xff]  ;;  %v1247_v30 = vld [vmem:[%s1539_s1 + $0x80] sm:$0xff]  ;;  %v1202_v37 = vld [vmem:[%s1392_s20 + $0x14] sm:$0xf0] }
  0x16   : > { %729 = vmatpush.bf16.msra.mxu2 %v1252_v10  ;;  %v1256_v27 = vld [vmem:[%s1539_s1 + $0xc8] sm:$0xff]  ;;  %v1255_v31 = vld [vmem:[%s1539_s1 + $0xc0] sm:$0xff]  ;;  %v952_v39 = vld [vmem:[%s1392_s20 + $0x18] sm:$0xf0] }
  0x17   : > { %778 = vmatpush.bf16.msra.mxu3 %v1260_v11  ;;  %v942_v32 = vld [vmem:[%s1392_s20] sm:$0xf]  ;;  %v1199_v34 = vld [vmem:[%s1392_s20 + $0x4] sm:$0xf]  ;;  %v950_v36 = vld [vmem:[%s1392_s20 + $0x8] sm:$0xf] }
  0x18   : > { %632 = vmatpush.bf16.msra.mxu0 %v1235_v12  ;;  %v1200_v38 = vld [vmem:[%s1392_s20 + $0xc] sm:$0xf]  ;;  %v943_v40 = vor.u32 %v1201_v33, %v942_v32  ;;  %v947_v41 = vor.u32 %v1199_v34, %v944_v35  ;;  %v951_v42 = vor.u32 %v1202_v37, %v950_v36  ;;  %v958_v44 = vld [vmem:[%s1392_s20 + $0x20] sm:$0xf]  ;;  %v1205_v45 = vld [vmem:[%s1392_s20 + $0x2c] sm:$0xf0] }
  0x19   : > { %681 = vmatpush.bf16.msra.mxu1 %v1243_v13  ;;  %v955_v43 = vor.u32 %v1200_v38, %v952_v39  ;;  %v1203_v46 = vld [vmem:[%s1392_s20 + $0x24] sm:$0xf]  ;;  %v960_v47 = vld [vmem:[%s1392_s20 + $0x30] sm:$0xf0]  ;;  %v966_v48 = vld [vmem:[%s1392_s20 + $0x28] sm:$0xf]  ;;  %v959_v52 = vor.u32 %v1205_v45, %v958_v44 }
  0x1a   : > { %730 = vmatpush.bf16.msra.mxu2 %v1251_v14  ;;  %v1206_v49 = vld [vmem:[%s1392_s20 + $0x34] sm:$0xf0]  ;;  %v1204_v50 = vld [vmem:[%s1392_s20 + $0x2c] sm:$0xf]  ;;  %v968_v51 = vld [vmem:[%s1392_s20 + $0x38] sm:$0xf0]  ;;  %v963_v53 = vor.u32 %v1203_v46, %v960_v47 }
  0x1b   : > { %779 = vmatpush.bf16.msra.mxu3 %v1259_v15  ;;  %v967_v54 = vor.u32 %v1206_v49, %v966_v48  ;;  %v971_v55 = vor.u32 %v1204_v50, %v968_v51  ;;  %v974_v56 = vld [vmem:[%s1392_s20 + $0x40] sm:$0xf]  ;;  %v1209_v57 = vld [vmem:[%s1392_s20 + $0x4c] sm:$0xf0]  ;;  %v1207_v58 = vld [vmem:[%s1392_s20 + $0x44] sm:$0xf] }
  0x1c   : > { %633 = vmatpush.bf16.msra.mxu0 %v1234_v16  ;;  %v976_v59 = vld [vmem:[%s1392_s20 + $0x50] sm:$0xf0]  ;;  %v982_v60 = vld [vmem:[%s1392_s20 + $0x48] sm:$0xf]  ;;  %v1210_v61 = vld [vmem:[%s1392_s20 + $0x54] sm:$0xf0]  ;;  %v975_v0 = vor.u32 %v1209_v57, %v974_v56 }
  0x1d   : > { %682 = vmatpush.bf16.msra.mxu1 %v1242_v17  ;;  %v1208_v62 = vld [vmem:[%s1392_s20 + $0x4c] sm:$0xf]  ;;  %v984_v63 = vld [vmem:[%s1392_s20 + $0x58] sm:$0xf0]  ;;  %v979_v1 = vor.u32 %v1207_v58, %v976_v59  ;;  %v983_v2 = vor.u32 %v1210_v61, %v982_v60  ;;  %v990_v4 = vld [vmem:[%s1392_s20 + $0x60] sm:$0xf] }
  0x1e   : > { %731 = vmatpush.bf16.msra.mxu2 %v1250_v18  ;;  %v987_v3 = vor.u32 %v1208_v62, %v984_v63  ;;  %v1213_v5 = vld [vmem:[%s1392_s20 + $0x6c] sm:$0xf0]  ;;  %v1211_v6 = vld [vmem:[%s1392_s20 + $0x64] sm:$0xf]  ;;  %v992_v7 = vld [vmem:[%s1392_s20 + $0x70] sm:$0xf0] }
  0x1f   : > { %780 = vmatpush.bf16.msra.mxu3 %v1258_v19  ;;  %v998_v8 = vld [vmem:[%s1392_s20 + $0x68] sm:$0xf]  ;;  %v1214_v9 = vld [vmem:[%s1392_s20 + $0x74] sm:$0xf0]  ;;  %v1212_v10 = vld [vmem:[%s1392_s20 + $0x6c] sm:$0xf]  ;;  %v991_v12 = vor.u32 %v1213_v5, %v990_v4  ;;  %v995_v13 = vor.u32 %v1211_v6, %v992_v7 }
  0x20   : > { %634 = vmatpush.bf16.msra.mxu0 %v1233_v20  ;;  %v1000_v11 = vld [vmem:[%s1392_s20 + $0x78] sm:$0xf0]  ;;  %v999_v14 = vor.u32 %v1214_v9, %v998_v8  ;;  %v1006_v16 = vld [vmem:[%s1392_s20 + $0x80] sm:$0xf]  ;;  %v1217_v17 = vld [vmem:[%s1392_s20 + $0x8c] sm:$0xf0] }
  0x21   : > { %683 = vmatpush.bf16.msra.mxu1 %v1241_v21  ;;  %v1003_v15 = vor.u32 %v1212_v10, %v1000_v11  ;;  %v1215_v18 = vld [vmem:[%s1392_s20 + $0x84] sm:$0xf]  ;;  %v1008_v19 = vld [vmem:[%s1392_s20 + $0x90] sm:$0xf0]  ;;  %v1014_v20 = vld [vmem:[%s1392_s20 + $0x88] sm:$0xf] }
  0x22   : > { %732 = vmatpush.bf16.msra.mxu2 %v1249_v22  ;;  %v1218_v21 = vld [vmem:[%s1392_s20 + $0x94] sm:$0xf0]  ;;  %v1216_v22 = vld [vmem:[%s1392_s20 + $0x8c] sm:$0xf]  ;;  %v1030_v32 = vld [vmem:[%s1392_s20 + $0xa8] sm:$0xf] }
  0x23   : > { %781 = vmatpush.bf16.msra.mxu3 %v1257_v23  ;;  %v1016_v23 = vld [vmem:[%s1392_s20 + $0x98] sm:$0xf0]  ;;  %v1222_v33 = vld [vmem:[%s1392_s20 + $0xb4] sm:$0xf0]  ;;  %v1220_v34 = vld [vmem:[%s1392_s20 + $0xac] sm:$0xf] }
  0x24   : > { %635 = vmatpush.bf16.msra.mxu0 %v1232_v24  ;;  %v1007_v24 = vor.u32 %v1217_v17, %v1006_v16  ;;  %v1032_v35 = vld [vmem:[%s1392_s20 + $0xb8] sm:$0xf0]  ;;  %v1031_v38 = vor.u32 %v1222_v33, %v1030_v32  ;;  %v1046_v44 = vld [vmem:[%s1392_s20 + $0xc8] sm:$0xf]  ;;  %v1226_v45 = vld [vmem:[%s1392_s20 + $0xd4] sm:$0xf0] }
  0x25   : > { %684 = vmatpush.bf16.msra.mxu1 %v1240_v25  ;;  %v1011_v25 = vor.u32 %v1215_v18, %v1008_v19  ;;  %v1035_v39 = vor.u32 %v1220_v34, %v1032_v35  ;;  %v1224_v46 = vld [vmem:[%s1392_s20 + $0xcc] sm:$0xf]  ;;  %v1048_v47 = vld [vmem:[%s1392_s20 + $0xd8] sm:$0xf0]  ;;  %v1047_v50 = vor.u32 %v1226_v45, %v1046_v44  ;;  %v1062_v56 = vld [vmem:[%s1392_s20 + $0xe8] sm:$0xf] }
  0x26   : > { %733 = vmatpush.bf16.msra.mxu2 %v1248_v26  ;;  %v1015_v26 = vor.u32 %v1218_v21, %v1014_v20  ;;  %v1051_v51 = vor.u32 %v1224_v46, %v1048_v47  ;;  %v1230_v57 = vld [vmem:[%s1392_s20 + $0xf4] sm:$0xf0]  ;;  %v1228_v58 = vld [vmem:[%s1392_s20 + $0xec] sm:$0xf]  ;;  %v1064_v59 = vld [vmem:[%s1392_s20 + $0xf8] sm:$0xf0] }
  0x27   : > { %782 = vmatpush.bf16.msra.mxu3 %v1256_v27  ;;  %v1019_v27 = vor.u32 %v1216_v22, %v1016_v23  ;;  %v1063_v62 = vor.u32 %v1230_v57, %v1062_v56  ;;  %v1067_v63 = vor.u32 %v1228_v58, %v1064_v59 }
  0x28   : > { %636 = vmatpush.bf16.msra.mxu0 %v1231_v28  ;;  %v1022_v28 = vld [vmem:[%s1392_s20 + $0xa0] sm:$0xf] }
  0x29   : > { %685 = vmatpush.bf16.msra.mxu1 %v1239_v29  ;;  %v1221_v29 = vld [vmem:[%s1392_s20 + $0xac] sm:$0xf0] }
  0x2a   : > { %734 = vmatpush.bf16.msra.mxu2 %v1247_v30  ;;  %v1219_v30 = vld [vmem:[%s1392_s20 + $0xa4] sm:$0xf]  ;;  %v1023_v36 = vor.u32 %v1221_v29, %v1022_v28 }
  0x2b   : > { %783 = vmatpush.bf16.msra.mxu3 %v1255_v31  ;;  %637 = vmatmul.bf16.vlgmr.msra.gmra.mxu0 %v943_v40  ;;  %v1024_v31 = vld [vmem:[%s1392_s20 + $0xb0] sm:$0xf0]  ;;  %v1038_v40 = vld [vmem:[%s1392_s20 + $0xc0] sm:$0xf] }
  0x2c   : > { %686 = vmatmul.bf16.vlgmr.msra.gmra.mxu1 %v947_v41  ;;  %v1027_v37 = vor.u32 %v1219_v30, %v1024_v31  ;;  %v1225_v41 = vld [vmem:[%s1392_s20 + $0xcc] sm:$0xf0] }
  0x2d   : > { %735 = vmatmul.bf16.vlgmr.msra.gmra.mxu2 %v951_v42  ;;  %v1223_v42 = vld [vmem:[%s1392_s20 + $0xc4] sm:$0xf]  ;;  %v1039_v48 = vor.u32 %v1225_v41, %v1038_v40 }
  0x2e   : > { %784 = vmatmul.bf16.vlgmr.msra.gmra.mxu3 %v955_v43  ;;  %v1040_v43 = vld [vmem:[%s1392_s20 + $0xd0] sm:$0xf0] }
  0x2f   : > { %v1043_v49 = vor.u32 %v1223_v42, %v1040_v43 }
  0x3b   : > { %642 = vmatmul.bf16.gmra.mxu0 %v959_v52  ;;  %v1054_v52 = vld [vmem:[%s1392_s20 + $0xe0] sm:$0xf] }
  0x3c   : > { %691 = vmatmul.bf16.gmra.mxu1 %v963_v53  ;;  %v1229_v53 = vld [vmem:[%s1392_s20 + $0xec] sm:$0xf0] }
  0x3d   : > { %740 = vmatmul.bf16.gmra.mxu2 %v967_v54  ;;  %v1227_v54 = vld [vmem:[%s1392_s20 + $0xe4] sm:$0xf]  ;;  %v1055_v60 = vor.u32 %v1229_v53, %v1054_v52 }
  0x3e   : > { %789 = vmatmul.bf16.gmra.mxu3 %v971_v55  ;;  %v1056_v55 = vld [vmem:[%s1392_s20 + $0xf0] sm:$0xf0] }
  0x3f   : > { %v1059_v61 = vor.u32 %v1227_v54, %v1056_v55 }
  0x4b   : > { %647 = vmatmul.bf16.gmra.mxu0 %v975_v0  ;;  %v1479_v0 = vld [vmem:[%s1540_s2] ss:$0 sm:$0xff] }
  0x4c   : > { %696 = vmatmul.bf16.gmra.mxu1 %v979_v1 }
  0x4d   : > { %745 = vmatmul.bf16.gmra.mxu2 %v983_v2 }
  0x4e   : > { %794 = vmatmul.bf16.gmra.mxu3 %v987_v3 }
  0x5b   : > { %652 = vmatmul.bf16.gmra.mxu0 %v991_v12 }
  0x5c   : > { %701 = vmatmul.bf16.gmra.mxu1 %v995_v13 }
  0x5d   : > { %750 = vmatmul.bf16.gmra.mxu2 %v999_v14 }
  0x5e   : > { %799 = vmatmul.bf16.gmra.mxu3 %v1003_v15 }
  0x6b   : > { %657 = vmatmul.bf16.gmra.mxu0 %v1007_v24 }
  0x6c   : > { %706 = vmatmul.bf16.gmra.mxu1 %v1011_v25 }
  0x6d   : > { %755 = vmatmul.bf16.gmra.mxu2 %v1015_v26 }
  0x6e   : > { %804 = vmatmul.bf16.gmra.mxu3 %v1019_v27 }
  0x7b   : > { %662 = vmatmul.bf16.gmra.mxu0 %v1023_v36 }
  0x7c   : > { %711 = vmatmul.bf16.gmra.mxu1 %v1027_v37 }
  0x7d   : > { %760 = vmatmul.bf16.gmra.mxu2 %v1031_v38 }
  0x7e   : > { %809 = vmatmul.bf16.gmra.mxu3 %v1035_v39 }
  0x8b   : > { %667 = vmatmul.bf16.gmra.mxu0 %v1039_v48 }
  0x8c   : > { %716 = vmatmul.bf16.gmra.mxu1 %v1043_v49 }
  0x8d   : > { %765 = vmatmul.bf16.gmra.mxu2 %v1047_v50 }
  0x8e   : > { %814 = vmatmul.bf16.gmra.mxu3 %v1051_v51 }
  0x9b   : > { %672 = vmatmul.bf16.gmra.mxu0 %v1055_v60 }
  0x9c   : > { %721 = vmatmul.bf16.gmra.mxu1 %v1059_v61 }
  0x9d   : > { %770 = vmatmul.bf16.gmra.mxu2 %v1063_v62 }
  0x9e   : > { %819 = vmatmul.bf16.gmra.mxu3 %v1067_v63 }
  0xa8   : > { %v638_v1 = vpop.f32.mrf.mxu0 }
  0xa9   : > { %v687_v2 = vpop.f32.mrf.mxu1  ;;  %v639_v3 = vadd.f32 %v1479_v0, %v638_v1 }
  0xab   : > { %v688_v4 = vadd.f32 %v687_v2, %v639_v3 }
  0xb0   : > { %v736_v5 = vpop.f32.mrf.mxu2  ;;  %v640_v8 = vpop.f32.mrf.mxu0 }
  0xb1   : > { %v785_v6 = vpop.f32.mrf.mxu3  ;;  %v737_v7 = vadd.f32 %v736_v5, %v688_v4  ;;  %v689_v9 = vpop.f32.mrf.mxu1  ;;  %v641_v11 = vadd.f32 %v1479_v0, %v640_v8 }
  0xb3   : > { %v786_v10 = vadd.f32 %v785_v6, %v737_v7  ;;  %v690_v14 = vadd.f32 %v689_v9, %v641_v11 }
  0xb5   : > { %v825_v12 = vmax.f32 %v786_v10, 0.0 }
  0xb7   : > { %v841_v13 = vpack.c.bf16 %v825_v12, %v825_v12 }
  0xb8   : > { %v738_v15 = vpop.f32.mrf.mxu2  ;;  %v643_v18 = vpop.f32.mrf.mxu0 }
  0xb9   : > { %v787_v16 = vpop.f32.mrf.mxu3  ;;  %858 = vst.msk [vmem:[%s1487_s10] sm:$0xf] %vm857_vm0, %v841_v13  ;;  %v739_v17 = vadd.f32 %v738_v15, %v690_v14  ;;  %v692_v19 = vpop.f32.mrf.mxu1  ;;  %v644_v20 = vadd.f32 %v1479_v0, %v643_v18 }
  0xbb   : > { %v788_v21 = vadd.f32 %v787_v16, %v739_v17  ;;  %v693_v23 = vadd.f32 %v692_v19, %v644_v20 }
  0xbd   : > { %v826_v22 = vmax.f32 %v788_v21, 0.0 }
  0xbf   : > { %v842_v24 = vpack.c.bf16 %v826_v22, %v826_v22 }
  0xc0   : > { %v741_v25 = vpop.f32.mrf.mxu2  ;;  %v645_v28 = vpop.f32.mrf.mxu0 }
  0xc1   : > { %v790_v26 = vpop.f32.mrf.mxu3  ;;  %859 = vst.msk [vmem:[%s1487_s10 + $0x4] sm:$0xf] %vm857_vm0, %v842_v24  ;;  %v742_v27 = vadd.f32 %v741_v25, %v693_v23  ;;  %v694_v29 = vpop.f32.mrf.mxu1  ;;  %v646_v31 = vadd.f32 %v1479_v0, %v645_v28 }
  0xc3   : > { %v791_v30 = vadd.f32 %v790_v26, %v742_v27  ;;  %v695_v34 = vadd.f32 %v694_v29, %v646_v31 }
  0xc5   : > { %v827_v32 = vmax.f32 %v791_v30, 0.0 }
  0xc7   : > { %v843_v33 = vpack.c.bf16 %v827_v32, %v827_v32 }
  0xc8   : > { %v743_v35 = vpop.f32.mrf.mxu2  ;;  %v648_v38 = vpop.f32.mrf.mxu0 }
  0xc9   : > { %v792_v36 = vpop.f32.mrf.mxu3  ;;  %860 = vst.msk [vmem:[%s1487_s10 + $0x8] sm:$0xf] %vm857_vm0, %v843_v33  ;;  %v744_v37 = vadd.f32 %v743_v35, %v695_v34  ;;  %v697_v39 = vpop.f32.mrf.mxu1  ;;  %v649_v40 = vadd.f32 %v1479_v0, %v648_v38 }
  0xcb   : > { %v793_v41 = vadd.f32 %v792_v36, %v744_v37  ;;  %v698_v43 = vadd.f32 %v697_v39, %v649_v40 }
  0xcd   : > { %v828_v42 = vmax.f32 %v793_v41, 0.0 }
  0xcf   : > { %v844_v44 = vpack.c.bf16 %v828_v42, %v828_v42 }
  0xd0   : > { %v746_v45 = vpop.f32.mrf.mxu2  ;;  %v650_v48 = vpop.f32.mrf.mxu0 }
  0xd1   : > { %v795_v46 = vpop.f32.mrf.mxu3  ;;  %861 = vst.msk [vmem:[%s1487_s10 + $0xc] sm:$0xf] %vm857_vm0, %v844_v44  ;;  %v747_v47 = vadd.f32 %v746_v45, %v698_v43  ;;  %v699_v49 = vpop.f32.mrf.mxu1  ;;  %v651_v51 = vadd.f32 %v1479_v0, %v650_v48 }
  0xd3   : > { %v796_v50 = vadd.f32 %v795_v46, %v747_v47  ;;  %v700_v54 = vadd.f32 %v699_v49, %v651_v51 }
  0xd5   : > { %v829_v52 = vmax.f32 %v796_v50, 0.0 }
  0xd7   : > { %v845_v53 = vpack.c.bf16 %v829_v52, %v829_v52 }
  0xd8   : > { %v748_v55 = vpop.f32.mrf.mxu2  ;;  %v653_v58 = vpop.f32.mrf.mxu0 }
  0xd9   : > { %v797_v56 = vpop.f32.mrf.mxu3  ;;  %862 = vst.msk [vmem:[%s1487_s10 + $0x10] sm:$0xf] %vm857_vm0, %v845_v53  ;;  %v749_v57 = vadd.f32 %v748_v55, %v700_v54  ;;  %v702_v59 = vpop.f32.mrf.mxu1  ;;  %v654_v60 = vadd.f32 %v1479_v0, %v653_v58 }
  0xdb   : > { %v798_v61 = vadd.f32 %v797_v56, %v749_v57  ;;  %v703_v63 = vadd.f32 %v702_v59, %v654_v60 }
  0xdd   : > { %v830_v62 = vmax.f32 %v798_v61, 0.0 }
  0xdf   : > { %v846_v1 = vpack.c.bf16 %v830_v62, %v830_v62 }
  0xe0   : > { %v751_v2 = vpop.f32.mrf.mxu2  ;;  %v655_v5 = vpop.f32.mrf.mxu0 }
  0xe1   : > { %v800_v3 = vpop.f32.mrf.mxu3  ;;  %863 = vst.msk [vmem:[%s1487_s10 + $0x14] sm:$0xf] %vm857_vm0, %v846_v1  ;;  %v752_v4 = vadd.f32 %v751_v2, %v703_v63  ;;  %v704_v6 = vpop.f32.mrf.mxu1  ;;  %v656_v8 = vadd.f32 %v1479_v0, %v655_v5 }
  0xe3   : > { %v801_v7 = vadd.f32 %v800_v3, %v752_v4  ;;  %v705_v11 = vadd.f32 %v704_v6, %v656_v8 }
  0xe5   : > { %v831_v9 = vmax.f32 %v801_v7, 0.0 }
  0xe7   : > { %v847_v10 = vpack.c.bf16 %v831_v9, %v831_v9 }
  0xe8   : > { %v753_v12 = vpop.f32.mrf.mxu2  ;;  %v658_v15 = vpop.f32.mrf.mxu0 }
  0xe9   : > { %v802_v13 = vpop.f32.mrf.mxu3  ;;  %864 = vst.msk [vmem:[%s1487_s10 + $0x18] sm:$0xf] %vm857_vm0, %v847_v10  ;;  %v754_v14 = vadd.f32 %v753_v12, %v705_v11  ;;  %v707_v16 = vpop.f32.mrf.mxu1  ;;  %v659_v17 = vadd.f32 %v1479_v0, %v658_v15 }
  0xeb   : > { %v803_v18 = vadd.f32 %v802_v13, %v754_v14  ;;  %v708_v20 = vadd.f32 %v707_v16, %v659_v17 }
  0xed   : > { %v832_v19 = vmax.f32 %v803_v18, 0.0 }
  0xef   : > { %v848_v21 = vpack.c.bf16 %v832_v19, %v832_v19 }
  0xf0   : > { %v756_v22 = vpop.f32.mrf.mxu2  ;;  %v660_v25 = vpop.f32.mrf.mxu0 }
  0xf1   : > { %v805_v23 = vpop.f32.mrf.mxu3  ;;  %865 = vst.msk [vmem:[%s1487_s10 + $0x1c] sm:$0xf] %vm857_vm0, %v848_v21  ;;  %v757_v24 = vadd.f32 %v756_v22, %v708_v20  ;;  %v709_v26 = vpop.f32.mrf.mxu1  ;;  %v661_v28 = vadd.f32 %v1479_v0, %v660_v25 }
  0xf3   : > { %v806_v27 = vadd.f32 %v805_v23, %v757_v24  ;;  %v710_v31 = vadd.f32 %v709_v26, %v661_v28 }
  0xf5   : > { %v833_v29 = vmax.f32 %v806_v27, 0.0 }
  0xf7   : > { %v849_v30 = vpack.c.bf16 %v833_v29, %v833_v29 }
  0xf8   : > { %v758_v32 = vpop.f32.mrf.mxu2  ;;  %v663_v35 = vpop.f32.mrf.mxu0 }
  0xf9   : > { %v807_v33 = vpop.f32.mrf.mxu3  ;;  %866 = vst.msk [vmem:[%s1487_s10 + $0x20] sm:$0xf] %vm857_vm0, %v849_v30  ;;  %v759_v34 = vadd.f32 %v758_v32, %v710_v31  ;;  %v712_v36 = vpop.f32.mrf.mxu1  ;;  %v664_v37 = vadd.f32 %v1479_v0, %v663_v35 }
  0xfb   : > { %v808_v38 = vadd.f32 %v807_v33, %v759_v34  ;;  %v713_v40 = vadd.f32 %v712_v36, %v664_v37 }
  0xfd   : > { %v834_v39 = vmax.f32 %v808_v38, 0.0 }
  0xff   : > { %v850_v41 = vpack.c.bf16 %v834_v39, %v834_v39 }
 0x100   : > { %v761_v42 = vpop.f32.mrf.mxu2  ;;  %v665_v45 = vpop.f32.mrf.mxu0 }
 0x101   : > { %v810_v43 = vpop.f32.mrf.mxu3  ;;  %867 = vst.msk [vmem:[%s1487_s10 + $0x24] sm:$0xf] %vm857_vm0, %v850_v41  ;;  %v762_v44 = vadd.f32 %v761_v42, %v713_v40  ;;  %v714_v46 = vpop.f32.mrf.mxu1  ;;  %v666_v48 = vadd.f32 %v1479_v0, %v665_v45 }
 0x103   : > { %v811_v47 = vadd.f32 %v810_v43, %v762_v44  ;;  %v715_v51 = vadd.f32 %v714_v46, %v666_v48 }
 0x105   : > { %v835_v49 = vmax.f32 %v811_v47, 0.0 }
 0x107   : > { %v851_v50 = vpack.c.bf16 %v835_v49, %v835_v49 }
 0x108   : > { %v763_v52 = vpop.f32.mrf.mxu2  ;;  %v668_v55 = vpop.f32.mrf.mxu0 }
 0x109   : > { %v812_v53 = vpop.f32.mrf.mxu3  ;;  %868 = vst.msk [vmem:[%s1487_s10 + $0x28] sm:$0xf] %vm857_vm0, %v851_v50  ;;  %v764_v54 = vadd.f32 %v763_v52, %v715_v51  ;;  %v717_v56 = vpop.f32.mrf.mxu1  ;;  %v669_v57 = vadd.f32 %v1479_v0, %v668_v55 }
 0x10b   : > { %v813_v58 = vadd.f32 %v812_v53, %v764_v54  ;;  %v718_v60 = vadd.f32 %v717_v56, %v669_v57 }
 0x10d   : > { %v836_v59 = vmax.f32 %v813_v58, 0.0 }
 0x10f   : > { %v852_v61 = vpack.c.bf16 %v836_v59, %v836_v59 }
 0x110   : > { %v766_v62 = vpop.f32.mrf.mxu2  ;;  %v670_v2 = vpop.f32.mrf.mxu0 }
 0x111   : > { %v815_v63 = vpop.f32.mrf.mxu3  ;;  %869 = vst.msk [vmem:[%s1487_s10 + $0x2c] sm:$0xf] %vm857_vm0, %v852_v61  ;;  %v767_v1 = vadd.f32 %v766_v62, %v718_v60  ;;  %v719_v3 = vpop.f32.mrf.mxu1  ;;  %v671_v5 = vadd.f32 %v1479_v0, %v670_v2 }
 0x113   : > { %v816_v4 = vadd.f32 %v815_v63, %v767_v1  ;;  %v720_v8 = vadd.f32 %v719_v3, %v671_v5 }
 0x115   : > { %v837_v6 = vmax.f32 %v816_v4, 0.0 }
 0x117   : > { %v853_v7 = vpack.c.bf16 %v837_v6, %v837_v6 }
 0x118   : > { %v768_v9 = vpop.f32.mrf.mxu2  ;;  %v673_v12 = vpop.f32.mrf.mxu0 }
 0x119   : > { %v817_v10 = vpop.f32.mrf.mxu3  ;;  %870 = vst.msk [vmem:[%s1487_s10 + $0x30] sm:$0xf] %vm857_vm0, %v853_v7  ;;  %v769_v11 = vadd.f32 %v768_v9, %v720_v8  ;;  %v674_v13 = vadd.f32 %v1479_v0, %v673_v12  ;;  %v722_v15 = vpop.f32.mrf.mxu1 }
 0x11b   : > { %v818_v14 = vadd.f32 %v817_v10, %v769_v11  ;;  %v723_v17 = vadd.f32 %v722_v15, %v674_v13 }
 0x11d   : > { %v838_v16 = vmax.f32 %v818_v14, 0.0 }
 0x11f   : > { %v854_v18 = vpack.c.bf16 %v838_v16, %v838_v16 }
 0x120   : > { %v771_v19 = vpop.f32.mrf.mxu2  ;;  %v675_v22 = vpop.f32.mrf.mxu0 }
 0x121   : > { %v820_v20 = vpop.f32.mrf.mxu3  ;;  %871 = vst.msk [vmem:[%s1487_s10 + $0x34] sm:$0xf] %vm857_vm0, %v854_v18  ;;  %v772_v21 = vadd.f32 %v771_v19, %v723_v17  ;;  %v676_v24 = vadd.f32 %v1479_v0, %v675_v22  ;;  %v724_v26 = vpop.f32.mrf.mxu1 }
 0x123   : > { %v821_v23 = vadd.f32 %v820_v20, %v772_v21  ;;  %v725_v28 = vadd.f32 %v724_v26, %v676_v24 }
 0x125   : > { %v839_v25 = vmax.f32 %v821_v23, 0.0 }
 0x127   : > { %v855_v27 = vpack.c.bf16 %v839_v25, %v839_v25 }
 0x128   : > { %v773_v29 = vpop.f32.mrf.mxu2 }
 0x129   : > { %872 = vst.msk [vmem:[%s1487_s10 + $0x38] sm:$0xf] %vm857_vm0, %v855_v27  ;;  %v774_v30 = vadd.f32 %v773_v29, %v725_v28  ;;  %v822_v31 = vpop.f32.mrf.mxu3 }
 0x12b   : > { %v823_v32 = vadd.f32 %v822_v31, %v774_v30 }
 0x12d   : > { %v840_v33 = vmax.f32 %v823_v32, 0.0 }
 0x12f   : > { %v856_v34 = vpack.c.bf16 %v840_v33, %v840_v33 }
 0x131   : > { %873 = vst.msk [vmem:[%s1487_s10 + $0x3c] sm:$0xf] %vm857_vm0, %v856_v34 }
 0x132 PF: > { %s13_s12 = sadd.s32 1, %s1278_s12  }
 0x133   : > { %p10_p4 = scmp.ge.s32.totalorder %s13_s12, 4  }
 0x135   :  { %12 = sbr.rel (!%p10_p4) target bundleno = 1 (0x1), region = 62 }

// kernel: dqn_forward.6
= control target key start
LH: loop header
LB: loop body
LE: loop exit
PB: predicated region body
PF: predicated region fallthrough
CT: control target
= control target key end

     0   :  { %s1554_s12 = smov 0   ;;  %s1864_s0 = inlined_call_operand.vmem [shape: bf16[256,576], index: 0, kind: input, shape index: {}]   ;;  %s1865_s1 = inlined_call_operand.vmem [shape: bf16[576,64], index: 1, kind: input, shape index: {}]   ;;  %s1866_s2 = inlined_call_operand.vmem [shape: f32[1,64], index: 2, kind: input, shape index: {}]   ;;  %s1867_s3 = inlined_call_operand.vmem [shape: bf16[256,64], index: 3, kind: output, shape index: {}]  }
   0x1 LB: > { %s1093_s13 = sadd.s32 4294967295, %s1532_s12   ;;  %p1097_p0 = scmp.ge.s32.totalorder %s1532_s12, 1  ;;  %s1532_s12 = sphi %s1554_s12, %s13_s12  }
   0x2   : > { %p139_p1 = scmp.lt.s32.totalorder %s1532_s12, 3 }
   0x4   : > { %p140_p2 = pnand %p1097_p0, %p139_p1 }
   0x5   : > { %s1098_s20 = sshll.u32 (!%p140_p2), %s1093_s13, 4 }
   0x6   : > { %143 = sbr.rel (%p140_p2) target bundleno = 338 (0x152), region = 32  ;;  %p165_p3 = scmp.lt.s32.totalorder (!%p140_p2), %s1098_s20, 31 }
   0xb   : > { %v1463_v0 = vld [vmem:[%s1865_s1 + $0x38] sm:$0xff]  ;;  %v1462_v1 = vld [vmem:[%s1865_s1 + $0x30] sm:$0xff]  ;;  %v1461_v2 = vld [vmem:[%s1865_s1 + $0x28] sm:$0xff]  ;;  %s1869_s20 = smov (!%p165_p3, %s1098_s20), 31  ;;  %vm718_vm0 = vcmask 523264   ;;  %vm1020_vm1 = vcmask 519168  }
   0xc   : > { %1492 = vmatpush.bf16.msra.mxu1 %v1463_v0  ;;  %1493 = vmatpush.bf16.msra.mxu2 %v1463_v0  ;;  %v1460_v3 = vld [vmem:[%s1865_s1 + $0x20] sm:$0xff]  ;;  %v1459_v4 = vld [vmem:[%s1865_s1 + $0x18] sm:$0xff]  ;;  %v1458_v5 = vld [vmem:[%s1865_s1 + $0x10] sm:$0xff]  ;;  %s1516_s27 = smul.u32 20, %s1869_s20 }
   0xd   : > { %1494 = vmatpush.bf16.msra.mxu3 %v1463_v0  ;;  %743 = vmatpush.bf16.msra.mxu0 %v1463_v0  ;;  %v1457_v6 = vld [vmem:[%s1865_s1 + $0x8] sm:$0xff]  ;;  %v1456_v7 = vld [vmem:[%s1865_s1] sm:$0xff]  ;;  %v1479_v16 = vld [vmem:[%s1865_s1 + $0xb8] sm:$0xff] }
   0xe   : > { %s1589_s5 = scalar_lea.vmem %s1864_s0, %s1516_s27  ;;  %v1471_v17 = vld [vmem:[%s1865_s1 + $0x78] sm:$0xff]  ;;  %v1478_v24 = vld [vmem:[%s1865_s1 + $0xb0] sm:$0xff]  ;;  %v1477_v28 = vld [vmem:[%s1865_s1 + $0xa8] sm:$0xff] }
   0xf   : > { %v1144_v8 = vld [vmem:[%s1589_s5 + $0x50] sm:$0xf]  ;;  %v1428_v9 = vld [vmem:[%s1589_s5 + $0x60] sm:$0xf0]  ;;  %v1184_v10 = vld [vmem:[%s1589_s5 + $0xa0] sm:$0xf] }
  0x10   : > { %1495 = vmatpush.bf16.msra.mxu1 %v1462_v1  ;;  %1496 = vmatpush.bf16.msra.mxu2 %v1462_v1  ;;  %v1438_v11 = vld [vmem:[%s1589_s5 + $0xb0] sm:$0xf0]  ;;  %v1224_v12 = vld [vmem:[%s1589_s5 + $0xf0] sm:$0xf]  ;;  %v1448_v13 = vld [vmem:[%s1589_s5 + $0x100] sm:$0xf0]  ;;  %v1145_v18 = vor.u32 %v1428_v9, %v1144_v8 }
  0x11   : > { %1497 = vmatpush.bf16.msra.mxu3 %v1462_v1  ;;  %744 = vmatpush.bf16.msra.mxu0 %v1462_v1  ;;  %v1104_v14 = vld [vmem:[%s1589_s5] sm:$0xf]  ;;  %v1418_v15 = vld [vmem:[%s1589_s5 + $0x10] sm:$0xf0]  ;;  %v1185_v19 = vor.u32 %v1438_v11, %v1184_v10  ;;  %v1225_v20 = vor.u32 %v1448_v13, %v1224_v12  ;;  %v1487_v22 = vld [vmem:[%s1865_s1 + $0xf8] sm:$0xff] }
  0x12   : > { %v1105_v21 = vor.u32 %v1418_v15, %v1104_v14  ;;  %v1491_v23 = vld [vmem:[%s1865_s1 + $0x118] sm:$0xff]  ;;  %v1470_v25 = vld [vmem:[%s1865_s1 + $0x70] sm:$0xff]  ;;  %v1469_v29 = vld [vmem:[%s1865_s1 + $0x68] sm:$0xff] }
  0x13   : > { %v1486_v26 = vld [vmem:[%s1865_s1 + $0xf0] sm:$0xff]  ;;  %v1485_v30 = vld [vmem:[%s1865_s1 + $0xe8] sm:$0xff]  ;;  %v1476_v32 = vld [vmem:[%s1865_s1 + $0xa0] sm:$0xff] }
  0x14   : > { %1498 = vmatpush.bf16.msra.mxu1 %v1461_v2  ;;  %1499 = vmatpush.bf16.msra.mxu2 %v1461_v2  ;;  %v1490_v27 = vld [vmem:[%s1865_s1 + $0x110] sm:$0xff]  ;;  %v1489_v31 = vld [vmem:[%s1865_s1 + $0x108] sm:$0xff]  ;;  %v1468_v33 = vld [vmem:[%s1865_s1 + $0x60] sm:$0xff] }
  0x15   : > { %1500 = vmatpush.bf16.msra.mxu3 %v1461_v2  ;;  %745 = vmatpush.bf16.msra.mxu0 %v1461_v2  ;;  %v1484_v34 = vld [vmem:[%s1865_s1 + $0xe0] sm:$0xff]  ;;  %v1164_v35 = vld [vmem:[%s1589_s5 + $0x78] sm:$0xf]  ;;  %v1433_v36 = vld [vmem:[%s1589_s5 + $0x88] sm:$0xf0] }
  0x16   : > { %v1204_v37 = vld [vmem:[%s1589_s5 + $0xc8] sm:$0xf]  ;;  %v1443_v38 = vld [vmem:[%s1589_s5 + $0xd8] sm:$0xf0]  ;;  %v1244_v39 = vld [vmem:[%s1589_s5 + $0x118] sm:$0xf]  ;;  %v1165_v46 = vor.u32 %v1433_v36, %v1164_v35 }
  0x17   : > { %v1453_v40 = vld [vmem:[%s1589_s5 + $0x128] sm:$0xf0]  ;;  %v1124_v41 = vld [vmem:[%s1589_s5 + $0x28] sm:$0xf]  ;;  %v1423_v42 = vld [vmem:[%s1589_s5 + $0x38] sm:$0xf0]  ;;  %v1205_v47 = vor.u32 %v1443_v38, %v1204_v37 }
  0x18   : > { %1501 = vmatpush.bf16.msra.mxu1 %v1460_v3  ;;  %1502 = vmatpush.bf16.msra.mxu2 %v1460_v3  ;;  %v1488_v43 = vld [vmem:[%s1865_s1 + $0x100] sm:$0xff]  ;;  %v1475_v44 = vld [vmem:[%s1865_s1 + $0x98] sm:$0xff]  ;;  %v1245_v48 = vor.u32 %v1453_v40, %v1244_v39  ;;  %v1125_v49 = vor.u32 %v1423_v42, %v1124_v41  ;;  %v1474_v51 = vld [vmem:[%s1865_s1 + $0x90] sm:$0xff] }
  0x19   : > { %1503 = vmatpush.bf16.msra.mxu3 %v1460_v3  ;;  %746 = vmatpush.bf16.msra.mxu0 %v1460_v3  ;;  %v1467_v45 = vld [vmem:[%s1865_s1 + $0x58] sm:$0xff]  ;;  %v1466_v52 = vld [vmem:[%s1865_s1 + $0x50] sm:$0xff]  ;;  %v1473_v54 = vld [vmem:[%s1865_s1 + $0x88] sm:$0xff] }
  0x1a   : > { %v1483_v50 = vld [vmem:[%s1865_s1 + $0xd8] sm:$0xff]  ;;  %v1482_v53 = vld [vmem:[%s1865_s1 + $0xd0] sm:$0xff]  ;;  %v1465_v55 = vld [vmem:[%s1865_s1 + $0x48] sm:$0xff] }
  0x1b   : > { %v1481_v56 = vld [vmem:[%s1865_s1 + $0xc8] sm:$0xff]  ;;  %v1472_v57 = vld [vmem:[%s1865_s1 + $0x80] sm:$0xff]  ;;  %v1106_v61 = vld [vmem:[%s1589_s5 + $0x14] sm:$0xf0] }
  0x1c   : > { %1504 = vmatpush.bf16.msra.mxu1 %v1459_v4  ;;  %1505 = vmatpush.bf16.msra.mxu2 %v1459_v4  ;;  %v1464_v58 = vld [vmem:[%s1865_s1 + $0x40] sm:$0xff]  ;;  %v1112_v62 = vld [vmem:[%s1589_s5 + $0x8] sm:$0xf]  ;;  %v1419_v63 = vld [vmem:[%s1589_s5 + $0x18] sm:$0xf0] }
  0x1d   : > { %1506 = vmatpush.bf16.msra.mxu3 %v1459_v4  ;;  %747 = vmatpush.bf16.msra.mxu0 %v1459_v4  ;;  %v1480_v59 = vld [vmem:[%s1865_s1 + $0xc0] sm:$0xff]  ;;  %v1417_v0 = vld [vmem:[%s1589_s5 + $0xc] sm:$0xf]  ;;  %v1120_v2 = vld [vmem:[%s1589_s5 + $0x10] sm:$0xf] }
  0x1e   : > { %v1416_v60 = vld [vmem:[%s1589_s5 + $0x4] sm:$0xf]  ;;  %v1114_v1 = vld [vmem:[%s1589_s5 + $0x1c] sm:$0xf0]  ;;  %v1421_v8 = vld [vmem:[%s1589_s5 + $0x2c] sm:$0xf] }
  0x1f   : > { %v1420_v3 = vld [vmem:[%s1589_s5 + $0x20] sm:$0xf0]  ;;  %v1109_v4 = vor.u32 %v1416_v60, %v1106_v61  ;;  %v1126_v9 = vld [vmem:[%s1589_s5 + $0x3c] sm:$0xf0]  ;;  %v1132_v10 = vld [vmem:[%s1589_s5 + $0x30] sm:$0xf] }
  0x20   : > { %1507 = vmatpush.bf16.msra.mxu1 %v1458_v5  ;;  %1508 = vmatpush.bf16.msra.mxu2 %v1458_v5  ;;  %v1424_v11 = vld [vmem:[%s1589_s5 + $0x40] sm:$0xf0]  ;;  %v1422_v12 = vld [vmem:[%s1589_s5 + $0x34] sm:$0xf]  ;;  %v1134_v13 = vld [vmem:[%s1589_s5 + $0x44] sm:$0xf0] }
  0x21   : > { %1509 = vmatpush.bf16.msra.mxu3 %v1458_v5  ;;  %748 = vmatpush.bf16.msra.mxu0 %v1458_v5  ;;  %v1113_v5 = vor.u32 %v1419_v63, %v1112_v62  ;;  %v1140_v14 = vld [vmem:[%s1589_s5 + $0x38] sm:$0xf]  ;;  %v1425_v15 = vld [vmem:[%s1589_s5 + $0x48] sm:$0xf0]  ;;  %v1434_v35 = vld [vmem:[%s1589_s5 + $0x90] sm:$0xf0] }
  0x22   : > { %v1432_v36 = vld [vmem:[%s1589_s5 + $0x84] sm:$0xf]  ;;  %v1174_v37 = vld [vmem:[%s1589_s5 + $0x94] sm:$0xf0]  ;;  %v1180_v38 = vld [vmem:[%s1589_s5 + $0x88] sm:$0xf] }
  0x23   : > { %v1435_v39 = vld [vmem:[%s1589_s5 + $0x98] sm:$0xf0]  ;;  %v1177_v42 = vor.u32 %v1432_v36, %v1174_v37  ;;  %v1442_v60 = vld [vmem:[%s1589_s5 + $0xd4] sm:$0xf]  ;;  %v1214_v61 = vld [vmem:[%s1589_s5 + $0xe4] sm:$0xf0] }
  0x24   : > { %1510 = vmatpush.bf16.msra.mxu1 %v1457_v6  ;;  %1511 = vmatpush.bf16.msra.mxu2 %v1457_v6  ;;  %v1220_v62 = vld [vmem:[%s1589_s5 + $0xd8] sm:$0xf]  ;;  %v1445_v63 = vld [vmem:[%s1589_s5 + $0xe8] sm:$0xf0] }
  0x25   : > { %1512 = vmatpush.bf16.msra.mxu3 %v1457_v6  ;;  %749 = vmatpush.bf16.msra.mxu0 %v1457_v6  ;;  %v1117_v6 = vor.u32 %v1417_v0, %v1114_v1 }
  0x28   : > { %1513 = vmatpush.bf16.msra.mxu1 %v1456_v7  ;;  %1514 = vmatpush.bf16.msra.mxu2 %v1456_v7 }
  0x29   : > { %1515 = vmatpush.bf16.msra.mxu3 %v1456_v7  ;;  %750 = vmatpush.bf16.msra.mxu0 %v1456_v7  ;;  %v1121_v7 = vor.u32 %v1420_v3, %v1120_v2  ;;  %v1217_v2 = vor.u32 %v1442_v60, %v1214_v61  ;;  %v1221_v3 = vor.u32 %v1445_v63, %v1220_v62 }
  0x2b   : > { %761 = vmatmul.bf16.vlgmr.msra.gmra.mxu1 %v1145_v18  ;;  %771 = vmatmul.bf16.vlgmr.msra.gmra.mxu2 %v1185_v19  ;;  %v1137_v18 = vor.u32 %v1422_v12, %v1134_v13  ;;  %v1141_v19 = vor.u32 %v1425_v15, %v1140_v14 }
  0x2c   : > { %841 = vmatpush.bf16.msrb.mxu2 %v1479_v16  ;;  %792 = vmatpush.bf16.msrb.mxu1 %v1471_v17  ;;  %v1129_v16 = vor.u32 %v1421_v8, %v1126_v9  ;;  %v1133_v17 = vor.u32 %v1424_v11, %v1132_v10  ;;  %v1447_v8 = vld [vmem:[%s1589_s5 + $0xfc] sm:$0xf]  ;;  %v1234_v9 = vld [vmem:[%s1589_s5 + $0x10c] sm:$0xf0]  ;;  %v1240_v10 = vld [vmem:[%s1589_s5 + $0x100] sm:$0xf] }
  0x2d   : > { %781 = vmatmul.bf16.vlgmr.msra.gmra.mxu3 %v1225_v20  ;;  %751 = vmatmul.bf16.vlgmr.msra.gmra.mxu0 %v1105_v21  ;;  %v1426_v20 = vld [vmem:[%s1589_s5 + $0x54] sm:$0xf]  ;;  %v1146_v21 = vld [vmem:[%s1589_s5 + $0x64] sm:$0xf0]  ;;  %v1237_v15 = vor.u32 %v1447_v8, %v1234_v9 }
  0x2e   : > { %890 = vmatpush.bf16.msrb.mxu3 %v1487_v22  ;;  %943 = vmatpush.bf16.msrb.mxu0 %v1491_v23  ;;  %v1152_v22 = vld [vmem:[%s1589_s5 + $0x58] sm:$0xf]  ;;  %v1429_v23 = vld [vmem:[%s1589_s5 + $0x68] sm:$0xf0]  ;;  %v1450_v11 = vld [vmem:[%s1589_s5 + $0x110] sm:$0xf0] }
  0x30   : > { %842 = vmatpush.bf16.msrb.mxu2 %v1478_v24  ;;  %793 = vmatpush.bf16.msrb.mxu1 %v1470_v25  ;;  %v1427_v24 = vld [vmem:[%s1589_s5 + $0x5c] sm:$0xf]  ;;  %v1154_v25 = vld [vmem:[%s1589_s5 + $0x6c] sm:$0xf0] }
  0x32   : > { %891 = vmatpush.bf16.msrb.mxu3 %v1486_v26  ;;  %944 = vmatpush.bf16.msrb.mxu0 %v1490_v27  ;;  %v1160_v26 = vld [vmem:[%s1589_s5 + $0x60] sm:$0xf]  ;;  %v1430_v27 = vld [vmem:[%s1589_s5 + $0x70] sm:$0xf0] }
  0x34   : > { %843 = vmatpush.bf16.msrb.mxu2 %v1477_v28  ;;  %794 = vmatpush.bf16.msrb.mxu1 %v1469_v29  ;;  %v1149_v28 = vor.u32 %v1426_v20, %v1146_v21  ;;  %v1153_v29 = vor.u32 %v1429_v23, %v1152_v22 }
  0x36   : > { %892 = vmatpush.bf16.msrb.mxu3 %v1485_v30  ;;  %945 = vmatpush.bf16.msrb.mxu0 %v1489_v31  ;;  %v1157_v30 = vor.u32 %v1427_v24, %v1154_v25  ;;  %v1161_v31 = vor.u32 %v1430_v27, %v1160_v26  ;;  %v1451_v25 = vld [vmem:[%s1589_s5 + $0x11c] sm:$0xf]  ;;  %v1246_v26 = vld [vmem:[%s1589_s5 + $0x12c] sm:$0xf0]  ;;  %v1252_v27 = vld [vmem:[%s1589_s5 + $0x120] sm:$0xf] }
  0x37   : > { %v1249_v36 = vor.u32 %v1451_v25, %v1246_v26 }
  0x38   : > { %844 = vmatpush.bf16.msrb.mxu2 %v1476_v32  ;;  %795 = vmatpush.bf16.msrb.mxu1 %v1468_v33  ;;  %v1431_v32 = vld [vmem:[%s1589_s5 + $0x7c] sm:$0xf]  ;;  %v1166_v33 = vld [vmem:[%s1589_s5 + $0x8c] sm:$0xf0] }
  0x39   : > { %v1169_v40 = vor.u32 %v1431_v32, %v1166_v33  ;;  %v1455_v32 = vld [vmem:[%s1589_s5 + $0x138] sm:$0xf0] }
  0x3a   : > { %893 = vmatpush.bf16.msrb.mxu3 %v1484_v34  ;;  %946 = vmatpush.bf16.msrb.mxu0 %v1488_v43  ;;  %v1172_v34 = vld [vmem:[%s1589_s5 + $0x80] sm:$0xf]  ;;  %v1181_v43 = vor.u32 %v1435_v39, %v1180_v38 }
  0x3b   : > { %766 = vmatmul.bf16.gmra.mxu1 %v1165_v46  ;;  %776 = vmatmul.bf16.gmra.mxu2 %v1205_v47  ;;  %v1173_v41 = vor.u32 %v1434_v35, %v1172_v34  ;;  %v1192_v46 = vld [vmem:[%s1589_s5 + $0xa8] sm:$0xf]  ;;  %v1439_v47 = vld [vmem:[%s1589_s5 + $0xb8] sm:$0xf0] }
  0x3c   : > { %845 = vmatpush.bf16.msrb.mxu2 %v1475_v44  ;;  %796 = vmatpush.bf16.msrb.mxu1 %v1467_v45  ;;  %v1436_v44 = vld [vmem:[%s1589_s5 + $0xa4] sm:$0xf]  ;;  %v1186_v45 = vld [vmem:[%s1589_s5 + $0xb4] sm:$0xf0] }
  0x3d   : > { %786 = vmatmul.bf16.gmra.mxu3 %v1245_v48  ;;  %756 = vmatmul.bf16.gmra.mxu0 %v1125_v49  ;;  %v1437_v48 = vld [vmem:[%s1589_s5 + $0xac] sm:$0xf]  ;;  %v1194_v49 = vld [vmem:[%s1589_s5 + $0xbc] sm:$0xf0] }
  0x3e   : > { %894 = vmatpush.bf16.msrb.mxu3 %v1483_v50  ;;  %v1200_v50 = vld [vmem:[%s1589_s5 + $0xb0] sm:$0xf] }
  0x40   : > { %846 = vmatpush.bf16.msrb.mxu2 %v1474_v51  ;;  %797 = vmatpush.bf16.msrb.mxu1 %v1466_v52  ;;  %v1440_v51 = vld [vmem:[%s1589_s5 + $0xc0] sm:$0xf0]  ;;  %v1189_v52 = vor.u32 %v1436_v44, %v1186_v45 }
  0x42   : > { %895 = vmatpush.bf16.msrb.mxu3 %v1482_v53  ;;  %v1193_v53 = vor.u32 %v1439_v47, %v1192_v46 }
  0x44   : > { %847 = vmatpush.bf16.msrb.mxu2 %v1473_v54  ;;  %798 = vmatpush.bf16.msrb.mxu1 %v1465_v55  ;;  %v1197_v54 = vor.u32 %v1437_v48, %v1194_v49  ;;  %v1201_v55 = vor.u32 %v1440_v51, %v1200_v50 }
  0x46   : > { %896 = vmatpush.bf16.msrb.mxu3 %v1481_v56  ;;  %v1441_v56 = vld [vmem:[%s1589_s5 + $0xcc] sm:$0xf] }
  0x48   : > { %848 = vmatpush.bf16.msrb.mxu2 %v1472_v57  ;;  %799 = vmatpush.bf16.msrb.mxu1 %v1464_v58  ;;  %v1206_v57 = vld [vmem:[%s1589_s5 + $0xdc] sm:$0xf0]  ;;  %v1212_v58 = vld [vmem:[%s1589_s5 + $0xd0] sm:$0xf] }
  0x49   : > { %v1209_v0 = vor.u32 %v1441_v56, %v1206_v57 }
  0x4a   : > { %897 = vmatpush.bf16.msrb.mxu3 %v1480_v59  ;;  %v1444_v59 = vld [vmem:[%s1589_s5 + $0xe0] sm:$0xf0] }
  0x4b   : > { %800 = vmatmul.bf16.vlgmr.msrb.gmra.mxu1 %v1109_v4  ;;  %849 = vmatmul.bf16.vlgmr.msrb.gmra.mxu2 %v1113_v5  ;;  %v1213_v1 = vor.u32 %v1444_v59, %v1212_v58  ;;  %v1446_v4 = vld [vmem:[%s1589_s5 + $0xf4] sm:$0xf]  ;;  %v1226_v5 = vld [vmem:[%s1589_s5 + $0x104] sm:$0xf0] }
  0x4c   : > { %v1229_v12 = vor.u32 %v1446_v4, %v1226_v5 }
  0x4d   : > { %898 = vmatmul.bf16.vlgmr.msrb.gmra.mxu3 %v1117_v6  ;;  %1406 = vmatmul.msk.bf16.vlgmr.msrb.gmra.mxu0 %vm718_vm0, %v1121_v7  ;;  %v1232_v6 = vld [vmem:[%s1589_s5 + $0xf8] sm:$0xf]  ;;  %v1449_v7 = vld [vmem:[%s1589_s5 + $0x108] sm:$0xf0] }
  0x4e   : > { %v1233_v13 = vor.u32 %v1449_v7, %v1232_v6 }
  0x5b   : > { %805 = vmatmul.bf16.gmra.mxu1 %v1129_v16  ;;  %854 = vmatmul.bf16.gmra.mxu2 %v1133_v17  ;;  %v1241_v16 = vor.u32 %v1450_v11, %v1240_v10 }
  0x5d   : > { %903 = vmatmul.bf16.gmra.mxu3 %v1137_v18  ;;  %1407 = vmatmul.msk.bf16.gmra.mxu0 %vm718_vm0, %v1141_v19  ;;  %v1762_v18 = vld [vmem:[%s1866_s2] ss:$0 sm:$0xff] }
  0x6b   : > { %810 = vmatmul.bf16.gmra.mxu1 %v1149_v28  ;;  %859 = vmatmul.bf16.gmra.mxu2 %v1153_v29  ;;  %v1454_v28 = vld [vmem:[%s1589_s5 + $0x130] sm:$0xf0]  ;;  %v1452_v29 = vld [vmem:[%s1589_s5 + $0x124] sm:$0xf] }
  0x6c   : > { %v1253_v37 = vor.u32 %v1454_v28, %v1252_v27 }
  0x6d   : > { %908 = vmatmul.bf16.gmra.mxu3 %v1157_v30  ;;  %1408 = vmatmul.msk.bf16.gmra.mxu0 %vm718_vm0, %v1161_v31  ;;  %v1254_v30 = vld [vmem:[%s1589_s5 + $0x134] sm:$0xf0]  ;;  %v1260_v31 = vld [vmem:[%s1589_s5 + $0x128] sm:$0xf]  ;;  %s1101_s5 = sshll.u32 %s1869_s20, 2 }
  0x6e   : > { %s1809_s22 = scalar_lea.vmem %s1867_s3, %s1101_s5 }
  0x7b   : > { %815 = vmatmul.bf16.gmra.mxu1 %v1169_v40  ;;  %864 = vmatmul.bf16.gmra.mxu2 %v1173_v41  ;;  %v1257_v40 = vor.u32 %v1452_v29, %v1254_v30  ;;  %v1261_v41 = vor.u32 %v1455_v32, %v1260_v31 }
  0x7d   : > { %913 = vmatmul.bf16.gmra.mxu3 %v1177_v42  ;;  %1409 = vmatmul.msk.bf16.gmra.mxu0 %vm718_vm0, %v1181_v43 }
  0x8b   : > { %820 = vmatmul.bf16.gmra.mxu1 %v1189_v52  ;;  %869 = vmatmul.bf16.gmra.mxu2 %v1193_v53 }
  0x8d   : > { %918 = vmatmul.bf16.gmra.mxu3 %v1197_v54  ;;  %1410 = vmatmul.msk.bf16.gmra.mxu0 %vm718_vm0, %v1201_v55 }
  0x9b   : > { %825 = vmatmul.bf16.gmra.mxu1 %v1209_v0  ;;  %874 = vmatmul.bf16.gmra.mxu2 %v1213_v1 }
  0x9d   : > { %923 = vmatmul.bf16.gmra.mxu3 %v1217_v2  ;;  %1411 = vmatmul.msk.bf16.gmra.mxu0 %vm718_vm0, %v1221_v3 }
  0xa8   : > { %v1756_v14 = vpop.f32.mrf.mxu1 }
  0xaa   : > { %v752_v17 = vpop.f32.mrf.mxu0 }
  0xab   : > { %830 = vmatmul.bf16.gmra.mxu1 %v1229_v12  ;;  %879 = vmatmul.bf16.gmra.mxu2 %v1233_v13  ;;  %v753_v55 = vadd.f32 %v1762_v18, %v752_v17 }
  0xad   : > { %928 = vmatmul.bf16.gmra.mxu3 %v1237_v15  ;;  %1412 = vmatmul.msk.bf16.gmra.mxu0 %vm718_vm0, %v1241_v16 }
  0xae   : > { %v772_v19 = vpop.f32.mrf.mxu2 }
  0xaf   : > { %v1765_v20 = vadd.f32 %v1762_v18, %v772_v19 }
  0xb0   : > { %v782_v21 = vpop.f32.mrf.mxu3  ;;  %v1770_v23 = vpop.f32.mrf.mxu1 }
  0xb1   : > { %v1768_v22 = vadd.f32 %v1762_v18, %v782_v21 }
  0xb2   : > { %v754_v24 = vpop.f32.mrf.mxu0 }
  0xb3   : > { %v755_v63 = vadd.f32 %v1762_v18, %v754_v24 }
  0xb6   : > { %v774_v33 = vpop.f32.mrf.mxu2 }
  0xb7   : > { %v1781_v34 = vadd.f32 %v1762_v18, %v774_v33 }
  0xb8   : > { %v784_v35 = vpop.f32.mrf.mxu3  ;;  %v1786_v39 = vpop.f32.mrf.mxu1 }
  0xb9   : > { %v1784_v38 = vadd.f32 %v1762_v18, %v784_v35 }
  0xba   : > { %v757_v42 = vpop.f32.mrf.mxu0 }
  0xbb   : > { %835 = vmatmul.bf16.gmra.mxu1 %v1249_v36  ;;  %884 = vmatmul.bf16.gmra.mxu2 %v1253_v37  ;;  %v758_v10 = vadd.f32 %v1762_v18, %v757_v42 }
  0xbd   : > { %933 = vmatmul.bf16.gmra.mxu3 %v1257_v40  ;;  %1413 = vmatmul.msk.bf16.gmra.mxu0 %vm718_vm0, %v1261_v41  ;;  %v763_v40 = vadd.f32 %v1762_v18, %v1756_v14 }
  0xbe   : > { %v777_v43 = vpop.f32.mrf.mxu2 }
  0xbf   : > { %v1790_v44 = vadd.f32 %v1762_v18, %v777_v43 }
  0xc0   : > { %v787_v45 = vpop.f32.mrf.mxu3  ;;  %v1795_v47 = vpop.f32.mrf.mxu1 }
  0xc1   : > { %v1793_v46 = vadd.f32 %v1762_v18, %v787_v45 }
  0xc2   : > { %v759_v48 = vpop.f32.mrf.mxu0 }
  0xc3   : > { %v760_v26 = vadd.f32 %v1762_v18, %v759_v48 }
  0xc6   : > { %v779_v49 = vpop.f32.mrf.mxu2 }
  0xc7   : > { %v1798_v50 = vadd.f32 %v1762_v18, %v779_v49 }
  0xc8   : > { %v789_v51 = vpop.f32.mrf.mxu3  ;;  %v801_v53 = vpop.f32.mrf.mxu1 }
  0xc9   : > { %v1801_v52 = vadd.f32 %v1762_v18, %v789_v51  ;;  %v802_v56 = vadd.f32 %v801_v53, %v753_v55 }
  0xca   : > { %v948_v54 = vpop.f32.mrf.mxu0 }
  0xce   : > { %v850_v57 = vpop.f32.mrf.mxu2 }
  0xcf   : > { %v851_v58 = vadd.f32 %v850_v57, %v802_v56  ;;  %v765_v56 = vadd.f32 %v1762_v18, %v1770_v23 }
  0xd0   : > { %v899_v59 = vpop.f32.mrf.mxu3  ;;  %v803_v60 = vpop.f32.mrf.mxu1 }
  0xd1   : > { %v900_v61 = vadd.f32 %v899_v59, %v851_v58  ;;  %v804_v2 = vadd.f32 %v803_v60, %v755_v63 }
  0xd2   : > { %v950_v62 = vpop.f32.mrf.mxu0 }
  0xd3   : > { %v949_v0 = vadd.f32 %v948_v54, %v900_v61 }
  0xd5   : > { %v988_v1 = vmax.f32 %v949_v0, 0.0 }
  0xd6   : > { %v852_v3 = vpop.f32.mrf.mxu2 }
  0xd7   : > { %v1004_v4 = vpack.c.bf16 %v988_v1, %v988_v1  ;;  %v853_v5 = vadd.f32 %v852_v3, %v804_v2  ;;  %v768_v2 = vadd.f32 %v1762_v18, %v1786_v39 }
  0xd8   : > { %v901_v6 = vpop.f32.mrf.mxu3  ;;  %v806_v7 = vpop.f32.mrf.mxu1 }
  0xd9   : > { %1021 = vst.msk [vmem:[%s1809_s22] sm:$0xf] %vm1020_vm1, %v1004_v4  ;;  %v902_v8 = vadd.f32 %v901_v6, %v853_v5  ;;  %v807_v13 = vadd.f32 %v806_v7, %v758_v10 }
  0xda   : > { %v953_v9 = vpop.f32.mrf.mxu0 }
  0xdb   : > { %v951_v11 = vadd.f32 %v950_v62, %v902_v8 }
  0xdd   : > { %v989_v12 = vmax.f32 %v951_v11, 0.0 }
  0xde   : > { %v855_v15 = vpop.f32.mrf.mxu2 }
  0xdf   : > { %v1005_v16 = vpack.c.bf16 %v989_v12, %v989_v12  ;;  %v856_v17 = vadd.f32 %v855_v15, %v807_v13  ;;  %v770_v12 = vadd.f32 %v1762_v18, %v1795_v47 }
  0xe0   : > { %v904_v19 = vpop.f32.mrf.mxu3  ;;  %v808_v21 = vpop.f32.mrf.mxu1 }
  0xe1   : > { %1022 = vst.msk [vmem:[%s1809_s22 + $0x4] sm:$0xf] %vm1020_vm1, %v1005_v16  ;;  %v905_v24 = vadd.f32 %v904_v19, %v856_v17  ;;  %v809_v29 = vadd.f32 %v808_v21, %v760_v26 }
  0xe2   : > { %v955_v25 = vpop.f32.mrf.mxu0 }
  0xe3   : > { %v954_v27 = vadd.f32 %v953_v9, %v905_v24 }
  0xe5   : > { %v990_v28 = vmax.f32 %v954_v27, 0.0 }
  0xe6   : > { %v857_v30 = vpop.f32.mrf.mxu2 }
  0xe7   : > { %v1006_v31 = vpack.c.bf16 %v990_v28, %v990_v28  ;;  %v858_v32 = vadd.f32 %v857_v30, %v809_v29 }
  0xe8   : > { %v906_v33 = vpop.f32.mrf.mxu3  ;;  %v811_v35 = vpop.f32.mrf.mxu1 }
  0xe9   : > { %1023 = vst.msk [vmem:[%s1809_s22 + $0x8] sm:$0xf] %vm1020_vm1, %v1006_v31  ;;  %v907_v36 = vadd.f32 %v906_v33, %v858_v32  ;;  %v812_v43 = vadd.f32 %v811_v35, %v763_v40 }
  0xea   : > { %v958_v37 = vpop.f32.mrf.mxu0 }
  0xeb   : > { %v956_v41 = vadd.f32 %v955_v25, %v907_v36 }
  0xed   : > { %v991_v42 = vmax.f32 %v956_v41, 0.0 }
  0xee   : > { %v860_v45 = vpop.f32.mrf.mxu2 }
  0xef   : > { %v1007_v48 = vpack.c.bf16 %v991_v42, %v991_v42  ;;  %v861_v49 = vadd.f32 %v860_v45, %v812_v43 }
  0xf0   : > { %v909_v51 = vpop.f32.mrf.mxu3  ;;  %v813_v53 = vpop.f32.mrf.mxu1 }
  0xf1   : > { %1024 = vst.msk [vmem:[%s1809_s22 + $0xc] sm:$0xf] %vm1020_vm1, %v1007_v48  ;;  %v910_v54 = vadd.f32 %v909_v51, %v861_v49  ;;  %v814_v59 = vadd.f32 %v813_v53, %v765_v56 }
  0xf2   : > { %v960_v55 = vpop.f32.mrf.mxu0 }
  0xf3   : > { %v959_v57 = vadd.f32 %v958_v37, %v910_v54 }
  0xf5   : > { %v992_v58 = vmax.f32 %v959_v57, 0.0 }
  0xf6   : > { %v862_v14 = vpop.f32.mrf.mxu2 }
  0xf7   : > { %v1008_v60 = vpack.c.bf16 %v992_v58, %v992_v58  ;;  %v863_v61 = vadd.f32 %v862_v14, %v814_v59 }
  0xf8   : > { %v911_v62 = vpop.f32.mrf.mxu3  ;;  %v816_v63 = vpop.f32.mrf.mxu1 }
  0xf9   : > { %1025 = vst.msk [vmem:[%s1809_s22 + $0x10] sm:$0xf] %vm1020_vm1, %v1008_v60  ;;  %v912_v0 = vadd.f32 %v911_v62, %v863_v61  ;;  %v817_v5 = vadd.f32 %v816_v63, %v768_v2 }
  0xfa   : > { %v963_v1 = vpop.f32.mrf.mxu0 }
  0xfb   : > { %v961_v3 = vadd.f32 %v960_v55, %v912_v0 }
  0xfd   : > { %v993_v4 = vmax.f32 %v961_v3, 0.0 }
  0xfe   : > { %v865_v23 = vpop.f32.mrf.mxu2 }
  0xff   : > { %v1009_v6 = vpack.c.bf16 %v993_v4, %v993_v4  ;;  %v866_v7 = vadd.f32 %v865_v23, %v817_v5 }
 0x100   : > { %v914_v8 = vpop.f32.mrf.mxu3  ;;  %v818_v9 = vpop.f32.mrf.mxu1 }
 0x101   : > { %1026 = vst.msk [vmem:[%s1809_s22 + $0x14] sm:$0xf] %vm1020_vm1, %v1009_v6  ;;  %v915_v10 = vadd.f32 %v914_v8, %v866_v7  ;;  %v819_v16 = vadd.f32 %v818_v9, %v770_v12 }
 0x102   : > { %v965_v11 = vpop.f32.mrf.mxu0 }
 0x103   : > { %v964_v13 = vadd.f32 %v963_v1, %v915_v10 }
 0x105   : > { %v994_v15 = vmax.f32 %v964_v13, 0.0 }
 0x106   : > { %v867_v39 = vpop.f32.mrf.mxu2 }
 0x107   : > { %v1010_v17 = vpack.c.bf16 %v994_v15, %v994_v15  ;;  %v868_v19 = vadd.f32 %v867_v39, %v819_v16 }
 0x108   : > { %v916_v21 = vpop.f32.mrf.mxu3  ;;  %v821_v24 = vpop.f32.mrf.mxu1 }
 0x109   : > { %1027 = vst.msk [vmem:[%s1809_s22 + $0x18] sm:$0xf] %vm1020_vm1, %v1010_v17  ;;  %v917_v25 = vadd.f32 %v916_v21, %v868_v19  ;;  %v822_v29 = vadd.f32 %v821_v24, %v1765_v20 }
 0x10a   : > { %v968_v26 = vpop.f32.mrf.mxu0 }
 0x10b   : > { %v966_v27 = vadd.f32 %v965_v11, %v917_v25 }
 0x10d   : > { %v995_v28 = vmax.f32 %v966_v27, 0.0 }
 0x10e   : > { %v870_v30 = vpop.f32.mrf.mxu2 }
 0x10f   : > { %v1011_v18 = vpack.c.bf16 %v995_v28, %v995_v28  ;;  %v871_v47 = vadd.f32 %v870_v30, %v822_v29 }
 0x110   : > { %v919_v31 = vpop.f32.mrf.mxu3  ;;  %v823_v32 = vpop.f32.mrf.mxu1 }
 0x111   : > { %1028 = vst.msk [vmem:[%s1809_s22 + $0x1c] sm:$0xf] %vm1020_vm1, %v1011_v18  ;;  %v920_v33 = vadd.f32 %v919_v31, %v871_v47  ;;  %v824_v40 = vadd.f32 %v823_v32, %v1781_v34 }
 0x112   : > { %v970_v35 = vpop.f32.mrf.mxu0 }
 0x113   : > { %v969_v36 = vadd.f32 %v968_v26, %v920_v33 }
 0x115   : > { %v996_v37 = vmax.f32 %v969_v36, 0.0 }
 0x116   : > { %v872_v41 = vpop.f32.mrf.mxu2 }
 0x117   : > { %v1012_v42 = vpack.c.bf16 %v996_v37, %v996_v37  ;;  %v873_v43 = vadd.f32 %v872_v41, %v824_v40 }
 0x118   : > { %v921_v45 = vpop.f32.mrf.mxu3  ;;  %v826_v20 = vpop.f32.mrf.mxu1 }
 0x119   : > { %1029 = vst.msk [vmem:[%s1809_s22 + $0x20] sm:$0xf] %vm1020_vm1, %v1012_v42  ;;  %v922_v48 = vadd.f32 %v921_v45, %v873_v43  ;;  %v827_v54 = vadd.f32 %v826_v20, %v1790_v44 }
 0x11a   : > { %v973_v49 = vpop.f32.mrf.mxu0 }
 0x11b   : > { %v971_v51 = vadd.f32 %v970_v35, %v922_v48 }
 0x11d   : > { %v997_v53 = vmax.f32 %v971_v51, 0.0 }
 0x11e   : > { %v875_v55 = vpop.f32.mrf.mxu2 }
 0x11f   : > { %v1013_v56 = vpack.c.bf16 %v997_v53, %v997_v53  ;;  %v876_v57 = vadd.f32 %v875_v55, %v827_v54 }
 0x120   : > { %v924_v58 = vpop.f32.mrf.mxu3  ;;  %v828_v34 = vpop.f32.mrf.mxu1 }
 0x121   : > { %1030 = vst.msk [vmem:[%s1809_s22 + $0x24] sm:$0xf] %vm1020_vm1, %v1013_v56  ;;  %v925_v59 = vadd.f32 %v924_v58, %v876_v57  ;;  %v829_v62 = vadd.f32 %v828_v34, %v1798_v50 }
 0x122   : > { %v975_v14 = vpop.f32.mrf.mxu0 }
 0x123   : > { %v974_v60 = vadd.f32 %v973_v49, %v925_v59 }
 0x125   : > { %v998_v61 = vmax.f32 %v974_v60, 0.0 }
 0x126   : > { %v877_v63 = vpop.f32.mrf.mxu2 }
 0x127   : > { %v1014_v0 = vpack.c.bf16 %v998_v61, %v998_v61  ;;  %v878_v1 = vadd.f32 %v877_v63, %v829_v62 }
 0x128   : > { %v926_v2 = vpop.f32.mrf.mxu3  ;;  %v831_v44 = vpop.f32.mrf.mxu1 }
 0x129   : > { %1031 = vst.msk [vmem:[%s1809_s22 + $0x28] sm:$0xf] %vm1020_vm1, %v1014_v0  ;;  %v927_v3 = vadd.f32 %v926_v2, %v878_v1  ;;  %v832_v6 = vadd.f32 %v831_v44, %v1768_v22 }
 0x12a   : > { %v978_v5 = vpop.f32.mrf.mxu0 }
 0x12b   : > { %v976_v4 = vadd.f32 %v975_v14, %v927_v3 }
 0x12d   : > { %v999_v23 = vmax.f32 %v976_v4, 0.0 }
 0x12e   : > { %v880_v7 = vpop.f32.mrf.mxu2 }
 0x12f   : > { %v1015_v8 = vpack.c.bf16 %v999_v23, %v999_v23  ;;  %v881_v9 = vadd.f32 %v880_v7, %v832_v6 }
 0x130   : > { %v929_v10 = vpop.f32.mrf.mxu3  ;;  %v833_v50 = vpop.f32.mrf.mxu1 }
 0x131   : > { %1032 = vst.msk [vmem:[%s1809_s22 + $0x2c] sm:$0xf] %vm1020_vm1, %v1015_v8  ;;  %v930_v11 = vadd.f32 %v929_v10, %v881_v9  ;;  %v834_v15 = vadd.f32 %v833_v50, %v1784_v38 }
 0x132   : > { %v980_v16 = vpop.f32.mrf.mxu0 }
 0x133   : > { %v979_v12 = vadd.f32 %v978_v5, %v930_v11 }
 0x135   : > { %v1000_v13 = vmax.f32 %v979_v12, 0.0 }
 0x136   : > { %v882_v39 = vpop.f32.mrf.mxu2 }
 0x137   : > { %v1016_v17 = vpack.c.bf16 %v1000_v13, %v1000_v13  ;;  %v883_v19 = vadd.f32 %v882_v39, %v834_v15 }
 0x138   : > { %v931_v21 = vpop.f32.mrf.mxu3  ;;  %v836_v22 = vpop.f32.mrf.mxu1 }
 0x139   : > { %1033 = vst.msk [vmem:[%s1809_s22 + $0x30] sm:$0xf] %vm1020_vm1, %v1016_v17  ;;  %v932_v24 = vadd.f32 %v931_v21, %v883_v19  ;;  %v837_v27 = vadd.f32 %v836_v22, %v1793_v46 }
 0x13a   : > { %v983_v38 = vpop.f32.mrf.mxu0 }
 0x13b   : > { %v981_v25 = vadd.f32 %v980_v16, %v932_v24 }
 0x13d   : > { %v1001_v26 = vmax.f32 %v981_v25, 0.0 }
 0x13e   : > { %v885_v28 = vpop.f32.mrf.mxu2 }
 0x13f   : > { %v1017_v29 = vpack.c.bf16 %v1001_v26, %v1001_v26  ;;  %v886_v30 = vadd.f32 %v885_v28, %v837_v27 }
 0x140   : > { %v934_v18 = vpop.f32.mrf.mxu3  ;;  %v838_v31 = vpop.f32.mrf.mxu1 }
 0x141   : > { %1034 = vst.msk [vmem:[%s1809_s22 + $0x34] sm:$0xf] %vm1020_vm1, %v1017_v29  ;;  %v935_v47 = vadd.f32 %v934_v18, %v886_v30  ;;  %v839_v35 = vadd.f32 %v838_v31, %v1801_v52 }
 0x142   : > { %v985_v42 = vpop.f32.mrf.mxu0 }
 0x143   : > { %v984_v32 = vadd.f32 %v983_v38, %v935_v47 }
 0x145   : > { %v1002_v33 = vmax.f32 %v984_v32, 0.0 }
 0x146   : > { %v887_v36 = vpop.f32.mrf.mxu2 }
 0x147   : > { %v1018_v37 = vpack.c.bf16 %v1002_v33, %v1002_v33  ;;  %v888_v40 = vadd.f32 %v887_v36, %v839_v35 }
 0x148   : > { %v936_v41 = vpop.f32.mrf.mxu3 }
 0x149   : > { %1035 = vst.msk [vmem:[%s1809_s22 + $0x38] sm:$0xf] %vm1020_vm1, %v1018_v37  ;;  %v937_v46 = vadd.f32 %v936_v41, %v888_v40 }
 0x14b   : > { %v986_v43 = vadd.f32 %v985_v42, %v937_v46 }
 0x14d   : > { %v1003_v45 = vmax.f32 %v986_v43, 0.0 }
 0x14f   : > { %v1019_v20 = vpack.c.bf16 %v1003_v45, %v1003_v45 }
 0x151   : > { %1036 = vst.msk [vmem:[%s1809_s22 + $0x3c] sm:$0xf] %vm1020_vm1, %v1019_v20 }
 0x152 PF: > { %s13_s12 = sadd.s32 1, %s1532_s12  }
 0x153   : > { %p10_p4 = scmp.ge.s32.totalorder %s13_s12, 4  }
 0x155   :  { %12 = sbr.rel (!%p10_p4) target bundleno = 1 (0x1), region = 62 }

// kernel: dqn_forward.7
= control target key start
LH: loop header
LB: loop body
LE: loop exit
PB: predicated region body
PF: predicated region fallthrough
CT: control target
= control target key end

     0   :  { %s18084_s18 = smov 0   ;;  %s18086_s19 = smov 0   ;;  %s22137_s0 = inlined_call_operand.vmem [shape: bf16[16,6400], index: 0, kind: input, shape index: {}]   ;;  %s22138_s1 = inlined_call_operand.vmem [shape: bf16[6400,1024], index: 1, kind: input, shape index: {}]   ;;  %s22139_s2 = inlined_call_operand.vmem [shape: f32[1,1024], index: 2, kind: input, shape index: {}]   ;;  %s22140_s3 = inlined_call_operand.vmem [shape: bf16[1024,8], index: 3, kind: input, shape index: {}]   ;;  %s22141_s4 = inlined_call_operand.vmem [shape: f32[1,8], index: 4, kind: input, shape index: {}]   ;;  %s22142_s5 = inlined_call_operand.vmem [shape: f32[16,8], index: 5, kind: output, shape index: {}]  }
   0x1   :  { %s18088_s20 = smov 0   ;;  %s18090_s21 = smov 0  }
   0x2   :  { %s18092_s22 = smov 0  }
   0x3 LB: > { %s24_s23 = sadd.s32 1, %s18046_s21  ;;  %p67_p1 = scmp.ne.s32.totalorder %s18038_s19, %s18034_s18  ;;  %s18050_s22 = sphi %s18092_s22, %s15_s22   ;;  %s18046_s21 = sphi %s18090_s21, %s22266_s21   ;;  %s18042_s20 = sphi %s18088_s20, %s22265_s20   ;;  %s18038_s19 = sphi %s18086_s19, %s22264_s19   ;;  %s18034_s18 = sphi %s18084_s18, %s22263_s18  }
   0x4   : > { %p25_p0 = scmp.ge.s32.totalorder %s24_s23, 4  ;;  %p68_p2 = scmp.eq.s32.totalorder %s18050_s22, 0 }
   0x5   : > { %s60_s25 = sadd.s32 1, %s18038_s19  ;;  %p13620_p5 = scmp.ge.s32.totalorder %s18050_s22, 4 }
   0x6   : > { %s22268_s23 = smov (%p25_p0, %s24_s23), 0  ;;  %p69_p3 = por %p68_p2, %p67_p1 }
   0x7   : > { %s57_s24 = ssub.s32 %s18046_s21, %s22268_s23  ;;  %205 = sbr.rel (%p13620_p5) target bundleno = 816 (0x330), region = 24 }
   0x8   : > { %p58_p4 = scmp.eq.s32.totalorder %s57_s24, 0 }
   0xa   : > { %s18119_s26 = scalar_select %p58_p4, %s18038_s19, %s60_s25  }
   0xc   : > { %208 = sbr.rel (!%p69_p3) target bundleno = 816 (0x330), region = 28  ;;  %s210_s27 = sand.u32 (%p69_p3), 1, %s18038_s19  }
   0xd   : > { %s17097_s28 = sshll.u32 (%p69_p3), %s18046_s21, 3  ;;  %s17964_s29 = smul.u32 (%p69_p3), 6400, %s210_s27 }
   0xe   : > { %s18127_s7 = scalar_lea.vmem (%p69_p3), %s22138_s1, %s17097_s28 }
   0xf   : > { %v1843_v0 = vld [vmem:[%s18127_s7] sm:$0xff] (%p69_p3)  ;;  %s18132_s8 = scalar_lea.vmem (%p69_p3), [#allocation3], %s17964_s29 }
  0x10   : > { %v1845_v1 = vld [vmem:[%s18127_s7 + $0x20] sm:$0xff] (%p69_p3)  ;;  %1844 = vst [vmem:[%s18132_s8] sm:$0xff] (%p69_p3), %v1843_v0 }
  0x11   : > { %v1847_v2 = vld [vmem:[%s18127_s7 + $0x40] sm:$0xff]  ;;  %1846 = vst [vmem:[%s18132_s8 + $0x8] sm:$0xff] %v1845_v1 }
  0x12   : > { %v1849_v3 = vld [vmem:[%s18127_s7 + $0x60] sm:$0xff]  ;;  %1848 = vst [vmem:[%s18132_s8 + $0x10] sm:$0xff] %v1847_v2 }
  0x13   : > { %v1851_v4 = vld [vmem:[%s18127_s7 + $0x80] sm:$0xff]  ;;  %1850 = vst [vmem:[%s18132_s8 + $0x18] sm:$0xff] %v1849_v3 }
  0x14   : > { %v1853_v5 = vld [vmem:[%s18127_s7 + $0xa0] sm:$0xff]  ;;  %1852 = vst [vmem:[%s18132_s8 + $0x20] sm:$0xff] %v1851_v4 }
  0x15   : > { %v1855_v6 = vld [vmem:[%s18127_s7 + $0xc0] sm:$0xff]  ;;  %1854 = vst [vmem:[%s18132_s8 + $0x28] sm:$0xff] %v1853_v5 }
  0x16   : > { %v1857_v7 = vld [vmem:[%s18127_s7 + $0xe0] sm:$0xff]  ;;  %1856 = vst [vmem:[%s18132_s8 + $0x30] sm:$0xff] %v1855_v6 }
  0x17   : > { %v1859_v8 = vld [vmem:[%s18127_s7 + $0x100] sm:$0xff]  ;;  %1858 = vst [vmem:[%s18132_s8 + $0x38] sm:$0xff] %v1857_v7 }
  0x18   : > { %v1861_v9 = vld [vmem:[%s18127_s7 + $0x120] sm:$0xff]  ;;  %1860 = vst [vmem:[%s18132_s8 + $0x40] sm:$0xff] %v1859_v8 }
  0x19   : > { %v1863_v10 = vld [vmem:[%s18127_s7 + $0x140] sm:$0xff]  ;;  %1862 = vst [vmem:[%s18132_s8 + $0x48] sm:$0xff] %v1861_v9 }
  0x1a   : > { %v1865_v11 = vld [vmem:[%s18127_s7 + $0x160] sm:$0xff]  ;;  %1864 = vst [vmem:[%s18132_s8 + $0x50] sm:$0xff] %v1863_v10 }
  0x1b   : > { %v1867_v12 = vld [vmem:[%s18127_s7 + $0x180] sm:$0xff]  ;;  %1866 = vst [vmem:[%s18132_s8 + $0x58] sm:$0xff] %v1865_v11 }
  0x1c   : > { %v1869_v13 = vld [vmem:[%s18127_s7 + $0x1a0] sm:$0xff]  ;;  %1868 = vst [vmem:[%s18132_s8 + $0x60] sm:$0xff] %v1867_v12 }
  0x1d   : > { %v1871_v14 = vld [vmem:[%s18127_s7 + $0x1c0] sm:$0xff]  ;;  %1870 = vst [vmem:[%s18132_s8 + $0x68] sm:$0xff] %v1869_v13 }
  0x1e   : > { %v1873_v15 = vld [vmem:[%s18127_s7 + $0x1e0] sm:$0xff]  ;;  %1872 = vst [vmem:[%s18132_s8 + $0x70] sm:$0xff] %v1871_v14 }
  0x1f   : > { %v1875_v16 = vld [vmem:[%s18127_s7 + $0x200] sm:$0xff]  ;;  %1874 = vst [vmem:[%s18132_s8 + $0x78] sm:$0xff] %v1873_v15 }
  0x20   : > { %v1877_v17 = vld [vmem:[%s18127_s7 + $0x220] sm:$0xff]  ;;  %1876 = vst [vmem:[%s18132_s8 + $0x80] sm:$0xff] %v1875_v16 }
  0x21   : > { %v1879_v18 = vld [vmem:[%s18127_s7 + $0x240] sm:$0xff]  ;;  %1878 = vst [vmem:[%s18132_s8 + $0x88] sm:$0xff] %v1877_v17 }
  0x22   : > { %v1881_v19 = vld [vmem:[%s18127_s7 + $0x260] sm:$0xff]  ;;  %1880 = vst [vmem:[%s18132_s8 + $0x90] sm:$0xff] %v1879_v18 }
  0x23   : > { %v1883_v20 = vld [vmem:[%s18127_s7 + $0x280] sm:$0xff]  ;;  %1882 = vst [vmem:[%s18132_s8 + $0x98] sm:$0xff] %v1881_v19 }
  0x24   : > { %v1885_v21 = vld [vmem:[%s18127_s7 + $0x2a0] sm:$0xff]  ;;  %1884 = vst [vmem:[%s18132_s8 + $0xa0] sm:$0xff] %v1883_v20 }
  0x25   : > { %v1887_v22 = vld [vmem:[%s18127_s7 + $0x2c0] sm:$0xff]  ;;  %1886 = vst [vmem:[%s18132_s8 + $0xa8] sm:$0xff] %v1885_v21 }
  0x26   : > { %v1889_v23 = vld [vmem:[%s18127_s7 + $0x2e0] sm:$0xff]  ;;  %1888 = vst [vmem:[%s18132_s8 + $0xb0] sm:$0xff] %v1887_v22 }
  0x27   : > { %v1891_v24 = vld [vmem:[%s18127_s7 + $0x300] sm:$0xff]  ;;  %1890 = vst [vmem:[%s18132_s8 + $0xb8] sm:$0xff] %v1889_v23 }
  0x28   : > { %v1893_v25 = vld [vmem:[%s18127_s7 + $0x320] sm:$0xff]  ;;  %1892 = vst [vmem:[%s18132_s8 + $0xc0] sm:$0xff] %v1891_v24 }
  0x29   : > { %v1895_v26 = vld [vmem:[%s18127_s7 + $0x340] sm:$0xff]  ;;  %1894 = vst [vmem:[%s18132_s8 + $0xc8] sm:$0xff] %v1893_v25 }
  0x2a   : > { %v1897_v27 = vld [vmem:[%s18127_s7 + $0x360] sm:$0xff]  ;;  %1896 = vst [vmem:[%s18132_s8 + $0xd0] sm:$0xff] %v1895_v26 }
  0x2b   : > { %v1899_v28 = vld [vmem:[%s18127_s7 + $0x380] sm:$0xff]  ;;  %1898 = vst [vmem:[%s18132_s8 + $0xd8] sm:$0xff] %v1897_v27 }
  0x2c   : > { %v1901_v29 = vld [vmem:[%s18127_s7 + $0x3a0] sm:$0xff]  ;;  %1900 = vst [vmem:[%s18132_s8 + $0xe0] sm:$0xff] %v1899_v28 }
  0x2d   : > { %v1903_v30 = vld [vmem:[%s18127_s7 + $0x3c0] sm:$0xff]  ;;  %1902 = vst [vmem:[%s18132_s8 + $0xe8] sm:$0xff] %v1901_v29 }
  0x2e   : > { %v1905_v31 = vld [vmem:[%s18127_s7 + $0x3e0] sm:$0xff]  ;;  %1904 = vst [vmem:[%s18132_s8 + $0xf0] sm:$0xff] %v1903_v30 }
  0x2f   : > { %v1907_v32 = vld [vmem:[%s18127_s7 + $0x400] sm:$0xff]  ;;  %1906 = vst [vmem:[%s18132_s8 + $0xf8] sm:$0xff] %v1905_v31 }
  0x30   : > { %v1909_v33 = vld [vmem:[%s18127_s7 + $0x420] sm:$0xff]  ;;  %1908 = vst [vmem:[%s18132_s8 + $0x100] sm:$0xff] %v1907_v32 }
  0x31   : > { %v1911_v34 = vld [vmem:[%s18127_s7 + $0x440] sm:$0xff]  ;;  %1910 = vst [vmem:[%s18132_s8 + $0x108] sm:$0xff] %v1909_v33 }
  0x32   : > { %v1913_v35 = vld [vmem:[%s18127_s7 + $0x460] sm:$0xff]  ;;  %1912 = vst [vmem:[%s18132_s8 + $0x110] sm:$0xff] %v1911_v34 }
  0x33   : > { %v1915_v36 = vld [vmem:[%s18127_s7 + $0x480] sm:$0xff]  ;;  %1914 = vst [vmem:[%s18132_s8 + $0x118] sm:$0xff] %v1913_v35 }
  0x34   : > { %v1917_v37 = vld [vmem:[%s18127_s7 + $0x4a0] sm:$0xff]  ;;  %1916 = vst [vmem:[%s18132_s8 + $0x120] sm:$0xff] %v1915_v36 }
  0x35   : > { %v1919_v38 = vld [vmem:[%s18127_s7 + $0x4c0] sm:$0xff]  ;;  %1918 = vst [vmem:[%s18132_s8 + $0x128] sm:$0xff] %v1917_v37 }
  0x36   : > { %v1921_v39 = vld [vmem:[%s18127_s7 + $0x4e0] sm:$0xff]  ;;  %1920 = vst [vmem:[%s18132_s8 + $0x130] sm:$0xff] %v1919_v38 }
  0x37   : > { %v1923_v40 = vld [vmem:[%s18127_s7 + $0x500] sm:$0xff]  ;;  %1922 = vst [vmem:[%s18132_s8 + $0x138] sm:$0xff] %v1921_v39 }
  0x38   : > { %v1925_v41 = vld [vmem:[%s18127_s7 + $0x520] sm:$0xff]  ;;  %1924 = vst [vmem:[%s18132_s8 + $0x140] sm:$0xff] %v1923_v40 }
  0x39   : > { %v1927_v42 = vld [vmem:[%s18127_s7 + $0x540] sm:$0xff]  ;;  %1926 = vst [vmem:[%s18132_s8 + $0x148] sm:$0xff] %v1925_v41 }
  0x3a   : > { %v1929_v43 = vld [vmem:[%s18127_s7 + $0x560] sm:$0xff]  ;;  %1928 = vst [vmem:[%s18132_s8 + $0x150] sm:$0xff] %v1927_v42 }
  0x3b   : > { %v1931_v44 = vld [vmem:[%s18127_s7 + $0x580] sm:$0xff]  ;;  %1930 = vst [vmem:[%s18132_s8 + $0x158] sm:$0xff] %v1929_v43 }
  0x3c   : > { %v1933_v45 = vld [vmem:[%s18127_s7 + $0x5a0] sm:$0xff]  ;;  %1932 = vst [vmem:[%s18132_s8 + $0x160] sm:$0xff] %v1931_v44 }
  0x3d   : > { %v1935_v46 = vld [vmem:[%s18127_s7 + $0x5c0] sm:$0xff]  ;;  %1934 = vst [vmem:[%s18132_s8 + $0x168] sm:$0xff] %v1933_v45 }
  0x3e   : > { %v1937_v47 = vld [vmem:[%s18127_s7 + $0x5e0] sm:$0xff]  ;;  %1936 = vst [vmem:[%s18132_s8 + $0x170] sm:$0xff] %v1935_v46 }
  0x3f   : > { %v1939_v48 = vld [vmem:[%s18127_s7 + $0x600] sm:$0xff]  ;;  %1938 = vst [vmem:[%s18132_s8 + $0x178] sm:$0xff] %v1937_v47 }
  0x40   : > { %v1941_v49 = vld [vmem:[%s18127_s7 + $0x620] sm:$0xff]  ;;  %1940 = vst [vmem:[%s18132_s8 + $0x180] sm:$0xff] %v1939_v48 }
  0x41   : > { %v1943_v50 = vld [vmem:[%s18127_s7 + $0x640] sm:$0xff]  ;;  %1942 = vst [vmem:[%s18132_s8 + $0x188] sm:$0xff] %v1941_v49 }
  0x42   : > { %v1945_v51 = vld [vmem:[%s18127_s7 + $0x660] sm:$0xff]  ;;  %1944 = vst [vmem:[%s18132_s8 + $0x190] sm:$0xff] %v1943_v50 }
  0x43   : > { %v1947_v52 = vld [vmem:[%s18127_s7 + $0x680] sm:$0xff]  ;;  %1946 = vst [vmem:[%s18132_s8 + $0x198] sm:$0xff] %v1945_v51 }
  0x44   : > { %v1949_v53 = vld [vmem:[%s18127_s7 + $0x6a0] sm:$0xff]  ;;  %1948 = vst [vmem:[%s18132_s8 + $0x1a0] sm:$0xff] %v1947_v52 }
  0x45   : > { %v1951_v54 = vld [vmem:[%s18127_s7 + $0x6c0] sm:$0xff]  ;;  %1950 = vst [vmem:[%s18132_s8 + $0x1a8] sm:$0xff] %v1949_v53 }
  0x46   : > { %v1953_v55 = vld [vmem:[%s18127_s7 + $0x6e0] sm:$0xff]  ;;  %1952 = vst [vmem:[%s18132_s8 + $0x1b0] sm:$0xff] %v1951_v54 }
  0x47   : > { %v1955_v56 = vld [vmem:[%s18127_s7 + $0x700] sm:$0xff]  ;;  %1954 = vst [vmem:[%s18132_s8 + $0x1b8] sm:$0xff] %v1953_v55 }
  0x48   : > { %v1957_v57 = vld [vmem:[%s18127_s7 + $0x720] sm:$0xff]  ;;  %1956 = vst [vmem:[%s18132_s8 + $0x1c0] sm:$0xff] %v1955_v56 }
  0x49   : > { %v1959_v58 = vld [vmem:[%s18127_s7 + $0x740] sm:$0xff]  ;;  %1958 = vst [vmem:[%s18132_s8 + $0x1c8] sm:$0xff] %v1957_v57 }
  0x4a   : > { %v1961_v59 = vld [vmem:[%s18127_s7 + $0x760] sm:$0xff]  ;;  %1960 = vst [vmem:[%s18132_s8 + $0x1d0] sm:$0xff] %v1959_v58 }
  0x4b   : > { %v1963_v60 = vld [vmem:[%s18127_s7 + $0x780] sm:$0xff]  ;;  %1962 = vst [vmem:[%s18132_s8 + $0x1d8] sm:$0xff] %v1961_v59 }
  0x4c   : > { %v1965_v61 = vld [vmem:[%s18127_s7 + $0x7a0] sm:$0xff]  ;;  %1964 = vst [vmem:[%s18132_s8 + $0x1e0] sm:$0xff] %v1963_v60 }
  0x4d   : > { %v1967_v62 = vld [vmem:[%s18127_s7 + $0x7c0] sm:$0xff]  ;;  %1966 = vst [vmem:[%s18132_s8 + $0x1e8] sm:$0xff] %v1965_v61 }
  0x4e   : > { %v1969_v63 = vld [vmem:[%s18127_s7 + $0x7e0] sm:$0xff]  ;;  %1968 = vst [vmem:[%s18132_s8 + $0x1f0] sm:$0xff] %v1967_v62 }
  0x4f   : > { %v1971_v0 = vld [vmem:[%s18127_s7 + $0x800] sm:$0xff]  ;;  %1970 = vst [vmem:[%s18132_s8 + $0x1f8] sm:$0xff] %v1969_v63 }
  0x50   : > { %v1973_v1 = vld [vmem:[%s18127_s7 + $0x820] sm:$0xff]  ;;  %1972 = vst [vmem:[%s18132_s8 + $0x200] sm:$0xff] %v1971_v0 }
  0x51   : > { %v1975_v2 = vld [vmem:[%s18127_s7 + $0x840] sm:$0xff]  ;;  %1974 = vst [vmem:[%s18132_s8 + $0x208] sm:$0xff] %v1973_v1 }
  0x52   : > { %v1977_v3 = vld [vmem:[%s18127_s7 + $0x860] sm:$0xff]  ;;  %1976 = vst [vmem:[%s18132_s8 + $0x210] sm:$0xff] %v1975_v2 }
  0x53   : > { %v1979_v4 = vld [vmem:[%s18127_s7 + $0x880] sm:$0xff]  ;;  %1978 = vst [vmem:[%s18132_s8 + $0x218] sm:$0xff] %v1977_v3 }
  0x54   : > { %v1981_v5 = vld [vmem:[%s18127_s7 + $0x8a0] sm:$0xff]  ;;  %1980 = vst [vmem:[%s18132_s8 + $0x220] sm:$0xff] %v1979_v4 }
  0x55   : > { %v1983_v6 = vld [vmem:[%s18127_s7 + $0x8c0] sm:$0xff]  ;;  %1982 = vst [vmem:[%s18132_s8 + $0x228] sm:$0xff] %v1981_v5 }
  0x56   : > { %v1985_v7 = vld [vmem:[%s18127_s7 + $0x8e0] sm:$0xff]  ;;  %1984 = vst [vmem:[%s18132_s8 + $0x230] sm:$0xff] %v1983_v6 }
  0x57   : > { %v1987_v8 = vld [vmem:[%s18127_s7 + $0x900] sm:$0xff]  ;;  %1986 = vst [vmem:[%s18132_s8 + $0x238] sm:$0xff] %v1985_v7 }
  0x58   : > { %v1989_v9 = vld [vmem:[%s18127_s7 + $0x920] sm:$0xff]  ;;  %1988 = vst [vmem:[%s18132_s8 + $0x240] sm:$0xff] %v1987_v8 }
  0x59   : > { %v1991_v10 = vld [vmem:[%s18127_s7 + $0x940] sm:$0xff]  ;;  %1990 = vst [vmem:[%s18132_s8 + $0x248] sm:$0xff] %v1989_v9 }
  0x5a   : > { %v1993_v11 = vld [vmem:[%s18127_s7 + $0x960] sm:$0xff]  ;;  %1992 = vst [vmem:[%s18132_s8 + $0x250] sm:$0xff] %v1991_v10 }
  0x5b   : > { %v1995_v12 = vld [vmem:[%s18127_s7 + $0x980] sm:$0xff]  ;;  %1994 = vst [vmem:[%s18132_s8 + $0x258] sm:$0xff] %v1993_v11 }
  0x5c   : > { %v1997_v13 = vld [vmem:[%s18127_s7 + $0x9a0] sm:$0xff]  ;;  %1996 = vst [vmem:[%s18132_s8 + $0x260] sm:$0xff] %v1995_v12 }
  0x5d   : > { %v1999_v14 = vld [vmem:[%s18127_s7 + $0x9c0] sm:$0xff]  ;;  %1998 = vst [vmem:[%s18132_s8 + $0x268] sm:$0xff] %v1997_v13 }
  0x5e   : > { %v2001_v15 = vld [vmem:[%s18127_s7 + $0x9e0] sm:$0xff]  ;;  %2000 = vst [vmem:[%s18132_s8 + $0x270] sm:$0xff] %v1999_v14 }
  0x5f   : > { %v2003_v16 = vld [vmem:[%s18127_s7 + $0xa00] sm:$0xff]  ;;  %2002 = vst [vmem:[%s18132_s8 + $0x278] sm:$0xff] %v2001_v15 }
  0x60   : > { %v2005_v17 = vld [vmem:[%s18127_s7 + $0xa20] sm:$0xff]  ;;  %2004 = vst [vmem:[%s18132_s8 + $0x280] sm:$0xff] %v2003_v16 }
  0x61   : > { %v2007_v18 = vld [vmem:[%s18127_s7 + $0xa40] sm:$0xff]  ;;  %2006 = vst [vmem:[%s18132_s8 + $0x288] sm:$0xff] %v2005_v17 }
  0x62   : > { %v2009_v19 = vld [vmem:[%s18127_s7 + $0xa60] sm:$0xff]  ;;  %2008 = vst [vmem:[%s18132_s8 + $0x290] sm:$0xff] %v2007_v18 }
  0x63   : > { %v2011_v20 = vld [vmem:[%s18127_s7 + $0xa80] sm:$0xff]  ;;  %2010 = vst [vmem:[%s18132_s8 + $0x298] sm:$0xff] %v2009_v19 }
  0x64   : > { %v2013_v21 = vld [vmem:[%s18127_s7 + $0xaa0] sm:$0xff]  ;;  %2012 = vst [vmem:[%s18132_s8 + $0x2a0] sm:$0xff] %v2011_v20 }
  0x65   : > { %v2015_v22 = vld [vmem:[%s18127_s7 + $0xac0] sm:$0xff]  ;;  %2014 = vst [vmem:[%s18132_s8 + $0x2a8] sm:$0xff] %v2013_v21 }
  0x66   : > { %v2017_v23 = vld [vmem:[%s18127_s7 + $0xae0] sm:$0xff]  ;;  %2016 = vst [vmem:[%s18132_s8 + $0x2b0] sm:$0xff] %v2015_v22 }
  0x67   : > { %v2019_v24 = vld [vmem:[%s18127_s7 + $0xb00] sm:$0xff]  ;;  %2018 = vst [vmem:[%s18132_s8 + $0x2b8] sm:$0xff] %v2017_v23 }
  0x68   : > { %v2021_v25 = vld [vmem:[%s18127_s7 + $0xb20] sm:$0xff]  ;;  %2020 = vst [vmem:[%s18132_s8 + $0x2c0] sm:$0xff] %v2019_v24 }
  0x69   : > { %v2023_v26 = vld [vmem:[%s18127_s7 + $0xb40] sm:$0xff]  ;;  %2022 = vst [vmem:[%s18132_s8 + $0x2c8] sm:$0xff] %v2021_v25 }
  0x6a   : > { %v2025_v27 = vld [vmem:[%s18127_s7 + $0xb60] sm:$0xff]  ;;  %2024 = vst [vmem:[%s18132_s8 + $0x2d0] sm:$0xff] %v2023_v26 }
  0x6b   : > { %v2027_v28 = vld [vmem:[%s18127_s7 + $0xb80] sm:$0xff]  ;;  %2026 = vst [vmem:[%s18132_s8 + $0x2d8] sm:$0xff] %v2025_v27 }
  0x6c   : > { %v2029_v29 = vld [vmem:[%s18127_s7 + $0xba0] sm:$0xff]  ;;  %2028 = vst [vmem:[%s18132_s8 + $0x2e0] sm:$0xff] %v2027_v28 }
  0x6d   : > { %v2031_v30 = vld [vmem:[%s18127_s7 + $0xbc0] sm:$0xff]  ;;  %2030 = vst [vmem:[%s18132_s8 + $0x2e8] sm:$0xff] %v2029_v29 }
  0x6e   : > { %v2033_v31 = vld [vmem:[%s18127_s7 + $0xbe0] sm:$0xff]  ;;  %2032 = vst [vmem:[%s18132_s8 + $0x2f0] sm:$0xff] %v2031_v30 }
  0x6f   : > { %v2035_v32 = vld [vmem:[%s18127_s7 + $0xc00] sm:$0xff]  ;;  %2034 = vst [vmem:[%s18132_s8 + $0x2f8] sm:$0xff] %v2033_v31 }
  0x70   : > { %v2037_v33 = vld [vmem:[%s18127_s7 + $0xc20] sm:$0xff]  ;;  %2036 = vst [vmem:[%s18132_s8 + $0x300] sm:$0xff] %v2035_v32 }
  0x71   : > { %v2039_v34 = vld [vmem:[%s18127_s7 + $0xc40] sm:$0xff]  ;;  %2038 = vst [vmem:[%s18132_s8 + $0x308] sm:$0xff] %v2037_v33 }
  0x72   : > { %v2041_v35 = vld [vmem:[%s18127_s7 + $0xc60] sm:$0xff]  ;;  %2040 = vst [vmem:[%s18132_s8 + $0x310] sm:$0xff] %v2039_v34 }
  0x73   : > { %v2043_v36 = vld [vmem:[%s18127_s7 + $0xc80] sm:$0xff]  ;;  %2042 = vst [vmem:[%s18132_s8 + $0x318] sm:$0xff] %v2041_v35 }
  0x74   : > { %v2045_v37 = vld [vmem:[%s18127_s7 + $0xca0] sm:$0xff]  ;;  %2044 = vst [vmem:[%s18132_s8 + $0x320] sm:$0xff] %v2043_v36 }
  0x75   : > { %v2047_v38 = vld [vmem:[%s18127_s7 + $0xcc0] sm:$0xff]  ;;  %2046 = vst [vmem:[%s18132_s8 + $0x328] sm:$0xff] %v2045_v37 }
  0x76   : > { %v2049_v39 = vld [vmem:[%s18127_s7 + $0xce0] sm:$0xff]  ;;  %2048 = vst [vmem:[%s18132_s8 + $0x330] sm:$0xff] %v2047_v38 }
  0x77   : > { %v2051_v40 = vld [vmem:[%s18127_s7 + $0xd00] sm:$0xff]  ;;  %2050 = vst [vmem:[%s18132_s8 + $0x338] sm:$0xff] %v2049_v39 }
  0x78   : > { %v2053_v41 = vld [vmem:[%s18127_s7 + $0xd20] sm:$0xff]  ;;  %2052 = vst [vmem:[%s18132_s8 + $0x340] sm:$0xff] %v2051_v40 }
  0x79   : > { %v2055_v42 = vld [vmem:[%s18127_s7 + $0xd40] sm:$0xff]  ;;  %2054 = vst [vmem:[%s18132_s8 + $0x348] sm:$0xff] %v2053_v41 }
  0x7a   : > { %v2057_v43 = vld [vmem:[%s18127_s7 + $0xd60] sm:$0xff]  ;;  %2056 = vst [vmem:[%s18132_s8 + $0x350] sm:$0xff] %v2055_v42 }
  0x7b   : > { %v2059_v44 = vld [vmem:[%s18127_s7 + $0xd80] sm:$0xff]  ;;  %2058 = vst [vmem:[%s18132_s8 + $0x358] sm:$0xff] %v2057_v43 }
  0x7c   : > { %v2061_v45 = vld [vmem:[%s18127_s7 + $0xda0] sm:$0xff]  ;;  %2060 = vst [vmem:[%s18132_s8 + $0x360] sm:$0xff] %v2059_v44 }
  0x7d   : > { %v2063_v46 = vld [vmem:[%s18127_s7 + $0xdc0] sm:$0xff]  ;;  %2062 = vst [vmem:[%s18132_s8 + $0x368] sm:$0xff] %v2061_v45 }
  0x7e   : > { %v2065_v47 = vld [vmem:[%s18127_s7 + $0xde0] sm:$0xff]  ;;  %2064 = vst [vmem:[%s18132_s8 + $0x370] sm:$0xff] %v2063_v46 }
  0x7f   : > { %v2067_v48 = vld [vmem:[%s18127_s7 + $0xe00] sm:$0xff]  ;;  %2066 = vst [vmem:[%s18132_s8 + $0x378] sm:$0xff] %v2065_v47 }
  0x80   : > { %v2069_v49 = vld [vmem:[%s18127_s7 + $0xe20] sm:$0xff]  ;;  %2068 = vst [vmem:[%s18132_s8 + $0x380] sm:$0xff] %v2067_v48 }
  0x81   : > { %v2071_v50 = vld [vmem:[%s18127_s7 + $0xe40] sm:$0xff]  ;;  %2070 = vst [vmem:[%s18132_s8 + $0x388] sm:$0xff] %v2069_v49 }
  0x82   : > { %v2073_v51 = vld [vmem:[%s18127_s7 + $0xe60] sm:$0xff]  ;;  %2072 = vst [vmem:[%s18132_s8 + $0x390] sm:$0xff] %v2071_v50 }
  0x83   : > { %v2075_v52 = vld [vmem:[%s18127_s7 + $0xe80] sm:$0xff]  ;;  %2074 = vst [vmem:[%s18132_s8 + $0x398] sm:$0xff] %v2073_v51 }
  0x84   : > { %v2077_v53 = vld [vmem:[%s18127_s7 + $0xea0] sm:$0xff]  ;;  %2076 = vst [vmem:[%s18132_s8 + $0x3a0] sm:$0xff] %v2075_v52 }
  0x85   : > { %v2079_v54 = vld [vmem:[%s18127_s7 + $0xec0] sm:$0xff]  ;;  %2078 = vst [vmem:[%s18132_s8 + $0x3a8] sm:$0xff] %v2077_v53 }
  0x86   : > { %v2081_v55 = vld [vmem:[%s18127_s7 + $0xee0] sm:$0xff]  ;;  %2080 = vst [vmem:[%s18132_s8 + $0x3b0] sm:$0xff] %v2079_v54 }
  0x87   : > { %v2083_v56 = vld [vmem:[%s18127_s7 + $0xf00] sm:$0xff]  ;;  %2082 = vst [vmem:[%s18132_s8 + $0x3b8] sm:$0xff] %v2081_v55 }
  0x88   : > { %v2085_v57 = vld [vmem:[%s18127_s7 + $0xf20] sm:$0xff]  ;;  %2084 = vst [vmem:[%s18132_s8 + $0x3c0] sm:$0xff] %v2083_v56 }
  0x89   : > { %v2087_v58 = vld [vmem:[%s18127_s7 + $0xf40] sm:$0xff]  ;;  %2086 = vst [vmem:[%s18132_s8 + $0x3c8] sm:$0xff] %v2085_v57 }
  0x8a   : > { %v2089_v59 = vld [vmem:[%s18127_s7 + $0xf60] sm:$0xff]  ;;  %2088 = vst [vmem:[%s18132_s8 + $0x3d0] sm:$0xff] %v2087_v58 }
  0x8b   : > { %v2091_v60 = vld [vmem:[%s18127_s7 + $0xf80] sm:$0xff]  ;;  %2090 = vst [vmem:[%s18132_s8 + $0x3d8] sm:$0xff] %v2089_v59 }
  0x8c   : > { %v2093_v61 = vld [vmem:[%s18127_s7 + $0xfa0] sm:$0xff]  ;;  %2092 = vst [vmem:[%s18132_s8 + $0x3e0] sm:$0xff] %v2091_v60 }
  0x8d   : > { %v2095_v62 = vld [vmem:[%s18127_s7 + $0xfc0] sm:$0xff]  ;;  %2094 = vst [vmem:[%s18132_s8 + $0x3e8] sm:$0xff] %v2093_v61 }
  0x8e   : > { %v2097_v63 = vld [vmem:[%s18127_s7 + $0xfe0] sm:$0xff]  ;;  %2096 = vst [vmem:[%s18132_s8 + $0x3f0] sm:$0xff] %v2095_v62 }
  0x8f   : > { %v2099_v0 = vld [vmem:[%s18127_s7 + $0x1000] sm:$0xff]  ;;  %2098 = vst [vmem:[%s18132_s8 + $0x3f8] sm:$0xff] %v2097_v63 }
  0x90   : > { %v2101_v1 = vld [vmem:[%s18127_s7 + $0x1020] sm:$0xff]  ;;  %2100 = vst [vmem:[%s18132_s8 + $0x400] sm:$0xff] %v2099_v0 }
  0x91   : > { %v2103_v2 = vld [vmem:[%s18127_s7 + $0x1040] sm:$0xff]  ;;  %2102 = vst [vmem:[%s18132_s8 + $0x408] sm:$0xff] %v2101_v1 }
  0x92   : > { %v2105_v3 = vld [vmem:[%s18127_s7 + $0x1060] sm:$0xff]  ;;  %2104 = vst [vmem:[%s18132_s8 + $0x410] sm:$0xff] %v2103_v2 }
  0x93   : > { %v2107_v4 = vld [vmem:[%s18127_s7 + $0x1080] sm:$0xff]  ;;  %2106 = vst [vmem:[%s18132_s8 + $0x418] sm:$0xff] %v2105_v3 }
  0x94   : > { %v2109_v5 = vld [vmem:[%s18127_s7 + $0x10a0] sm:$0xff]  ;;  %2108 = vst [vmem:[%s18132_s8 + $0x420] sm:$0xff] %v2107_v4 }
  0x95   : > { %v2111_v6 = vld [vmem:[%s18127_s7 + $0x10c0] sm:$0xff]  ;;  %2110 = vst [vmem:[%s18132_s8 + $0x428] sm:$0xff] %v2109_v5 }
  0x96   : > { %v2113_v7 = vld [vmem:[%s18127_s7 + $0x10e0] sm:$0xff]  ;;  %2112 = vst [vmem:[%s18132_s8 + $0x430] sm:$0xff] %v2111_v6 }
  0x97   : > { %v2115_v8 = vld [vmem:[%s18127_s7 + $0x1100] sm:$0xff]  ;;  %2114 = vst [vmem:[%s18132_s8 + $0x438] sm:$0xff] %v2113_v7 }
  0x98   : > { %v2117_v9 = vld [vmem:[%s18127_s7 + $0x1120] sm:$0xff]  ;;  %2116 = vst [vmem:[%s18132_s8 + $0x440] sm:$0xff] %v2115_v8 }
  0x99   : > { %v2119_v10 = vld [vmem:[%s18127_s7 + $0x1140] sm:$0xff]  ;;  %2118 = vst [vmem:[%s18132_s8 + $0x448] sm:$0xff] %v2117_v9 }
  0x9a   : > { %v2121_v11 = vld [vmem:[%s18127_s7 + $0x1160] sm:$0xff]  ;;  %2120 = vst [vmem:[%s18132_s8 + $0x450] sm:$0xff] %v2119_v10 }
  0x9b   : > { %v2123_v12 = vld [vmem:[%s18127_s7 + $0x1180] sm:$0xff]  ;;  %2122 = vst [vmem:[%s18132_s8 + $0x458] sm:$0xff] %v2121_v11 }
  0x9c   : > { %v2125_v13 = vld [vmem:[%s18127_s7 + $0x11a0] sm:$0xff]  ;;  %2124 = vst [vmem:[%s18132_s8 + $0x460] sm:$0xff] %v2123_v12 }
  0x9d   : > { %v2127_v14 = vld [vmem:[%s18127_s7 + $0x11c0] sm:$0xff]  ;;  %2126 = vst [vmem:[%s18132_s8 + $0x468] sm:$0xff] %v2125_v13 }
  0x9e   : > { %v2129_v15 = vld [vmem:[%s18127_s7 + $0x11e0] sm:$0xff]  ;;  %2128 = vst [vmem:[%s18132_s8 + $0x470] sm:$0xff] %v2127_v14 }
  0x9f   : > { %v2131_v16 = vld [vmem:[%s18127_s7 + $0x1200] sm:$0xff]  ;;  %2130 = vst [vmem:[%s18132_s8 + $0x478] sm:$0xff] %v2129_v15 }
  0xa0   : > { %v2133_v17 = vld [vmem:[%s18127_s7 + $0x1220] sm:$0xff]  ;;  %2132 = vst [vmem:[%s18132_s8 + $0x480] sm:$0xff] %v2131_v16 }
  0xa1   : > { %v2135_v18 = vld [vmem:[%s18127_s7 + $0x1240] sm:$0xff]  ;;  %2134 = vst [vmem:[%s18132_s8 + $0x488] sm:$0xff] %v2133_v17 }
  0xa2   : > { %v2137_v19 = vld [vmem:[%s18127_s7 + $0x1260] sm:$0xff]  ;;  %2136 = vst [vmem:[%s18132_s8 + $0x490] sm:$0xff] %v2135_v18 }
  0xa3   : > { %v2139_v20 = vld [vmem:[%s18127_s7 + $0x1280] sm:$0xff]  ;;  %2138 = vst [vmem:[%s18132_s8 + $0x498] sm:$0xff] %v2137_v19 }
  0xa4   : > { %v2141_v21 = vld [vmem:[%s18127_s7 + $0x12a0] sm:$0xff]  ;;  %2140 = vst [vmem:[%s18132_s8 + $0x4a0] sm:$0xff] %v2139_v20 }
  0xa5   : > { %v2143_v22 = vld [vmem:[%s18127_s7 + $0x12c0] sm:$0xff]  ;;  %2142 = vst [vmem:[%s18132_s8 + $0x4a8] sm:$0xff] %v2141_v21 }
  0xa6   : > { %v2145_v23 = vld [vmem:[%s18127_s7 + $0x12e0] sm:$0xff]  ;;  %2144 = vst [vmem:[%s18132_s8 + $0x4b0] sm:$0xff] %v2143_v22 }
  0xa7   : > { %v2147_v24 = vld [vmem:[%s18127_s7 + $0x1300] sm:$0xff]  ;;  %2146 = vst [vmem:[%s18132_s8 + $0x4b8] sm:$0xff] %v2145_v23 }
  0xa8   : > { %v2149_v25 = vld [vmem:[%s18127_s7 + $0x1320] sm:$0xff]  ;;  %2148 = vst [vmem:[%s18132_s8 + $0x4c0] sm:$0xff] %v2147_v24 }
  0xa9   : > { %v2151_v26 = vld [vmem:[%s18127_s7 + $0x1340] sm:$0xff]  ;;  %2150 = vst [vmem:[%s18132_s8 + $0x4c8] sm:$0xff] %v2149_v25 }
  0xaa   : > { %v2153_v27 = vld [vmem:[%s18127_s7 + $0x1360] sm:$0xff]  ;;  %2152 = vst [vmem:[%s18132_s8 + $0x4d0] sm:$0xff] %v2151_v26 }
  0xab   : > { %v2155_v28 = vld [vmem:[%s18127_s7 + $0x1380] sm:$0xff]  ;;  %2154 = vst [vmem:[%s18132_s8 + $0x4d8] sm:$0xff] %v2153_v27 }
  0xac   : > { %v2157_v29 = vld [vmem:[%s18127_s7 + $0x13a0] sm:$0xff]  ;;  %2156 = vst [vmem:[%s18132_s8 + $0x4e0] sm:$0xff] %v2155_v28 }
  0xad   : > { %v2159_v30 = vld [vmem:[%s18127_s7 + $0x13c0] sm:$0xff]  ;;  %2158 = vst [vmem:[%s18132_s8 + $0x4e8] sm:$0xff] %v2157_v29 }
  0xae   : > { %v2161_v31 = vld [vmem:[%s18127_s7 + $0x13e0] sm:$0xff]  ;;  %2160 = vst [vmem:[%s18132_s8 + $0x4f0] sm:$0xff] %v2159_v30 }
  0xaf   : > { %v2163_v32 = vld [vmem:[%s18127_s7 + $0x1400] sm:$0xff]  ;;  %2162 = vst [vmem:[%s18132_s8 + $0x4f8] sm:$0xff] %v2161_v31 }
  0xb0   : > { %v2165_v33 = vld [vmem:[%s18127_s7 + $0x1420] sm:$0xff]  ;;  %2164 = vst [vmem:[%s18132_s8 + $0x500] sm:$0xff] %v2163_v32 }
  0xb1   : > { %v2167_v34 = vld [vmem:[%s18127_s7 + $0x1440] sm:$0xff]  ;;  %2166 = vst [vmem:[%s18132_s8 + $0x508] sm:$0xff] %v2165_v33 }
  0xb2   : > { %v2169_v35 = vld [vmem:[%s18127_s7 + $0x1460] sm:$0xff]  ;;  %2168 = vst [vmem:[%s18132_s8 + $0x510] sm:$0xff] %v2167_v34 }
  0xb3   : > { %v2171_v36 = vld [vmem:[%s18127_s7 + $0x1480] sm:$0xff]  ;;  %2170 = vst [vmem:[%s18132_s8 + $0x518] sm:$0xff] %v2169_v35 }
  0xb4   : > { %v2173_v37 = vld [vmem:[%s18127_s7 + $0x14a0] sm:$0xff]  ;;  %2172 = vst [vmem:[%s18132_s8 + $0x520] sm:$0xff] %v2171_v36 }
  0xb5   : > { %v2175_v38 = vld [vmem:[%s18127_s7 + $0x14c0] sm:$0xff]  ;;  %2174 = vst [vmem:[%s18132_s8 + $0x528] sm:$0xff] %v2173_v37 }
  0xb6   : > { %v2177_v39 = vld [vmem:[%s18127_s7 + $0x14e0] sm:$0xff]  ;;  %2176 = vst [vmem:[%s18132_s8 + $0x530] sm:$0xff] %v2175_v38 }
  0xb7   : > { %v2179_v40 = vld [vmem:[%s18127_s7 + $0x1500] sm:$0xff]  ;;  %2178 = vst [vmem:[%s18132_s8 + $0x538] sm:$0xff] %v2177_v39 }
  0xb8   : > { %v2181_v41 = vld [vmem:[%s18127_s7 + $0x1520] sm:$0xff]  ;;  %2180 = vst [vmem:[%s18132_s8 + $0x540] sm:$0xff] %v2179_v40 }
  0xb9   : > { %v2183_v42 = vld [vmem:[%s18127_s7 + $0x1540] sm:$0xff]  ;;  %2182 = vst [vmem:[%s18132_s8 + $0x548] sm:$0xff] %v2181_v41 }
  0xba   : > { %v2185_v43 = vld [vmem:[%s18127_s7 + $0x1560] sm:$0xff]  ;;  %2184 = vst [vmem:[%s18132_s8 + $0x550] sm:$0xff] %v2183_v42 }
  0xbb   : > { %v2187_v44 = vld [vmem:[%s18127_s7 + $0x1580] sm:$0xff]  ;;  %2186 = vst [vmem:[%s18132_s8 + $0x558] sm:$0xff] %v2185_v43 }
  0xbc   : > { %v2189_v45 = vld [vmem:[%s18127_s7 + $0x15a0] sm:$0xff]  ;;  %2188 = vst [vmem:[%s18132_s8 + $0x560] sm:$0xff] %v2187_v44 }
  0xbd   : > { %v2191_v46 = vld [vmem:[%s18127_s7 + $0x15c0] sm:$0xff]  ;;  %2190 = vst [vmem:[%s18132_s8 + $0x568] sm:$0xff] %v2189_v45 }
  0xbe   : > { %v2193_v47 = vld [vmem:[%s18127_s7 + $0x15e0] sm:$0xff]  ;;  %2192 = vst [vmem:[%s18132_s8 + $0x570] sm:$0xff] %v2191_v46 }
  0xbf   : > { %v2195_v48 = vld [vmem:[%s18127_s7 + $0x1600] sm:$0xff]  ;;  %2194 = vst [vmem:[%s18132_s8 + $0x578] sm:$0xff] %v2193_v47 }
  0xc0   : > { %v2197_v49 = vld [vmem:[%s18127_s7 + $0x1620] sm:$0xff]  ;;  %2196 = vst [vmem:[%s18132_s8 + $0x580] sm:$0xff] %v2195_v48 }
  0xc1   : > { %v2199_v50 = vld [vmem:[%s18127_s7 + $0x1640] sm:$0xff]  ;;  %2198 = vst [vmem:[%s18132_s8 + $0x588] sm:$0xff] %v2197_v49 }
  0xc2   : > { %v2201_v51 = vld [vmem:[%s18127_s7 + $0x1660] sm:$0xff]  ;;  %2200 = vst [vmem:[%s18132_s8 + $0x590] sm:$0xff] %v2199_v50 }
  0xc3   : > { %v2203_v52 = vld [vmem:[%s18127_s7 + $0x1680] sm:$0xff]  ;;  %2202 = vst [vmem:[%s18132_s8 + $0x598] sm:$0xff] %v2201_v51 }
  0xc4   : > { %v2205_v53 = vld [vmem:[%s18127_s7 + $0x16a0] sm:$0xff]  ;;  %2204 = vst [vmem:[%s18132_s8 + $0x5a0] sm:$0xff] %v2203_v52 }
  0xc5   : > { %v2207_v54 = vld [vmem:[%s18127_s7 + $0x16c0] sm:$0xff]  ;;  %2206 = vst [vmem:[%s18132_s8 + $0x5a8] sm:$0xff] %v2205_v53 }
  0xc6   : > { %v2209_v55 = vld [vmem:[%s18127_s7 + $0x16e0] sm:$0xff]  ;;  %2208 = vst [vmem:[%s18132_s8 + $0x5b0] sm:$0xff] %v2207_v54 }
  0xc7   : > { %v2211_v56 = vld [vmem:[%s18127_s7 + $0x1700] sm:$0xff]  ;;  %2210 = vst [vmem:[%s18132_s8 + $0x5b8] sm:$0xff] %v2209_v55 }
  0xc8   : > { %v2213_v57 = vld [vmem:[%s18127_s7 + $0x1720] sm:$0xff]  ;;  %2212 = vst [vmem:[%s18132_s8 + $0x5c0] sm:$0xff] %v2211_v56 }
  0xc9   : > { %v2215_v58 = vld [vmem:[%s18127_s7 + $0x1740] sm:$0xff]  ;;  %2214 = vst [vmem:[%s18132_s8 + $0x5c8] sm:$0xff] %v2213_v57 }
  0xca   : > { %v2217_v59 = vld [vmem:[%s18127_s7 + $0x1760] sm:$0xff]  ;;  %2216 = vst [vmem:[%s18132_s8 + $0x5d0] sm:$0xff] %v2215_v58 }
  0xcb   : > { %v2219_v60 = vld [vmem:[%s18127_s7 + $0x1780] sm:$0xff]  ;;  %2218 = vst [vmem:[%s18132_s8 + $0x5d8] sm:$0xff] %v2217_v59 }
  0xcc   : > { %v2221_v61 = vld [vmem:[%s18127_s7 + $0x17a0] sm:$0xff]  ;;  %2220 = vst [vmem:[%s18132_s8 + $0x5e0] sm:$0xff] %v2219_v60 }
  0xcd   : > { %v2223_v62 = vld [vmem:[%s18127_s7 + $0x17c0] sm:$0xff]  ;;  %2222 = vst [vmem:[%s18132_s8 + $0x5e8] sm:$0xff] %v2221_v61 }
  0xce   : > { %v2225_v63 = vld [vmem:[%s18127_s7 + $0x17e0] sm:$0xff]  ;;  %2224 = vst [vmem:[%s18132_s8 + $0x5f0] sm:$0xff] %v2223_v62 }
  0xcf   : > { %v2227_v0 = vld [vmem:[%s18127_s7 + $0x1800] sm:$0xff]  ;;  %2226 = vst [vmem:[%s18132_s8 + $0x5f8] sm:$0xff] %v2225_v63 }
  0xd0   : > { %v2229_v1 = vld [vmem:[%s18127_s7 + $0x1820] sm:$0xff]  ;;  %2228 = vst [vmem:[%s18132_s8 + $0x600] sm:$0xff] %v2227_v0 }
  0xd1   : > { %v2231_v2 = vld [vmem:[%s18127_s7 + $0x1840] sm:$0xff]  ;;  %2230 = vst [vmem:[%s18132_s8 + $0x608] sm:$0xff] %v2229_v1 }
  0xd2   : > { %v2233_v3 = vld [vmem:[%s18127_s7 + $0x1860] sm:$0xff]  ;;  %2232 = vst [vmem:[%s18132_s8 + $0x610] sm:$0xff] %v2231_v2 }
  0xd3   : > { %v2235_v4 = vld [vmem:[%s18127_s7 + $0x1880] sm:$0xff]  ;;  %2234 = vst [vmem:[%s18132_s8 + $0x618] sm:$0xff] %v2233_v3 }
  0xd4   : > { %v2237_v5 = vld [vmem:[%s18127_s7 + $0x18a0] sm:$0xff]  ;;  %2236 = vst [vmem:[%s18132_s8 + $0x620] sm:$0xff] %v2235_v4 }
  0xd5   : > { %v2239_v6 = vld [vmem:[%s18127_s7 + $0x18c0] sm:$0xff]  ;;  %2238 = vst [vmem:[%s18132_s8 + $0x628] sm:$0xff] %v2237_v5 }
  0xd6   : > { %v2241_v7 = vld [vmem:[%s18127_s7 + $0x18e0] sm:$0xff]  ;;  %2240 = vst [vmem:[%s18132_s8 + $0x630] sm:$0xff] %v2239_v6 }
  0xd7   : > { %v2243_v8 = vld [vmem:[%s18127_s7 + $0x1900] sm:$0xff]  ;;  %2242 = vst [vmem:[%s18132_s8 + $0x638] sm:$0xff] %v2241_v7 }
  0xd8   : > { %v2245_v9 = vld [vmem:[%s18127_s7 + $0x1920] sm:$0xff]  ;;  %2244 = vst [vmem:[%s18132_s8 + $0x640] sm:$0xff] %v2243_v8 }
  0xd9   : > { %v2247_v10 = vld [vmem:[%s18127_s7 + $0x1940] sm:$0xff]  ;;  %2246 = vst [vmem:[%s18132_s8 + $0x648] sm:$0xff] %v2245_v9 }
  0xda   : > { %v2249_v11 = vld [vmem:[%s18127_s7 + $0x1960] sm:$0xff]  ;;  %2248 = vst [vmem:[%s18132_s8 + $0x650] sm:$0xff] %v2247_v10 }
  0xdb   : > { %v2251_v12 = vld [vmem:[%s18127_s7 + $0x1980] sm:$0xff]  ;;  %2250 = vst [vmem:[%s18132_s8 + $0x658] sm:$0xff] %v2249_v11 }
  0xdc   : > { %v2253_v13 = vld [vmem:[%s18127_s7 + $0x19a0] sm:$0xff]  ;;  %2252 = vst [vmem:[%s18132_s8 + $0x660] sm:$0xff] %v2251_v12 }
  0xdd   : > { %v2255_v14 = vld [vmem:[%s18127_s7 + $0x19c0] sm:$0xff]  ;;  %2254 = vst [vmem:[%s18132_s8 + $0x668] sm:$0xff] %v2253_v13 }
  0xde   : > { %v2257_v15 = vld [vmem:[%s18127_s7 + $0x19e0] sm:$0xff]  ;;  %2256 = vst [vmem:[%s18132_s8 + $0x670] sm:$0xff] %v2255_v14 }
  0xdf   : > { %v2259_v16 = vld [vmem:[%s18127_s7 + $0x1a00] sm:$0xff]  ;;  %2258 = vst [vmem:[%s18132_s8 + $0x678] sm:$0xff] %v2257_v15 }
  0xe0   : > { %v2261_v17 = vld [vmem:[%s18127_s7 + $0x1a20] sm:$0xff]  ;;  %2260 = vst [vmem:[%s18132_s8 + $0x680] sm:$0xff] %v2259_v16 }
  0xe1   : > { %v2263_v18 = vld [vmem:[%s18127_s7 + $0x1a40] sm:$0xff]  ;;  %2262 = vst [vmem:[%s18132_s8 + $0x688] sm:$0xff] %v2261_v17 }
  0xe2   : > { %v2265_v19 = vld [vmem:[%s18127_s7 + $0x1a60] sm:$0xff]  ;;  %2264 = vst [vmem:[%s18132_s8 + $0x690] sm:$0xff] %v2263_v18 }
  0xe3   : > { %v2267_v20 = vld [vmem:[%s18127_s7 + $0x1a80] sm:$0xff]  ;;  %2266 = vst [vmem:[%s18132_s8 + $0x698] sm:$0xff] %v2265_v19 }
  0xe4   : > { %v2269_v21 = vld [vmem:[%s18127_s7 + $0x1aa0] sm:$0xff]  ;;  %2268 = vst [vmem:[%s18132_s8 + $0x6a0] sm:$0xff] %v2267_v20 }
  0xe5   : > { %v2271_v22 = vld [vmem:[%s18127_s7 + $0x1ac0] sm:$0xff]  ;;  %2270 = vst [vmem:[%s18132_s8 + $0x6a8] sm:$0xff] %v2269_v21 }
  0xe6   : > { %v2273_v23 = vld [vmem:[%s18127_s7 + $0x1ae0] sm:$0xff]  ;;  %2272 = vst [vmem:[%s18132_s8 + $0x6b0] sm:$0xff] %v2271_v22 }
  0xe7   : > { %v2275_v24 = vld [vmem:[%s18127_s7 + $0x1b00] sm:$0xff]  ;;  %2274 = vst [vmem:[%s18132_s8 + $0x6b8] sm:$0xff] %v2273_v23 }
  0xe8   : > { %v2277_v25 = vld [vmem:[%s18127_s7 + $0x1b20] sm:$0xff]  ;;  %2276 = vst [vmem:[%s18132_s8 + $0x6c0] sm:$0xff] %v2275_v24 }
  0xe9   : > { %v2279_v26 = vld [vmem:[%s18127_s7 + $0x1b40] sm:$0xff]  ;;  %2278 = vst [vmem:[%s18132_s8 + $0x6c8] sm:$0xff] %v2277_v25 }
  0xea   : > { %v2281_v27 = vld [vmem:[%s18127_s7 + $0x1b60] sm:$0xff]  ;;  %2280 = vst [vmem:[%s18132_s8 + $0x6d0] sm:$0xff] %v2279_v26 }
  0xeb   : > { %v2283_v28 = vld [vmem:[%s18127_s7 + $0x1b80] sm:$0xff]  ;;  %2282 = vst [vmem:[%s18132_s8 + $0x6d8] sm:$0xff] %v2281_v27 }
  0xec   : > { %v2285_v29 = vld [vmem:[%s18127_s7 + $0x1ba0] sm:$0xff]  ;;  %2284 = vst [vmem:[%s18132_s8 + $0x6e0] sm:$0xff] %v2283_v28 }
  0xed   : > { %v2287_v30 = vld [vmem:[%s18127_s7 + $0x1bc0] sm:$0xff]  ;;  %2286 = vst [vmem:[%s18132_s8 + $0x6e8] sm:$0xff] %v2285_v29 }
  0xee   : > { %v2289_v31 = vld [vmem:[%s18127_s7 + $0x1be0] sm:$0xff]  ;;  %2288 = vst [vmem:[%s18132_s8 + $0x6f0] sm:$0xff] %v2287_v30 }
  0xef   : > { %v2291_v32 = vld [vmem:[%s18127_s7 + $0x1c00] sm:$0xff]  ;;  %2290 = vst [vmem:[%s18132_s8 + $0x6f8] sm:$0xff] %v2289_v31 }
  0xf0   : > { %v2293_v33 = vld [vmem:[%s18127_s7 + $0x1c20] sm:$0xff]  ;;  %2292 = vst [vmem:[%s18132_s8 + $0x700] sm:$0xff] %v2291_v32 }
  0xf1   : > { %v2295_v34 = vld [vmem:[%s18127_s7 + $0x1c40] sm:$0xff]  ;;  %2294 = vst [vmem:[%s18132_s8 + $0x708] sm:$0xff] %v2293_v33 }
  0xf2   : > { %v2297_v35 = vld [vmem:[%s18127_s7 + $0x1c60] sm:$0xff]  ;;  %2296 = vst [vmem:[%s18132_s8 + $0x710] sm:$0xff] %v2295_v34 }
  0xf3   : > { %v2299_v36 = vld [vmem:[%s18127_s7 + $0x1c80] sm:$0xff]  ;;  %2298 = vst [vmem:[%s18132_s8 + $0x718] sm:$0xff] %v2297_v35 }
  0xf4   : > { %v2301_v37 = vld [vmem:[%s18127_s7 + $0x1ca0] sm:$0xff]  ;;  %2300 = vst [vmem:[%s18132_s8 + $0x720] sm:$0xff] %v2299_v36 }
  0xf5   : > { %v2303_v38 = vld [vmem:[%s18127_s7 + $0x1cc0] sm:$0xff]  ;;  %2302 = vst [vmem:[%s18132_s8 + $0x728] sm:$0xff] %v2301_v37 }
  0xf6   : > { %v2305_v39 = vld [vmem:[%s18127_s7 + $0x1ce0] sm:$0xff]  ;;  %2304 = vst [vmem:[%s18132_s8 + $0x730] sm:$0xff] %v2303_v38 }
  0xf7   : > { %v2307_v40 = vld [vmem:[%s18127_s7 + $0x1d00] sm:$0xff]  ;;  %2306 = vst [vmem:[%s18132_s8 + $0x738] sm:$0xff] %v2305_v39 }
  0xf8   : > { %v2309_v41 = vld [vmem:[%s18127_s7 + $0x1d20] sm:$0xff]  ;;  %2308 = vst [vmem:[%s18132_s8 + $0x740] sm:$0xff] %v2307_v40 }
  0xf9   : > { %v2311_v42 = vld [vmem:[%s18127_s7 + $0x1d40] sm:$0xff]  ;;  %2310 = vst [vmem:[%s18132_s8 + $0x748] sm:$0xff] %v2309_v41 }
  0xfa   : > { %v2313_v43 = vld [vmem:[%s18127_s7 + $0x1d60] sm:$0xff]  ;;  %2312 = vst [vmem:[%s18132_s8 + $0x750] sm:$0xff] %v2311_v42 }
  0xfb   : > { %v2315_v44 = vld [vmem:[%s18127_s7 + $0x1d80] sm:$0xff]  ;;  %2314 = vst [vmem:[%s18132_s8 + $0x758] sm:$0xff] %v2313_v43 }
  0xfc   : > { %v2317_v45 = vld [vmem:[%s18127_s7 + $0x1da0] sm:$0xff]  ;;  %2316 = vst [vmem:[%s18132_s8 + $0x760] sm:$0xff] %v2315_v44 }
  0xfd   : > { %v2319_v46 = vld [vmem:[%s18127_s7 + $0x1dc0] sm:$0xff]  ;;  %2318 = vst [vmem:[%s18132_s8 + $0x768] sm:$0xff] %v2317_v45 }
  0xfe   : > { %v2321_v47 = vld [vmem:[%s18127_s7 + $0x1de0] sm:$0xff]  ;;  %2320 = vst [vmem:[%s18132_s8 + $0x770] sm:$0xff] %v2319_v46 }
  0xff   : > { %v2323_v48 = vld [vmem:[%s18127_s7 + $0x1e00] sm:$0xff]  ;;  %2322 = vst [vmem:[%s18132_s8 + $0x778] sm:$0xff] %v2321_v47 }
 0x100   : > { %v2325_v49 = vld [vmem:[%s18127_s7 + $0x1e20] sm:$0xff]  ;;  %2324 = vst [vmem:[%s18132_s8 + $0x780] sm:$0xff] %v2323_v48 }
 0x101   : > { %v2327_v50 = vld [vmem:[%s18127_s7 + $0x1e40] sm:$0xff]  ;;  %2326 = vst [vmem:[%s18132_s8 + $0x788] sm:$0xff] %v2325_v49 }
 0x102   : > { %v2329_v51 = vld [vmem:[%s18127_s7 + $0x1e60] sm:$0xff]  ;;  %2328 = vst [vmem:[%s18132_s8 + $0x790] sm:$0xff] %v2327_v50 }
 0x103   : > { %v2331_v52 = vld [vmem:[%s18127_s7 + $0x1e80] sm:$0xff]  ;;  %2330 = vst [vmem:[%s18132_s8 + $0x798] sm:$0xff] %v2329_v51 }
 0x104   : > { %v2333_v53 = vld [vmem:[%s18127_s7 + $0x1ea0] sm:$0xff]  ;;  %2332 = vst [vmem:[%s18132_s8 + $0x7a0] sm:$0xff] %v2331_v52 }
 0x105   : > { %v2335_v54 = vld [vmem:[%s18127_s7 + $0x1ec0] sm:$0xff]  ;;  %2334 = vst [vmem:[%s18132_s8 + $0x7a8] sm:$0xff] %v2333_v53 }
 0x106   : > { %v2337_v55 = vld [vmem:[%s18127_s7 + $0x1ee0] sm:$0xff]  ;;  %2336 = vst [vmem:[%s18132_s8 + $0x7b0] sm:$0xff] %v2335_v54 }
 0x107   : > { %v2339_v56 = vld [vmem:[%s18127_s7 + $0x1f00] sm:$0xff]  ;;  %2338 = vst [vmem:[%s18132_s8 + $0x7b8] sm:$0xff] %v2337_v55 }
 0x108   : > { %v2341_v57 = vld [vmem:[%s18127_s7 + $0x1f20] sm:$0xff]  ;;  %2340 = vst [vmem:[%s18132_s8 + $0x7c0] sm:$0xff] %v2339_v56 }
 0x109   : > { %v2343_v58 = vld [vmem:[%s18127_s7 + $0x1f40] sm:$0xff]  ;;  %2342 = vst [vmem:[%s18132_s8 + $0x7c8] sm:$0xff] %v2341_v57 }
 0x10a   : > { %v2345_v59 = vld [vmem:[%s18127_s7 + $0x1f60] sm:$0xff]  ;;  %2344 = vst [vmem:[%s18132_s8 + $0x7d0] sm:$0xff] %v2343_v58 }
 0x10b   : > { %v2347_v60 = vld [vmem:[%s18127_s7 + $0x1f80] sm:$0xff]  ;;  %2346 = vst [vmem:[%s18132_s8 + $0x7d8] sm:$0xff] %v2345_v59 }
 0x10c   : > { %v2349_v61 = vld [vmem:[%s18127_s7 + $0x1fa0] sm:$0xff]  ;;  %2348 = vst [vmem:[%s18132_s8 + $0x7e0] sm:$0xff] %v2347_v60 }
 0x10d   : > { %v2351_v62 = vld [vmem:[%s18127_s7 + $0x1fc0] sm:$0xff]  ;;  %2350 = vst [vmem:[%s18132_s8 + $0x7e8] sm:$0xff] %v2349_v61 }
 0x10e   : > { %v2353_v63 = vld [vmem:[%s18127_s7 + $0x1fe0] sm:$0xff]  ;;  %2352 = vst [vmem:[%s18132_s8 + $0x7f0] sm:$0xff] %v2351_v62 }
 0x10f   : > { %v2355_v0 = vld [vmem:[%s18127_s7 + $0x2000] sm:$0xff]  ;;  %2354 = vst [vmem:[%s18132_s8 + $0x7f8] sm:$0xff] %v2353_v63 }
 0x110   : > { %v2357_v1 = vld [vmem:[%s18127_s7 + $0x2020] sm:$0xff]  ;;  %2356 = vst [vmem:[%s18132_s8 + $0x800] sm:$0xff] %v2355_v0 }
 0x111   : > { %v2359_v2 = vld [vmem:[%s18127_s7 + $0x2040] sm:$0xff]  ;;  %2358 = vst [vmem:[%s18132_s8 + $0x808] sm:$0xff] %v2357_v1 }
 0x112   : > { %v2361_v3 = vld [vmem:[%s18127_s7 + $0x2060] sm:$0xff]  ;;  %2360 = vst [vmem:[%s18132_s8 + $0x810] sm:$0xff] %v2359_v2 }
 0x113   : > { %v2363_v4 = vld [vmem:[%s18127_s7 + $0x2080] sm:$0xff]  ;;  %2362 = vst [vmem:[%s18132_s8 + $0x818] sm:$0xff] %v2361_v3 }
 0x114   : > { %v2365_v5 = vld [vmem:[%s18127_s7 + $0x20a0] sm:$0xff]  ;;  %2364 = vst [vmem:[%s18132_s8 + $0x820] sm:$0xff] %v2363_v4 }
 0x115   : > { %v2367_v6 = vld [vmem:[%s18127_s7 + $0x20c0] sm:$0xff]  ;;  %2366 = vst [vmem:[%s18132_s8 + $0x828] sm:$0xff] %v2365_v5 }
 0x116   : > { %v2369_v7 = vld [vmem:[%s18127_s7 + $0x20e0] sm:$0xff]  ;;  %2368 = vst [vmem:[%s18132_s8 + $0x830] sm:$0xff] %v2367_v6 }
 0x117   : > { %v2371_v8 = vld [vmem:[%s18127_s7 + $0x2100] sm:$0xff]  ;;  %2370 = vst [vmem:[%s18132_s8 + $0x838] sm:$0xff] %v2369_v7 }
 0x118   : > { %v2373_v9 = vld [vmem:[%s18127_s7 + $0x2120] sm:$0xff]  ;;  %2372 = vst [vmem:[%s18132_s8 + $0x840] sm:$0xff] %v2371_v8 }
 0x119   : > { %v2375_v10 = vld [vmem:[%s18127_s7 + $0x2140] sm:$0xff]  ;;  %2374 = vst [vmem:[%s18132_s8 + $0x848] sm:$0xff] %v2373_v9 }
 0x11a   : > { %v2377_v11 = vld [vmem:[%s18127_s7 + $0x2160] sm:$0xff]  ;;  %2376 = vst [vmem:[%s18132_s8 + $0x850] sm:$0xff] %v2375_v10 }
 0x11b   : > { %v2379_v12 = vld [vmem:[%s18127_s7 + $0x2180] sm:$0xff]  ;;  %2378 = vst [vmem:[%s18132_s8 + $0x858] sm:$0xff] %v2377_v11 }
 0x11c   : > { %v2381_v13 = vld [vmem:[%s18127_s7 + $0x21a0] sm:$0xff]  ;;  %2380 = vst [vmem:[%s18132_s8 + $0x860] sm:$0xff] %v2379_v12 }
 0x11d   : > { %v2383_v14 = vld [vmem:[%s18127_s7 + $0x21c0] sm:$0xff]  ;;  %2382 = vst [vmem:[%s18132_s8 + $0x868] sm:$0xff] %v2381_v13 }
 0x11e   : > { %v2385_v15 = vld [vmem:[%s18127_s7 + $0x21e0] sm:$0xff]  ;;  %2384 = vst [vmem:[%s18132_s8 + $0x870] sm:$0xff] %v2383_v14 }
 0x11f   : > { %v2387_v16 = vld [vmem:[%s18127_s7 + $0x2200] sm:$0xff]  ;;  %2386 = vst [vmem:[%s18132_s8 + $0x878] sm:$0xff] %v2385_v15 }
 0x120   : > { %v2389_v17 = vld [vmem:[%s18127_s7 + $0x2220] sm:$0xff]  ;;  %2388 = vst [vmem:[%s18132_s8 + $0x880] sm:$0xff] %v2387_v16 }
 0x121   : > { %v2391_v18 = vld [vmem:[%s18127_s7 + $0x2240] sm:$0xff]  ;;  %2390 = vst [vmem:[%s18132_s8 + $0x888] sm:$0xff] %v2389_v17 }
 0x122   : > { %v2393_v19 = vld [vmem:[%s18127_s7 + $0x2260] sm:$0xff]  ;;  %2392 = vst [vmem:[%s18132_s8 + $0x890] sm:$0xff] %v2391_v18 }
 0x123   : > { %v2395_v20 = vld [vmem:[%s18127_s7 + $0x2280] sm:$0xff]  ;;  %2394 = vst [vmem:[%s18132_s8 + $0x898] sm:$0xff] %v2393_v19 }
 0x124   : > { %v2397_v21 = vld [vmem:[%s18127_s7 + $0x22a0] sm:$0xff]  ;;  %2396 = vst [vmem:[%s18132_s8 + $0x8a0] sm:$0xff] %v2395_v20 }
 0x125   : > { %v2399_v22 = vld [vmem:[%s18127_s7 + $0x22c0] sm:$0xff]  ;;  %2398 = vst [vmem:[%s18132_s8 + $0x8a8] sm:$0xff] %v2397_v21 }
 0x126   : > { %v2401_v23 = vld [vmem:[%s18127_s7 + $0x22e0] sm:$0xff]  ;;  %2400 = vst [vmem:[%s18132_s8 + $0x8b0] sm:$0xff] %v2399_v22 }
 0x127   : > { %v2403_v24 = vld [vmem:[%s18127_s7 + $0x2300] sm:$0xff]  ;;  %2402 = vst [vmem:[%s18132_s8 + $0x8b8] sm:$0xff] %v2401_v23 }
 0x128   : > { %v2405_v25 = vld [vmem:[%s18127_s7 + $0x2320] sm:$0xff]  ;;  %2404 = vst [vmem:[%s18132_s8 + $0x8c0] sm:$0xff] %v2403_v24 }
 0x129   : > { %v2407_v26 = vld [vmem:[%s18127_s7 + $0x2340] sm:$0xff]  ;;  %2406 = vst [vmem:[%s18132_s8 + $0x8c8] sm:$0xff] %v2405_v25 }
 0x12a   : > { %v2409_v27 = vld [vmem:[%s18127_s7 + $0x2360] sm:$0xff]  ;;  %2408 = vst [vmem:[%s18132_s8 + $0x8d0] sm:$0xff] %v2407_v26 }
 0x12b   : > { %v2411_v28 = vld [vmem:[%s18127_s7 + $0x2380] sm:$0xff]  ;;  %2410 = vst [vmem:[%s18132_s8 + $0x8d8] sm:$0xff] %v2409_v27 }
 0x12c   : > { %v2413_v29 = vld [vmem:[%s18127_s7 + $0x23a0] sm:$0xff]  ;;  %2412 = vst [vmem:[%s18132_s8 + $0x8e0] sm:$0xff] %v2411_v28 }
 0x12d   : > { %v2415_v30 = vld [vmem:[%s18127_s7 + $0x23c0] sm:$0xff]  ;;  %2414 = vst [vmem:[%s18132_s8 + $0x8e8] sm:$0xff] %v2413_v29 }
 0x12e   : > { %v2417_v31 = vld [vmem:[%s18127_s7 + $0x23e0] sm:$0xff]  ;;  %2416 = vst [vmem:[%s18132_s8 + $0x8f0] sm:$0xff] %v2415_v30 }
 0x12f   : > { %v2419_v32 = vld [vmem:[%s18127_s7 + $0x2400] sm:$0xff]  ;;  %2418 = vst [vmem:[%s18132_s8 + $0x8f8] sm:$0xff] %v2417_v31 }
 0x130   : > { %v2421_v33 = vld [vmem:[%s18127_s7 + $0x2420] sm:$0xff]  ;;  %2420 = vst [vmem:[%s18132_s8 + $0x900] sm:$0xff] %v2419_v32 }
 0x131   : > { %v2423_v34 = vld [vmem:[%s18127_s7 + $0x2440] sm:$0xff]  ;;  %2422 = vst [vmem:[%s18132_s8 + $0x908] sm:$0xff] %v2421_v33 }
 0x132   : > { %v2425_v35 = vld [vmem:[%s18127_s7 + $0x2460] sm:$0xff]  ;;  %2424 = vst [vmem:[%s18132_s8 + $0x910] sm:$0xff] %v2423_v34 }
 0x133   : > { %v2427_v36 = vld [vmem:[%s18127_s7 + $0x2480] sm:$0xff]  ;;  %2426 = vst [vmem:[%s18132_s8 + $0x918] sm:$0xff] %v2425_v35 }
 0x134   : > { %v2429_v37 = vld [vmem:[%s18127_s7 + $0x24a0] sm:$0xff]  ;;  %2428 = vst [vmem:[%s18132_s8 + $0x920] sm:$0xff] %v2427_v36 }
 0x135   : > { %v2431_v38 = vld [vmem:[%s18127_s7 + $0x24c0] sm:$0xff]  ;;  %2430 = vst [vmem:[%s18132_s8 + $0x928] sm:$0xff] %v2429_v37 }
 0x136   : > { %v2433_v39 = vld [vmem:[%s18127_s7 + $0x24e0] sm:$0xff]  ;;  %2432 = vst [vmem:[%s18132_s8 + $0x930] sm:$0xff] %v2431_v38 }
 0x137   : > { %v2435_v40 = vld [vmem:[%s18127_s7 + $0x2500] sm:$0xff]  ;;  %2434 = vst [vmem:[%s18132_s8 + $0x938] sm:$0xff] %v2433_v39 }
 0x138   : > { %v2437_v41 = vld [vmem:[%s18127_s7 + $0x2520] sm:$0xff]  ;;  %2436 = vst [vmem:[%s18132_s8 + $0x940] sm:$0xff] %v2435_v40 }
 0x139   : > { %v2439_v42 = vld [vmem:[%s18127_s7 + $0x2540] sm:$0xff]  ;;  %2438 = vst [vmem:[%s18132_s8 + $0x948] sm:$0xff] %v2437_v41 }
 0x13a   : > { %v2441_v43 = vld [vmem:[%s18127_s7 + $0x2560] sm:$0xff]  ;;  %2440 = vst [vmem:[%s18132_s8 + $0x950] sm:$0xff] %v2439_v42 }
 0x13b   : > { %v2443_v44 = vld [vmem:[%s18127_s7 + $0x2580] sm:$0xff]  ;;  %2442 = vst [vmem:[%s18132_s8 + $0x958] sm:$0xff] %v2441_v43 }
 0x13c   : > { %v2445_v45 = vld [vmem:[%s18127_s7 + $0x25a0] sm:$0xff]  ;;  %2444 = vst [vmem:[%s18132_s8 + $0x960] sm:$0xff] %v2443_v44 }
 0x13d   : > { %v2447_v46 = vld [vmem:[%s18127_s7 + $0x25c0] sm:$0xff]  ;;  %2446 = vst [vmem:[%s18132_s8 + $0x968] sm:$0xff] %v2445_v45 }
 0x13e   : > { %v2449_v47 = vld [vmem:[%s18127_s7 + $0x25e0] sm:$0xff]  ;;  %2448 = vst [vmem:[%s18132_s8 + $0x970] sm:$0xff] %v2447_v46 }
 0x13f   : > { %v2451_v48 = vld [vmem:[%s18127_s7 + $0x2600] sm:$0xff]  ;;  %2450 = vst [vmem:[%s18132_s8 + $0x978] sm:$0xff] %v2449_v47 }
 0x140   : > { %v2453_v49 = vld [vmem:[%s18127_s7 + $0x2620] sm:$0xff]  ;;  %2452 = vst [vmem:[%s18132_s8 + $0x980] sm:$0xff] %v2451_v48 }
 0x141   : > { %v2455_v50 = vld [vmem:[%s18127_s7 + $0x2640] sm:$0xff]  ;;  %2454 = vst [vmem:[%s18132_s8 + $0x988] sm:$0xff] %v2453_v49 }
 0x142   : > { %v2457_v51 = vld [vmem:[%s18127_s7 + $0x2660] sm:$0xff]  ;;  %2456 = vst [vmem:[%s18132_s8 + $0x990] sm:$0xff] %v2455_v50 }
 0x143   : > { %v2459_v52 = vld [vmem:[%s18127_s7 + $0x2680] sm:$0xff]  ;;  %2458 = vst [vmem:[%s18132_s8 + $0x998] sm:$0xff] %v2457_v51 }
 0x144   : > { %v2461_v53 = vld [vmem:[%s18127_s7 + $0x26a0] sm:$0xff]  ;;  %2460 = vst [vmem:[%s18132_s8 + $0x9a0] sm:$0xff] %v2459_v52 }
 0x145   : > { %v2463_v54 = vld [vmem:[%s18127_s7 + $0x26c0] sm:$0xff]  ;;  %2462 = vst [vmem:[%s18132_s8 + $0x9a8] sm:$0xff] %v2461_v53 }
 0x146   : > { %v2465_v55 = vld [vmem:[%s18127_s7 + $0x26e0] sm:$0xff]  ;;  %2464 = vst [vmem:[%s18132_s8 + $0x9b0] sm:$0xff] %v2463_v54 }
 0x147   : > { %v2467_v56 = vld [vmem:[%s18127_s7 + $0x2700] sm:$0xff]  ;;  %2466 = vst [vmem:[%s18132_s8 + $0x9b8] sm:$0xff] %v2465_v55 }
 0x148   : > { %v2469_v57 = vld [vmem:[%s18127_s7 + $0x2720] sm:$0xff]  ;;  %2468 = vst [vmem:[%s18132_s8 + $0x9c0] sm:$0xff] %v2467_v56 }
 0x149   : > { %v2471_v58 = vld [vmem:[%s18127_s7 + $0x2740] sm:$0xff]  ;;  %2470 = vst [vmem:[%s18132_s8 + $0x9c8] sm:$0xff] %v2469_v57 }
 0x14a   : > { %v2473_v59 = vld [vmem:[%s18127_s7 + $0x2760] sm:$0xff]  ;;  %2472 = vst [vmem:[%s18132_s8 + $0x9d0] sm:$0xff] %v2471_v58 }
 0x14b   : > { %v2475_v60 = vld [vmem:[%s18127_s7 + $0x2780] sm:$0xff]  ;;  %2474 = vst [vmem:[%s18132_s8 + $0x9d8] sm:$0xff] %v2473_v59 }
 0x14c   : > { %v2477_v61 = vld [vmem:[%s18127_s7 + $0x27a0] sm:$0xff]  ;;  %2476 = vst [vmem:[%s18132_s8 + $0x9e0] sm:$0xff] %v2475_v60 }
 0x14d   : > { %v2479_v62 = vld [vmem:[%s18127_s7 + $0x27c0] sm:$0xff]  ;;  %2478 = vst [vmem:[%s18132_s8 + $0x9e8] sm:$0xff] %v2477_v61 }
 0x14e   : > { %v2481_v63 = vld [vmem:[%s18127_s7 + $0x27e0] sm:$0xff]  ;;  %2480 = vst [vmem:[%s18132_s8 + $0x9f0] sm:$0xff] %v2479_v62 }
 0x14f   : > { %v2483_v0 = vld [vmem:[%s18127_s7 + $0x2800] sm:$0xff]  ;;  %2482 = vst [vmem:[%s18132_s8 + $0x9f8] sm:$0xff] %v2481_v63 }
 0x150   : > { %v2485_v1 = vld [vmem:[%s18127_s7 + $0x2820] sm:$0xff]  ;;  %2484 = vst [vmem:[%s18132_s8 + $0xa00] sm:$0xff] %v2483_v0 }
 0x151   : > { %v2487_v2 = vld [vmem:[%s18127_s7 + $0x2840] sm:$0xff]  ;;  %2486 = vst [vmem:[%s18132_s8 + $0xa08] sm:$0xff] %v2485_v1 }
 0x152   : > { %v2489_v3 = vld [vmem:[%s18127_s7 + $0x2860] sm:$0xff]  ;;  %2488 = vst [vmem:[%s18132_s8 + $0xa10] sm:$0xff] %v2487_v2 }
 0x153   : > { %v2491_v4 = vld [vmem:[%s18127_s7 + $0x2880] sm:$0xff]  ;;  %2490 = vst [vmem:[%s18132_s8 + $0xa18] sm:$0xff] %v2489_v3 }
 0x154   : > { %v2493_v5 = vld [vmem:[%s18127_s7 + $0x28a0] sm:$0xff]  ;;  %2492 = vst [vmem:[%s18132_s8 + $0xa20] sm:$0xff] %v2491_v4 }
 0x155   : > { %v2495_v6 = vld [vmem:[%s18127_s7 + $0x28c0] sm:$0xff]  ;;  %2494 = vst [vmem:[%s18132_s8 + $0xa28] sm:$0xff] %v2493_v5 }
 0x156   : > { %v2497_v7 = vld [vmem:[%s18127_s7 + $0x28e0] sm:$0xff]  ;;  %2496 = vst [vmem:[%s18132_s8 + $0xa30] sm:$0xff] %v2495_v6 }
 0x157   : > { %v2499_v8 = vld [vmem:[%s18127_s7 + $0x2900] sm:$0xff]  ;;  %2498 = vst [vmem:[%s18132_s8 + $0xa38] sm:$0xff] %v2497_v7 }
 0x158   : > { %v2501_v9 = vld [vmem:[%s18127_s7 + $0x2920] sm:$0xff]  ;;  %2500 = vst [vmem:[%s18132_s8 + $0xa40] sm:$0xff] %v2499_v8 }
 0x159   : > { %v2503_v10 = vld [vmem:[%s18127_s7 + $0x2940] sm:$0xff]  ;;  %2502 = vst [vmem:[%s18132_s8 + $0xa48] sm:$0xff] %v2501_v9 }
 0x15a   : > { %v2505_v11 = vld [vmem:[%s18127_s7 + $0x2960] sm:$0xff]  ;;  %2504 = vst [vmem:[%s18132_s8 + $0xa50] sm:$0xff] %v2503_v10 }
 0x15b   : > { %v2507_v12 = vld [vmem:[%s18127_s7 + $0x2980] sm:$0xff]  ;;  %2506 = vst [vmem:[%s18132_s8 + $0xa58] sm:$0xff] %v2505_v11 }
 0x15c   : > { %v2509_v13 = vld [vmem:[%s18127_s7 + $0x29a0] sm:$0xff]  ;;  %2508 = vst [vmem:[%s18132_s8 + $0xa60] sm:$0xff] %v2507_v12 }
 0x15d   : > { %v2511_v14 = vld [vmem:[%s18127_s7 + $0x29c0] sm:$0xff]  ;;  %2510 = vst [vmem:[%s18132_s8 + $0xa68] sm:$0xff] %v2509_v13 }
 0x15e   : > { %v2513_v15 = vld [vmem:[%s18127_s7 + $0x29e0] sm:$0xff]  ;;  %2512 = vst [vmem:[%s18132_s8 + $0xa70] sm:$0xff] %v2511_v14 }
 0x15f   : > { %v2515_v16 = vld [vmem:[%s18127_s7 + $0x2a00] sm:$0xff]  ;;  %2514 = vst [vmem:[%s18132_s8 + $0xa78] sm:$0xff] %v2513_v15 }
 0x160   : > { %v2517_v17 = vld [vmem:[%s18127_s7 + $0x2a20] sm:$0xff]  ;;  %2516 = vst [vmem:[%s18132_s8 + $0xa80] sm:$0xff] %v2515_v16 }
 0x161   : > { %v2519_v18 = vld [vmem:[%s18127_s7 + $0x2a40] sm:$0xff]  ;;  %2518 = vst [vmem:[%s18132_s8 + $0xa88] sm:$0xff] %v2517_v17 }
 0x162   : > { %v2521_v19 = vld [vmem:[%s18127_s7 + $0x2a60] sm:$0xff]  ;;  %2520 = vst [vmem:[%s18132_s8 + $0xa90] sm:$0xff] %v2519_v18 }
 0x163   : > { %v2523_v20 = vld [vmem:[%s18127_s7 + $0x2a80] sm:$0xff]  ;;  %2522 = vst [vmem:[%s18132_s8 + $0xa98] sm:$0xff] %v2521_v19 }
 0x164   : > { %v2525_v21 = vld [vmem:[%s18127_s7 + $0x2aa0] sm:$0xff]  ;;  %2524 = vst [vmem:[%s18132_s8 + $0xaa0] sm:$0xff] %v2523_v20 }
 0x165   : > { %v2527_v22 = vld [vmem:[%s18127_s7 + $0x2ac0] sm:$0xff]  ;;  %2526 = vst [vmem:[%s18132_s8 + $0xaa8] sm:$0xff] %v2525_v21 }
 0x166   : > { %v2529_v23 = vld [vmem:[%s18127_s7 + $0x2ae0] sm:$0xff]  ;;  %2528 = vst [vmem:[%s18132_s8 + $0xab0] sm:$0xff] %v2527_v22 }
 0x167   : > { %v2531_v24 = vld [vmem:[%s18127_s7 + $0x2b00] sm:$0xff]  ;;  %2530 = vst [vmem:[%s18132_s8 + $0xab8] sm:$0xff] %v2529_v23 }
 0x168   : > { %v2533_v25 = vld [vmem:[%s18127_s7 + $0x2b20] sm:$0xff]  ;;  %2532 = vst [vmem:[%s18132_s8 + $0xac0] sm:$0xff] %v2531_v24 }
 0x169   : > { %v2535_v26 = vld [vmem:[%s18127_s7 + $0x2b40] sm:$0xff]  ;;  %2534 = vst [vmem:[%s18132_s8 + $0xac8] sm:$0xff] %v2533_v25 }
 0x16a   : > { %v2537_v27 = vld [vmem:[%s18127_s7 + $0x2b60] sm:$0xff]  ;;  %2536 = vst [vmem:[%s18132_s8 + $0xad0] sm:$0xff] %v2535_v26 }
 0x16b   : > { %v2539_v28 = vld [vmem:[%s18127_s7 + $0x2b80] sm:$0xff]  ;;  %2538 = vst [vmem:[%s18132_s8 + $0xad8] sm:$0xff] %v2537_v27 }
 0x16c   : > { %v2541_v29 = vld [vmem:[%s18127_s7 + $0x2ba0] sm:$0xff]  ;;  %2540 = vst [vmem:[%s18132_s8 + $0xae0] sm:$0xff] %v2539_v28 }
 0x16d   : > { %v2543_v30 = vld [vmem:[%s18127_s7 + $0x2bc0] sm:$0xff]  ;;  %2542 = vst [vmem:[%s18132_s8 + $0xae8] sm:$0xff] %v2541_v29 }
 0x16e   : > { %v2545_v31 = vld [vmem:[%s18127_s7 + $0x2be0] sm:$0xff]  ;;  %2544 = vst [vmem:[%s18132_s8 + $0xaf0] sm:$0xff] %v2543_v30 }
 0x16f   : > { %v2547_v32 = vld [vmem:[%s18127_s7 + $0x2c00] sm:$0xff]  ;;  %2546 = vst [vmem:[%s18132_s8 + $0xaf8] sm:$0xff] %v2545_v31 }
 0x170   : > { %v2549_v33 = vld [vmem:[%s18127_s7 + $0x2c20] sm:$0xff]  ;;  %2548 = vst [vmem:[%s18132_s8 + $0xb00] sm:$0xff] %v2547_v32 }
 0x171   : > { %v2551_v34 = vld [vmem:[%s18127_s7 + $0x2c40] sm:$0xff]  ;;  %2550 = vst [vmem:[%s18132_s8 + $0xb08] sm:$0xff] %v2549_v33 }
 0x172   : > { %v2553_v35 = vld [vmem:[%s18127_s7 + $0x2c60] sm:$0xff]  ;;  %2552 = vst [vmem:[%s18132_s8 + $0xb10] sm:$0xff] %v2551_v34 }
 0x173   : > { %v2555_v36 = vld [vmem:[%s18127_s7 + $0x2c80] sm:$0xff]  ;;  %2554 = vst [vmem:[%s18132_s8 + $0xb18] sm:$0xff] %v2553_v35 }
 0x174   : > { %v2557_v37 = vld [vmem:[%s18127_s7 + $0x2ca0] sm:$0xff]  ;;  %2556 = vst [vmem:[%s18132_s8 + $0xb20] sm:$0xff] %v2555_v36 }
 0x175   : > { %v2559_v38 = vld [vmem:[%s18127_s7 + $0x2cc0] sm:$0xff]  ;;  %2558 = vst [vmem:[%s18132_s8 + $0xb28] sm:$0xff] %v2557_v37 }
 0x176   : > { %v2561_v39 = vld [vmem:[%s18127_s7 + $0x2ce0] sm:$0xff]  ;;  %2560 = vst [vmem:[%s18132_s8 + $0xb30] sm:$0xff] %v2559_v38 }
 0x177   : > { %v2563_v40 = vld [vmem:[%s18127_s7 + $0x2d00] sm:$0xff]  ;;  %2562 = vst [vmem:[%s18132_s8 + $0xb38] sm:$0xff] %v2561_v39 }
 0x178   : > { %v2565_v41 = vld [vmem:[%s18127_s7 + $0x2d20] sm:$0xff]  ;;  %2564 = vst [vmem:[%s18132_s8 + $0xb40] sm:$0xff] %v2563_v40 }
 0x179   : > { %v2567_v42 = vld [vmem:[%s18127_s7 + $0x2d40] sm:$0xff]  ;;  %2566 = vst [vmem:[%s18132_s8 + $0xb48] sm:$0xff] %v2565_v41 }
 0x17a   : > { %v2569_v43 = vld [vmem:[%s18127_s7 + $0x2d60] sm:$0xff]  ;;  %2568 = vst [vmem:[%s18132_s8 + $0xb50] sm:$0xff] %v2567_v42 }
 0x17b   : > { %v2571_v44 = vld [vmem:[%s18127_s7 + $0x2d80] sm:$0xff]  ;;  %2570 = vst [vmem:[%s18132_s8 + $0xb58] sm:$0xff] %v2569_v43 }
 0x17c   : > { %v2573_v45 = vld [vmem:[%s18127_s7 + $0x2da0] sm:$0xff]  ;;  %2572 = vst [vmem:[%s18132_s8 + $0xb60] sm:$0xff] %v2571_v44 }
 0x17d   : > { %v2575_v46 = vld [vmem:[%s18127_s7 + $0x2dc0] sm:$0xff]  ;;  %2574 = vst [vmem:[%s18132_s8 + $0xb68] sm:$0xff] %v2573_v45 }
 0x17e   : > { %v2577_v47 = vld [vmem:[%s18127_s7 + $0x2de0] sm:$0xff]  ;;  %2576 = vst [vmem:[%s18132_s8 + $0xb70] sm:$0xff] %v2575_v46 }
 0x17f   : > { %v2579_v48 = vld [vmem:[%s18127_s7 + $0x2e00] sm:$0xff]  ;;  %2578 = vst [vmem:[%s18132_s8 + $0xb78] sm:$0xff] %v2577_v47 }
 0x180   : > { %v2581_v49 = vld [vmem:[%s18127_s7 + $0x2e20] sm:$0xff]  ;;  %2580 = vst [vmem:[%s18132_s8 + $0xb80] sm:$0xff] %v2579_v48 }
 0x181   : > { %v2583_v50 = vld [vmem:[%s18127_s7 + $0x2e40] sm:$0xff]  ;;  %2582 = vst [vmem:[%s18132_s8 + $0xb88] sm:$0xff] %v2581_v49 }
 0x182   : > { %v2585_v51 = vld [vmem:[%s18127_s7 + $0x2e60] sm:$0xff]  ;;  %2584 = vst [vmem:[%s18132_s8 + $0xb90] sm:$0xff] %v2583_v50 }
 0x183   : > { %v2587_v52 = vld [vmem:[%s18127_s7 + $0x2e80] sm:$0xff]  ;;  %2586 = vst [vmem:[%s18132_s8 + $0xb98] sm:$0xff] %v2585_v51 }
 0x184   : > { %v2589_v53 = vld [vmem:[%s18127_s7 + $0x2ea0] sm:$0xff]  ;;  %2588 = vst [vmem:[%s18132_s8 + $0xba0] sm:$0xff] %v2587_v52 }
 0x185   : > { %v2591_v54 = vld [vmem:[%s18127_s7 + $0x2ec0] sm:$0xff]  ;;  %2590 = vst [vmem:[%s18132_s8 + $0xba8] sm:$0xff] %v2589_v53 }
 0x186   : > { %v2593_v55 = vld [vmem:[%s18127_s7 + $0x2ee0] sm:$0xff]  ;;  %2592 = vst [vmem:[%s18132_s8 + $0xbb0] sm:$0xff] %v2591_v54 }
 0x187   : > { %v2595_v56 = vld [vmem:[%s18127_s7 + $0x2f00] sm:$0xff]  ;;  %2594 = vst [vmem:[%s18132_s8 + $0xbb8] sm:$0xff] %v2593_v55 }
 0x188   : > { %v2597_v57 = vld [vmem:[%s18127_s7 + $0x2f20] sm:$0xff]  ;;  %2596 = vst [vmem:[%s18132_s8 + $0xbc0] sm:$0xff] %v2595_v56 }
 0x189   : > { %v2599_v58 = vld [vmem:[%s18127_s7 + $0x2f40] sm:$0xff]  ;;  %2598 = vst [vmem:[%s18132_s8 + $0xbc8] sm:$0xff] %v2597_v57 }
 0x18a   : > { %v2601_v59 = vld [vmem:[%s18127_s7 + $0x2f60] sm:$0xff]  ;;  %2600 = vst [vmem:[%s18132_s8 + $0xbd0] sm:$0xff] %v2599_v58 }
 0x18b   : > { %v2603_v60 = vld [vmem:[%s18127_s7 + $0x2f80] sm:$0xff]  ;;  %2602 = vst [vmem:[%s18132_s8 + $0xbd8] sm:$0xff] %v2601_v59 }
 0x18c   : > { %v2605_v61 = vld [vmem:[%s18127_s7 + $0x2fa0] sm:$0xff]  ;;  %2604 = vst [vmem:[%s18132_s8 + $0xbe0] sm:$0xff] %v2603_v60 }
 0x18d   : > { %v2607_v62 = vld [vmem:[%s18127_s7 + $0x2fc0] sm:$0xff]  ;;  %2606 = vst [vmem:[%s18132_s8 + $0xbe8] sm:$0xff] %v2605_v61 }
 0x18e   : > { %v2609_v63 = vld [vmem:[%s18127_s7 + $0x2fe0] sm:$0xff]  ;;  %2608 = vst [vmem:[%s18132_s8 + $0xbf0] sm:$0xff] %v2607_v62 }
 0x18f   : > { %v2611_v0 = vld [vmem:[%s18127_s7 + $0x3000] sm:$0xff]  ;;  %2610 = vst [vmem:[%s18132_s8 + $0xbf8] sm:$0xff] %v2609_v63 }
 0x190   : > { %v2613_v1 = vld [vmem:[%s18127_s7 + $0x3020] sm:$0xff]  ;;  %2612 = vst [vmem:[%s18132_s8 + $0xc00] sm:$0xff] %v2611_v0 }
 0x191   : > { %v2615_v2 = vld [vmem:[%s18127_s7 + $0x3040] sm:$0xff]  ;;  %2614 = vst [vmem:[%s18132_s8 + $0xc08] sm:$0xff] %v2613_v1 }
 0x192   : > { %v2617_v3 = vld [vmem:[%s18127_s7 + $0x3060] sm:$0xff]  ;;  %2616 = vst [vmem:[%s18132_s8 + $0xc10] sm:$0xff] %v2615_v2 }
 0x193   : > { %v2619_v4 = vld [vmem:[%s18127_s7 + $0x3080] sm:$0xff]  ;;  %2618 = vst [vmem:[%s18132_s8 + $0xc18] sm:$0xff] %v2617_v3 }
 0x194   : > { %v2621_v5 = vld [vmem:[%s18127_s7 + $0x30a0] sm:$0xff]  ;;  %2620 = vst [vmem:[%s18132_s8 + $0xc20] sm:$0xff] %v2619_v4 }
 0x195   : > { %v2623_v6 = vld [vmem:[%s18127_s7 + $0x30c0] sm:$0xff]  ;;  %2622 = vst [vmem:[%s18132_s8 + $0xc28] sm:$0xff] %v2621_v5 }
 0x196   : > { %v2625_v7 = vld [vmem:[%s18127_s7 + $0x30e0] sm:$0xff]  ;;  %2624 = vst [vmem:[%s18132_s8 + $0xc30] sm:$0xff] %v2623_v6 }
 0x197   : > { %v2627_v8 = vld [vmem:[%s18127_s7 + $0x3100] sm:$0xff]  ;;  %2626 = vst [vmem:[%s18132_s8 + $0xc38] sm:$0xff] %v2625_v7 }
 0x198   : > { %v2629_v9 = vld [vmem:[%s18127_s7 + $0x3120] sm:$0xff]  ;;  %2628 = vst [vmem:[%s18132_s8 + $0xc40] sm:$0xff] %v2627_v8 }
 0x199   : > { %v2631_v10 = vld [vmem:[%s18127_s7 + $0x3140] sm:$0xff]  ;;  %2630 = vst [vmem:[%s18132_s8 + $0xc48] sm:$0xff] %v2629_v9 }
 0x19a   : > { %v2633_v11 = vld [vmem:[%s18127_s7 + $0x3160] sm:$0xff]  ;;  %2632 = vst [vmem:[%s18132_s8 + $0xc50] sm:$0xff] %v2631_v10 }
 0x19b   : > { %v2635_v12 = vld [vmem:[%s18127_s7 + $0x3180] sm:$0xff]  ;;  %2634 = vst [vmem:[%s18132_s8 + $0xc58] sm:$0xff] %v2633_v11 }
 0x19c   : > { %v2637_v13 = vld [vmem:[%s18127_s7 + $0x31a0] sm:$0xff]  ;;  %2636 = vst [vmem:[%s18132_s8 + $0xc60] sm:$0xff] %v2635_v12 }
 0x19d   : > { %v2639_v14 = vld [vmem:[%s18127_s7 + $0x31c0] sm:$0xff]  ;;  %2638 = vst [vmem:[%s18132_s8 + $0xc68] sm:$0xff] %v2637_v13 }
 0x19e   : > { %v2641_v15 = vld [vmem:[%s18127_s7 + $0x31e0] sm:$0xff]  ;;  %2640 = vst [vmem:[%s18132_s8 + $0xc70] sm:$0xff] %v2639_v14 }
 0x19f   : > { %v2643_v16 = vld [vmem:[%s18127_s7 + $0x3200] sm:$0xff]  ;;  %2642 = vst [vmem:[%s18132_s8 + $0xc78] sm:$0xff] %v2641_v15 }
 0x1a0   : > { %v2645_v17 = vld [vmem:[%s18127_s7 + $0x3220] sm:$0xff]  ;;  %2644 = vst [vmem:[%s18132_s8 + $0xc80] sm:$0xff] %v2643_v16 }
 0x1a1   : > { %v2647_v18 = vld [vmem:[%s18127_s7 + $0x3240] sm:$0xff]  ;;  %2646 = vst [vmem:[%s18132_s8 + $0xc88] sm:$0xff] %v2645_v17 }
 0x1a2   : > { %v2649_v19 = vld [vmem:[%s18127_s7 + $0x3260] sm:$0xff]  ;;  %2648 = vst [vmem:[%s18132_s8 + $0xc90] sm:$0xff] %v2647_v18 }
 0x1a3   : > { %v2651_v20 = vld [vmem:[%s18127_s7 + $0x3280] sm:$0xff]  ;;  %2650 = vst [vmem:[%s18132_s8 + $0xc98] sm:$0xff] %v2649_v19 }
 0x1a4   : > { %v2653_v21 = vld [vmem:[%s18127_s7 + $0x32a0] sm:$0xff]  ;;  %2652 = vst [vmem:[%s18132_s8 + $0xca0] sm:$0xff] %v2651_v20 }
 0x1a5   : > { %v2655_v22 = vld [vmem:[%s18127_s7 + $0x32c0] sm:$0xff]  ;;  %2654 = vst [vmem:[%s18132_s8 + $0xca8] sm:$0xff] %v2653_v21 }
 0x1a6   : > { %v2657_v23 = vld [vmem:[%s18127_s7 + $0x32e0] sm:$0xff]  ;;  %2656 = vst [vmem:[%s18132_s8 + $0xcb0] sm:$0xff] %v2655_v22 }
 0x1a7   : > { %v2659_v24 = vld [vmem:[%s18127_s7 + $0x3300] sm:$0xff]  ;;  %2658 = vst [vmem:[%s18132_s8 + $0xcb8] sm:$0xff] %v2657_v23 }
 0x1a8   : > { %v2661_v25 = vld [vmem:[%s18127_s7 + $0x3320] sm:$0xff]  ;;  %2660 = vst [vmem:[%s18132_s8 + $0xcc0] sm:$0xff] %v2659_v24 }
 0x1a9   : > { %v2663_v26 = vld [vmem:[%s18127_s7 + $0x3340] sm:$0xff]  ;;  %2662 = vst [vmem:[%s18132_s8 + $0xcc8] sm:$0xff] %v2661_v25 }
 0x1aa   : > { %v2665_v27 = vld [vmem:[%s18127_s7 + $0x3360] sm:$0xff]  ;;  %2664 = vst [vmem:[%s18132_s8 + $0xcd0] sm:$0xff] %v2663_v26 }
 0x1ab   : > { %v2667_v28 = vld [vmem:[%s18127_s7 + $0x3380] sm:$0xff]  ;;  %2666 = vst [vmem:[%s18132_s8 + $0xcd8] sm:$0xff] %v2665_v27 }
 0x1ac   : > { %v2669_v29 = vld [vmem:[%s18127_s7 + $0x33a0] sm:$0xff]  ;;  %2668 = vst [vmem:[%s18132_s8 + $0xce0] sm:$0xff] %v2667_v28 }
 0x1ad   : > { %v2671_v30 = vld [vmem:[%s18127_s7 + $0x33c0] sm:$0xff]  ;;  %2670 = vst [vmem:[%s18132_s8 + $0xce8] sm:$0xff] %v2669_v29 }
 0x1ae   : > { %v2673_v31 = vld [vmem:[%s18127_s7 + $0x33e0] sm:$0xff]  ;;  %2672 = vst [vmem:[%s18132_s8 + $0xcf0] sm:$0xff] %v2671_v30 }
 0x1af   : > { %v2675_v32 = vld [vmem:[%s18127_s7 + $0x3400] sm:$0xff]  ;;  %2674 = vst [vmem:[%s18132_s8 + $0xcf8] sm:$0xff] %v2673_v31 }
 0x1b0   : > { %v2677_v33 = vld [vmem:[%s18127_s7 + $0x3420] sm:$0xff]  ;;  %2676 = vst [vmem:[%s18132_s8 + $0xd00] sm:$0xff] %v2675_v32 }
 0x1b1   : > { %v2679_v34 = vld [vmem:[%s18127_s7 + $0x3440] sm:$0xff]  ;;  %2678 = vst [vmem:[%s18132_s8 + $0xd08] sm:$0xff] %v2677_v33 }
 0x1b2   : > { %v2681_v35 = vld [vmem:[%s18127_s7 + $0x3460] sm:$0xff]  ;;  %2680 = vst [vmem:[%s18132_s8 + $0xd10] sm:$0xff] %v2679_v34 }
 0x1b3   : > { %v2683_v36 = vld [vmem:[%s18127_s7 + $0x3480] sm:$0xff]  ;;  %2682 = vst [vmem:[%s18132_s8 + $0xd18] sm:$0xff] %v2681_v35 }
 0x1b4   : > { %v2685_v37 = vld [vmem:[%s18127_s7 + $0x34a0] sm:$0xff]  ;;  %2684 = vst [vmem:[%s18132_s8 + $0xd20] sm:$0xff] %v2683_v36 }
 0x1b5   : > { %v2687_v38 = vld [vmem:[%s18127_s7 + $0x34c0] sm:$0xff]  ;;  %2686 = vst [vmem:[%s18132_s8 + $0xd28] sm:$0xff] %v2685_v37 }
 0x1b6   : > { %v2689_v39 = vld [vmem:[%s18127_s7 + $0x34e0] sm:$0xff]  ;;  %2688 = vst [vmem:[%s18132_s8 + $0xd30] sm:$0xff] %v2687_v38 }
 0x1b7   : > { %v2691_v40 = vld [vmem:[%s18127_s7 + $0x3500] sm:$0xff]  ;;  %2690 = vst [vmem:[%s18132_s8 + $0xd38] sm:$0xff] %v2689_v39 }
 0x1b8   : > { %v2693_v41 = vld [vmem:[%s18127_s7 + $0x3520] sm:$0xff]  ;;  %2692 = vst [vmem:[%s18132_s8 + $0xd40] sm:$0xff] %v2691_v40 }
 0x1b9   : > { %v2695_v42 = vld [vmem:[%s18127_s7 + $0x3540] sm:$0xff]  ;;  %2694 = vst [vmem:[%s18132_s8 + $0xd48] sm:$0xff] %v2693_v41 }
 0x1ba   : > { %v2697_v43 = vld [vmem:[%s18127_s7 + $0x3560] sm:$0xff]  ;;  %2696 = vst [vmem:[%s18132_s8 + $0xd50] sm:$0xff] %v2695_v42 }
 0x1bb   : > { %v2699_v44 = vld [vmem:[%s18127_s7 + $0x3580] sm:$0xff]  ;;  %2698 = vst [vmem:[%s18132_s8 + $0xd58] sm:$0xff] %v2697_v43 }
 0x1bc   : > { %v2701_v45 = vld [vmem:[%s18127_s7 + $0x35a0] sm:$0xff]  ;;  %2700 = vst [vmem:[%s18132_s8 + $0xd60] sm:$0xff] %v2699_v44 }
 0x1bd   : > { %v2703_v46 = vld [vmem:[%s18127_s7 + $0x35c0] sm:$0xff]  ;;  %2702 = vst [vmem:[%s18132_s8 + $0xd68] sm:$0xff] %v2701_v45 }
 0x1be   : > { %v2705_v47 = vld [vmem:[%s18127_s7 + $0x35e0] sm:$0xff]  ;;  %2704 = vst [vmem:[%s18132_s8 + $0xd70] sm:$0xff] %v2703_v46 }
 0x1bf   : > { %v2707_v48 = vld [vmem:[%s18127_s7 + $0x3600] sm:$0xff]  ;;  %2706 = vst [vmem:[%s18132_s8 + $0xd78] sm:$0xff] %v2705_v47 }
 0x1c0   : > { %v2709_v49 = vld [vmem:[%s18127_s7 + $0x3620] sm:$0xff]  ;;  %2708 = vst [vmem:[%s18132_s8 + $0xd80] sm:$0xff] %v2707_v48 }
 0x1c1   : > { %v2711_v50 = vld [vmem:[%s18127_s7 + $0x3640] sm:$0xff]  ;;  %2710 = vst [vmem:[%s18132_s8 + $0xd88] sm:$0xff] %v2709_v49 }
 0x1c2   : > { %v2713_v51 = vld [vmem:[%s18127_s7 + $0x3660] sm:$0xff]  ;;  %2712 = vst [vmem:[%s18132_s8 + $0xd90] sm:$0xff] %v2711_v50 }
 0x1c3   : > { %v2715_v52 = vld [vmem:[%s18127_s7 + $0x3680] sm:$0xff]  ;;  %2714 = vst [vmem:[%s18132_s8 + $0xd98] sm:$0xff] %v2713_v51 }
 0x1c4   : > { %v2717_v53 = vld [vmem:[%s18127_s7 + $0x36a0] sm:$0xff]  ;;  %2716 = vst [vmem:[%s18132_s8 + $0xda0] sm:$0xff] %v2715_v52 }
 0x1c5   : > { %v2719_v54 = vld [vmem:[%s18127_s7 + $0x36c0] sm:$0xff]  ;;  %2718 = vst [vmem:[%s18132_s8 + $0xda8] sm:$0xff] %v2717_v53 }
 0x1c6   : > { %v2721_v55 = vld [vmem:[%s18127_s7 + $0x36e0] sm:$0xff]  ;;  %2720 = vst [vmem:[%s18132_s8 + $0xdb0] sm:$0xff] %v2719_v54 }
 0x1c7   : > { %v2723_v56 = vld [vmem:[%s18127_s7 + $0x3700] sm:$0xff]  ;;  %2722 = vst [vmem:[%s18132_s8 + $0xdb8] sm:$0xff] %v2721_v55 }
 0x1c8   : > { %v2725_v57 = vld [vmem:[%s18127_s7 + $0x3720] sm:$0xff]  ;;  %2724 = vst [vmem:[%s18132_s8 + $0xdc0] sm:$0xff] %v2723_v56 }
 0x1c9   : > { %v2727_v58 = vld [vmem:[%s18127_s7 + $0x3740] sm:$0xff]  ;;  %2726 = vst [vmem:[%s18132_s8 + $0xdc8] sm:$0xff] %v2725_v57 }
 0x1ca   : > { %v2729_v59 = vld [vmem:[%s18127_s7 + $0x3760] sm:$0xff]  ;;  %2728 = vst [vmem:[%s18132_s8 + $0xdd0] sm:$0xff] %v2727_v58 }
 0x1cb   : > { %v2731_v60 = vld [vmem:[%s18127_s7 + $0x3780] sm:$0xff]  ;;  %2730 = vst [vmem:[%s18132_s8 + $0xdd8] sm:$0xff] %v2729_v59 }
 0x1cc   : > { %v2733_v61 = vld [vmem:[%s18127_s7 + $0x37a0] sm:$0xff]  ;;  %2732 = vst [vmem:[%s18132_s8 + $0xde0] sm:$0xff] %v2731_v60 }
 0x1cd   : > { %v2735_v62 = vld [vmem:[%s18127_s7 + $0x37c0] sm:$0xff]  ;;  %2734 = vst [vmem:[%s18132_s8 + $0xde8] sm:$0xff] %v2733_v61 }
 0x1ce   : > { %v2737_v63 = vld [vmem:[%s18127_s7 + $0x37e0] sm:$0xff]  ;;  %2736 = vst [vmem:[%s18132_s8 + $0xdf0] sm:$0xff] %v2735_v62 }
 0x1cf   : > { %v2739_v0 = vld [vmem:[%s18127_s7 + $0x3800] sm:$0xff]  ;;  %2738 = vst [vmem:[%s18132_s8 + $0xdf8] sm:$0xff] %v2737_v63 }
 0x1d0   : > { %v2741_v1 = vld [vmem:[%s18127_s7 + $0x3820] sm:$0xff]  ;;  %2740 = vst [vmem:[%s18132_s8 + $0xe00] sm:$0xff] %v2739_v0 }
 0x1d1   : > { %v2743_v2 = vld [vmem:[%s18127_s7 + $0x3840] sm:$0xff]  ;;  %2742 = vst [vmem:[%s18132_s8 + $0xe08] sm:$0xff] %v2741_v1 }
 0x1d2   : > { %v2745_v3 = vld [vmem:[%s18127_s7 + $0x3860] sm:$0xff]  ;;  %2744 = vst [vmem:[%s18132_s8 + $0xe10] sm:$0xff] %v2743_v2 }
 0x1d3   : > { %v2747_v4 = vld [vmem:[%s18127_s7 + $0x3880] sm:$0xff]  ;;  %2746 = vst [vmem:[%s18132_s8 + $0xe18] sm:$0xff] %v2745_v3 }
 0x1d4   : > { %v2749_v5 = vld [vmem:[%s18127_s7 + $0x38a0] sm:$0xff]  ;;  %2748 = vst [vmem:[%s18132_s8 + $0xe20] sm:$0xff] %v2747_v4 }
 0x1d5   : > { %v2751_v6 = vld [vmem:[%s18127_s7 + $0x38c0] sm:$0xff]  ;;  %2750 = vst [vmem:[%s18132_s8 + $0xe28] sm:$0xff] %v2749_v5 }
 0x1d6   : > { %v2753_v7 = vld [vmem:[%s18127_s7 + $0x38e0] sm:$0xff]  ;;  %2752 = vst [vmem:[%s18132_s8 + $0xe30] sm:$0xff] %v2751_v6 }
 0x1d7   : > { %v2755_v8 = vld [vmem:[%s18127_s7 + $0x3900] sm:$0xff]  ;;  %2754 = vst [vmem:[%s18132_s8 + $0xe38] sm:$0xff] %v2753_v7 }
 0x1d8   : > { %v2757_v9 = vld [vmem:[%s18127_s7 + $0x3920] sm:$0xff]  ;;  %2756 = vst [vmem:[%s18132_s8 + $0xe40] sm:$0xff] %v2755_v8 }
 0x1d9   : > { %v2759_v10 = vld [vmem:[%s18127_s7 + $0x3940] sm:$0xff]  ;;  %2758 = vst [vmem:[%s18132_s8 + $0xe48] sm:$0xff] %v2757_v9 }
 0x1da   : > { %v2761_v11 = vld [vmem:[%s18127_s7 + $0x3960] sm:$0xff]  ;;  %2760 = vst [vmem:[%s18132_s8 + $0xe50] sm:$0xff] %v2759_v10 }
 0x1db   : > { %v2763_v12 = vld [vmem:[%s18127_s7 + $0x3980] sm:$0xff]  ;;  %2762 = vst [vmem:[%s18132_s8 + $0xe58] sm:$0xff] %v2761_v11 }
 0x1dc   : > { %v2765_v13 = vld [vmem:[%s18127_s7 + $0x39a0] sm:$0xff]  ;;  %2764 = vst [vmem:[%s18132_s8 + $0xe60] sm:$0xff] %v2763_v12 }
 0x1dd   : > { %v2767_v14 = vld [vmem:[%s18127_s7 + $0x39c0] sm:$0xff]  ;;  %2766 = vst [vmem:[%s18132_s8 + $0xe68] sm:$0xff] %v2765_v13 }
 0x1de   : > { %v2769_v15 = vld [vmem:[%s18127_s7 + $0x39e0] sm:$0xff]  ;;  %2768 = vst [vmem:[%s18132_s8 + $0xe70] sm:$0xff] %v2767_v14 }
 0x1df   : > { %v2771_v16 = vld [vmem:[%s18127_s7 + $0x3a00] sm:$0xff]  ;;  %2770 = vst [vmem:[%s18132_s8 + $0xe78] sm:$0xff] %v2769_v15 }
 0x1e0   : > { %v2773_v17 = vld [vmem:[%s18127_s7 + $0x3a20] sm:$0xff]  ;;  %2772 = vst [vmem:[%s18132_s8 + $0xe80] sm:$0xff] %v2771_v16 }
 0x1e1   : > { %v2775_v18 = vld [vmem:[%s18127_s7 + $0x3a40] sm:$0xff]  ;;  %2774 = vst [vmem:[%s18132_s8 + $0xe88] sm:$0xff] %v2773_v17 }
 0x1e2   : > { %v2777_v19 = vld [vmem:[%s18127_s7 + $0x3a60] sm:$0xff]  ;;  %2776 = vst [vmem:[%s18132_s8 + $0xe90] sm:$0xff] %v2775_v18 }
 0x1e3   : > { %v2779_v20 = vld [vmem:[%s18127_s7 + $0x3a80] sm:$0xff]  ;;  %2778 = vst [vmem:[%s18132_s8 + $0xe98] sm:$0xff] %v2777_v19 }
 0x1e4   : > { %v2781_v21 = vld [vmem:[%s18127_s7 + $0x3aa0] sm:$0xff]  ;;  %2780 = vst [vmem:[%s18132_s8 + $0xea0] sm:$0xff] %v2779_v20 }
 0x1e5   : > { %v2783_v22 = vld [vmem:[%s18127_s7 + $0x3ac0] sm:$0xff]  ;;  %2782 = vst [vmem:[%s18132_s8 + $0xea8] sm:$0xff] %v2781_v21 }
 0x1e6   : > { %v2785_v23 = vld [vmem:[%s18127_s7 + $0x3ae0] sm:$0xff]  ;;  %2784 = vst [vmem:[%s18132_s8 + $0xeb0] sm:$0xff] %v2783_v22 }
 0x1e7   : > { %v2787_v24 = vld [vmem:[%s18127_s7 + $0x3b00] sm:$0xff]  ;;  %2786 = vst [vmem:[%s18132_s8 + $0xeb8] sm:$0xff] %v2785_v23 }
 0x1e8   : > { %v2789_v25 = vld [vmem:[%s18127_s7 + $0x3b20] sm:$0xff]  ;;  %2788 = vst [vmem:[%s18132_s8 + $0xec0] sm:$0xff] %v2787_v24 }
 0x1e9   : > { %v2791_v26 = vld [vmem:[%s18127_s7 + $0x3b40] sm:$0xff]  ;;  %2790 = vst [vmem:[%s18132_s8 + $0xec8] sm:$0xff] %v2789_v25 }
 0x1ea   : > { %v2793_v27 = vld [vmem:[%s18127_s7 + $0x3b60] sm:$0xff]  ;;  %2792 = vst [vmem:[%s18132_s8 + $0xed0] sm:$0xff] %v2791_v26 }
 0x1eb   : > { %v2795_v28 = vld [vmem:[%s18127_s7 + $0x3b80] sm:$0xff]  ;;  %2794 = vst [vmem:[%s18132_s8 + $0xed8] sm:$0xff] %v2793_v27 }
 0x1ec   : > { %v2797_v29 = vld [vmem:[%s18127_s7 + $0x3ba0] sm:$0xff]  ;;  %2796 = vst [vmem:[%s18132_s8 + $0xee0] sm:$0xff] %v2795_v28 }
 0x1ed   : > { %v2799_v30 = vld [vmem:[%s18127_s7 + $0x3bc0] sm:$0xff]  ;;  %2798 = vst [vmem:[%s18132_s8 + $0xee8] sm:$0xff] %v2797_v29 }
 0x1ee   : > { %v2801_v31 = vld [vmem:[%s18127_s7 + $0x3be0] sm:$0xff]  ;;  %2800 = vst [vmem:[%s18132_s8 + $0xef0] sm:$0xff] %v2799_v30 }
 0x1ef   : > { %v2803_v32 = vld [vmem:[%s18127_s7 + $0x3c00] sm:$0xff]  ;;  %2802 = vst [vmem:[%s18132_s8 + $0xef8] sm:$0xff] %v2801_v31 }
 0x1f0   : > { %v2805_v33 = vld [vmem:[%s18127_s7 + $0x3c20] sm:$0xff]  ;;  %2804 = vst [vmem:[%s18132_s8 + $0xf00] sm:$0xff] %v2803_v32 }
 0x1f1   : > { %v2807_v34 = vld [vmem:[%s18127_s7 + $0x3c40] sm:$0xff]  ;;  %2806 = vst [vmem:[%s18132_s8 + $0xf08] sm:$0xff] %v2805_v33 }
 0x1f2   : > { %v2809_v35 = vld [vmem:[%s18127_s7 + $0x3c60] sm:$0xff]  ;;  %2808 = vst [vmem:[%s18132_s8 + $0xf10] sm:$0xff] %v2807_v34 }
 0x1f3   : > { %v2811_v36 = vld [vmem:[%s18127_s7 + $0x3c80] sm:$0xff]  ;;  %2810 = vst [vmem:[%s18132_s8 + $0xf18] sm:$0xff] %v2809_v35 }
 0x1f4   : > { %v2813_v37 = vld [vmem:[%s18127_s7 + $0x3ca0] sm:$0xff]  ;;  %2812 = vst [vmem:[%s18132_s8 + $0xf20] sm:$0xff] %v2811_v36 }
 0x1f5   : > { %v2815_v38 = vld [vmem:[%s18127_s7 + $0x3cc0] sm:$0xff]  ;;  %2814 = vst [vmem:[%s18132_s8 + $0xf28] sm:$0xff] %v2813_v37 }
 0x1f6   : > { %v2817_v39 = vld [vmem:[%s18127_s7 + $0x3ce0] sm:$0xff]  ;;  %2816 = vst [vmem:[%s18132_s8 + $0xf30] sm:$0xff] %v2815_v38 }
 0x1f7   : > { %v2819_v40 = vld [vmem:[%s18127_s7 + $0x3d00] sm:$0xff]  ;;  %2818 = vst [vmem:[%s18132_s8 + $0xf38] sm:$0xff] %v2817_v39 }
 0x1f8   : > { %v2821_v41 = vld [vmem:[%s18127_s7 + $0x3d20] sm:$0xff]  ;;  %2820 = vst [vmem:[%s18132_s8 + $0xf40] sm:$0xff] %v2819_v40 }
 0x1f9   : > { %v2823_v42 = vld [vmem:[%s18127_s7 + $0x3d40] sm:$0xff]  ;;  %2822 = vst [vmem:[%s18132_s8 + $0xf48] sm:$0xff] %v2821_v41 }
 0x1fa   : > { %v2825_v43 = vld [vmem:[%s18127_s7 + $0x3d60] sm:$0xff]  ;;  %2824 = vst [vmem:[%s18132_s8 + $0xf50] sm:$0xff] %v2823_v42 }
 0x1fb   : > { %v2827_v44 = vld [vmem:[%s18127_s7 + $0x3d80] sm:$0xff]  ;;  %2826 = vst [vmem:[%s18132_s8 + $0xf58] sm:$0xff] %v2825_v43 }
 0x1fc   : > { %v2829_v45 = vld [vmem:[%s18127_s7 + $0x3da0] sm:$0xff]  ;;  %2828 = vst [vmem:[%s18132_s8 + $0xf60] sm:$0xff] %v2827_v44 }
 0x1fd   : > { %v2831_v46 = vld [vmem:[%s18127_s7 + $0x3dc0] sm:$0xff]  ;;  %2830 = vst [vmem:[%s18132_s8 + $0xf68] sm:$0xff] %v2829_v45 }
 0x1fe   : > { %v2833_v47 = vld [vmem:[%s18127_s7 + $0x3de0] sm:$0xff]  ;;  %2832 = vst [vmem:[%s18132_s8 + $0xf70] sm:$0xff] %v2831_v46 }
 0x1ff   : > { %v2835_v48 = vld [vmem:[%s18127_s7 + $0x3e00] sm:$0xff]  ;;  %2834 = vst [vmem:[%s18132_s8 + $0xf78] sm:$0xff] %v2833_v47 }
 0x200   : > { %v2837_v49 = vld [vmem:[%s18127_s7 + $0x3e20] sm:$0xff]  ;;  %2836 = vst [vmem:[%s18132_s8 + $0xf80] sm:$0xff] %v2835_v48 }
 0x201   : > { %v2839_v50 = vld [vmem:[%s18127_s7 + $0x3e40] sm:$0xff]  ;;  %2838 = vst [vmem:[%s18132_s8 + $0xf88] sm:$0xff] %v2837_v49 }
 0x202   : > { %v2841_v51 = vld [vmem:[%s18127_s7 + $0x3e60] sm:$0xff]  ;;  %2840 = vst [vmem:[%s18132_s8 + $0xf90] sm:$0xff] %v2839_v50 }
 0x203   : > { %v2843_v52 = vld [vmem:[%s18127_s7 + $0x3e80] sm:$0xff]  ;;  %2842 = vst [vmem:[%s18132_s8 + $0xf98] sm:$0xff] %v2841_v51 }
 0x204   : > { %v2845_v53 = vld [vmem:[%s18127_s7 + $0x3ea0] sm:$0xff]  ;;  %2844 = vst [vmem:[%s18132_s8 + $0xfa0] sm:$0xff] %v2843_v52 }
 0x205   : > { %v2847_v54 = vld [vmem:[%s18127_s7 + $0x3ec0] sm:$0xff]  ;;  %2846 = vst [vmem:[%s18132_s8 + $0xfa8] sm:$0xff] %v2845_v53 }
 0x206   : > { %v2849_v55 = vld [vmem:[%s18127_s7 + $0x3ee0] sm:$0xff]  ;;  %2848 = vst [vmem:[%s18132_s8 + $0xfb0] sm:$0xff] %v2847_v54 }
 0x207   : > { %v2851_v56 = vld [vmem:[%s18127_s7 + $0x3f00] sm:$0xff]  ;;  %2850 = vst [vmem:[%s18132_s8 + $0xfb8] sm:$0xff] %v2849_v55 }
 0x208   : > { %v2853_v57 = vld [vmem:[%s18127_s7 + $0x3f20] sm:$0xff]  ;;  %2852 = vst [vmem:[%s18132_s8 + $0xfc0] sm:$0xff] %v2851_v56 }
 0x209   : > { %v2855_v58 = vld [vmem:[%s18127_s7 + $0x3f40] sm:$0xff]  ;;  %2854 = vst [vmem:[%s18132_s8 + $0xfc8] sm:$0xff] %v2853_v57 }
 0x20a   : > { %v2857_v59 = vld [vmem:[%s18127_s7 + $0x3f60] sm:$0xff]  ;;  %2856 = vst [vmem:[%s18132_s8 + $0xfd0] sm:$0xff] %v2855_v58 }
 0x20b   : > { %v2859_v60 = vld [vmem:[%s18127_s7 + $0x3f80] sm:$0xff]  ;;  %2858 = vst [vmem:[%s18132_s8 + $0xfd8] sm:$0xff] %v2857_v59 }
 0x20c   : > { %v2861_v61 = vld [vmem:[%s18127_s7 + $0x3fa0] sm:$0xff]  ;;  %2860 = vst [vmem:[%s18132_s8 + $0xfe0] sm:$0xff] %v2859_v60 }
 0x20d   : > { %v2863_v62 = vld [vmem:[%s18127_s7 + $0x3fc0] sm:$0xff]  ;;  %2862 = vst [vmem:[%s18132_s8 + $0xfe8] sm:$0xff] %v2861_v61 }
 0x20e   : > { %v2865_v63 = vld [vmem:[%s18127_s7 + $0x3fe0] sm:$0xff]  ;;  %2864 = vst [vmem:[%s18132_s8 + $0xff0] sm:$0xff] %v2863_v62 }
 0x20f   : > { %v2867_v0 = vld [vmem:[%s18127_s7 + $0x4000] sm:$0xff]  ;;  %2866 = vst [vmem:[%s18132_s8 + $0xff8] sm:$0xff] %v2865_v63 }
 0x210   : > { %v2869_v1 = vld [vmem:[%s18127_s7 + $0x4020] sm:$0xff]  ;;  %2868 = vst [vmem:[%s18132_s8 + $0x1000] sm:$0xff] %v2867_v0 }
 0x211   : > { %v2871_v2 = vld [vmem:[%s18127_s7 + $0x4040] sm:$0xff]  ;;  %2870 = vst [vmem:[%s18132_s8 + $0x1008] sm:$0xff] %v2869_v1 }
 0x212   : > { %v2873_v3 = vld [vmem:[%s18127_s7 + $0x4060] sm:$0xff]  ;;  %2872 = vst [vmem:[%s18132_s8 + $0x1010] sm:$0xff] %v2871_v2 }
 0x213   : > { %v2875_v4 = vld [vmem:[%s18127_s7 + $0x4080] sm:$0xff]  ;;  %2874 = vst [vmem:[%s18132_s8 + $0x1018] sm:$0xff] %v2873_v3 }
 0x214   : > { %v2877_v5 = vld [vmem:[%s18127_s7 + $0x40a0] sm:$0xff]  ;;  %2876 = vst [vmem:[%s18132_s8 + $0x1020] sm:$0xff] %v2875_v4 }
 0x215   : > { %v2879_v6 = vld [vmem:[%s18127_s7 + $0x40c0] sm:$0xff]  ;;  %2878 = vst [vmem:[%s18132_s8 + $0x1028] sm:$0xff] %v2877_v5 }
 0x216   : > { %v2881_v7 = vld [vmem:[%s18127_s7 + $0x40e0] sm:$0xff]  ;;  %2880 = vst [vmem:[%s18132_s8 + $0x1030] sm:$0xff] %v2879_v6 }
 0x217   : > { %v2883_v8 = vld [vmem:[%s18127_s7 + $0x4100] sm:$0xff]  ;;  %2882 = vst [vmem:[%s18132_s8 + $0x1038] sm:$0xff] %v2881_v7 }
 0x218   : > { %v2885_v9 = vld [vmem:[%s18127_s7 + $0x4120] sm:$0xff]  ;;  %2884 = vst [vmem:[%s18132_s8 + $0x1040] sm:$0xff] %v2883_v8 }
 0x219   : > { %v2887_v10 = vld [vmem:[%s18127_s7 + $0x4140] sm:$0xff]  ;;  %2886 = vst [vmem:[%s18132_s8 + $0x1048] sm:$0xff] %v2885_v9 }
 0x21a   : > { %v2889_v11 = vld [vmem:[%s18127_s7 + $0x4160] sm:$0xff]  ;;  %2888 = vst [vmem:[%s18132_s8 + $0x1050] sm:$0xff] %v2887_v10 }
 0x21b   : > { %v2891_v12 = vld [vmem:[%s18127_s7 + $0x4180] sm:$0xff]  ;;  %2890 = vst [vmem:[%s18132_s8 + $0x1058] sm:$0xff] %v2889_v11 }
 0x21c   : > { %v2893_v13 = vld [vmem:[%s18127_s7 + $0x41a0] sm:$0xff]  ;;  %2892 = vst [vmem:[%s18132_s8 + $0x1060] sm:$0xff] %v2891_v12 }
 0x21d   : > { %v2895_v14 = vld [vmem:[%s18127_s7 + $0x41c0] sm:$0xff]  ;;  %2894 = vst [vmem:[%s18132_s8 + $0x1068] sm:$0xff] %v2893_v13 }
 0x21e   : > { %v2897_v15 = vld [vmem:[%s18127_s7 + $0x41e0] sm:$0xff]  ;;  %2896 = vst [vmem:[%s18132_s8 + $0x1070] sm:$0xff] %v2895_v14 }
 0x21f   : > { %v2899_v16 = vld [vmem:[%s18127_s7 + $0x4200] sm:$0xff]  ;;  %2898 = vst [vmem:[%s18132_s8 + $0x1078] sm:$0xff] %v2897_v15 }
 0x220   : > { %v2901_v17 = vld [vmem:[%s18127_s7 + $0x4220] sm:$0xff]  ;;  %2900 = vst [vmem:[%s18132_s8 + $0x1080] sm:$0xff] %v2899_v16 }
 0x221   : > { %v2903_v18 = vld [vmem:[%s18127_s7 + $0x4240] sm:$0xff]  ;;  %2902 = vst [vmem:[%s18132_s8 + $0x1088] sm:$0xff] %v2901_v17 }
 0x222   : > { %v2905_v19 = vld [vmem:[%s18127_s7 + $0x4260] sm:$0xff]  ;;  %2904 = vst [vmem:[%s18132_s8 + $0x1090] sm:$0xff] %v2903_v18 }
 0x223   : > { %v2907_v20 = vld [vmem:[%s18127_s7 + $0x4280] sm:$0xff]  ;;  %2906 = vst [vmem:[%s18132_s8 + $0x1098] sm:$0xff] %v2905_v19 }
 0x224   : > { %v2909_v21 = vld [vmem:[%s18127_s7 + $0x42a0] sm:$0xff]  ;;  %2908 = vst [vmem:[%s18132_s8 + $0x10a0] sm:$0xff] %v2907_v20 }
 0x225   : > { %v2911_v22 = vld [vmem:[%s18127_s7 + $0x42c0] sm:$0xff]  ;;  %2910 = vst [vmem:[%s18132_s8 + $0x10a8] sm:$0xff] %v2909_v21 }
 0x226   : > { %v2913_v23 = vld [vmem:[%s18127_s7 + $0x42e0] sm:$0xff]  ;;  %2912 = vst [vmem:[%s18132_s8 + $0x10b0] sm:$0xff] %v2911_v22 }
 0x227   : > { %v2915_v24 = vld [vmem:[%s18127_s7 + $0x4300] sm:$0xff]  ;;  %2914 = vst [vmem:[%s18132_s8 + $0x10b8] sm:$0xff] %v2913_v23 }
 0x228   : > { %v2917_v25 = vld [vmem:[%s18127_s7 + $0x4320] sm:$0xff]  ;;  %2916 = vst [vmem:[%s18132_s8 + $0x10c0] sm:$0xff] %v2915_v24 }
 0x229   : > { %v2919_v26 = vld [vmem:[%s18127_s7 + $0x4340] sm:$0xff]  ;;  %2918 = vst [vmem:[%s18132_s8 + $0x10c8] sm:$0xff] %v2917_v25 }
 0x22a   : > { %v2921_v27 = vld [vmem:[%s18127_s7 + $0x4360] sm:$0xff]  ;;  %2920 = vst [vmem:[%s18132_s8 + $0x10d0] sm:$0xff] %v2919_v26 }
 0x22b   : > { %v2923_v28 = vld [vmem:[%s18127_s7 + $0x4380] sm:$0xff]  ;;  %2922 = vst [vmem:[%s18132_s8 + $0x10d8] sm:$0xff] %v2921_v27 }
 0x22c   : > { %v2925_v29 = vld [vmem:[%s18127_s7 + $0x43a0] sm:$0xff]  ;;  %2924 = vst [vmem:[%s18132_s8 + $0x10e0] sm:$0xff] %v2923_v28 }
 0x22d   : > { %v2927_v30 = vld [vmem:[%s18127_s7 + $0x43c0] sm:$0xff]  ;;  %2926 = vst [vmem:[%s18132_s8 + $0x10e8] sm:$0xff] %v2925_v29 }
 0x22e   : > { %v2929_v31 = vld [vmem:[%s18127_s7 + $0x43e0] sm:$0xff]  ;;  %2928 = vst [vmem:[%s18132_s8 + $0x10f0] sm:$0xff] %v2927_v30 }
 0x22f   : > { %v2931_v32 = vld [vmem:[%s18127_s7 + $0x4400] sm:$0xff]  ;;  %2930 = vst [vmem:[%s18132_s8 + $0x10f8] sm:$0xff] %v2929_v31 }
 0x230   : > { %v2933_v33 = vld [vmem:[%s18127_s7 + $0x4420] sm:$0xff]  ;;  %2932 = vst [vmem:[%s18132_s8 + $0x1100] sm:$0xff] %v2931_v32 }
 0x231   : > { %v2935_v34 = vld [vmem:[%s18127_s7 + $0x4440] sm:$0xff]  ;;  %2934 = vst [vmem:[%s18132_s8 + $0x1108] sm:$0xff] %v2933_v33 }
 0x232   : > { %v2937_v35 = vld [vmem:[%s18127_s7 + $0x4460] sm:$0xff]  ;;  %2936 = vst [vmem:[%s18132_s8 + $0x1110] sm:$0xff] %v2935_v34 }
 0x233   : > { %v2939_v36 = vld [vmem:[%s18127_s7 + $0x4480] sm:$0xff]  ;;  %2938 = vst [vmem:[%s18132_s8 + $0x1118] sm:$0xff] %v2937_v35 }
 0x234   : > { %v2941_v37 = vld [vmem:[%s18127_s7 + $0x44a0] sm:$0xff]  ;;  %2940 = vst [vmem:[%s18132_s8 + $0x1120] sm:$0xff] %v2939_v36 }
 0x235   : > { %v2943_v38 = vld [vmem:[%s18127_s7 + $0x44c0] sm:$0xff]  ;;  %2942 = vst [vmem:[%s18132_s8 + $0x1128] sm:$0xff] %v2941_v37 }
 0x236   : > { %v2945_v39 = vld [vmem:[%s18127_s7 + $0x44e0] sm:$0xff]  ;;  %2944 = vst [vmem:[%s18132_s8 + $0x1130] sm:$0xff] %v2943_v38 }
 0x237   : > { %v2947_v40 = vld [vmem:[%s18127_s7 + $0x4500] sm:$0xff]  ;;  %2946 = vst [vmem:[%s18132_s8 + $0x1138] sm:$0xff] %v2945_v39 }
 0x238   : > { %v2949_v41 = vld [vmem:[%s18127_s7 + $0x4520] sm:$0xff]  ;;  %2948 = vst [vmem:[%s18132_s8 + $0x1140] sm:$0xff] %v2947_v40 }
 0x239   : > { %v2951_v42 = vld [vmem:[%s18127_s7 + $0x4540] sm:$0xff]  ;;  %2950 = vst [vmem:[%s18132_s8 + $0x1148] sm:$0xff] %v2949_v41 }
 0x23a   : > { %v2953_v43 = vld [vmem:[%s18127_s7 + $0x4560] sm:$0xff]  ;;  %2952 = vst [vmem:[%s18132_s8 + $0x1150] sm:$0xff] %v2951_v42 }
 0x23b   : > { %v2955_v44 = vld [vmem:[%s18127_s7 + $0x4580] sm:$0xff]  ;;  %2954 = vst [vmem:[%s18132_s8 + $0x1158] sm:$0xff] %v2953_v43 }
 0x23c   : > { %v2957_v45 = vld [vmem:[%s18127_s7 + $0x45a0] sm:$0xff]  ;;  %2956 = vst [vmem:[%s18132_s8 + $0x1160] sm:$0xff] %v2955_v44 }
 0x23d   : > { %v2959_v46 = vld [vmem:[%s18127_s7 + $0x45c0] sm:$0xff]  ;;  %2958 = vst [vmem:[%s18132_s8 + $0x1168] sm:$0xff] %v2957_v45 }
 0x23e   : > { %v2961_v47 = vld [vmem:[%s18127_s7 + $0x45e0] sm:$0xff]  ;;  %2960 = vst [vmem:[%s18132_s8 + $0x1170] sm:$0xff] %v2959_v46 }
 0x23f   : > { %v2963_v48 = vld [vmem:[%s18127_s7 + $0x4600] sm:$0xff]  ;;  %2962 = vst [vmem:[%s18132_s8 + $0x1178] sm:$0xff] %v2961_v47 }
 0x240   : > { %v2965_v49 = vld [vmem:[%s18127_s7 + $0x4620] sm:$0xff]  ;;  %2964 = vst [vmem:[%s18132_s8 + $0x1180] sm:$0xff] %v2963_v48 }
 0x241   : > { %v2967_v50 = vld [vmem:[%s18127_s7 + $0x4640] sm:$0xff]  ;;  %2966 = vst [vmem:[%s18132_s8 + $0x1188] sm:$0xff] %v2965_v49 }
 0x242   : > { %v2969_v51 = vld [vmem:[%s18127_s7 + $0x4660] sm:$0xff]  ;;  %2968 = vst [vmem:[%s18132_s8 + $0x1190] sm:$0xff] %v2967_v50 }
 0x243   : > { %v2971_v52 = vld [vmem:[%s18127_s7 + $0x4680] sm:$0xff]  ;;  %2970 = vst [vmem:[%s18132_s8 + $0x1198] sm:$0xff] %v2969_v51 }
 0x244   : > { %v2973_v53 = vld [vmem:[%s18127_s7 + $0x46a0] sm:$0xff]  ;;  %2972 = vst [vmem:[%s18132_s8 + $0x11a0] sm:$0xff] %v2971_v52 }
 0x245   : > { %v2975_v54 = vld [vmem:[%s18127_s7 + $0x46c0] sm:$0xff]  ;;  %2974 = vst [vmem:[%s18132_s8 + $0x11a8] sm:$0xff] %v2973_v53 }
 0x246   : > { %v2977_v55 = vld [vmem:[%s18127_s7 + $0x46e0] sm:$0xff]  ;;  %2976 = vst [vmem:[%s18132_s8 + $0x11b0] sm:$0xff] %v2975_v54 }
 0x247   : > { %v2979_v56 = vld [vmem:[%s18127_s7 + $0x4700] sm:$0xff]  ;;  %2978 = vst [vmem:[%s18132_s8 + $0x11b8] sm:$0xff] %v2977_v55 }
 0x248   : > { %v2981_v57 = vld [vmem:[%s18127_s7 + $0x4720] sm:$0xff]  ;;  %2980 = vst [vmem:[%s18132_s8 + $0x11c0] sm:$0xff] %v2979_v56 }
 0x249   : > { %v2983_v58 = vld [vmem:[%s18127_s7 + $0x4740] sm:$0xff]  ;;  %2982 = vst [vmem:[%s18132_s8 + $0x11c8] sm:$0xff] %v2981_v57 }
 0x24a   : > { %v2985_v59 = vld [vmem:[%s18127_s7 + $0x4760] sm:$0xff]  ;;  %2984 = vst [vmem:[%s18132_s8 + $0x11d0] sm:$0xff] %v2983_v58 }
 0x24b   : > { %v2987_v60 = vld [vmem:[%s18127_s7 + $0x4780] sm:$0xff]  ;;  %2986 = vst [vmem:[%s18132_s8 + $0x11d8] sm:$0xff] %v2985_v59 }
 0x24c   : > { %v2989_v61 = vld [vmem:[%s18127_s7 + $0x47a0] sm:$0xff]  ;;  %2988 = vst [vmem:[%s18132_s8 + $0x11e0] sm:$0xff] %v2987_v60 }
 0x24d   : > { %v2991_v62 = vld [vmem:[%s18127_s7 + $0x47c0] sm:$0xff]  ;;  %2990 = vst [vmem:[%s18132_s8 + $0x11e8] sm:$0xff] %v2989_v61 }
 0x24e   : > { %v2993_v63 = vld [vmem:[%s18127_s7 + $0x47e0] sm:$0xff]  ;;  %2992 = vst [vmem:[%s18132_s8 + $0x11f0] sm:$0xff] %v2991_v62 }
 0x24f   : > { %v2995_v0 = vld [vmem:[%s18127_s7 + $0x4800] sm:$0xff]  ;;  %2994 = vst [vmem:[%s18132_s8 + $0x11f8] sm:$0xff] %v2993_v63 }
 0x250   : > { %v2997_v1 = vld [vmem:[%s18127_s7 + $0x4820] sm:$0xff]  ;;  %2996 = vst [vmem:[%s18132_s8 + $0x1200] sm:$0xff] %v2995_v0 }
 0x251   : > { %v2999_v2 = vld [vmem:[%s18127_s7 + $0x4840] sm:$0xff]  ;;  %2998 = vst [vmem:[%s18132_s8 + $0x1208] sm:$0xff] %v2997_v1 }
 0x252   : > { %v3001_v3 = vld [vmem:[%s18127_s7 + $0x4860] sm:$0xff]  ;;  %3000 = vst [vmem:[%s18132_s8 + $0x1210] sm:$0xff] %v2999_v2 }
 0x253   : > { %v3003_v4 = vld [vmem:[%s18127_s7 + $0x4880] sm:$0xff]  ;;  %3002 = vst [vmem:[%s18132_s8 + $0x1218] sm:$0xff] %v3001_v3 }
 0x254   : > { %v3005_v5 = vld [vmem:[%s18127_s7 + $0x48a0] sm:$0xff]  ;;  %3004 = vst [vmem:[%s18132_s8 + $0x1220] sm:$0xff] %v3003_v4 }
 0x255   : > { %v3007_v6 = vld [vmem:[%s18127_s7 + $0x48c0] sm:$0xff]  ;;  %3006 = vst [vmem:[%s18132_s8 + $0x1228] sm:$0xff] %v3005_v5 }
 0x256   : > { %v3009_v7 = vld [vmem:[%s18127_s7 + $0x48e0] sm:$0xff]  ;;  %3008 = vst [vmem:[%s18132_s8 + $0x1230] sm:$0xff] %v3007_v6 }
 0x257   : > { %v3011_v8 = vld [vmem:[%s18127_s7 + $0x4900] sm:$0xff]  ;;  %3010 = vst [vmem:[%s18132_s8 + $0x1238] sm:$0xff] %v3009_v7 }
 0x258   : > { %v3013_v9 = vld [vmem:[%s18127_s7 + $0x4920] sm:$0xff]  ;;  %3012 = vst [vmem:[%s18132_s8 + $0x1240] sm:$0xff] %v3011_v8 }
 0x259   : > { %v3015_v10 = vld [vmem:[%s18127_s7 + $0x4940] sm:$0xff]  ;;  %3014 = vst [vmem:[%s18132_s8 + $0x1248] sm:$0xff] %v3013_v9 }
 0x25a   : > { %v3017_v11 = vld [vmem:[%s18127_s7 + $0x4960] sm:$0xff]  ;;  %3016 = vst [vmem:[%s18132_s8 + $0x1250] sm:$0xff] %v3015_v10 }
 0x25b   : > { %v3019_v12 = vld [vmem:[%s18127_s7 + $0x4980] sm:$0xff]  ;;  %3018 = vst [vmem:[%s18132_s8 + $0x1258] sm:$0xff] %v3017_v11 }
 0x25c   : > { %v3021_v13 = vld [vmem:[%s18127_s7 + $0x49a0] sm:$0xff]  ;;  %3020 = vst [vmem:[%s18132_s8 + $0x1260] sm:$0xff] %v3019_v12 }
 0x25d   : > { %v3023_v14 = vld [vmem:[%s18127_s7 + $0x49c0] sm:$0xff]  ;;  %3022 = vst [vmem:[%s18132_s8 + $0x1268] sm:$0xff] %v3021_v13 }
 0x25e   : > { %v3025_v15 = vld [vmem:[%s18127_s7 + $0x49e0] sm:$0xff]  ;;  %3024 = vst [vmem:[%s18132_s8 + $0x1270] sm:$0xff] %v3023_v14 }
 0x25f   : > { %v3027_v16 = vld [vmem:[%s18127_s7 + $0x4a00] sm:$0xff]  ;;  %3026 = vst [vmem:[%s18132_s8 + $0x1278] sm:$0xff] %v3025_v15 }
 0x260   : > { %v3029_v17 = vld [vmem:[%s18127_s7 + $0x4a20] sm:$0xff]  ;;  %3028 = vst [vmem:[%s18132_s8 + $0x1280] sm:$0xff] %v3027_v16 }
 0x261   : > { %v3031_v18 = vld [vmem:[%s18127_s7 + $0x4a40] sm:$0xff]  ;;  %3030 = vst [vmem:[%s18132_s8 + $0x1288] sm:$0xff] %v3029_v17 }
 0x262   : > { %v3033_v19 = vld [vmem:[%s18127_s7 + $0x4a60] sm:$0xff]  ;;  %3032 = vst [vmem:[%s18132_s8 + $0x1290] sm:$0xff] %v3031_v18 }
 0x263   : > { %v3035_v20 = vld [vmem:[%s18127_s7 + $0x4a80] sm:$0xff]  ;;  %3034 = vst [vmem:[%s18132_s8 + $0x1298] sm:$0xff] %v3033_v19 }
 0x264   : > { %v3037_v21 = vld [vmem:[%s18127_s7 + $0x4aa0] sm:$0xff]  ;;  %3036 = vst [vmem:[%s18132_s8 + $0x12a0] sm:$0xff] %v3035_v20 }
 0x265   : > { %v3039_v22 = vld [vmem:[%s18127_s7 + $0x4ac0] sm:$0xff]  ;;  %3038 = vst [vmem:[%s18132_s8 + $0x12a8] sm:$0xff] %v3037_v21 }
 0x266   : > { %v3041_v23 = vld [vmem:[%s18127_s7 + $0x4ae0] sm:$0xff]  ;;  %3040 = vst [vmem:[%s18132_s8 + $0x12b0] sm:$0xff] %v3039_v22 }
 0x267   : > { %v3043_v24 = vld [vmem:[%s18127_s7 + $0x4b00] sm:$0xff]  ;;  %3042 = vst [vmem:[%s18132_s8 + $0x12b8] sm:$0xff] %v3041_v23 }
 0x268   : > { %v3045_v25 = vld [vmem:[%s18127_s7 + $0x4b20] sm:$0xff]  ;;  %3044 = vst [vmem:[%s18132_s8 + $0x12c0] sm:$0xff] %v3043_v24 }
 0x269   : > { %v3047_v26 = vld [vmem:[%s18127_s7 + $0x4b40] sm:$0xff]  ;;  %3046 = vst [vmem:[%s18132_s8 + $0x12c8] sm:$0xff] %v3045_v25 }
 0x26a   : > { %v3049_v27 = vld [vmem:[%s18127_s7 + $0x4b60] sm:$0xff]  ;;  %3048 = vst [vmem:[%s18132_s8 + $0x12d0] sm:$0xff] %v3047_v26 }
 0x26b   : > { %v3051_v28 = vld [vmem:[%s18127_s7 + $0x4b80] sm:$0xff]  ;;  %3050 = vst [vmem:[%s18132_s8 + $0x12d8] sm:$0xff] %v3049_v27 }
 0x26c   : > { %v3053_v29 = vld [vmem:[%s18127_s7 + $0x4ba0] sm:$0xff]  ;;  %3052 = vst [vmem:[%s18132_s8 + $0x12e0] sm:$0xff] %v3051_v28 }
 0x26d   : > { %v3055_v30 = vld [vmem:[%s18127_s7 + $0x4bc0] sm:$0xff]  ;;  %3054 = vst [vmem:[%s18132_s8 + $0x12e8] sm:$0xff] %v3053_v29 }
 0x26e   : > { %v3057_v31 = vld [vmem:[%s18127_s7 + $0x4be0] sm:$0xff]  ;;  %3056 = vst [vmem:[%s18132_s8 + $0x12f0] sm:$0xff] %v3055_v30 }
 0x26f   : > { %v3059_v32 = vld [vmem:[%s18127_s7 + $0x4c00] sm:$0xff]  ;;  %3058 = vst [vmem:[%s18132_s8 + $0x12f8] sm:$0xff] %v3057_v31 }
 0x270   : > { %v3061_v33 = vld [vmem:[%s18127_s7 + $0x4c20] sm:$0xff]  ;;  %3060 = vst [vmem:[%s18132_s8 + $0x1300] sm:$0xff] %v3059_v32 }
 0x271   : > { %v3063_v34 = vld [vmem:[%s18127_s7 + $0x4c40] sm:$0xff]  ;;  %3062 = vst [vmem:[%s18132_s8 + $0x1308] sm:$0xff] %v3061_v33 }
 0x272   : > { %v3065_v35 = vld [vmem:[%s18127_s7 + $0x4c60] sm:$0xff]  ;;  %3064 = vst [vmem:[%s18132_s8 + $0x1310] sm:$0xff] %v3063_v34 }
 0x273   : > { %v3067_v36 = vld [vmem:[%s18127_s7 + $0x4c80] sm:$0xff]  ;;  %3066 = vst [vmem:[%s18132_s8 + $0x1318] sm:$0xff] %v3065_v35 }
 0x274   : > { %v3069_v37 = vld [vmem:[%s18127_s7 + $0x4ca0] sm:$0xff]  ;;  %3068 = vst [vmem:[%s18132_s8 + $0x1320] sm:$0xff] %v3067_v36 }
 0x275   : > { %v3071_v38 = vld [vmem:[%s18127_s7 + $0x4cc0] sm:$0xff]  ;;  %3070 = vst [vmem:[%s18132_s8 + $0x1328] sm:$0xff] %v3069_v37 }
 0x276   : > { %v3073_v39 = vld [vmem:[%s18127_s7 + $0x4ce0] sm:$0xff]  ;;  %3072 = vst [vmem:[%s18132_s8 + $0x1330] sm:$0xff] %v3071_v38 }
 0x277   : > { %v3075_v40 = vld [vmem:[%s18127_s7 + $0x4d00] sm:$0xff]  ;;  %3074 = vst [vmem:[%s18132_s8 + $0x1338] sm:$0xff] %v3073_v39 }
 0x278   : > { %v3077_v41 = vld [vmem:[%s18127_s7 + $0x4d20] sm:$0xff]  ;;  %3076 = vst [vmem:[%s18132_s8 + $0x1340] sm:$0xff] %v3075_v40 }
 0x279   : > { %v3079_v42 = vld [vmem:[%s18127_s7 + $0x4d40] sm:$0xff]  ;;  %3078 = vst [vmem:[%s18132_s8 + $0x1348] sm:$0xff] %v3077_v41 }
 0x27a   : > { %v3081_v43 = vld [vmem:[%s18127_s7 + $0x4d60] sm:$0xff]  ;;  %3080 = vst [vmem:[%s18132_s8 + $0x1350] sm:$0xff] %v3079_v42 }
 0x27b   : > { %v3083_v44 = vld [vmem:[%s18127_s7 + $0x4d80] sm:$0xff]  ;;  %3082 = vst [vmem:[%s18132_s8 + $0x1358] sm:$0xff] %v3081_v43 }
 0x27c   : > { %v3085_v45 = vld [vmem:[%s18127_s7 + $0x4da0] sm:$0xff]  ;;  %3084 = vst [vmem:[%s18132_s8 + $0x1360] sm:$0xff] %v3083_v44 }
 0x27d   : > { %v3087_v46 = vld [vmem:[%s18127_s7 + $0x4dc0] sm:$0xff]  ;;  %3086 = vst [vmem:[%s18132_s8 + $0x1368] sm:$0xff] %v3085_v45 }
 0x27e   : > { %v3089_v47 = vld [vmem:[%s18127_s7 + $0x4de0] sm:$0xff]  ;;  %3088 = vst [vmem:[%s18132_s8 + $0x1370] sm:$0xff] %v3087_v46 }
 0x27f   : > { %v3091_v48 = vld [vmem:[%s18127_s7 + $0x4e00] sm:$0xff]  ;;  %3090 = vst [vmem:[%s18132_s8 + $0x1378] sm:$0xff] %v3089_v47 }
 0x280   : > { %v3093_v49 = vld [vmem:[%s18127_s7 + $0x4e20] sm:$0xff]  ;;  %3092 = vst [vmem:[%s18132_s8 + $0x1380] sm:$0xff] %v3091_v48 }
 0x281   : > { %v3095_v50 = vld [vmem:[%s18127_s7 + $0x4e40] sm:$0xff]  ;;  %3094 = vst [vmem:[%s18132_s8 + $0x1388] sm:$0xff] %v3093_v49 }
 0x282   : > { %v3097_v51 = vld [vmem:[%s18127_s7 + $0x4e60] sm:$0xff]  ;;  %3096 = vst [vmem:[%s18132_s8 + $0x1390] sm:$0xff] %v3095_v50 }
 0x283   : > { %v3099_v52 = vld [vmem:[%s18127_s7 + $0x4e80] sm:$0xff]  ;;  %3098 = vst [vmem:[%s18132_s8 + $0x1398] sm:$0xff] %v3097_v51 }
 0x284   : > { %v3101_v53 = vld [vmem:[%s18127_s7 + $0x4ea0] sm:$0xff]  ;;  %3100 = vst [vmem:[%s18132_s8 + $0x13a0] sm:$0xff] %v3099_v52 }
 0x285   : > { %v3103_v54 = vld [vmem:[%s18127_s7 + $0x4ec0] sm:$0xff]  ;;  %3102 = vst [vmem:[%s18132_s8 + $0x13a8] sm:$0xff] %v3101_v53 }
 0x286   : > { %v3105_v55 = vld [vmem:[%s18127_s7 + $0x4ee0] sm:$0xff]  ;;  %3104 = vst [vmem:[%s18132_s8 + $0x13b0] sm:$0xff] %v3103_v54 }
 0x287   : > { %v3107_v56 = vld [vmem:[%s18127_s7 + $0x4f00] sm:$0xff]  ;;  %3106 = vst [vmem:[%s18132_s8 + $0x13b8] sm:$0xff] %v3105_v55 }
 0x288   : > { %v3109_v57 = vld [vmem:[%s18127_s7 + $0x4f20] sm:$0xff]  ;;  %3108 = vst [vmem:[%s18132_s8 + $0x13c0] sm:$0xff] %v3107_v56 }
 0x289   : > { %v3111_v58 = vld [vmem:[%s18127_s7 + $0x4f40] sm:$0xff]  ;;  %3110 = vst [vmem:[%s18132_s8 + $0x13c8] sm:$0xff] %v3109_v57 }
 0x28a   : > { %v3113_v59 = vld [vmem:[%s18127_s7 + $0x4f60] sm:$0xff]  ;;  %3112 = vst [vmem:[%s18132_s8 + $0x13d0] sm:$0xff] %v3111_v58 }
 0x28b   : > { %v3115_v60 = vld [vmem:[%s18127_s7 + $0x4f80] sm:$0xff]  ;;  %3114 = vst [vmem:[%s18132_s8 + $0x13d8] sm:$0xff] %v3113_v59 }
 0x28c   : > { %v3117_v61 = vld [vmem:[%s18127_s7 + $0x4fa0] sm:$0xff]  ;;  %3116 = vst [vmem:[%s18132_s8 + $0x13e0] sm:$0xff] %v3115_v60 }
 0x28d   : > { %v3119_v62 = vld [vmem:[%s18127_s7 + $0x4fc0] sm:$0xff]  ;;  %3118 = vst [vmem:[%s18132_s8 + $0x13e8] sm:$0xff] %v3117_v61 }
 0x28e   : > { %v3121_v63 = vld [vmem:[%s18127_s7 + $0x4fe0] sm:$0xff]  ;;  %3120 = vst [vmem:[%s18132_s8 + $0x13f0] sm:$0xff] %v3119_v62 }
 0x28f   : > { %v3123_v0 = vld [vmem:[%s18127_s7 + $0x5000] sm:$0xff]  ;;  %3122 = vst [vmem:[%s18132_s8 + $0x13f8] sm:$0xff] %v3121_v63 }
 0x290   : > { %v3125_v1 = vld [vmem:[%s18127_s7 + $0x5020] sm:$0xff]  ;;  %3124 = vst [vmem:[%s18132_s8 + $0x1400] sm:$0xff] %v3123_v0 }
 0x291   : > { %v3127_v2 = vld [vmem:[%s18127_s7 + $0x5040] sm:$0xff]  ;;  %3126 = vst [vmem:[%s18132_s8 + $0x1408] sm:$0xff] %v3125_v1 }
 0x292   : > { %v3129_v3 = vld [vmem:[%s18127_s7 + $0x5060] sm:$0xff]  ;;  %3128 = vst [vmem:[%s18132_s8 + $0x1410] sm:$0xff] %v3127_v2 }
 0x293   : > { %v3131_v4 = vld [vmem:[%s18127_s7 + $0x5080] sm:$0xff]  ;;  %3130 = vst [vmem:[%s18132_s8 + $0x1418] sm:$0xff] %v3129_v3 }
 0x294   : > { %v3133_v5 = vld [vmem:[%s18127_s7 + $0x50a0] sm:$0xff]  ;;  %3132 = vst [vmem:[%s18132_s8 + $0x1420] sm:$0xff] %v3131_v4 }
 0x295   : > { %v3135_v6 = vld [vmem:[%s18127_s7 + $0x50c0] sm:$0xff]  ;;  %3134 = vst [vmem:[%s18132_s8 + $0x1428] sm:$0xff] %v3133_v5 }
 0x296   : > { %v3137_v7 = vld [vmem:[%s18127_s7 + $0x50e0] sm:$0xff]  ;;  %3136 = vst [vmem:[%s18132_s8 + $0x1430] sm:$0xff] %v3135_v6 }
 0x297   : > { %v3139_v8 = vld [vmem:[%s18127_s7 + $0x5100] sm:$0xff]  ;;  %3138 = vst [vmem:[%s18132_s8 + $0x1438] sm:$0xff] %v3137_v7 }
 0x298   : > { %v3141_v9 = vld [vmem:[%s18127_s7 + $0x5120] sm:$0xff]  ;;  %3140 = vst [vmem:[%s18132_s8 + $0x1440] sm:$0xff] %v3139_v8 }
 0x299   : > { %v3143_v10 = vld [vmem:[%s18127_s7 + $0x5140] sm:$0xff]  ;;  %3142 = vst [vmem:[%s18132_s8 + $0x1448] sm:$0xff] %v3141_v9 }
 0x29a   : > { %v3145_v11 = vld [vmem:[%s18127_s7 + $0x5160] sm:$0xff]  ;;  %3144 = vst [vmem:[%s18132_s8 + $0x1450] sm:$0xff] %v3143_v10 }
 0x29b   : > { %v3147_v12 = vld [vmem:[%s18127_s7 + $0x5180] sm:$0xff]  ;;  %3146 = vst [vmem:[%s18132_s8 + $0x1458] sm:$0xff] %v3145_v11 }
 0x29c   : > { %v3149_v13 = vld [vmem:[%s18127_s7 + $0x51a0] sm:$0xff]  ;;  %3148 = vst [vmem:[%s18132_s8 + $0x1460] sm:$0xff] %v3147_v12 }
 0x29d   : > { %v3151_v14 = vld [vmem:[%s18127_s7 + $0x51c0] sm:$0xff]  ;;  %3150 = vst [vmem:[%s18132_s8 + $0x1468] sm:$0xff] %v3149_v13 }
 0x29e   : > { %v3153_v15 = vld [vmem:[%s18127_s7 + $0x51e0] sm:$0xff]  ;;  %3152 = vst [vmem:[%s18132_s8 + $0x1470] sm:$0xff] %v3151_v14 }
 0x29f   : > { %v3155_v16 = vld [vmem:[%s18127_s7 + $0x5200] sm:$0xff]  ;;  %3154 = vst [vmem:[%s18132_s8 + $0x1478] sm:$0xff] %v3153_v15 }
 0x2a0   : > { %v3157_v17 = vld [vmem:[%s18127_s7 + $0x5220] sm:$0xff]  ;;  %3156 = vst [vmem:[%s18132_s8 + $0x1480] sm:$0xff] %v3155_v16 }
 0x2a1   : > { %v3159_v18 = vld [vmem:[%s18127_s7 + $0x5240] sm:$0xff]  ;;  %3158 = vst [vmem:[%s18132_s8 + $0x1488] sm:$0xff] %v3157_v17 }
 0x2a2   : > { %v3161_v19 = vld [vmem:[%s18127_s7 + $0x5260] sm:$0xff]  ;;  %3160 = vst [vmem:[%s18132_s8 + $0x1490] sm:$0xff] %v3159_v18 }
 0x2a3   : > { %v3163_v20 = vld [vmem:[%s18127_s7 + $0x5280] sm:$0xff]  ;;  %3162 = vst [vmem:[%s18132_s8 + $0x1498] sm:$0xff] %v3161_v19 }
 0x2a4   : > { %v3165_v21 = vld [vmem:[%s18127_s7 + $0x52a0] sm:$0xff]  ;;  %3164 = vst [vmem:[%s18132_s8 + $0x14a0] sm:$0xff] %v3163_v20 }
 0x2a5   : > { %v3167_v22 = vld [vmem:[%s18127_s7 + $0x52c0] sm:$0xff]  ;;  %3166 = vst [vmem:[%s18132_s8 + $0x14a8] sm:$0xff] %v3165_v21 }
 0x2a6   : > { %v3169_v23 = vld [vmem:[%s18127_s7 + $0x52e0] sm:$0xff]  ;;  %3168 = vst [vmem:[%s18132_s8 + $0x14b0] sm:$0xff] %v3167_v22 }
 0x2a7   : > { %v3171_v24 = vld [vmem:[%s18127_s7 + $0x5300] sm:$0xff]  ;;  %3170 = vst [vmem:[%s18132_s8 + $0x14b8] sm:$0xff] %v3169_v23 }
 0x2a8   : > { %v3173_v25 = vld [vmem:[%s18127_s7 + $0x5320] sm:$0xff]  ;;  %3172 = vst [vmem:[%s18132_s8 + $0x14c0] sm:$0xff] %v3171_v24 }
 0x2a9   : > { %v3175_v26 = vld [vmem:[%s18127_s7 + $0x5340] sm:$0xff]  ;;  %3174 = vst [vmem:[%s18132_s8 + $0x14c8] sm:$0xff] %v3173_v25 }
 0x2aa   : > { %v3177_v27 = vld [vmem:[%s18127_s7 + $0x5360] sm:$0xff]  ;;  %3176 = vst [vmem:[%s18132_s8 + $0x14d0] sm:$0xff] %v3175_v26 }
 0x2ab   : > { %v3179_v28 = vld [vmem:[%s18127_s7 + $0x5380] sm:$0xff]  ;;  %3178 = vst [vmem:[%s18132_s8 + $0x14d8] sm:$0xff] %v3177_v27 }
 0x2ac   : > { %v3181_v29 = vld [vmem:[%s18127_s7 + $0x53a0] sm:$0xff]  ;;  %3180 = vst [vmem:[%s18132_s8 + $0x14e0] sm:$0xff] %v3179_v28 }
 0x2ad   : > { %v3183_v30 = vld [vmem:[%s18127_s7 + $0x53c0] sm:$0xff]  ;;  %3182 = vst [vmem:[%s18132_s8 + $0x14e8] sm:$0xff] %v3181_v29 }
 0x2ae   : > { %v3185_v31 = vld [vmem:[%s18127_s7 + $0x53e0] sm:$0xff]  ;;  %3184 = vst [vmem:[%s18132_s8 + $0x14f0] sm:$0xff] %v3183_v30 }
 0x2af   : > { %v3187_v32 = vld [vmem:[%s18127_s7 + $0x5400] sm:$0xff]  ;;  %3186 = vst [vmem:[%s18132_s8 + $0x14f8] sm:$0xff] %v3185_v31 }
 0x2b0   : > { %v3189_v33 = vld [vmem:[%s18127_s7 + $0x5420] sm:$0xff]  ;;  %3188 = vst [vmem:[%s18132_s8 + $0x1500] sm:$0xff] %v3187_v32 }
 0x2b1   : > { %v3191_v34 = vld [vmem:[%s18127_s7 + $0x5440] sm:$0xff]  ;;  %3190 = vst [vmem:[%s18132_s8 + $0x1508] sm:$0xff] %v3189_v33 }
 0x2b2   : > { %v3193_v35 = vld [vmem:[%s18127_s7 + $0x5460] sm:$0xff]  ;;  %3192 = vst [vmem:[%s18132_s8 + $0x1510] sm:$0xff] %v3191_v34 }
 0x2b3   : > { %v3195_v36 = vld [vmem:[%s18127_s7 + $0x5480] sm:$0xff]  ;;  %3194 = vst [vmem:[%s18132_s8 + $0x1518] sm:$0xff] %v3193_v35 }
 0x2b4   : > { %v3197_v37 = vld [vmem:[%s18127_s7 + $0x54a0] sm:$0xff]  ;;  %3196 = vst [vmem:[%s18132_s8 + $0x1520] sm:$0xff] %v3195_v36 }
 0x2b5   : > { %v3199_v38 = vld [vmem:[%s18127_s7 + $0x54c0] sm:$0xff]  ;;  %3198 = vst [vmem:[%s18132_s8 + $0x1528] sm:$0xff] %v3197_v37 }
 0x2b6   : > { %v3201_v39 = vld [vmem:[%s18127_s7 + $0x54e0] sm:$0xff]  ;;  %3200 = vst [vmem:[%s18132_s8 + $0x1530] sm:$0xff] %v3199_v38 }
 0x2b7   : > { %v3203_v40 = vld [vmem:[%s18127_s7 + $0x5500] sm:$0xff]  ;;  %3202 = vst [vmem:[%s18132_s8 + $0x1538] sm:$0xff] %v3201_v39 }
 0x2b8   : > { %v3205_v41 = vld [vmem:[%s18127_s7 + $0x5520] sm:$0xff]  ;;  %3204 = vst [vmem:[%s18132_s8 + $0x1540] sm:$0xff] %v3203_v40 }
 0x2b9   : > { %v3207_v42 = vld [vmem:[%s18127_s7 + $0x5540] sm:$0xff]  ;;  %3206 = vst [vmem:[%s18132_s8 + $0x1548] sm:$0xff] %v3205_v41 }
 0x2ba   : > { %v3209_v43 = vld [vmem:[%s18127_s7 + $0x5560] sm:$0xff]  ;;  %3208 = vst [vmem:[%s18132_s8 + $0x1550] sm:$0xff] %v3207_v42 }
 0x2bb   : > { %v3211_v44 = vld [vmem:[%s18127_s7 + $0x5580] sm:$0xff]  ;;  %3210 = vst [vmem:[%s18132_s8 + $0x1558] sm:$0xff] %v3209_v43 }
 0x2bc   : > { %v3213_v45 = vld [vmem:[%s18127_s7 + $0x55a0] sm:$0xff]  ;;  %3212 = vst [vmem:[%s18132_s8 + $0x1560] sm:$0xff] %v3211_v44 }
 0x2bd   : > { %v3215_v46 = vld [vmem:[%s18127_s7 + $0x55c0] sm:$0xff]  ;;  %3214 = vst [vmem:[%s18132_s8 + $0x1568] sm:$0xff] %v3213_v45 }
 0x2be   : > { %v3217_v47 = vld [vmem:[%s18127_s7 + $0x55e0] sm:$0xff]  ;;  %3216 = vst [vmem:[%s18132_s8 + $0x1570] sm:$0xff] %v3215_v46 }
 0x2bf   : > { %v3219_v48 = vld [vmem:[%s18127_s7 + $0x5600] sm:$0xff]  ;;  %3218 = vst [vmem:[%s18132_s8 + $0x1578] sm:$0xff] %v3217_v47 }
 0x2c0   : > { %v3221_v49 = vld [vmem:[%s18127_s7 + $0x5620] sm:$0xff]  ;;  %3220 = vst [vmem:[%s18132_s8 + $0x1580] sm:$0xff] %v3219_v48 }
 0x2c1   : > { %v3223_v50 = vld [vmem:[%s18127_s7 + $0x5640] sm:$0xff]  ;;  %3222 = vst [vmem:[%s18132_s8 + $0x1588] sm:$0xff] %v3221_v49 }
 0x2c2   : > { %v3225_v51 = vld [vmem:[%s18127_s7 + $0x5660] sm:$0xff]  ;;  %3224 = vst [vmem:[%s18132_s8 + $0x1590] sm:$0xff] %v3223_v50 }
 0x2c3   : > { %v3227_v52 = vld [vmem:[%s18127_s7 + $0x5680] sm:$0xff]  ;;  %3226 = vst [vmem:[%s18132_s8 + $0x1598] sm:$0xff] %v3225_v51 }
 0x2c4   : > { %v3229_v53 = vld [vmem:[%s18127_s7 + $0x56a0] sm:$0xff]  ;;  %3228 = vst [vmem:[%s18132_s8 + $0x15a0] sm:$0xff] %v3227_v52 }
 0x2c5   : > { %v3231_v54 = vld [vmem:[%s18127_s7 + $0x56c0] sm:$0xff]  ;;  %3230 = vst [vmem:[%s18132_s8 + $0x15a8] sm:$0xff] %v3229_v53 }
 0x2c6   : > { %v3233_v55 = vld [vmem:[%s18127_s7 + $0x56e0] sm:$0xff]  ;;  %3232 = vst [vmem:[%s18132_s8 + $0x15b0] sm:$0xff] %v3231_v54 }
 0x2c7   : > { %v3235_v56 = vld [vmem:[%s18127_s7 + $0x5700] sm:$0xff]  ;;  %3234 = vst [vmem:[%s18132_s8 + $0x15b8] sm:$0xff] %v3233_v55 }
 0x2c8   : > { %v3237_v57 = vld [vmem:[%s18127_s7 + $0x5720] sm:$0xff]  ;;  %3236 = vst [vmem:[%s18132_s8 + $0x15c0] sm:$0xff] %v3235_v56 }
 0x2c9   : > { %v3239_v58 = vld [vmem:[%s18127_s7 + $0x5740] sm:$0xff]  ;;  %3238 = vst [vmem:[%s18132_s8 + $0x15c8] sm:$0xff] %v3237_v57 }
 0x2ca   : > { %v3241_v59 = vld [vmem:[%s18127_s7 + $0x5760] sm:$0xff]  ;;  %3240 = vst [vmem:[%s18132_s8 + $0x15d0] sm:$0xff] %v3239_v58 }
 0x2cb   : > { %v3243_v60 = vld [vmem:[%s18127_s7 + $0x5780] sm:$0xff]  ;;  %3242 = vst [vmem:[%s18132_s8 + $0x15d8] sm:$0xff] %v3241_v59 }
 0x2cc   : > { %v3245_v61 = vld [vmem:[%s18127_s7 + $0x57a0] sm:$0xff]  ;;  %3244 = vst [vmem:[%s18132_s8 + $0x15e0] sm:$0xff] %v3243_v60 }
 0x2cd   : > { %v3247_v62 = vld [vmem:[%s18127_s7 + $0x57c0] sm:$0xff]  ;;  %3246 = vst [vmem:[%s18132_s8 + $0x15e8] sm:$0xff] %v3245_v61 }
 0x2ce   : > { %v3249_v63 = vld [vmem:[%s18127_s7 + $0x57e0] sm:$0xff]  ;;  %3248 = vst [vmem:[%s18132_s8 + $0x15f0] sm:$0xff] %v3247_v62 }
 0x2cf   : > { %v3251_v0 = vld [vmem:[%s18127_s7 + $0x5800] sm:$0xff]  ;;  %3250 = vst [vmem:[%s18132_s8 + $0x15f8] sm:$0xff] %v3249_v63 }
 0x2d0   : > { %v3253_v1 = vld [vmem:[%s18127_s7 + $0x5820] sm:$0xff]  ;;  %3252 = vst [vmem:[%s18132_s8 + $0x1600] sm:$0xff] %v3251_v0 }
 0x2d1   : > { %v3255_v2 = vld [vmem:[%s18127_s7 + $0x5840] sm:$0xff]  ;;  %3254 = vst [vmem:[%s18132_s8 + $0x1608] sm:$0xff] %v3253_v1 }
 0x2d2   : > { %v3257_v3 = vld [vmem:[%s18127_s7 + $0x5860] sm:$0xff]  ;;  %3256 = vst [vmem:[%s18132_s8 + $0x1610] sm:$0xff] %v3255_v2 }
 0x2d3   : > { %v3259_v4 = vld [vmem:[%s18127_s7 + $0x5880] sm:$0xff]  ;;  %3258 = vst [vmem:[%s18132_s8 + $0x1618] sm:$0xff] %v3257_v3 }
 0x2d4   : > { %v3261_v5 = vld [vmem:[%s18127_s7 + $0x58a0] sm:$0xff]  ;;  %3260 = vst [vmem:[%s18132_s8 + $0x1620] sm:$0xff] %v3259_v4 }
 0x2d5   : > { %v3263_v6 = vld [vmem:[%s18127_s7 + $0x58c0] sm:$0xff]  ;;  %3262 = vst [vmem:[%s18132_s8 + $0x1628] sm:$0xff] %v3261_v5 }
 0x2d6   : > { %v3265_v7 = vld [vmem:[%s18127_s7 + $0x58e0] sm:$0xff]  ;;  %3264 = vst [vmem:[%s18132_s8 + $0x1630] sm:$0xff] %v3263_v6 }
 0x2d7   : > { %v3267_v8 = vld [vmem:[%s18127_s7 + $0x5900] sm:$0xff]  ;;  %3266 = vst [vmem:[%s18132_s8 + $0x1638] sm:$0xff] %v3265_v7 }
 0x2d8   : > { %v3269_v9 = vld [vmem:[%s18127_s7 + $0x5920] sm:$0xff]  ;;  %3268 = vst [vmem:[%s18132_s8 + $0x1640] sm:$0xff] %v3267_v8 }
 0x2d9   : > { %v3271_v10 = vld [vmem:[%s18127_s7 + $0x5940] sm:$0xff]  ;;  %3270 = vst [vmem:[%s18132_s8 + $0x1648] sm:$0xff] %v3269_v9 }
 0x2da   : > { %v3273_v11 = vld [vmem:[%s18127_s7 + $0x5960] sm:$0xff]  ;;  %3272 = vst [vmem:[%s18132_s8 + $0x1650] sm:$0xff] %v3271_v10 }
 0x2db   : > { %v3275_v12 = vld [vmem:[%s18127_s7 + $0x5980] sm:$0xff]  ;;  %3274 = vst [vmem:[%s18132_s8 + $0x1658] sm:$0xff] %v3273_v11 }
 0x2dc   : > { %v3277_v13 = vld [vmem:[%s18127_s7 + $0x59a0] sm:$0xff]  ;;  %3276 = vst [vmem:[%s18132_s8 + $0x1660] sm:$0xff] %v3275_v12 }
 0x2dd   : > { %v3279_v14 = vld [vmem:[%s18127_s7 + $0x59c0] sm:$0xff]  ;;  %3278 = vst [vmem:[%s18132_s8 + $0x1668] sm:$0xff] %v3277_v13 }
 0x2de   : > { %v3281_v15 = vld [vmem:[%s18127_s7 + $0x59e0] sm:$0xff]  ;;  %3280 = vst [vmem:[%s18132_s8 + $0x1670] sm:$0xff] %v3279_v14 }
 0x2df   : > { %v3283_v16 = vld [vmem:[%s18127_s7 + $0x5a00] sm:$0xff]  ;;  %3282 = vst [vmem:[%s18132_s8 + $0x1678] sm:$0xff] %v3281_v15 }
 0x2e0   : > { %v3285_v17 = vld [vmem:[%s18127_s7 + $0x5a20] sm:$0xff]  ;;  %3284 = vst [vmem:[%s18132_s8 + $0x1680] sm:$0xff] %v3283_v16 }
 0x2e1   : > { %v3287_v18 = vld [vmem:[%s18127_s7 + $0x5a40] sm:$0xff]  ;;  %3286 = vst [vmem:[%s18132_s8 + $0x1688] sm:$0xff] %v3285_v17 }
 0x2e2   : > { %v3289_v19 = vld [vmem:[%s18127_s7 + $0x5a60] sm:$0xff]  ;;  %3288 = vst [vmem:[%s18132_s8 + $0x1690] sm:$0xff] %v3287_v18 }
 0x2e3   : > { %v3291_v20 = vld [vmem:[%s18127_s7 + $0x5a80] sm:$0xff]  ;;  %3290 = vst [vmem:[%s18132_s8 + $0x1698] sm:$0xff] %v3289_v19 }
 0x2e4   : > { %v3293_v21 = vld [vmem:[%s18127_s7 + $0x5aa0] sm:$0xff]  ;;  %3292 = vst [vmem:[%s18132_s8 + $0x16a0] sm:$0xff] %v3291_v20 }
 0x2e5   : > { %v3295_v22 = vld [vmem:[%s18127_s7 + $0x5ac0] sm:$0xff]  ;;  %3294 = vst [vmem:[%s18132_s8 + $0x16a8] sm:$0xff] %v3293_v21 }
 0x2e6   : > { %v3297_v23 = vld [vmem:[%s18127_s7 + $0x5ae0] sm:$0xff]  ;;  %3296 = vst [vmem:[%s18132_s8 + $0x16b0] sm:$0xff] %v3295_v22 }
 0x2e7   : > { %v3299_v24 = vld [vmem:[%s18127_s7 + $0x5b00] sm:$0xff]  ;;  %3298 = vst [vmem:[%s18132_s8 + $0x16b8] sm:$0xff] %v3297_v23 }
 0x2e8   : > { %v3301_v25 = vld [vmem:[%s18127_s7 + $0x5b20] sm:$0xff]  ;;  %3300 = vst [vmem:[%s18132_s8 + $0x16c0] sm:$0xff] %v3299_v24 }
 0x2e9   : > { %v3303_v26 = vld [vmem:[%s18127_s7 + $0x5b40] sm:$0xff]  ;;  %3302 = vst [vmem:[%s18132_s8 + $0x16c8] sm:$0xff] %v3301_v25 }
 0x2ea   : > { %v3305_v27 = vld [vmem:[%s18127_s7 + $0x5b60] sm:$0xff]  ;;  %3304 = vst [vmem:[%s18132_s8 + $0x16d0] sm:$0xff] %v3303_v26 }
 0x2eb   : > { %v3307_v28 = vld [vmem:[%s18127_s7 + $0x5b80] sm:$0xff]  ;;  %3306 = vst [vmem:[%s18132_s8 + $0x16d8] sm:$0xff] %v3305_v27 }
 0x2ec   : > { %v3309_v29 = vld [vmem:[%s18127_s7 + $0x5ba0] sm:$0xff]  ;;  %3308 = vst [vmem:[%s18132_s8 + $0x16e0] sm:$0xff] %v3307_v28 }
 0x2ed   : > { %v3311_v30 = vld [vmem:[%s18127_s7 + $0x5bc0] sm:$0xff]  ;;  %3310 = vst [vmem:[%s18132_s8 + $0x16e8] sm:$0xff] %v3309_v29 }
 0x2ee   : > { %v3313_v31 = vld [vmem:[%s18127_s7 + $0x5be0] sm:$0xff]  ;;  %3312 = vst [vmem:[%s18132_s8 + $0x16f0] sm:$0xff] %v3311_v30 }
 0x2ef   : > { %v3315_v32 = vld [vmem:[%s18127_s7 + $0x5c00] sm:$0xff]  ;;  %3314 = vst [vmem:[%s18132_s8 + $0x16f8] sm:$0xff] %v3313_v31 }
 0x2f0   : > { %v3317_v33 = vld [vmem:[%s18127_s7 + $0x5c20] sm:$0xff]  ;;  %3316 = vst [vmem:[%s18132_s8 + $0x1700] sm:$0xff] %v3315_v32 }
 0x2f1   : > { %v3319_v34 = vld [vmem:[%s18127_s7 + $0x5c40] sm:$0xff]  ;;  %3318 = vst [vmem:[%s18132_s8 + $0x1708] sm:$0xff] %v3317_v33 }
 0x2f2   : > { %v3321_v35 = vld [vmem:[%s18127_s7 + $0x5c60] sm:$0xff]  ;;  %3320 = vst [vmem:[%s18132_s8 + $0x1710] sm:$0xff] %v3319_v34 }
 0x2f3   : > { %v3323_v36 = vld [vmem:[%s18127_s7 + $0x5c80] sm:$0xff]  ;;  %3322 = vst [vmem:[%s18132_s8 + $0x1718] sm:$0xff] %v3321_v35 }
 0x2f4   : > { %v3325_v37 = vld [vmem:[%s18127_s7 + $0x5ca0] sm:$0xff]  ;;  %3324 = vst [vmem:[%s18132_s8 + $0x1720] sm:$0xff] %v3323_v36 }
 0x2f5   : > { %v3327_v38 = vld [vmem:[%s18127_s7 + $0x5cc0] sm:$0xff]  ;;  %3326 = vst [vmem:[%s18132_s8 + $0x1728] sm:$0xff] %v3325_v37 }
 0x2f6   : > { %v3329_v39 = vld [vmem:[%s18127_s7 + $0x5ce0] sm:$0xff]  ;;  %3328 = vst [vmem:[%s18132_s8 + $0x1730] sm:$0xff] %v3327_v38 }
 0x2f7   : > { %v3331_v40 = vld [vmem:[%s18127_s7 + $0x5d00] sm:$0xff]  ;;  %3330 = vst [vmem:[%s18132_s8 + $0x1738] sm:$0xff] %v3329_v39 }
 0x2f8   : > { %v3333_v41 = vld [vmem:[%s18127_s7 + $0x5d20] sm:$0xff]  ;;  %3332 = vst [vmem:[%s18132_s8 + $0x1740] sm:$0xff] %v3331_v40 }
 0x2f9   : > { %v3335_v42 = vld [vmem:[%s18127_s7 + $0x5d40] sm:$0xff]  ;;  %3334 = vst [vmem:[%s18132_s8 + $0x1748] sm:$0xff] %v3333_v41 }
 0x2fa   : > { %v3337_v43 = vld [vmem:[%s18127_s7 + $0x5d60] sm:$0xff]  ;;  %3336 = vst [vmem:[%s18132_s8 + $0x1750] sm:$0xff] %v3335_v42 }
 0x2fb   : > { %v3339_v44 = vld [vmem:[%s18127_s7 + $0x5d80] sm:$0xff]  ;;  %3338 = vst [vmem:[%s18132_s8 + $0x1758] sm:$0xff] %v3337_v43 }
 0x2fc   : > { %v3341_v45 = vld [vmem:[%s18127_s7 + $0x5da0] sm:$0xff]  ;;  %3340 = vst [vmem:[%s18132_s8 + $0x1760] sm:$0xff] %v3339_v44 }
 0x2fd   : > { %v3343_v46 = vld [vmem:[%s18127_s7 + $0x5dc0] sm:$0xff]  ;;  %3342 = vst [vmem:[%s18132_s8 + $0x1768] sm:$0xff] %v3341_v45 }
 0x2fe   : > { %v3345_v47 = vld [vmem:[%s18127_s7 + $0x5de0] sm:$0xff]  ;;  %3344 = vst [vmem:[%s18132_s8 + $0x1770] sm:$0xff] %v3343_v46 }
 0x2ff   : > { %v3347_v48 = vld [vmem:[%s18127_s7 + $0x5e00] sm:$0xff]  ;;  %3346 = vst [vmem:[%s18132_s8 + $0x1778] sm:$0xff] %v3345_v47 }
 0x300   : > { %v3349_v49 = vld [vmem:[%s18127_s7 + $0x5e20] sm:$0xff]  ;;  %3348 = vst [vmem:[%s18132_s8 + $0x1780] sm:$0xff] %v3347_v48 }
 0x301   : > { %v3351_v50 = vld [vmem:[%s18127_s7 + $0x5e40] sm:$0xff]  ;;  %3350 = vst [vmem:[%s18132_s8 + $0x1788] sm:$0xff] %v3349_v49 }
 0x302   : > { %v3353_v51 = vld [vmem:[%s18127_s7 + $0x5e60] sm:$0xff]  ;;  %3352 = vst [vmem:[%s18132_s8 + $0x1790] sm:$0xff] %v3351_v50 }
 0x303   : > { %v3355_v52 = vld [vmem:[%s18127_s7 + $0x5e80] sm:$0xff]  ;;  %3354 = vst [vmem:[%s18132_s8 + $0x1798] sm:$0xff] %v3353_v51 }
 0x304   : > { %v3357_v53 = vld [vmem:[%s18127_s7 + $0x5ea0] sm:$0xff]  ;;  %3356 = vst [vmem:[%s18132_s8 + $0x17a0] sm:$0xff] %v3355_v52 }
 0x305   : > { %v3359_v54 = vld [vmem:[%s18127_s7 + $0x5ec0] sm:$0xff]  ;;  %3358 = vst [vmem:[%s18132_s8 + $0x17a8] sm:$0xff] %v3357_v53 }
 0x306   : > { %v3361_v55 = vld [vmem:[%s18127_s7 + $0x5ee0] sm:$0xff]  ;;  %3360 = vst [vmem:[%s18132_s8 + $0x17b0] sm:$0xff] %v3359_v54 }
 0x307   : > { %v3363_v56 = vld [vmem:[%s18127_s7 + $0x5f00] sm:$0xff]  ;;  %3362 = vst [vmem:[%s18132_s8 + $0x17b8] sm:$0xff] %v3361_v55 }
 0x308   : > { %v3365_v57 = vld [vmem:[%s18127_s7 + $0x5f20] sm:$0xff]  ;;  %3364 = vst [vmem:[%s18132_s8 + $0x17c0] sm:$0xff] %v3363_v56 }
 0x309   : > { %v3367_v58 = vld [vmem:[%s18127_s7 + $0x5f40] sm:$0xff]  ;;  %3366 = vst [vmem:[%s18132_s8 + $0x17c8] sm:$0xff] %v3365_v57 }
 0x30a   : > { %v3369_v59 = vld [vmem:[%s18127_s7 + $0x5f60] sm:$0xff]  ;;  %3368 = vst [vmem:[%s18132_s8 + $0x17d0] sm:$0xff] %v3367_v58 }
 0x30b   : > { %v3371_v60 = vld [vmem:[%s18127_s7 + $0x5f80] sm:$0xff]  ;;  %3370 = vst [vmem:[%s18132_s8 + $0x17d8] sm:$0xff] %v3369_v59 }
 0x30c   : > { %v3373_v61 = vld [vmem:[%s18127_s7 + $0x5fa0] sm:$0xff]  ;;  %3372 = vst [vmem:[%s18132_s8 + $0x17e0] sm:$0xff] %v3371_v60 }
 0x30d   : > { %v3375_v62 = vld [vmem:[%s18127_s7 + $0x5fc0] sm:$0xff]  ;;  %3374 = vst [vmem:[%s18132_s8 + $0x17e8] sm:$0xff] %v3373_v61 }
 0x30e   : > { %v3377_v63 = vld [vmem:[%s18127_s7 + $0x5fe0] sm:$0xff]  ;;  %3376 = vst [vmem:[%s18132_s8 + $0x17f0] sm:$0xff] %v3375_v62 }
 0x30f   : > { %v3379_v0 = vld [vmem:[%s18127_s7 + $0x6000] sm:$0xff]  ;;  %3378 = vst [vmem:[%s18132_s8 + $0x17f8] sm:$0xff] %v3377_v63 }
 0x310   : > { %v3381_v1 = vld [vmem:[%s18127_s7 + $0x6020] sm:$0xff]  ;;  %3380 = vst [vmem:[%s18132_s8 + $0x1800] sm:$0xff] %v3379_v0 }
 0x311   : > { %v3383_v2 = vld [vmem:[%s18127_s7 + $0x6040] sm:$0xff]  ;;  %3382 = vst [vmem:[%s18132_s8 + $0x1808] sm:$0xff] %v3381_v1 }
 0x312   : > { %v3385_v3 = vld [vmem:[%s18127_s7 + $0x6060] sm:$0xff]  ;;  %3384 = vst [vmem:[%s18132_s8 + $0x1810] sm:$0xff] %v3383_v2 }
 0x313   : > { %v3387_v4 = vld [vmem:[%s18127_s7 + $0x6080] sm:$0xff]  ;;  %3386 = vst [vmem:[%s18132_s8 + $0x1818] sm:$0xff] %v3385_v3 }
 0x314   : > { %v3389_v5 = vld [vmem:[%s18127_s7 + $0x60a0] sm:$0xff]  ;;  %3388 = vst [vmem:[%s18132_s8 + $0x1820] sm:$0xff] %v3387_v4 }
 0x315   : > { %v3391_v6 = vld [vmem:[%s18127_s7 + $0x60c0] sm:$0xff]  ;;  %3390 = vst [vmem:[%s18132_s8 + $0x1828] sm:$0xff] %v3389_v5 }
 0x316   : > { %v3393_v7 = vld [vmem:[%s18127_s7 + $0x60e0] sm:$0xff]  ;;  %3392 = vst [vmem:[%s18132_s8 + $0x1830] sm:$0xff] %v3391_v6 }
 0x317   : > { %v3395_v8 = vld [vmem:[%s18127_s7 + $0x6100] sm:$0xff]  ;;  %3394 = vst [vmem:[%s18132_s8 + $0x1838] sm:$0xff] %v3393_v7 }
 0x318   : > { %v3397_v9 = vld [vmem:[%s18127_s7 + $0x6120] sm:$0xff]  ;;  %3396 = vst [vmem:[%s18132_s8 + $0x1840] sm:$0xff] %v3395_v8 }
 0x319   : > { %v3399_v10 = vld [vmem:[%s18127_s7 + $0x6140] sm:$0xff]  ;;  %3398 = vst [vmem:[%s18132_s8 + $0x1848] sm:$0xff] %v3397_v9 }
 0x31a   : > { %v3401_v11 = vld [vmem:[%s18127_s7 + $0x6160] sm:$0xff]  ;;  %3400 = vst [vmem:[%s18132_s8 + $0x1850] sm:$0xff] %v3399_v10 }
 0x31b   : > { %v3403_v12 = vld [vmem:[%s18127_s7 + $0x6180] sm:$0xff]  ;;  %3402 = vst [vmem:[%s18132_s8 + $0x1858] sm:$0xff] %v3401_v11 }
 0x31c   : > { %v3405_v13 = vld [vmem:[%s18127_s7 + $0x61a0] sm:$0xff]  ;;  %3404 = vst [vmem:[%s18132_s8 + $0x1860] sm:$0xff] %v3403_v12 }
 0x31d   : > { %v3407_v14 = vld [vmem:[%s18127_s7 + $0x61c0] sm:$0xff]  ;;  %3406 = vst [vmem:[%s18132_s8 + $0x1868] sm:$0xff] %v3405_v13 }
 0x31e   : > { %v3409_v15 = vld [vmem:[%s18127_s7 + $0x61e0] sm:$0xff]  ;;  %3408 = vst [vmem:[%s18132_s8 + $0x1870] sm:$0xff] %v3407_v14 }
 0x31f   : > { %v3411_v16 = vld [vmem:[%s18127_s7 + $0x6200] sm:$0xff]  ;;  %3410 = vst [vmem:[%s18132_s8 + $0x1878] sm:$0xff] %v3409_v15 }
 0x320   : > { %v3413_v17 = vld [vmem:[%s18127_s7 + $0x6220] sm:$0xff]  ;;  %3412 = vst [vmem:[%s18132_s8 + $0x1880] sm:$0xff] %v3411_v16 }
 0x321   : > { %v3415_v18 = vld [vmem:[%s18127_s7 + $0x6240] sm:$0xff]  ;;  %3414 = vst [vmem:[%s18132_s8 + $0x1888] sm:$0xff] %v3413_v17 }
 0x322   : > { %v3417_v19 = vld [vmem:[%s18127_s7 + $0x6260] sm:$0xff]  ;;  %3416 = vst [vmem:[%s18132_s8 + $0x1890] sm:$0xff] %v3415_v18 }
 0x323   : > { %v3419_v20 = vld [vmem:[%s18127_s7 + $0x6280] sm:$0xff]  ;;  %3418 = vst [vmem:[%s18132_s8 + $0x1898] sm:$0xff] %v3417_v19 }
 0x324   : > { %v3421_v21 = vld [vmem:[%s18127_s7 + $0x62a0] sm:$0xff]  ;;  %3420 = vst [vmem:[%s18132_s8 + $0x18a0] sm:$0xff] %v3419_v20 }
 0x325   : > { %v3423_v22 = vld [vmem:[%s18127_s7 + $0x62c0] sm:$0xff]  ;;  %3422 = vst [vmem:[%s18132_s8 + $0x18a8] sm:$0xff] %v3421_v21 }
 0x326   : > { %v3425_v23 = vld [vmem:[%s18127_s7 + $0x62e0] sm:$0xff]  ;;  %3424 = vst [vmem:[%s18132_s8 + $0x18b0] sm:$0xff] %v3423_v22 }
 0x327   : > { %v3427_v24 = vld [vmem:[%s18127_s7 + $0x6300] sm:$0xff]  ;;  %3426 = vst [vmem:[%s18132_s8 + $0x18b8] sm:$0xff] %v3425_v23 }
 0x328   : > { %v3429_v25 = vld [vmem:[%s18127_s7 + $0x6320] sm:$0xff]  ;;  %3428 = vst [vmem:[%s18132_s8 + $0x18c0] sm:$0xff] %v3427_v24 }
 0x329   : > { %v3431_v26 = vld [vmem:[%s18127_s7 + $0x6340] sm:$0xff]  ;;  %3430 = vst [vmem:[%s18132_s8 + $0x18c8] sm:$0xff] %v3429_v25 }
 0x32a   : > { %v3433_v27 = vld [vmem:[%s18127_s7 + $0x6360] sm:$0xff]  ;;  %3432 = vst [vmem:[%s18132_s8 + $0x18d0] sm:$0xff] %v3431_v26 }
 0x32b   : > { %v3435_v28 = vld [vmem:[%s18127_s7 + $0x6380] sm:$0xff]  ;;  %3434 = vst [vmem:[%s18132_s8 + $0x18d8] sm:$0xff] %v3433_v27 }
 0x32c   : > { %v3437_v29 = vld [vmem:[%s18127_s7 + $0x63a0] sm:$0xff]  ;;  %3436 = vst [vmem:[%s18132_s8 + $0x18e0] sm:$0xff] %v3435_v28 }
 0x32d   : > { %v3439_v30 = vld [vmem:[%s18127_s7 + $0x63c0] sm:$0xff]  ;;  %3438 = vst [vmem:[%s18132_s8 + $0x18e8] sm:$0xff] %v3437_v29 }
 0x32e   : > { %v3441_v31 = vld [vmem:[%s18127_s7 + $0x63e0] sm:$0xff]  ;;  %3440 = vst [vmem:[%s18132_s8 + $0x18f0] sm:$0xff] %v3439_v30 }
 0x32f   : > { %3442 = vst [vmem:[%s18132_s8 + $0x18f8] sm:$0xff] %v3441_v31 }
 0x330 PF: > { %p13623_p6 = scmp.ge.s32.totalorder %s18050_s22, 1  ;;  %p6699_p7 = scmp.lt.s32.totalorder %s18050_s22, 5 }
 0x332   : > { %p6700_p8 = pnand %p13623_p6, %p6699_p7 }
 0x334   : > { %6703 = sbr.rel (%p6700_p8) target bundleno = 2066 (0x812), region = 88 }
 0x339   : > { %s6706_s9 = sand.u32 1, %s18034_s18   ;;  %s13624_s10 = sshll.u32 %s18042_s20, 1 }
 0x33a   : > { %s17965_s11 = smul.u32 6400, %s6706_s9  ;;  %p6757_p9 = scmp.lt.s32.totalorder %s13624_s10, 7 }
 0x33b   : > { %s13625_s12 = sshll.u32 %s18042_s20, 5  ;;  %p13627_p11 = scmp.ne.s32.totalorder %s18042_s20, 0 }
 0x33c   : > { %p6762_p10 = scmp.lt.s32.totalorder %s13625_s12, 127  ;;  %s22270_s10 = smov (!%p6757_p9, %s13624_s10), 7 }
 0x33d   : > { %s19739_s15 = scalar_lea.vmem %s22139_s2, %s22270_s10  ;;  %s19746_s27 = scalar_lea.vmem [#allocation3], %s17965_s11 }
 0x33e   : > { %s22272_s12 = smov (!%p6762_p10, %s13625_s12), 127  ;;  %6776 = sbr.rel (%p13627_p11) target bundleno = 838 (0x346), region = 96 }
 0x33f   : > { %s13626_s16 = sshll.u32 %s22272_s12, 2 }
 0x340   : > { %s19744_s25 = scalar_lea.vmem %s22140_s3, %s13626_s16 }
 0x343   : > { %vm6777_vm0 = vcmask 64512   ;;  %v18052_v32 = vmov 0.0  }
 0x344   : > { %6778 = vst.msk [vmem:[#allocation2] sm:$0xff] %vm6777_vm0, %v18052_v32 }
 0x345   : > { %6779 = vst.msk [vmem:[#allocation2 + $0x8] sm:$0xff] %vm6777_vm0, %v18052_v32 }
 0x346 PF: > { %v13886_v33 = vld [vmem:[%s19746_s27 + $0x70] sm:$0xf]  ;;  %v17163_v34 = vld [vmem:[%s19746_s27 + $0x74] sm:$0xf0]  ;;  %v13878_v44 = vld [vmem:[%s19746_s27 + $0x60] sm:$0xf] }
 0x347   : > { %v13950_v35 = vld [vmem:[%s19746_s27 + $0xf0] sm:$0xf]  ;;  %v13887_v36 = vor.u32 %v17163_v34, %v13886_v33  ;;  %v17179_v37 = vld [vmem:[%s19746_s27 + $0xf4] sm:$0xf0]  ;;  %v17161_v46 = vld [vmem:[%s19746_s27 + $0x64] sm:$0xf0] }
 0x348   : > { %v14014_v38 = vld [vmem:[%s19746_s27 + $0x170] sm:$0xf]  ;;  %v17195_v39 = vld [vmem:[%s19746_s27 + $0x174] sm:$0xf0]  ;;  %v13951_v40 = vor.u32 %v17179_v37, %v13950_v35  ;;  %v13942_v47 = vld [vmem:[%s19746_s27 + $0xe0] sm:$0xf]  ;;  %v13879_v49 = vor.u32 %v17161_v46, %v13878_v44 }
 0x349   : > { %v14015_v41 = vor.u32 %v17195_v39, %v14014_v38  ;;  %v14078_v42 = vld [vmem:[%s19746_s27 + $0x1f0] sm:$0xf]  ;;  %v17211_v43 = vld [vmem:[%s19746_s27 + $0x1f4] sm:$0xf0]  ;;  %11886 = vmatpush.bf16.msra.mxu0 %v13887_v36  ;;  %v17177_v48 = vld [vmem:[%s19746_s27 + $0xe4] sm:$0xf0] }
 0x34a   : > { %v14079_v45 = vor.u32 %v17211_v43, %v14078_v42  ;;  %11900 = vmatpush.bf16.msra.mxu1 %v13951_v40  ;;  %v13943_v50 = vor.u32 %v17177_v48, %v13942_v47  ;;  %v14006_v51 = vld [vmem:[%s19746_s27 + $0x160] sm:$0xf]  ;;  %v17193_v52 = vld [vmem:[%s19746_s27 + $0x164] sm:$0xf0]  ;;  %v13870_v56 = vld [vmem:[%s19746_s27 + $0x50] sm:$0xf] }
 0x34b   : > { %11914 = vmatpush.bf16.msra.mxu2 %v14015_v41  ;;  %v14070_v53 = vld [vmem:[%s19746_s27 + $0x1e0] sm:$0xf]  ;;  %v14007_v54 = vor.u32 %v17193_v52, %v14006_v51  ;;  %v17209_v55 = vld [vmem:[%s19746_s27 + $0x1e4] sm:$0xf0]  ;;  %v17159_v57 = vld [vmem:[%s19746_s27 + $0x54] sm:$0xf0] }
 0x34c   : > { %11928 = vmatpush.bf16.msra.mxu3 %v14079_v45  ;;  %v14071_v58 = vor.u32 %v17209_v55, %v14070_v53  ;;  %v13934_v59 = vld [vmem:[%s19746_s27 + $0xd0] sm:$0xf]  ;;  %v17175_v60 = vld [vmem:[%s19746_s27 + $0xd4] sm:$0xf0]  ;;  %v13871_v62 = vor.u32 %v17159_v57, %v13870_v56  ;;  %v13862_v4 = vld [vmem:[%s19746_s27 + $0x40] sm:$0xf] }
 0x34d   : > { %v13998_v61 = vld [vmem:[%s19746_s27 + $0x150] sm:$0xf]  ;;  %11887 = vmatpush.bf16.msra.mxu0 %v13879_v49  ;;  %v17191_v63 = vld [vmem:[%s19746_s27 + $0x154] sm:$0xf0]  ;;  %v13935_v2 = vor.u32 %v17175_v60, %v13934_v59  ;;  %v17157_v5 = vld [vmem:[%s19746_s27 + $0x44] sm:$0xf0] }
 0x34e   : > { %v14062_v0 = vld [vmem:[%s19746_s27 + $0x1d0] sm:$0xf]  ;;  %v17207_v1 = vld [vmem:[%s19746_s27 + $0x1d4] sm:$0xf0]  ;;  %11901 = vmatpush.bf16.msra.mxu1 %v13943_v50  ;;  %v13999_v3 = vor.u32 %v17191_v63, %v13998_v61  ;;  %v13926_v6 = vld [vmem:[%s19746_s27 + $0xc0] sm:$0xf]  ;;  %v13863_v13 = vor.u32 %v17157_v5, %v13862_v4 }
 0x34f   : > { %11915 = vmatpush.bf16.msra.mxu2 %v14007_v54  ;;  %v14063_v7 = vor.u32 %v17207_v1, %v14062_v0  ;;  %v17173_v8 = vld [vmem:[%s19746_s27 + $0xc4] sm:$0xf0]  ;;  %v13990_v9 = vld [vmem:[%s19746_s27 + $0x140] sm:$0xf]  ;;  %v13854_v16 = vld [vmem:[%s19746_s27 + $0x30] sm:$0xf] }
 0x350   : > { %11929 = vmatpush.bf16.msra.mxu3 %v14071_v58  ;;  %v17189_v10 = vld [vmem:[%s19746_s27 + $0x144] sm:$0xf0]  ;;  %v14054_v11 = vld [vmem:[%s19746_s27 + $0x1c0] sm:$0xf]  ;;  %v13927_v14 = vor.u32 %v17173_v8, %v13926_v6  ;;  %v17155_v17 = vld [vmem:[%s19746_s27 + $0x34] sm:$0xf0] }
 0x351   : > { %v17205_v12 = vld [vmem:[%s19746_s27 + $0x1c4] sm:$0xf0]  ;;  %11888 = vmatpush.bf16.msra.mxu0 %v13871_v62  ;;  %v13991_v15 = vor.u32 %v17189_v10, %v13990_v9  ;;  %v13918_v18 = vld [vmem:[%s19746_s27 + $0xb0] sm:$0xf]  ;;  %v17171_v20 = vld [vmem:[%s19746_s27 + $0xb4] sm:$0xf0]  ;;  %v13855_v25 = vor.u32 %v17155_v17, %v13854_v16 }
 0x352   : > { %11902 = vmatpush.bf16.msra.mxu1 %v13935_v2  ;;  %v14055_v19 = vor.u32 %v17205_v12, %v14054_v11  ;;  %v13982_v21 = vld [vmem:[%s19746_s27 + $0x130] sm:$0xf]  ;;  %v17187_v22 = vld [vmem:[%s19746_s27 + $0x134] sm:$0xf0]  ;;  %v13919_v26 = vor.u32 %v17171_v20, %v13918_v18  ;;  %v13846_v28 = vld [vmem:[%s19746_s27 + $0x20] sm:$0xf] }
 0x353   : > { %11916 = vmatpush.bf16.msra.mxu2 %v13999_v3  ;;  %v14046_v23 = vld [vmem:[%s19746_s27 + $0x1b0] sm:$0xf]  ;;  %v17203_v24 = vld [vmem:[%s19746_s27 + $0x1b4] sm:$0xf0]  ;;  %v13983_v27 = vor.u32 %v17187_v22, %v13982_v21  ;;  %v17153_v29 = vld [vmem:[%s19746_s27 + $0x24] sm:$0xf0] }
 0x354   : > { %11930 = vmatpush.bf16.msra.mxu3 %v14063_v7  ;;  %v13910_v30 = vld [vmem:[%s19746_s27 + $0xa0] sm:$0xf]  ;;  %v14047_v31 = vor.u32 %v17203_v24, %v14046_v23  ;;  %v17169_v32 = vld [vmem:[%s19746_s27 + $0xa4] sm:$0xf0]  ;;  %v13847_v37 = vor.u32 %v17153_v29, %v13846_v28  ;;  %v13838_v40 = vld [vmem:[%s19746_s27 + $0x10] sm:$0xf] }
 0x355   : > { %11889 = vmatpush.bf16.msra.mxu0 %v13863_v13  ;;  %v13974_v33 = vld [vmem:[%s19746_s27 + $0x120] sm:$0xf]  ;;  %v17185_v34 = vld [vmem:[%s19746_s27 + $0x124] sm:$0xf0]  ;;  %v13911_v38 = vor.u32 %v17169_v32, %v13910_v30  ;;  %v17151_v41 = vld [vmem:[%s19746_s27 + $0x14] sm:$0xf0] }
 0x356   : > { %11903 = vmatpush.bf16.msra.mxu1 %v13927_v14  ;;  %v14038_v35 = vld [vmem:[%s19746_s27 + $0x1a0] sm:$0xf]  ;;  %v17201_v36 = vld [vmem:[%s19746_s27 + $0x1a4] sm:$0xf0]  ;;  %v13975_v39 = vor.u32 %v17185_v34, %v13974_v33  ;;  %v13902_v42 = vld [vmem:[%s19746_s27 + $0x90] sm:$0xf]  ;;  %v13839_v49 = vor.u32 %v17151_v41, %v13838_v40 }
 0x357   : > { %11917 = vmatpush.bf16.msra.mxu2 %v13991_v15  ;;  %v14039_v43 = vor.u32 %v17201_v36, %v14038_v35  ;;  %v17167_v44 = vld [vmem:[%s19746_s27 + $0x94] sm:$0xf0]  ;;  %v13966_v45 = vld [vmem:[%s19746_s27 + $0x110] sm:$0xf]  ;;  %v13830_v50 = vld [vmem:[%s19746_s27] sm:$0xf] }
 0x358   : > { %11931 = vmatpush.bf16.msra.mxu3 %v14055_v19  ;;  %v17183_v46 = vld [vmem:[%s19746_s27 + $0x114] sm:$0xf0]  ;;  %v14030_v47 = vld [vmem:[%s19746_s27 + $0x190] sm:$0xf]  ;;  %v17149_v51 = vld [vmem:[%s19746_s27 + $0x4] sm:$0xf0]  ;;  %v13903_v52 = vor.u32 %v17167_v44, %v13902_v42 }
 0x359   : > { %11890 = vmatpush.bf16.msra.mxu0 %v13855_v25  ;;  %v17199_v48 = vld [vmem:[%s19746_s27 + $0x194] sm:$0xf0]  ;;  %v13967_v53 = vor.u32 %v17183_v46, %v13966_v45  ;;  %v13894_v54 = vld [vmem:[%s19746_s27 + $0x80] sm:$0xf]  ;;  %v17165_v55 = vld [vmem:[%s19746_s27 + $0x84] sm:$0xf0]  ;;  %v13831_v0 = vor.u32 %v17149_v51, %v13830_v50 }
 0x35a   : > { %11904 = vmatpush.bf16.msra.mxu1 %v13919_v26  ;;  %v13958_v56 = vld [vmem:[%s19746_s27 + $0x100] sm:$0xf]  ;;  %v14031_v57 = vor.u32 %v17199_v48, %v14030_v47  ;;  %v17181_v58 = vld [vmem:[%s19746_s27 + $0x104] sm:$0xf0]  ;;  %v14142_v61 = vld [vmem:[%s19746_s27 + $0x270] sm:$0xf]  ;;  %v13895_v4 = vor.u32 %v17165_v55, %v13894_v54 }
 0x35b   : > { %11918 = vmatpush.bf16.msra.mxu2 %v13983_v27  ;;  %v14022_v59 = vld [vmem:[%s19746_s27 + $0x180] sm:$0xf]  ;;  %v17197_v60 = vld [vmem:[%s19746_s27 + $0x184] sm:$0xf0]  ;;  %v17227_v62 = vld [vmem:[%s19746_s27 + $0x274] sm:$0xf0]  ;;  %v13959_v5 = vor.u32 %v17181_v58, %v13958_v56 }
 0x35c   : > { %11932 = vmatpush.bf16.msra.mxu3 %v14047_v31  ;;  %v14206_v63 = vld [vmem:[%s19746_s27 + $0x2f0] sm:$0xf]  ;;  %v17243_v1 = vld [vmem:[%s19746_s27 + $0x2f4] sm:$0xf0]  ;;  %v14023_v8 = vor.u32 %v17197_v60, %v14022_v59  ;;  %v14143_v9 = vor.u32 %v17227_v62, %v14142_v61  ;;  %v14134_v10 = vld [vmem:[%s19746_s27 + $0x260] sm:$0xf] }
 0x35d   : > { %11891 = vmatpush.bf16.msra.mxu0 %v13847_v37  ;;  %v14270_v2 = vld [vmem:[%s19746_s27 + $0x370] sm:$0xf]  ;;  %v17259_v3 = vld [vmem:[%s19746_s27 + $0x374] sm:$0xf0]  ;;  %v17225_v11 = vld [vmem:[%s19746_s27 + $0x264] sm:$0xf0]  ;;  %v14207_v12 = vor.u32 %v17243_v1, %v14206_v63 }
 0x35e   : > { %11905 = vmatpush.bf16.msra.mxu1 %v13911_v38  ;;  %v14334_v6 = vld [vmem:[%s19746_s27 + $0x3f0] sm:$0xf]  ;;  %v17275_v7 = vld [vmem:[%s19746_s27 + $0x3f4] sm:$0xf0]  ;;  %v14271_v13 = vor.u32 %v17259_v3, %v14270_v2  ;;  %v14198_v14 = vld [vmem:[%s19746_s27 + $0x2e0] sm:$0xf]  ;;  %v14135_v24 = vor.u32 %v17225_v11, %v14134_v10 }
 0x35f   : > { %11919 = vmatpush.bf16.msra.mxu2 %v13975_v39  ;;  %v17241_v15 = vld [vmem:[%s19746_s27 + $0x2e4] sm:$0xf0]  ;;  %v14262_v16 = vld [vmem:[%s19746_s27 + $0x360] sm:$0xf]  ;;  %v14335_v17 = vor.u32 %v17275_v7, %v14334_v6  ;;  %v13630_v21 = vld [vmem:[%s22137_s0] sm:$0xf] }
 0x360   : > { %11933 = vmatpush.bf16.msra.mxu3 %v14039_v43  ;;  %v17257_v18 = vld [vmem:[%s19746_s27 + $0x364] sm:$0xf0]  ;;  %v14326_v19 = vld [vmem:[%s19746_s27 + $0x3e0] sm:$0xf]  ;;  %v17123_v22 = vld [vmem:[%s22137_s0 + $0xc4] sm:$0xf0]  ;;  %v14199_v29 = vor.u32 %v17241_v15, %v14198_v14 }
 0x361   : > { %11892 = vmatpush.bf16.msra.mxu0 %v13839_v49  ;;  %v17273_v20 = vld [vmem:[%s19746_s27 + $0x3e4] sm:$0xf0]  ;;  %v13638_v23 = vld [vmem:[%s22137_s0 + $0x8] sm:$0xf]  ;;  %v14126_v25 = vld [vmem:[%s19746_s27 + $0x250] sm:$0xf]  ;;  %v19840_v27 = vor.u32 %v17123_v22, %v13630_v21  ;;  %v14263_v30 = vor.u32 %v17257_v18, %v14262_v16 }
 0x362   : > { %11906 = vmatpush.bf16.msra.mxu1 %v13903_v52  ;;  %v17223_v26 = vld [vmem:[%s19746_s27 + $0x254] sm:$0xf0]  ;;  %v17124_v28 = vld [vmem:[%s22137_s0 + $0xcc] sm:$0xf0]  ;;  %v14190_v31 = vld [vmem:[%s19746_s27 + $0x2d0] sm:$0xf]  ;;  %v14327_v35 = vor.u32 %v17273_v20, %v14326_v19 }
 0x363   : > { %11920 = vmatpush.bf16.msra.mxu2 %v13967_v53  ;;  %v17239_v32 = vld [vmem:[%s19746_s27 + $0x2d4] sm:$0xf0]  ;;  %v14254_v33 = vld [vmem:[%s19746_s27 + $0x350] sm:$0xf]  ;;  %v19848_v34 = vor.u32 %v17124_v28, %v13638_v23  ;;  %v17098_v39 = vld [vmem:[%s22137_s0 + $0x4] sm:$0xf]  ;;  %v14127_v42 = vor.u32 %v17223_v26, %v14126_v25 }
 0x364   : > { %11934 = vmatpush.bf16.msra.mxu3 %v14031_v57  ;;  %v17255_v36 = vld [vmem:[%s19746_s27 + $0x354] sm:$0xf0]  ;;  %v14318_v37 = vld [vmem:[%s19746_s27 + $0x3d0] sm:$0xf]  ;;  %v13632_v40 = vld [vmem:[%s22137_s0 + $0xc8] sm:$0xf0]  ;;  %v14191_v45 = vor.u32 %v17239_v32, %v14190_v31 }
 0x365   : > { %11893 = vmatpush.bf16.msra.mxu0 %v13831_v0  ;;  %v17271_v38 = vld [vmem:[%s19746_s27 + $0x3d4] sm:$0xf0]  ;;  %v17099_v41 = vld [vmem:[%s22137_s0 + $0xc] sm:$0xf]  ;;  %v19864_v43 = vor.u32 %v17098_v39, %v13632_v40  ;;  %v13640_v44 = vld [vmem:[%s22137_s0 + $0xd0] sm:$0xf0]  ;;  %v14255_v46 = vor.u32 %v17255_v36, %v14254_v33 }
 0x366   : > { %11907 = vmatpush.bf16.msra.mxu1 %v13895_v4  ;;  %v14118_v47 = vld [vmem:[%s19746_s27 + $0x240] sm:$0xf]  ;;  %v17221_v48 = vld [vmem:[%s19746_s27 + $0x244] sm:$0xf0]  ;;  %v19872_v50 = vor.u32 %v17099_v41, %v13640_v44  ;;  %v14319_v51 = vor.u32 %v17271_v38, %v14318_v37  ;;  %v14110_v60 = vld [vmem:[%s19746_s27 + $0x230] sm:$0xf] }
 0x367   : > { %11921 = vmatpush.bf16.msra.mxu2 %v13959_v5  ;;  %v14182_v49 = vld [vmem:[%s19746_s27 + $0x2c0] sm:$0xf]  ;;  %v17237_v52 = vld [vmem:[%s19746_s27 + $0x2c4] sm:$0xf0]  ;;  %v14119_v57 = vor.u32 %v17221_v48, %v14118_v47  ;;  %v17219_v61 = vld [vmem:[%s19746_s27 + $0x234] sm:$0xf0] }
 0x368   : > { %11935 = vmatpush.bf16.msra.mxu3 %v14023_v8  ;;  %11894 = vmatmul.bf16.vlgmr.msra.gmra.mxu0 %v19840_v27  ;;  %v14246_v53 = vld [vmem:[%s19746_s27 + $0x340] sm:$0xf]  ;;  %v17253_v54 = vld [vmem:[%s19746_s27 + $0x344] sm:$0xf0]  ;;  %v14183_v58 = vor.u32 %v17237_v52, %v14182_v49  ;;  %v14174_v62 = vld [vmem:[%s19746_s27 + $0x2b0] sm:$0xf]  ;;  %v14111_v5 = vor.u32 %v17219_v61, %v14110_v60 }
 0x369   : > { %11942 = vmatpush.bf16.msrb.mxu0 %v14143_v9  ;;  %11908 = vmatmul.bf16.vlgmr.msra.gmra.mxu1 %v19864_v43  ;;  %v14310_v55 = vld [vmem:[%s19746_s27 + $0x3c0] sm:$0xf]  ;;  %v17269_v56 = vld [vmem:[%s19746_s27 + $0x3c4] sm:$0xf0]  ;;  %v14247_v59 = vor.u32 %v17253_v54, %v14246_v53  ;;  %v17235_v0 = vld [vmem:[%s19746_s27 + $0x2b4] sm:$0xf0] }
 0x36a   : > { %11956 = vmatpush.bf16.msrb.mxu1 %v14207_v12  ;;  %11922 = vmatmul.bf16.vlgmr.msra.gmra.mxu2 %v19848_v34  ;;  %v14311_v63 = vor.u32 %v17269_v56, %v14310_v55  ;;  %v14238_v1 = vld [vmem:[%s19746_s27 + $0x330] sm:$0xf]  ;;  %v17251_v2 = vld [vmem:[%s19746_s27 + $0x334] sm:$0xf0]  ;;  %v14175_v6 = vor.u32 %v17235_v0, %v14174_v62  ;;  %v14102_v8 = vld [vmem:[%s19746_s27 + $0x220] sm:$0xf] }
 0x36b   : > { %11970 = vmatpush.bf16.msrb.mxu2 %v14271_v13  ;;  %11936 = vmatmul.bf16.vlgmr.msra.gmra.mxu3 %v19872_v50  ;;  %v14302_v3 = vld [vmem:[%s19746_s27 + $0x3b0] sm:$0xf]  ;;  %v17267_v4 = vld [vmem:[%s19746_s27 + $0x3b4] sm:$0xf0]  ;;  %v14239_v7 = vor.u32 %v17251_v2, %v14238_v1  ;;  %v17217_v9 = vld [vmem:[%s19746_s27 + $0x224] sm:$0xf0] }
 0x36c   : > { %11984 = vmatpush.bf16.msrb.mxu3 %v14335_v17  ;;  %v14166_v10 = vld [vmem:[%s19746_s27 + $0x2a0] sm:$0xf]  ;;  %v14303_v11 = vor.u32 %v17267_v4, %v14302_v3  ;;  %v17233_v12 = vld [vmem:[%s19746_s27 + $0x2a4] sm:$0xf0]  ;;  %v14103_v17 = vor.u32 %v17217_v9, %v14102_v8  ;;  %v14094_v18 = vld [vmem:[%s19746_s27 + $0x210] sm:$0xf] }
 0x36d   : > { %11943 = vmatpush.bf16.msrb.mxu0 %v14135_v24  ;;  %v14230_v13 = vld [vmem:[%s19746_s27 + $0x320] sm:$0xf]  ;;  %v17249_v14 = vld [vmem:[%s19746_s27 + $0x324] sm:$0xf0]  ;;  %v14167_v19 = vor.u32 %v17233_v12, %v14166_v10  ;;  %v17215_v21 = vld [vmem:[%s19746_s27 + $0x214] sm:$0xf0] }
 0x36e   : > { %11957 = vmatpush.bf16.msrb.mxu1 %v14199_v29  ;;  %v14294_v15 = vld [vmem:[%s19746_s27 + $0x3a0] sm:$0xf]  ;;  %v17265_v16 = vld [vmem:[%s19746_s27 + $0x3a4] sm:$0xf0]  ;;  %v14231_v20 = vor.u32 %v17249_v14, %v14230_v13  ;;  %v14158_v22 = vld [vmem:[%s19746_s27 + $0x290] sm:$0xf]  ;;  %v14095_v32 = vor.u32 %v17215_v21, %v14094_v18 }
 0x36f   : > { %11971 = vmatpush.bf16.msrb.mxu2 %v14263_v30  ;;  %v17231_v23 = vld [vmem:[%s19746_s27 + $0x294] sm:$0xf0]  ;;  %v14295_v24 = vor.u32 %v17265_v16, %v14294_v15  ;;  %v14222_v25 = vld [vmem:[%s19746_s27 + $0x310] sm:$0xf]  ;;  %v14086_v30 = vld [vmem:[%s19746_s27 + $0x200] sm:$0xf] }
 0x370   : > { %11985 = vmatpush.bf16.msrb.mxu3 %v14327_v35  ;;  %v17247_v26 = vld [vmem:[%s19746_s27 + $0x314] sm:$0xf0]  ;;  %v14286_v28 = vld [vmem:[%s19746_s27 + $0x390] sm:$0xf]  ;;  %v17213_v31 = vld [vmem:[%s19746_s27 + $0x204] sm:$0xf0]  ;;  %v14159_v38 = vor.u32 %v17231_v23, %v14158_v22 }
 0x371   : > { %11944 = vmatpush.bf16.msrb.mxu0 %v14127_v42  ;;  %v17263_v29 = vld [vmem:[%s19746_s27 + $0x394] sm:$0xf0]  ;;  %v14150_v33 = vld [vmem:[%s19746_s27 + $0x280] sm:$0xf]  ;;  %v17229_v35 = vld [vmem:[%s19746_s27 + $0x284] sm:$0xf0]  ;;  %v14223_v39 = vor.u32 %v17247_v26, %v14222_v25  ;;  %v14087_v52 = vor.u32 %v17213_v31, %v14086_v30 }
 0x372   : > { %11958 = vmatpush.bf16.msrb.mxu1 %v14191_v45  ;;  %v14214_v36 = vld [vmem:[%s19746_s27 + $0x300] sm:$0xf]  ;;  %v17245_v37 = vld [vmem:[%s19746_s27 + $0x304] sm:$0xf0]  ;;  %v14398_v42 = vld [vmem:[%s19746_s27 + $0x470] sm:$0xf]  ;;  %v14287_v44 = vor.u32 %v17263_v29, %v14286_v28  ;;  %v14151_v56 = vor.u32 %v17229_v35, %v14150_v33 }
 0x373   : > { %11972 = vmatpush.bf16.msrb.mxu2 %v14255_v46  ;;  %v14278_v40 = vld [vmem:[%s19746_s27 + $0x380] sm:$0xf]  ;;  %v17261_v41 = vld [vmem:[%s19746_s27 + $0x384] sm:$0xf0]  ;;  %v17291_v45 = vld [vmem:[%s19746_s27 + $0x474] sm:$0xf0] }
 0x374   : > { %11986 = vmatpush.bf16.msrb.mxu3 %v14319_v51  ;;  %v14462_v46 = vld [vmem:[%s19746_s27 + $0x4f0] sm:$0xf]  ;;  %v17307_v47 = vld [vmem:[%s19746_s27 + $0x4f4] sm:$0xf0]  ;;  %v13646_v54 = vld [vmem:[%s22137_s0 + $0x10] sm:$0xf]  ;;  %v14279_v61 = vor.u32 %v17261_v41, %v14278_v40  ;;  %v14399_v62 = vor.u32 %v17291_v45, %v14398_v42 }
 0x375   : > { %11945 = vmatpush.bf16.msrb.mxu0 %v14119_v57  ;;  %v14526_v48 = vld [vmem:[%s19746_s27 + $0x570] sm:$0xf]  ;;  %v17323_v49 = vld [vmem:[%s19746_s27 + $0x574] sm:$0xf0]  ;;  %v17125_v55 = vld [vmem:[%s22137_s0 + $0xd4] sm:$0xf0]  ;;  %v14215_v57 = vor.u32 %v17245_v37, %v14214_v36  ;;  %v14463_v2 = vor.u32 %v17307_v47, %v14462_v46 }
 0x376   : > { %11959 = vmatpush.bf16.msrb.mxu1 %v14183_v58  ;;  %v14590_v51 = vld [vmem:[%s19746_s27 + $0x5f0] sm:$0xf]  ;;  %v17339_v53 = vld [vmem:[%s19746_s27 + $0x5f4] sm:$0xf0]  ;;  %v13654_v58 = vld [vmem:[%s22137_s0 + $0x18] sm:$0xf]  ;;  %v14527_v3 = vor.u32 %v17323_v49, %v14526_v48  ;;  %v19948_v8 = vor.u32 %v17125_v55, %v13646_v54 }
 0x377   : > { %11973 = vmatpush.bf16.msrb.mxu2 %v14247_v59  ;;  %v17126_v59 = vld [vmem:[%s22137_s0 + $0xdc] sm:$0xf0]  ;;  %v17100_v60 = vld [vmem:[%s22137_s0 + $0x14] sm:$0xf]  ;;  %v17101_v0 = vld [vmem:[%s22137_s0 + $0x1c] sm:$0xf] }
 0x378   : > { %11987 = vmatpush.bf16.msrb.mxu3 %v14311_v63  ;;  %v13648_v63 = vld [vmem:[%s22137_s0 + $0xd8] sm:$0xf0]  ;;  %v13656_v1 = vld [vmem:[%s22137_s0 + $0xe0] sm:$0xf0]  ;;  %v14390_v4 = vld [vmem:[%s19746_s27 + $0x460] sm:$0xf]  ;;  %v19953_v12 = vor.u32 %v17126_v59, %v13654_v58 }
 0x379   : > { %11946 = vmatpush.bf16.msrb.mxu0 %v14111_v5  ;;  %v17289_v5 = vld [vmem:[%s19746_s27 + $0x464] sm:$0xf0]  ;;  %v14518_v10 = vld [vmem:[%s19746_s27 + $0x560] sm:$0xf]  ;;  %v19955_v13 = vor.u32 %v17100_v60, %v13648_v63  ;;  %v19959_v16 = vor.u32 %v17101_v0, %v13656_v1  ;;  %v17287_v21 = vld [vmem:[%s19746_s27 + $0x454] sm:$0xf0] }
 0x37a   : > { %11960 = vmatpush.bf16.msrb.mxu1 %v14175_v6  ;;  %v14454_v6 = vld [vmem:[%s19746_s27 + $0x4e0] sm:$0xf]  ;;  %v17305_v9 = vld [vmem:[%s19746_s27 + $0x4e4] sm:$0xf0]  ;;  %v14446_v22 = vld [vmem:[%s19746_s27 + $0x4d0] sm:$0xf] }
 0x37b   : > { %11974 = vmatpush.bf16.msrb.mxu2 %v14239_v7  ;;  %v14591_v7 = vor.u32 %v17339_v53, %v14590_v51  ;;  %v14582_v14 = vld [vmem:[%s19746_s27 + $0x5e0] sm:$0xf]  ;;  %v17337_v15 = vld [vmem:[%s19746_s27 + $0x5e4] sm:$0xf0]  ;;  %v14455_v18 = vor.u32 %v17305_v9, %v14454_v6  ;;  %v14510_v25 = vld [vmem:[%s19746_s27 + $0x550] sm:$0xf] }
 0x37c   : > { %11988 = vmatpush.bf16.msrb.mxu3 %v14303_v11  ;;  %v17321_v11 = vld [vmem:[%s19746_s27 + $0x564] sm:$0xf0]  ;;  %v14583_v23 = vor.u32 %v17337_v15, %v14582_v14  ;;  %v17319_v26 = vld [vmem:[%s19746_s27 + $0x554] sm:$0xf0]  ;;  %v14574_v28 = vld [vmem:[%s19746_s27 + $0x5d0] sm:$0xf] }
 0x37d   : > { %11947 = vmatpush.bf16.msrb.mxu0 %v14103_v17  ;;  %v14391_v17 = vor.u32 %v17289_v5, %v14390_v4  ;;  %v17335_v29 = vld [vmem:[%s19746_s27 + $0x5d4] sm:$0xf0]  ;;  %v14374_v33 = vld [vmem:[%s19746_s27 + $0x440] sm:$0xf]  ;;  %v17285_v35 = vld [vmem:[%s19746_s27 + $0x444] sm:$0xf0] }
 0x37e   : > { %11961 = vmatpush.bf16.msrb.mxu1 %v14167_v19  ;;  %v14519_v19 = vor.u32 %v17321_v11, %v14518_v10  ;;  %v14438_v36 = vld [vmem:[%s19746_s27 + $0x4c0] sm:$0xf]  ;;  %v14575_v37 = vor.u32 %v17335_v29, %v14574_v28  ;;  %v17317_v40 = vld [vmem:[%s19746_s27 + $0x544] sm:$0xf0]  ;;  %v14366_v47 = vld [vmem:[%s19746_s27 + $0x430] sm:$0xf] }
 0x37f   : > { %11975 = vmatpush.bf16.msrb.mxu2 %v14231_v20  ;;  %v14382_v20 = vld [vmem:[%s19746_s27 + $0x450] sm:$0xf]  ;;  %v14566_v41 = vld [vmem:[%s19746_s27 + $0x5c0] sm:$0xf]  ;;  %v17333_v42 = vld [vmem:[%s19746_s27 + $0x5c4] sm:$0xf0] }
 0x380   : > { %11989 = vmatpush.bf16.msrb.mxu3 %v14295_v24  ;;  %v17303_v24 = vld [vmem:[%s19746_s27 + $0x4d4] sm:$0xf0]  ;;  %v14383_v30 = vor.u32 %v17287_v21, %v14382_v20  ;;  %v14430_v49 = vld [vmem:[%s19746_s27 + $0x4b0] sm:$0xf]  ;;  %v14567_v51 = vor.u32 %v17333_v42, %v14566_v41  ;;  %v14358_v60 = vld [vmem:[%s19746_s27 + $0x420] sm:$0xf] }
 0x381   : > { %11948 = vmatpush.bf16.msrb.mxu0 %v14095_v32  ;;  %v14447_v31 = vor.u32 %v17303_v24, %v14446_v22  ;;  %v14511_v32 = vor.u32 %v17319_v26, %v14510_v25  ;;  %v17283_v48 = vld [vmem:[%s19746_s27 + $0x434] sm:$0xf0]  ;;  %v14494_v53 = vld [vmem:[%s19746_s27 + $0x530] sm:$0xf]  ;;  %v17297_v0 = vld [vmem:[%s19746_s27 + $0x4a4] sm:$0xf0] }
 0x382   : > { %11962 = vmatpush.bf16.msrb.mxu1 %v14159_v38  ;;  %v17301_v38 = vld [vmem:[%s19746_s27 + $0x4c4] sm:$0xf0]  ;;  %v17315_v54 = vld [vmem:[%s19746_s27 + $0x534] sm:$0xf0]  ;;  %v14558_v55 = vld [vmem:[%s19746_s27 + $0x5b0] sm:$0xf] }
 0x383   : > { %11976 = vmatpush.bf16.msrb.mxu2 %v14223_v39  ;;  %v14502_v39 = vld [vmem:[%s19746_s27 + $0x540] sm:$0xf]  ;;  %v14439_v45 = vor.u32 %v17301_v38, %v14438_v36  ;;  %v14495_v59 = vor.u32 %v17315_v54, %v14494_v53  ;;  %v17329_v4 = vld [vmem:[%s19746_s27 + $0x5a4] sm:$0xf0]  ;;  %v14350_v6 = vld [vmem:[%s19746_s27 + $0x410] sm:$0xf] }
 0x384   : > { %11990 = vmatpush.bf16.msrb.mxu3 %v14287_v44  ;;  %v14375_v44 = vor.u32 %v17285_v35, %v14374_v33  ;;  %v14503_v46 = vor.u32 %v17317_v40, %v14502_v39  ;;  %v14486_v1 = vld [vmem:[%s19746_s27 + $0x520] sm:$0xf]  ;;  %v17279_v10 = vld [vmem:[%s19746_s27 + $0x414] sm:$0xf0]  ;;  %v14414_v11 = vld [vmem:[%s19746_s27 + $0x490] sm:$0xf] }
 0x385   : > { %11949 = vmatpush.bf16.msrb.mxu0 %v14087_v52  ;;  %v17299_v52 = vld [vmem:[%s19746_s27 + $0x4b4] sm:$0xf0]  ;;  %v14342_v21 = vld [vmem:[%s19746_s27 + $0x400] sm:$0xf]  ;;  %v17277_v22 = vld [vmem:[%s19746_s27 + $0x404] sm:$0xf0] }
 0x386   : > { %11963 = vmatpush.bf16.msrb.mxu1 %v14151_v56  ;;  %v17331_v56 = vld [vmem:[%s19746_s27 + $0x5b4] sm:$0xf0]  ;;  %v14431_v58 = vor.u32 %v17299_v52, %v14430_v49  ;;  %v14406_v24 = vld [vmem:[%s19746_s27 + $0x480] sm:$0xf]  ;;  %v17293_v25 = vld [vmem:[%s19746_s27 + $0x484] sm:$0xf0]  ;;  %v14343_v42 = vor.u32 %v17277_v22, %v14342_v21 }
 0x387   : > { %11977 = vmatpush.bf16.msrb.mxu2 %v14215_v57  ;;  %v14367_v57 = vor.u32 %v17283_v48, %v14366_v47  ;;  %v14559_v63 = vor.u32 %v17331_v56, %v14558_v55  ;;  %v17295_v14 = vld [vmem:[%s19746_s27 + $0x494] sm:$0xf0]  ;;  %v14470_v26 = vld [vmem:[%s19746_s27 + $0x500] sm:$0xf]  ;;  %v17309_v28 = vld [vmem:[%s19746_s27 + $0x504] sm:$0xf0]  ;;  %v14407_v47 = vor.u32 %v17293_v25, %v14406_v24 }
 0x388   : > { %11991 = vmatpush.bf16.msrb.mxu3 %v14279_v61  ;;  %11950 = vmatmul.bf16.vlgmr.msrb.gmra.mxu0 %v19948_v8  ;;  %v17281_v61 = vld [vmem:[%s19746_s27 + $0x424] sm:$0xf0]  ;;  %v17327_v20 = vld [vmem:[%s19746_s27 + $0x594] sm:$0xf0]  ;;  %v14415_v29 = vor.u32 %v17295_v14, %v14414_v11  ;;  %v14654_v33 = vld [vmem:[%s19746_s27 + $0x670] sm:$0xf]  ;;  %v14471_v48 = vor.u32 %v17309_v28, %v14470_v26 }
 0x389   : > { %11998 = vmatpush.bf16.msra.mxu0 %v14399_v62  ;;  %11964 = vmatmul.bf16.vlgmr.msrb.gmra.mxu1 %v19955_v13  ;;  %v14422_v62 = vld [vmem:[%s19746_s27 + $0x4a0] sm:$0xf]  ;;  %v14359_v5 = vor.u32 %v17281_v61, %v14358_v60  ;;  %v17355_v36 = vld [vmem:[%s19746_s27 + $0x674] sm:$0xf0]  ;;  %v14782_v39 = vld [vmem:[%s19746_s27 + $0x770] sm:$0xf] }
 0x38a   : > { %12012 = vmatpush.bf16.msra.mxu1 %v14463_v2  ;;  %11978 = vmatmul.bf16.vlgmr.msrb.gmra.mxu2 %v19953_v12  ;;  %v17313_v2 = vld [vmem:[%s19746_s27 + $0x524] sm:$0xf0]  ;;  %v17371_v38 = vld [vmem:[%s19746_s27 + $0x6f4] sm:$0xf0]  ;;  %v14846_v41 = vld [vmem:[%s19746_s27 + $0x7f0] sm:$0xf]  ;;  %v14655_v54 = vor.u32 %v17355_v36, %v14654_v33 }
 0x38b   : > { %12026 = vmatpush.bf16.msra.mxu2 %v14527_v3  ;;  %11992 = vmatmul.bf16.vlgmr.msrb.gmra.mxu3 %v19959_v16  ;;  %v14550_v3 = vld [vmem:[%s19746_s27 + $0x5a0] sm:$0xf]  ;;  %v14487_v9 = vor.u32 %v17313_v2, %v14486_v1  ;;  %v17387_v40 = vld [vmem:[%s19746_s27 + $0x774] sm:$0xf0]  ;;  %v17102_v52 = vld [vmem:[%s22137_s0 + $0x24] sm:$0xf] }
 0x38c   : > { %12040 = vmatpush.bf16.msra.mxu3 %v14591_v7  ;;  %v14423_v7 = vor.u32 %v17297_v0, %v14422_v62  ;;  %v14551_v15 = vor.u32 %v17329_v4, %v14550_v3  ;;  %v13670_v49 = vld [vmem:[%s22137_s0 + $0x28] sm:$0xf]  ;;  %v13664_v55 = vld [vmem:[%s22137_s0 + $0xe8] sm:$0xf0]  ;;  %v14646_v60 = vld [vmem:[%s19746_s27 + $0x660] sm:$0xf] }
 0x38d   : > { %11999 = vmatpush.bf16.msra.mxu0 %v14391_v17  ;;  %v14478_v17 = vld [vmem:[%s19746_s27 + $0x510] sm:$0xf]  ;;  %v17103_v56 = vld [vmem:[%s22137_s0 + $0x2c] sm:$0xf]  ;;  %v17353_v61 = vld [vmem:[%s19746_s27 + $0x664] sm:$0xf0] }
 0x38e   : > { %12013 = vmatpush.bf16.msra.mxu1 %v14455_v18  ;;  %v17311_v18 = vld [vmem:[%s19746_s27 + $0x514] sm:$0xf0]  ;;  %v14710_v62 = vld [vmem:[%s19746_s27 + $0x6e0] sm:$0xf]  ;;  %v17369_v1 = vld [vmem:[%s19746_s27 + $0x6e4] sm:$0xf0] }
 0x38f   : > { %12027 = vmatpush.bf16.msra.mxu2 %v14519_v19  ;;  %v14542_v19 = vld [vmem:[%s19746_s27 + $0x590] sm:$0xf]  ;;  %v14774_v2 = vld [vmem:[%s19746_s27 + $0x760] sm:$0xf]  ;;  %v17385_v3 = vld [vmem:[%s19746_s27 + $0x764] sm:$0xf0]  ;;  %v14711_v11 = vor.u32 %v17369_v1, %v14710_v62 }
 0x390   : > { %12041 = vmatpush.bf16.msra.mxu3 %v14583_v23  ;;  %v14351_v23 = vor.u32 %v17279_v10, %v14350_v6  ;;  %v14543_v35 = vor.u32 %v17327_v20, %v14542_v19  ;;  %v14838_v6 = vld [vmem:[%s19746_s27 + $0x7e0] sm:$0xf]  ;;  %v14647_v10 = vor.u32 %v17353_v61, %v14646_v60  ;;  %v14775_v14 = vor.u32 %v17385_v3, %v14774_v2  ;;  %v17367_v20 = vld [vmem:[%s19746_s27 + $0x6d4] sm:$0xf0]  ;;  %v14766_v21 = vld [vmem:[%s19746_s27 + $0x750] sm:$0xf] }
 0x391   : > { %12000 = vmatpush.bf16.msra.mxu0 %v14383_v30  ;;  %v14479_v30 = vor.u32 %v17311_v18, %v14478_v17  ;;  %v17351_v17 = vld [vmem:[%s19746_s27 + $0x654] sm:$0xf0]  ;;  %v14702_v18 = vld [vmem:[%s19746_s27 + $0x6d0] sm:$0xf]  ;;  %v17365_v33 = vld [vmem:[%s19746_s27 + $0x6c4] sm:$0xf0] }
 0x392   : > { %12014 = vmatpush.bf16.msra.mxu1 %v14447_v31  ;;  %v14534_v31 = vld [vmem:[%s19746_s27 + $0x580] sm:$0xf]  ;;  %v17383_v22 = vld [vmem:[%s19746_s27 + $0x754] sm:$0xf0]  ;;  %v14703_v26 = vor.u32 %v17367_v20, %v14702_v18  ;;  %v17381_v36 = vld [vmem:[%s19746_s27 + $0x744] sm:$0xf0] }
 0x393   : > { %12028 = vmatpush.bf16.msra.mxu2 %v14511_v32  ;;  %v17325_v32 = vld [vmem:[%s19746_s27 + $0x584] sm:$0xf0]  ;;  %v17399_v24 = vld [vmem:[%s19746_s27 + $0x7d4] sm:$0xf0]  ;;  %v14767_v28 = vor.u32 %v17383_v22, %v14766_v21  ;;  %v14742_v61 = vld [vmem:[%s19746_s27 + $0x720] sm:$0xf] }
 0x394   : > { %12042 = vmatpush.bf16.msra.mxu3 %v14575_v37  ;;  %v14718_v37 = vld [vmem:[%s19746_s27 + $0x6f0] sm:$0xf]  ;;  %v14535_v53 = vor.u32 %v17325_v32, %v14534_v31  ;;  %v14694_v31 = vld [vmem:[%s19746_s27 + $0x6c0] sm:$0xf]  ;;  %v17361_v60 = vld [vmem:[%s19746_s27 + $0x6a4] sm:$0xf0] }
 0x395   : > { %12001 = vmatpush.bf16.msra.mxu0 %v14375_v44  ;;  %v17403_v44 = vld [vmem:[%s19746_s27 + $0x7f4] sm:$0xf0]  ;;  %v17377_v62 = vld [vmem:[%s19746_s27 + $0x724] sm:$0xf0]  ;;  %v14606_v3 = vld [vmem:[%s19746_s27 + $0x610] sm:$0xf] }
 0x396   : > { %12015 = vmatpush.bf16.msra.mxu1 %v14439_v45  ;;  %v13662_v45 = vld [vmem:[%s22137_s0 + $0x20] sm:$0xf]  ;;  %v17393_v1 = vld [vmem:[%s19746_s27 + $0x7a4] sm:$0xf0]  ;;  %v17375_v18 = vld [vmem:[%s19746_s27 + $0x714] sm:$0xf0] }
 0x397   : > { %12029 = vmatpush.bf16.msra.mxu2 %v14503_v46  ;;  %v17127_v46 = vld [vmem:[%s22137_s0 + $0xe4] sm:$0xf0]  ;;  %v14598_v21 = vld [vmem:[%s19746_s27 + $0x600] sm:$0xf]  ;;  %v17341_v22 = vld [vmem:[%s19746_s27 + $0x604] sm:$0xf0] }
 0x398   : > { %12043 = vmatpush.bf16.msra.mxu3 %v14567_v51  ;;  %v17128_v51 = vld [vmem:[%s22137_s0 + $0xec] sm:$0xf0]  ;;  %v20048_v0 = vor.u32 %v17127_v46, %v13662_v45  ;;  %v14686_v45 = vld [vmem:[%s19746_s27 + $0x6b0] sm:$0xf]  ;;  %v17391_v20 = vld [vmem:[%s19746_s27 + $0x794] sm:$0xf0] }
 0x399   : > { %12002 = vmatpush.bf16.msra.mxu0 %v14367_v57  ;;  %v13672_v57 = vld [vmem:[%s22137_s0 + $0xf0] sm:$0xf0]  ;;  %v20053_v4 = vor.u32 %v17128_v51, %v13670_v49  ;;  %v17379_v49 = vld [vmem:[%s19746_s27 + $0x734] sm:$0xf0]  ;;  %v14814_v51 = vld [vmem:[%s19746_s27 + $0x7b0] sm:$0xf] }
 0x39a   : > { %12016 = vmatpush.bf16.msra.mxu1 %v14431_v58  ;;  %v14719_v58 = vor.u32 %v17371_v38, %v14718_v37  ;;  %v14822_v37 = vld [vmem:[%s19746_s27 + $0x7c0] sm:$0xf]  ;;  %v17397_v38 = vld [vmem:[%s19746_s27 + $0x7c4] sm:$0xf0]  ;;  %vm13452_vm1 = vcmask 64512   ;;  %p17092_p12 = scmp.ne.s32.totalorder %s18042_s20, 3 }
 0x39b   : > { %12030 = vmatpush.bf16.msra.mxu2 %v14495_v59  ;;  %v14783_v59 = vor.u32 %v17387_v40, %v14782_v39  ;;  %v14695_v40 = vor.u32 %v17365_v33, %v14694_v31  ;;  %v14823_v46 = vor.u32 %v17397_v38, %v14822_v37  ;;  %v14790_v31 = vld [vmem:[%s19746_s27 + $0x780] sm:$0xf]  ;;  %v14910_v33 = vld [vmem:[%s19746_s27 + $0x870] sm:$0xf]  ;;  %v17435_v38 = vld [vmem:[%s19746_s27 + $0x8f4] sm:$0xf0] }
 0x39c   : > { %12044 = vmatpush.bf16.msra.mxu3 %v14559_v63  ;;  %v14847_v63 = vor.u32 %v17403_v44, %v14846_v41  ;;  %v17347_v44 = vld [vmem:[%s19746_s27 + $0x634] sm:$0xf0]  ;;  %v14974_v37 = vld [vmem:[%s19746_s27 + $0x8f0] sm:$0xf] }
 0x39d   : > { %12003 = vmatpush.bf16.msra.mxu0 %v14359_v5  ;;  %v20055_v5 = vor.u32 %v17102_v52, %v13664_v55  ;;  %v17395_v52 = vld [vmem:[%s19746_s27 + $0x7b4] sm:$0xf0] }
 0x39e   : > { %12017 = vmatpush.bf16.msra.mxu1 %v14423_v7  ;;  %v17401_v7 = vld [vmem:[%s19746_s27 + $0x7e4] sm:$0xf0] }
 0x39f   : > { %12031 = vmatpush.bf16.msra.mxu2 %v14487_v9  ;;  %v20059_v9 = vor.u32 %v17103_v56, %v13672_v57  ;;  %v14839_v19 = vor.u32 %v17401_v7, %v14838_v6  ;;  %v14614_v56 = vld [vmem:[%s19746_s27 + $0x620] sm:$0xf]  ;;  %v17345_v57 = vld [vmem:[%s19746_s27 + $0x624] sm:$0xf0]  ;;  %v14743_v7 = vor.u32 %v17377_v62, %v14742_v61 }
 0x3a0   : > { %12045 = vmatpush.bf16.msra.mxu3 %v14551_v15  ;;  %v14638_v15 = vld [vmem:[%s19746_s27 + $0x650] sm:$0xf]  ;;  %v14615_v2 = vor.u32 %v17345_v57, %v14614_v56  ;;  %v17105_v56 = vld [vmem:[%s22137_s0 + $0x3c] sm:$0xf]  ;;  %v13688_v57 = vld [vmem:[%s22137_s0 + $0x100] sm:$0xf0] }
 0x3a1   : > { %12004 = vmatpush.bf16.msra.mxu0 %v14351_v23  ;;  %v14830_v23 = vld [vmem:[%s19746_s27 + $0x7d0] sm:$0xf]  ;;  %v14639_v25 = vor.u32 %v17351_v17, %v14638_v15  ;;  %v17417_v61 = vld [vmem:[%s19746_s27 + $0x864] sm:$0xf0]  ;;  %v14966_v62 = vld [vmem:[%s19746_s27 + $0x8e0] sm:$0xf] }
 0x3a2   : > { %12018 = vmatpush.bf16.msra.mxu1 %v14415_v29  ;;  %v14630_v29 = vld [vmem:[%s19746_s27 + $0x640] sm:$0xf]  ;;  %v14831_v32 = vor.u32 %v17399_v24, %v14830_v23  ;;  %v14734_v17 = vld [vmem:[%s19746_s27 + $0x710] sm:$0xf] }
 0x3a3   : > { %12032 = vmatpush.bf16.msra.mxu2 %v14479_v30  ;;  %v17349_v30 = vld [vmem:[%s19746_s27 + $0x644] sm:$0xf0]  ;;  %v14662_v24 = vld [vmem:[%s19746_s27 + $0x680] sm:$0xf] }
 0x3a4   : > { %12046 = vmatpush.bf16.msra.mxu3 %v14543_v35  ;;  %v14758_v35 = vld [vmem:[%s19746_s27 + $0x740] sm:$0xf]  ;;  %v14631_v39 = vor.u32 %v17349_v30, %v14630_v29  ;;  %v14735_v30 = vor.u32 %v17375_v18, %v14734_v17 }
 0x3a5   : > { %12005 = vmatpush.bf16.msra.mxu0 %v14343_v42  ;;  %v14759_v41 = vor.u32 %v17381_v36, %v14758_v35  ;;  %v14622_v42 = vld [vmem:[%s19746_s27 + $0x630] sm:$0xf]  ;;  %v17419_v36 = vld [vmem:[%s19746_s27 + $0x874] sm:$0xf0] }
 0x3a6   : > { %12019 = vmatpush.bf16.msra.mxu1 %v14407_v47  ;;  %v17363_v47 = vld [vmem:[%s19746_s27 + $0x6b4] sm:$0xf0] }
 0x3a7   : > { %12033 = vmatpush.bf16.msra.mxu2 %v14471_v48  ;;  %v14750_v48 = vld [vmem:[%s19746_s27 + $0x730] sm:$0xf] }
 0x3a8   : > { %12047 = vmatpush.bf16.msra.mxu3 %v14535_v53  ;;  %12006 = vmatmul.bf16.vlgmr.msra.gmra.mxu0 %v20048_v0  ;;  %v14623_v53 = vor.u32 %v17347_v44, %v14622_v42  ;;  %v14751_v55 = vor.u32 %v17379_v49, %v14750_v48  ;;  %v14599_v42 = vor.u32 %v17341_v22, %v14598_v21  ;;  %v17467_v44 = vld [vmem:[%s19746_s27 + $0x9f4] sm:$0xf0]  ;;  %v13686_v49 = vld [vmem:[%s22137_s0 + $0x38] sm:$0xf]  ;;  %v14958_v22 = vld [vmem:[%s19746_s27 + $0x8d0] sm:$0xf] }
 0x3a9   : > { %12054 = vmatpush.bf16.msrb.mxu0 %v14655_v54  ;;  %12020 = vmatmul.bf16.vlgmr.msra.gmra.mxu1 %v20055_v5  ;;  %v14687_v54 = vor.u32 %v17363_v47, %v14686_v45  ;;  %v13678_v45 = vld [vmem:[%s22137_s0 + $0x30] sm:$0xf]  ;;  %v17415_v21 = vld [vmem:[%s19746_s27 + $0x854] sm:$0xf0] }
 0x3aa   : > { %12068 = vmatpush.bf16.msrb.mxu1 %v14719_v58  ;;  %12034 = vmatmul.bf16.vlgmr.msra.gmra.mxu2 %v20053_v4  ;;  %v14678_v58 = vld [vmem:[%s19746_s27 + $0x6a0] sm:$0xf] }
 0x3ab   : > { %12082 = vmatpush.bf16.msrb.mxu2 %v14783_v59  ;;  %12048 = vmatmul.bf16.vlgmr.msra.gmra.mxu3 %v20059_v9  ;;  %v14815_v59 = vor.u32 %v17395_v52, %v14814_v51  ;;  %v14679_v6 = vor.u32 %v17361_v60, %v14678_v58  ;;  %v17130_v51 = vld [vmem:[%s22137_s0 + $0xfc] sm:$0xf0]  ;;  %v17104_v52 = vld [vmem:[%s22137_s0 + $0x34] sm:$0xf]  ;;  %v14975_v58 = vor.u32 %v17435_v38, %v14974_v37  ;;  %v14902_v60 = vld [vmem:[%s19746_s27 + $0x860] sm:$0xf] }
 0x3ac   : > { %12096 = vmatpush.bf16.msrb.mxu3 %v14847_v63  ;;  %v14806_v63 = vld [vmem:[%s19746_s27 + $0x7a0] sm:$0xf]  ;;  %v14903_v17 = vor.u32 %v17417_v61, %v14902_v60  ;;  %v17429_v38 = vld [vmem:[%s19746_s27 + $0x8c4] sm:$0xf0] }
 0x3ad   : > { %12055 = vmatpush.bf16.msrb.mxu0 %v14647_v10  ;;  %v17343_v10 = vld [vmem:[%s19746_s27 + $0x614] sm:$0xf0]  ;;  %v14807_v15 = vor.u32 %v17393_v1, %v14806_v63  ;;  %v14870_v60 = vld [vmem:[%s19746_s27 + $0x820] sm:$0xf]  ;;  %v17409_v61 = vld [vmem:[%s19746_s27 + $0x824] sm:$0xf0] }
 0x3ae   : > { %12069 = vmatpush.bf16.msrb.mxu1 %v14711_v11  ;;  %v14670_v11 = vld [vmem:[%s19746_s27 + $0x690] sm:$0xf]  ;;  %v14607_v23 = vor.u32 %v17343_v10, %v14606_v3  ;;  %v15030_v3 = vld [vmem:[%s19746_s27 + $0x960] sm:$0xf] }
 0x3af   : > { %12083 = vmatpush.bf16.msrb.mxu2 %v14775_v14  ;;  %v17359_v14 = vld [vmem:[%s19746_s27 + $0x694] sm:$0xf0] }
 0x3b0   : > { %12097 = vmatpush.bf16.msrb.mxu3 %v14839_v19  ;;  %v14798_v19 = vld [vmem:[%s19746_s27 + $0x790] sm:$0xf]  ;;  %v14671_v29 = vor.u32 %v17359_v14, %v14670_v11  ;;  %v15094_v11 = vld [vmem:[%s19746_s27 + $0x9e0] sm:$0xf]  ;;  %v17465_v14 = vld [vmem:[%s19746_s27 + $0x9e4] sm:$0xf0] }
 0x3b1   : > { %12056 = vmatpush.bf16.msrb.mxu0 %v14639_v25  ;;  %v17357_v25 = vld [vmem:[%s19746_s27 + $0x684] sm:$0xf0]  ;;  %v14799_v35 = vor.u32 %v17391_v20, %v14798_v19  ;;  %v14894_v20 = vld [vmem:[%s19746_s27 + $0x850] sm:$0xf] }
 0x3b2   : > { %12070 = vmatpush.bf16.msrb.mxu1 %v14703_v26  ;;  %v14726_v26 = vld [vmem:[%s19746_s27 + $0x700] sm:$0xf]  ;;  %v14663_v47 = vor.u32 %v17357_v25, %v14662_v24  ;;  %v17431_v24 = vld [vmem:[%s19746_s27 + $0x8d4] sm:$0xf0]  ;;  %v15022_v25 = vld [vmem:[%s19746_s27 + $0x950] sm:$0xf] }
 0x3b3   : > { %12084 = vmatpush.bf16.msrb.mxu2 %v14767_v28  ;;  %v17373_v28 = vld [vmem:[%s19746_s27 + $0x704] sm:$0xf0] }
 0x3b4   : > { %12098 = vmatpush.bf16.msrb.mxu3 %v14831_v32  ;;  %v17389_v32 = vld [vmem:[%s19746_s27 + $0x784] sm:$0xf0]  ;;  %v14727_v48 = vor.u32 %v17373_v28, %v14726_v26  ;;  %v17447_v26 = vld [vmem:[%s19746_s27 + $0x954] sm:$0xf0]  ;;  %v15086_v28 = vld [vmem:[%s19746_s27 + $0x9d0] sm:$0xf] }
 0x3b5   : > { %12057 = vmatpush.bf16.msrb.mxu0 %v14631_v39  ;;  %v15038_v39 = vld [vmem:[%s19746_s27 + $0x970] sm:$0xf] }
 0x3b6   : > { %12071 = vmatpush.bf16.msrb.mxu1 %v14695_v40  ;;  %v17451_v40 = vld [vmem:[%s19746_s27 + $0x974] sm:$0xf0] }
 0x3b7   : > { %12085 = vmatpush.bf16.msrb.mxu2 %v14759_v41  ;;  %v15102_v41 = vld [vmem:[%s19746_s27 + $0x9f0] sm:$0xf] }
 0x3b8   : > { %12099 = vmatpush.bf16.msrb.mxu3 %v14823_v46  ;;  %v17129_v46 = vld [vmem:[%s22137_s0 + $0xf4] sm:$0xf0]  ;;  %v15103_v63 = vor.u32 %v17467_v44, %v15102_v41  ;;  %v15078_v41 = vld [vmem:[%s19746_s27 + $0x9c0] sm:$0xf] }
 0x3b9   : > { %12058 = vmatpush.bf16.msrb.mxu0 %v14623_v53  ;;  %v14791_v53 = vor.u32 %v17389_v32, %v14790_v31  ;;  %v20148_v1 = vor.u32 %v17129_v46, %v13678_v45  ;;  %v14959_v31 = vor.u32 %v17431_v24, %v14958_v22  ;;  %v15023_v32 = vor.u32 %v17447_v26, %v15022_v25  ;;  %v14926_v22 = vld [vmem:[%s19746_s27 + $0x890] sm:$0xf]  ;;  %v17439_v26 = vld [vmem:[%s19746_s27 + $0x914] sm:$0xf0] }
 0x3ba   : > { %12072 = vmatpush.bf16.msrb.mxu1 %v14687_v54  ;;  %v14911_v54 = vor.u32 %v17419_v36, %v14910_v33  ;;  %v14886_v33 = vld [vmem:[%s19746_s27 + $0x840] sm:$0xf]  ;;  %v14990_v25 = vld [vmem:[%s19746_s27 + $0x910] sm:$0xf] }
 0x3bb   : > { %12086 = vmatpush.bf16.msrb.mxu2 %v14751_v55  ;;  %v13680_v55 = vld [vmem:[%s22137_s0 + $0xf8] sm:$0xf0]  ;;  %v14950_v36 = vld [vmem:[%s19746_s27 + $0x8c0] sm:$0xf] }
 0x3bc   : > { %12100 = vmatpush.bf16.msrb.mxu3 %v14815_v59  ;;  %v15039_v59 = vor.u32 %v17451_v40, %v15038_v39  ;;  %v20155_v10 = vor.u32 %v17104_v52, %v13680_v55  ;;  %v15014_v39 = vld [vmem:[%s19746_s27 + $0x940] sm:$0xf]  ;;  %v17445_v40 = vld [vmem:[%s19746_s27 + $0x944] sm:$0xf0]  ;;  %v14951_v45 = vor.u32 %v17429_v38, %v14950_v36  ;;  %v17427_v52 = vld [vmem:[%s19746_s27 + $0x8b4] sm:$0xf0] }
 0x3bd   : > { %12059 = vmatpush.bf16.msrb.mxu0 %v14615_v2  ;;  %v17433_v2 = vld [vmem:[%s19746_s27 + $0x8e4] sm:$0xf0]  ;;  %v15015_v46 = vor.u32 %v17445_v40, %v15014_v39  ;;  %v15070_v55 = vld [vmem:[%s19746_s27 + $0x9b0] sm:$0xf]  ;;  %v14982_v36 = vld [vmem:[%s19746_s27 + $0x900] sm:$0xf]  ;;  %v14991_v39 = vor.u32 %v17439_v26, %v14990_v25 }
 0x3be   : > { %12073 = vmatpush.bf16.msrb.mxu1 %v14679_v6  ;;  %v17449_v6 = vld [vmem:[%s19746_s27 + $0x964] sm:$0xf0]  ;;  %v14967_v18 = vor.u32 %v17433_v2, %v14966_v62  ;;  %v14934_v62 = vld [vmem:[%s19746_s27 + $0x8a0] sm:$0xf] }
 0x3bf   : > { %12087 = vmatpush.bf16.msrb.mxu2 %v14743_v7  ;;  %v20153_v7 = vor.u32 %v17130_v51, %v13686_v49  ;;  %v15031_v19 = vor.u32 %v17449_v6, %v15030_v3  ;;  %v14942_v49 = vld [vmem:[%s19746_s27 + $0x8b0] sm:$0xf]  ;;  %v17425_v2 = vld [vmem:[%s19746_s27 + $0x8a4] sm:$0xf0]  ;;  %v14998_v3 = vld [vmem:[%s19746_s27 + $0x920] sm:$0xf] }
 0x3c0   : > { %12101 = vmatpush.bf16.msrb.mxu3 %v14807_v15  ;;  %v20159_v15 = vor.u32 %v17105_v56, %v13688_v57  ;;  %v17459_v56 = vld [vmem:[%s19746_s27 + $0x9b4] sm:$0xf0]  ;;  %v17441_v6 = vld [vmem:[%s19746_s27 + $0x924] sm:$0xf0]  ;;  %v15046_v40 = vld [vmem:[%s19746_s27 + $0x980] sm:$0xf] }
 0x3c1   : > { %12060 = vmatpush.bf16.msrb.mxu0 %v14607_v23  ;;  %v15095_v23 = vor.u32 %v17465_v14, %v15094_v11  ;;  %v15062_v11 = vld [vmem:[%s19746_s27 + $0x9a0] sm:$0xf]  ;;  %v17457_v14 = vld [vmem:[%s19746_s27 + $0x9a4] sm:$0xf0] }
 0x3c2   : > { %12074 = vmatpush.bf16.msrb.mxu1 %v14671_v29  ;;  %v17463_v29 = vld [vmem:[%s19746_s27 + $0x9d4] sm:$0xf0]  ;;  %v15063_v24 = vor.u32 %v17457_v14, %v15062_v11  ;;  %v15158_v14 = vld [vmem:[%s19746_s27 + $0xa60] sm:$0xf] }
 0x3c3   : > { %12088 = vmatpush.bf16.msrb.mxu2 %v14735_v30  ;;  %v14895_v30 = vor.u32 %v17415_v21, %v14894_v20  ;;  %v15087_v37 = vor.u32 %v17463_v29, %v15086_v28  ;;  %v14999_v20 = vor.u32 %v17441_v6, %v14998_v3  ;;  %v17407_v21 = vld [vmem:[%s19746_s27 + $0x814] sm:$0xf0]  ;;  %v15054_v28 = vld [vmem:[%s19746_s27 + $0x990] sm:$0xf]  ;;  %v13704_v3 = vld [vmem:[%s22137_s0 + $0x110] sm:$0xf0] }
 0x3c4   : > { %12102 = vmatpush.bf16.msrb.mxu3 %v14799_v35  ;;  %v17413_v35 = vld [vmem:[%s19746_s27 + $0x844] sm:$0xf0]  ;;  %v17455_v29 = vld [vmem:[%s19746_s27 + $0x994] sm:$0xf0]  ;;  %v15350_v26 = vld [vmem:[%s19746_s27 + $0xbe0] sm:$0xf] }
 0x3c5   : > { %12061 = vmatpush.bf16.msrb.mxu0 %v14599_v42  ;;  %v17461_v42 = vld [vmem:[%s19746_s27 + $0x9c4] sm:$0xf0]  ;;  %v14887_v44 = vor.u32 %v17413_v35, %v14886_v33  ;;  %v14918_v33 = vld [vmem:[%s19746_s27 + $0x880] sm:$0xf] }
 0x3c6   : > { %12075 = vmatpush.bf16.msrb.mxu1 %v14663_v47  ;;  %v14878_v47 = vld [vmem:[%s19746_s27 + $0x830] sm:$0xf]  ;;  %v15079_v51 = vor.u32 %v17461_v42, %v15078_v41  ;;  %v17421_v35 = vld [vmem:[%s19746_s27 + $0x884] sm:$0xf0] }
 0x3c7   : > { %12089 = vmatpush.bf16.msrb.mxu2 %v14727_v48  ;;  %v17411_v48 = vld [vmem:[%s19746_s27 + $0x834] sm:$0xf0]  ;;  %v17453_v41 = vld [vmem:[%s19746_s27 + $0x984] sm:$0xf0]  ;;  %v15166_v42 = vld [vmem:[%s19746_s27 + $0xa70] sm:$0xf] }
 0x3c8   : > { %12103 = vmatpush.bf16.msrb.mxu3 %v14791_v53  ;;  %12062 = vmatmul.bf16.vlgmr.msrb.gmra.mxu0 %v20148_v1  ;;  %v15006_v53 = vld [vmem:[%s19746_s27 + $0x930] sm:$0xf]  ;;  %v14879_v57 = vor.u32 %v17411_v48, %v14878_v47  ;;  %v17499_v47 = vld [vmem:[%s19746_s27 + $0xaf4] sm:$0xf0] }
 0x3c9   : > { %12110 = vmatpush.bf16.msra.mxu0 %v14911_v54  ;;  %12076 = vmatmul.bf16.vlgmr.msrb.gmra.mxu1 %v20155_v10  ;;  %v17443_v54 = vld [vmem:[%s19746_s27 + $0x934] sm:$0xf0]  ;;  %v15294_v48 = vld [vmem:[%s19746_s27 + $0xb70] sm:$0xf] }
 0x3ca   : > { %12124 = vmatpush.bf16.msra.mxu1 %v14975_v58  ;;  %12090 = vmatmul.bf16.vlgmr.msrb.gmra.mxu2 %v20153_v7  ;;  %v14943_v58 = vor.u32 %v17427_v52, %v14942_v49  ;;  %v17515_v49 = vld [vmem:[%s19746_s27 + $0xb74] sm:$0xf0] }
 0x3cb   : > { %12138 = vmatpush.bf16.msra.mxu2 %v15039_v59  ;;  %12104 = vmatmul.bf16.vlgmr.msrb.gmra.mxu3 %v20159_v15  ;;  %v15007_v59 = vor.u32 %v17443_v54, %v15006_v53  ;;  %v17531_v53 = vld [vmem:[%s19746_s27 + $0xbf4] sm:$0xf0]  ;;  %v13694_v54 = vld [vmem:[%s22137_s0 + $0x40] sm:$0xf]  ;;  %v15295_v11 = vor.u32 %v17515_v49, %v15294_v48  ;;  %v15142_v49 = vld [vmem:[%s19746_s27 + $0xa40] sm:$0xf] }
 0x3cc   : > { %12152 = vmatpush.bf16.msra.mxu3 %v15103_v63  ;;  %v15071_v63 = vor.u32 %v17459_v56, %v15070_v55  ;;  %v17131_v55 = vld [vmem:[%s22137_s0 + $0x104] sm:$0xf0]  ;;  %v14919_v56 = vor.u32 %v17421_v35, %v14918_v33 }
 0x3cd   : > { %12111 = vmatpush.bf16.msra.mxu0 %v14903_v17  ;;  %v14871_v17 = vor.u32 %v17409_v61, %v14870_v60  ;;  %v17106_v60 = vld [vmem:[%s22137_s0 + $0x44] sm:$0xf]  ;;  %v15047_v61 = vor.u32 %v17453_v41, %v15046_v40  ;;  %v17479_v35 = vld [vmem:[%s19746_s27 + $0xa54] sm:$0xf0]  ;;  %v15278_v40 = vld [vmem:[%s19746_s27 + $0xb50] sm:$0xf] }
 0x3ce   : > { %12125 = vmatpush.bf16.msra.mxu1 %v14967_v18  ;;  %v14862_v18 = vld [vmem:[%s19746_s27 + $0x810] sm:$0xf]  ;;  %v17511_v41 = vld [vmem:[%s19746_s27 + $0xb54] sm:$0xf0] }
 0x3cf   : > { %12139 = vmatpush.bf16.msra.mxu2 %v15031_v19  ;;  %v14935_v19 = vor.u32 %v17425_v2, %v14934_v62  ;;  %v17107_v2 = vld [vmem:[%s22137_s0 + $0x4c] sm:$0xf]  ;;  %v15279_v48 = vor.u32 %v17511_v41, %v15278_v40  ;;  %v15318_v41 = vld [vmem:[%s19746_s27 + $0xba0] sm:$0xf] }
 0x3d0   : > { %12153 = vmatpush.bf16.msra.mxu3 %v15095_v23  ;;  %v17423_v23 = vld [vmem:[%s19746_s27 + $0x894] sm:$0xf0] }
 0x3d1   : > { %12112 = vmatpush.bf16.msra.mxu0 %v14895_v30  ;;  %v14854_v30 = vld [vmem:[%s19746_s27 + $0x800] sm:$0xf]  ;;  %v14927_v38 = vor.u32 %v17423_v23, %v14926_v22  ;;  %v17513_v23 = vld [vmem:[%s19746_s27 + $0xb64] sm:$0xf0] }
 0x3d2   : > { %12126 = vmatpush.bf16.msra.mxu1 %v14959_v31  ;;  %v17405_v31 = vld [vmem:[%s19746_s27 + $0x804] sm:$0xf0]  ;;  %v15286_v22 = vld [vmem:[%s19746_s27 + $0xb60] sm:$0xf] }
 0x3d3   : > { %12140 = vmatpush.bf16.msra.mxu2 %v15023_v32  ;;  %v14863_v32 = vor.u32 %v17407_v21, %v14862_v18  ;;  %v14855_v52 = vor.u32 %v17405_v31, %v14854_v30  ;;  %v15222_v18 = vld [vmem:[%s19746_s27 + $0xae0] sm:$0xf]  ;;  %v17497_v21 = vld [vmem:[%s19746_s27 + $0xae4] sm:$0xf0]  ;;  %v15150_v31 = vld [vmem:[%s19746_s27 + $0xa50] sm:$0xf]  ;;  %v15287_v33 = vor.u32 %v17513_v23, %v15286_v22 }
 0x3d4   : > { %12154 = vmatpush.bf16.msra.mxu3 %v15087_v37  ;;  %v17437_v37 = vld [vmem:[%s19746_s27 + $0x904] sm:$0xf0] }
 0x3d5   : > { %12113 = vmatpush.bf16.msra.mxu0 %v14887_v44  ;;  %v15055_v44 = vor.u32 %v17455_v29, %v15054_v28  ;;  %v17529_v28 = vld [vmem:[%s19746_s27 + $0xbe4] sm:$0xf0]  ;;  %v20259_v29 = vor.u32 %v17107_v2, %v13704_v3  ;;  %v15134_v2 = vld [vmem:[%s19746_s27 + $0xa30] sm:$0xf]  ;;  %v17475_v3 = vld [vmem:[%s19746_s27 + $0xa34] sm:$0xf0] }
 0x3d6   : > { %12127 = vmatpush.bf16.msra.mxu1 %v14951_v45  ;;  %v17483_v45 = vld [vmem:[%s19746_s27 + $0xa74] sm:$0xf0]  ;;  %v15135_v23 = vor.u32 %v17475_v3, %v15134_v2  ;;  %v15174_v2 = vld [vmem:[%s19746_s27 + $0xa80] sm:$0xf]  ;;  %v17485_v3 = vld [vmem:[%s19746_s27 + $0xa84] sm:$0xf0] }
 0x3d7   : > { %12141 = vmatpush.bf16.msra.mxu2 %v15015_v46  ;;  %v15230_v46 = vld [vmem:[%s19746_s27 + $0xaf0] sm:$0xf]  ;;  %v15167_v62 = vor.u32 %v17483_v45, %v15166_v42  ;;  %v15151_v45 = vor.u32 %v17479_v35, %v15150_v31  ;;  %v15126_v31 = vld [vmem:[%s19746_s27 + $0xa20] sm:$0xf] }
 0x3d8   : > { %12155 = vmatpush.bf16.msra.mxu3 %v15079_v51  ;;  %v15358_v51 = vld [vmem:[%s19746_s27 + $0xbf0] sm:$0xf]  ;;  %v15231_v6 = vor.u32 %v17499_v47, %v15230_v46 }
 0x3d9   : > { %12114 = vmatpush.bf16.msra.mxu0 %v14879_v57  ;;  %v14983_v57 = vor.u32 %v17437_v37, %v14982_v36  ;;  %v15214_v36 = vld [vmem:[%s19746_s27 + $0xad0] sm:$0xf] }
 0x3da   : > { %12128 = vmatpush.bf16.msra.mxu1 %v14943_v58  ;;  %v13702_v58 = vld [vmem:[%s22137_s0 + $0x48] sm:$0xf]  ;;  %v20265_v37 = vld [vmem:[%s19739_s15] sm:$0x3] }
 0x3db   : > { %12142 = vmatpush.bf16.msra.mxu2 %v15007_v59  ;;  %v17132_v59 = vld [vmem:[%s22137_s0 + $0x10c] sm:$0xf0]  ;;  %v15342_v42 = vld [vmem:[%s19746_s27 + $0xbd0] sm:$0xf]  ;;  %v22143_v46 = vperm.slane %v20265_v37, 0 }
 0x3dc   : > { %12156 = vmatpush.bf16.msra.mxu3 %v15071_v63  ;;  %v13696_v63 = vld [vmem:[%s22137_s0 + $0x108] sm:$0xf0] }
 0x3dd   : > { %12115 = vmatpush.bf16.msra.mxu0 %v14871_v17  ;;  %v17481_v17 = vld [vmem:[%s19746_s27 + $0xa64] sm:$0xf0]  ;;  %v20255_v25 = vor.u32 %v17106_v60, %v13696_v63 }
 0x3de   : > { %12129 = vmatpush.bf16.msra.mxu1 %v14935_v19  ;;  %v15359_v19 = vor.u32 %v17531_v53, %v15358_v51  ;;  %v15159_v30 = vor.u32 %v17481_v17, %v15158_v14  ;;  %v17477_v51 = vld [vmem:[%s19746_s27 + $0xa44] sm:$0xf0]  ;;  %v17491_v14 = vld [vmem:[%s19746_s27 + $0xab4] sm:$0xf0]  ;;  %v15262_v17 = vld [vmem:[%s19746_s27 + $0xb30] sm:$0xf] }
 0x3df   : > { %12143 = vmatpush.bf16.msra.mxu2 %v14999_v20  ;;  %v20248_v20 = vor.u32 %v17131_v55, %v13694_v54  ;;  %v17493_v54 = vld [vmem:[%s19746_s27 + $0xac4] sm:$0xf0]  ;;  %v15270_v55 = vld [vmem:[%s19746_s27 + $0xb40] sm:$0xf]  ;;  %v15143_v60 = vor.u32 %v17477_v51, %v15142_v49  ;;  %v17471_v51 = vld [vmem:[%s19746_s27 + $0xa14] sm:$0xf0] }
 0x3e0   : > { %12157 = vmatpush.bf16.msra.mxu3 %v15063_v24  ;;  %v20253_v24 = vor.u32 %v17132_v59, %v13702_v58  ;;  %v17525_v58 = vld [vmem:[%s19746_s27 + $0xbc4] sm:$0xf0] }
 0x3e1   : > { %12116 = vmatpush.bf16.msra.mxu0 %v14863_v32  ;;  %v15223_v32 = vor.u32 %v17497_v21, %v15222_v18  ;;  %v17507_v18 = vld [vmem:[%s19746_s27 + $0xb34] sm:$0xf0] }
 0x3e2   : > { %12130 = vmatpush.bf16.msra.mxu1 %v14927_v38  ;;  %v15351_v38 = vor.u32 %v17529_v28, %v15350_v26  ;;  %v17523_v21 = vld [vmem:[%s19746_s27 + $0xbb4] sm:$0xf0] }
 0x3e3   : > { %12144 = vmatpush.bf16.msra.mxu2 %v14991_v39  ;;  %v17495_v39 = vld [vmem:[%s19746_s27 + $0xad4] sm:$0xf0] }
 0x3e4   : > { %12158 = vmatpush.bf16.msra.mxu3 %v15055_v44  ;;  %v17527_v44 = vld [vmem:[%s19746_s27 + $0xbd4] sm:$0xf0]  ;;  %v15215_v47 = vor.u32 %v17495_v39, %v15214_v36  ;;  %v17489_v36 = vld [vmem:[%s19746_s27 + $0xaa4] sm:$0xf0] }
 0x3e5   : > { %12117 = vmatpush.bf16.msra.mxu0 %v14855_v52  ;;  %v15206_v52 = vld [vmem:[%s19746_s27 + $0xac0] sm:$0xf]  ;;  %v15343_v53 = vor.u32 %v17527_v44, %v15342_v42  ;;  %v11895_v59 = vpop.f32.mrf.mxu0  ;;  %v17505_v39 = vld [vmem:[%s19746_s27 + $0xb24] sm:$0xf0] }
 0x3e6   : > { %12131 = vmatpush.bf16.msra.mxu1 %v14919_v56  ;;  %v17509_v56 = vld [vmem:[%s19746_s27 + $0xb44] sm:$0xf0]  ;;  %v11909_v22 = vpop.f32.mrf.mxu1 }
 0x3e7   : > { %12145 = vmatpush.bf16.msra.mxu2 %v14983_v57  ;;  %v15334_v57 = vld [vmem:[%s19746_s27 + $0xbc0] sm:$0xf]  ;;  %v15271_v63 = vor.u32 %v17509_v56, %v15270_v55  ;;  %v17521_v42 = vld [vmem:[%s19746_s27 + $0xba4] sm:$0xf0]  ;;  %v15246_v55 = vld [vmem:[%s19746_s27 + $0xb10] sm:$0xf] }
 0x3e8   : > { %12159 = vmatpush.bf16.msra.mxu3 %v15047_v61  ;;  %12118 = vmatmul.bf16.vlgmr.msra.gmra.mxu0 %v20248_v20  ;;  %v11896_v61 = vadd.f32 %v11895_v59, %v22143_v46  ;;  %v17503_v56 = vld [vmem:[%s19746_s27 + $0xb14] sm:$0xf0]  ;;  %v16062_v46 = vld [vmem:[%s19746_s27 + $0x1170] sm:$0xf] }
 0x3e9   : > { %12166 = vmatpush.bf16.msrb.mxu0 %v15167_v62  ;;  %12132 = vmatmul.bf16.vlgmr.msra.gmra.mxu1 %v20255_v25  ;;  %v15207_v62 = vor.u32 %v17493_v54, %v15206_v52  ;;  %v15182_v52 = vld [vmem:[%s19746_s27 + $0xa90] sm:$0xf]  ;;  %v15319_v54 = vor.u32 %v17521_v42, %v15318_v41  ;;  %v17519_v59 = vld [vmem:[%s19746_s27 + $0xb94] sm:$0xf0]  ;;  %v13718_v41 = vld [vmem:[%s22137_s0 + $0x58] sm:$0xf] }
 0x3ea   : > { %12180 = vmatpush.bf16.msrb.mxu1 %v15231_v6  ;;  %12146 = vmatmul.bf16.vlgmr.msra.gmra.mxu2 %v20253_v24  ;;  %v15198_v6 = vld [vmem:[%s19746_s27 + $0xab0] sm:$0xf]  ;;  %v11910_v26 = vadd.f32 %v11909_v22, %v11896_v61  ;;  %v17469_v61 = vld [vmem:[%s19746_s27 + $0xa04] sm:$0xf0] }
 0x3eb   : > { %12194 = vmatpush.bf16.msrb.mxu2 %v15295_v11  ;;  %12160 = vmatmul.bf16.vlgmr.msra.gmra.mxu3 %v20259_v29  ;;  %v15335_v11 = vor.u32 %v17525_v58, %v15334_v57  ;;  %v15199_v28 = vor.u32 %v17491_v14, %v15198_v6  ;;  %v15310_v57 = vld [vmem:[%s19746_s27 + $0xb90] sm:$0xf]  ;;  %v15238_v6 = vld [vmem:[%s19746_s27 + $0xb00] sm:$0xf] }
 0x3ec   : > { %12208 = vmatpush.bf16.msrb.mxu3 %v15359_v19  ;;  %v15326_v19 = vld [vmem:[%s19746_s27 + $0xbb0] sm:$0xf]  ;;  %v15311_v22 = vor.u32 %v17519_v59, %v15310_v57  ;;  %v15478_v57 = vld [vmem:[%s19746_s27 + $0xce0] sm:$0xf] }
 0x3ed   : > { %12167 = vmatpush.bf16.msrb.mxu0 %v15159_v30  ;;  %v15263_v30 = vor.u32 %v17507_v18, %v15262_v17  ;;  %v15327_v35 = vor.u32 %v17523_v21, %v15326_v19  ;;  %v11923_v40 = vpop.f32.mrf.mxu2  ;;  %v15247_v17 = vor.u32 %v17503_v56, %v15246_v55  ;;  %v15302_v18 = vld [vmem:[%s19746_s27 + $0xb80] sm:$0xf]  ;;  %v17517_v19 = vld [vmem:[%s19746_s27 + $0xb84] sm:$0xf0]  ;;  %v15422_v21 = vld [vmem:[%s19746_s27 + $0xc70] sm:$0xf] }
 0x3ee   : > { %12181 = vmatpush.bf16.msrb.mxu1 %v15223_v32  ;;  %v17473_v32 = vld [vmem:[%s19746_s27 + $0xa24] sm:$0xf0]  ;;  %v11924_v44 = vadd.f32 %v11923_v40, %v11910_v26  ;;  %v11937_v58 = vpop.f32.mrf.mxu3  ;;  %v15486_v26 = vld [vmem:[%s19746_s27 + $0xcf0] sm:$0xf]  ;;  %v15414_v55 = vld [vmem:[%s19746_s27 + $0xc60] sm:$0xf] }
 0x3ef   : > { %12195 = vmatpush.bf16.msrb.mxu2 %v15287_v33  ;;  %v15190_v33 = vld [vmem:[%s19746_s27 + $0xaa0] sm:$0xf]  ;;  %v17134_v42 = vld [vmem:[%s22137_s0 + $0x11c] sm:$0xf0]  ;;  %v17545_v56 = vld [vmem:[%s19746_s27 + $0xc64] sm:$0xf0] }
 0x3f0   : > { %12209 = vmatpush.bf16.msrb.mxu3 %v15351_v38  ;;  %v15254_v38 = vld [vmem:[%s19746_s27 + $0xb20] sm:$0xf] }
 0x3f1   : > { %12168 = vmatpush.bf16.msrb.mxu0 %v15151_v45  ;;  %v15127_v45 = vor.u32 %v17473_v32, %v15126_v31  ;;  %v15255_v49 = vor.u32 %v17505_v39, %v15254_v38  ;;  %v17579_v31 = vld [vmem:[%s19746_s27 + $0xd74] sm:$0xf0]  ;;  %v15614_v32 = vld [vmem:[%s19746_s27 + $0xdf0] sm:$0xf]  ;;  %v17133_v38 = vld [vmem:[%s22137_s0 + $0x114] sm:$0xf0]  ;;  %v15175_v39 = vor.u32 %v17485_v3, %v15174_v2  ;;  %v20363_v2 = vor.u32 %v17134_v42, %v13718_v41 }
 0x3f2   : > { %12182 = vmatpush.bf16.msrb.mxu1 %v15215_v47  ;;  %v15118_v47 = vld [vmem:[%s19746_s27 + $0xa10] sm:$0xf]  ;;  %v15398_v41 = vld [vmem:[%s19746_s27 + $0xc40] sm:$0xf]  ;;  %v17541_v42 = vld [vmem:[%s19746_s27 + $0xc44] sm:$0xf0] }
 0x3f3   : > { %12196 = vmatpush.bf16.msrb.mxu2 %v15279_v48  ;;  %v15191_v48 = vor.u32 %v17489_v36, %v15190_v33  ;;  %v13710_v36 = vld [vmem:[%s22137_s0 + $0x50] sm:$0xf] }
 0x3f4   : > { %12210 = vmatpush.bf16.msrb.mxu3 %v15343_v53  ;;  %v17487_v53 = vld [vmem:[%s19746_s27 + $0xa94] sm:$0xf0]  ;;  %v20358_v59 = vor.u32 %v17133_v38, %v13710_v36 }
 0x3f5   : > { %12169 = vmatpush.bf16.msrb.mxu0 %v15143_v60  ;;  %v15110_v60 = vld [vmem:[%s19746_s27 + $0xa00] sm:$0xf]  ;;  %v15183_v14 = vor.u32 %v17487_v53, %v15182_v52  ;;  %v20385_v38 = vpop.f32.mrf.mxu2 }
 0x3f6   : > { %12183 = vmatpush.bf16.msrb.mxu1 %v15207_v62  ;;  %v20313_v62 = vadd.f32 %v11937_v58, %v11924_v44  ;;  %v15111_v33 = vor.u32 %v17469_v61, %v15110_v60  ;;  %v17108_v44 = vld [vmem:[%s22137_s0 + $0x54] sm:$0xf]  ;;  %v17561_v60 = vld [vmem:[%s19746_s27 + $0xce4] sm:$0xf0]  ;;  %v15542_v61 = vld [vmem:[%s19746_s27 + $0xd60] sm:$0xf] }
 0x3f7   : > { %12197 = vmatpush.bf16.msrb.mxu2 %v15271_v63  ;;  %v15119_v63 = vor.u32 %v17471_v51, %v15118_v47  ;;  %v13720_v51 = vld [vmem:[%s22137_s0 + $0x120] sm:$0xf0]  ;;  %22165 = vst [vmem:[#allocation4_spill] sm:$0xff] %v20385_v38  ;;  %v17787_v38 = vld [vmem:[%s19746_s27 + $0x13f4] sm:$0xf0] }
 0x3f8   : > { %12211 = vmatpush.bf16.msrb.mxu3 %v15335_v11  ;;  %v17501_v11 = vld [vmem:[%s19746_s27 + $0xb04] sm:$0xf0] }
 0x3f9   : > { %12170 = vmatpush.bf16.msrb.mxu0 %v15135_v23  ;;  %v17547_v23 = vld [vmem:[%s19746_s27 + $0xc74] sm:$0xf0]  ;;  %v15239_v40 = vor.u32 %v17501_v11, %v15238_v6  ;;  %v15606_v6 = vld [vmem:[%s19746_s27 + $0xde0] sm:$0xf]  ;;  %v17593_v11 = vld [vmem:[%s19746_s27 + $0xde4] sm:$0xf0] }
 0x3fa   : > { %12184 = vmatpush.bf16.msrb.mxu1 %v15199_v28  ;;  %v17563_v28 = vld [vmem:[%s19746_s27 + $0xcf4] sm:$0xf0]  ;;  %v15423_v47 = vor.u32 %v17547_v23, %v15422_v21 }
 0x3fb   : > { %12198 = vmatpush.bf16.msrb.mxu2 %v15263_v30  ;;  %v15550_v30 = vld [vmem:[%s19746_s27 + $0xd70] sm:$0xf]  ;;  %v15487_v52 = vor.u32 %v17563_v28, %v15486_v26  ;;  %v17543_v23 = vld [vmem:[%s19746_s27 + $0xc54] sm:$0xf0]  ;;  %v15607_v28 = vor.u32 %v17593_v11, %v15606_v6 }
 0x3fc   : > { %12212 = vmatpush.bf16.msrb.mxu3 %v15327_v35  ;;  %v17595_v35 = vld [vmem:[%s19746_s27 + $0xdf4] sm:$0xf0]  ;;  %v15551_v53 = vor.u32 %v17579_v31, %v15550_v30  ;;  %v15470_v26 = vld [vmem:[%s19746_s27 + $0xcd0] sm:$0xf] }
 0x3fd   : > { %12171 = vmatpush.bf16.msrb.mxu0 %v15127_v45  ;;  %v15303_v45 = vor.u32 %v17517_v19, %v15302_v18  ;;  %v15615_v58 = vor.u32 %v17595_v35, %v15614_v32  ;;  %v15415_v18 = vor.u32 %v17545_v56, %v15414_v55  ;;  %v15479_v19 = vor.u32 %v17561_v60, %v15478_v57  ;;  %v17559_v30 = vld [vmem:[%s19746_s27 + $0xcd4] sm:$0xf0]  ;;  %v15534_v31 = vld [vmem:[%s19746_s27 + $0xd50] sm:$0xf]  ;;  %v17589_v55 = vld [vmem:[%s19746_s27 + $0xdc4] sm:$0xf0] }
 0x3fe   : > { %12185 = vmatpush.bf16.msrb.mxu1 %v15191_v48  ;;  %v13712_v48 = vld [vmem:[%s22137_s0 + $0x118] sm:$0xf0]  ;;  %v17575_v32 = vld [vmem:[%s19746_s27 + $0xd54] sm:$0xf0]  ;;  %v15399_v57 = vor.u32 %v17541_v42, %v15398_v41  ;;  %v15454_v11 = vld [vmem:[%s19746_s27 + $0xcb0] sm:$0xf] }
 0x3ff   : > { %12199 = vmatpush.bf16.msrb.mxu2 %v15255_v49  ;;  %v17109_v49 = vld [vmem:[%s22137_s0 + $0x5c] sm:$0xf]  ;;  %v20365_v3 = vor.u32 %v17108_v44, %v13712_v48  ;;  %v17591_v35 = vld [vmem:[%s19746_s27 + $0xdd4] sm:$0xf0]  ;;  %v15462_v44 = vld [vmem:[%s19746_s27 + $0xcc0] sm:$0xf] }
 0x400   : > { %12213 = vmatpush.bf16.msrb.mxu3 %v15319_v54  ;;  %v20353_v54 = vpop.f32.mrf.mxu0  ;;  %v17557_v48 = vld [vmem:[%s19746_s27 + $0xcc4] sm:$0xf0]  ;;  %v17539_v6 = vld [vmem:[%s19746_s27 + $0xc34] sm:$0xf0]  ;;  %v15510_v41 = vld [vmem:[%s19746_s27 + $0xd20] sm:$0xf] }
 0x401   : > { %12172 = vmatpush.bf16.msrb.mxu0 %v15119_v63  ;;  %v17577_v63 = vld [vmem:[%s19746_s27 + $0xd64] sm:$0xf0] }
 0x402   : > { %12186 = vmatpush.bf16.msrb.mxu1 %v15183_v14  ;;  %v20369_v14 = vpop.f32.mrf.mxu1  ;;  %v15543_v21 = vor.u32 %v17577_v63, %v15542_v61  ;;  %v15390_v63 = vld [vmem:[%s19746_s27 + $0xc30] sm:$0xf]  ;;  %v17569_v42 = vld [vmem:[%s19746_s27 + $0xd24] sm:$0xf0] }
 0x403   : > { %12200 = vmatpush.bf16.msrb.mxu2 %v15247_v17  ;;  %v20371_v17 = vor.u32 %v17109_v49, %v13720_v51  ;;  %v15526_v49 = vld [vmem:[%s19746_s27 + $0xd40] sm:$0xf]  ;;  %v17573_v51 = vld [vmem:[%s19746_s27 + $0xd44] sm:$0xf0] }
 0x404   : > { %12214 = vmatpush.bf16.msrb.mxu3 %v15311_v22  ;;  %v15406_v22 = vld [vmem:[%s19746_s27 + $0xc50] sm:$0xf]  ;;  %v15527_v60 = vor.u32 %v17573_v51, %v15526_v49 }
 0x405   : > { %12173 = vmatpush.bf16.msrb.mxu0 %v15111_v33  ;;  %v15598_v33 = vld [vmem:[%s19746_s27 + $0xdd0] sm:$0xf]  ;;  %v15407_v36 = vor.u32 %v17543_v23, %v15406_v22 }
 0x406   : > { %12187 = vmatpush.bf16.msrb.mxu1 %v15175_v39  ;;  %v15471_v39 = vor.u32 %v17559_v30, %v15470_v26  ;;  %v15518_v22 = vld [vmem:[%s19746_s27 + $0xd30] sm:$0xf]  ;;  %v17587_v26 = vld [vmem:[%s19746_s27 + $0xdb4] sm:$0xf0] }
 0x407   : > { %12201 = vmatpush.bf16.msrb.mxu2 %v15239_v40  ;;  %v15535_v40 = vor.u32 %v17575_v32, %v15534_v31  ;;  %v15582_v23 = vld [vmem:[%s19746_s27 + $0xdb0] sm:$0xf]  ;;  %v15382_v32 = vld [vmem:[%s19746_s27 + $0xc20] sm:$0xf] }
 0x408   : > { %12215 = vmatpush.bf16.msrb.mxu3 %v15303_v45  ;;  %12174 = vmatmul.bf16.vlgmr.msrb.gmra.mxu0 %v20358_v59  ;;  %v15599_v45 = vor.u32 %v17591_v35, %v15598_v33  ;;  %v17537_v33 = vld [vmem:[%s19746_s27 + $0xc24] sm:$0xf0]  ;;  %v15446_v35 = vld [vmem:[%s19746_s27 + $0xca0] sm:$0xf] }
 0x409   : > { %12222 = vmatpush.bf16.msra.mxu0 %v15423_v47  ;;  %12188 = vmatmul.bf16.vlgmr.msrb.gmra.mxu1 %v20365_v3  ;;  %v20390_v47 = vpop.f32.mrf.mxu3  ;;  %v15383_v51 = vor.u32 %v17537_v33, %v15382_v32  ;;  %v15558_v32 = vld [vmem:[%s19746_s27 + $0xd80] sm:$0xf]  ;;  %v17581_v33 = vld [vmem:[%s19746_s27 + $0xd84] sm:$0xf0] }
 0x40a   : > { %12236 = vmatpush.bf16.msra.mxu1 %v15487_v52  ;;  %12202 = vmatmul.bf16.vlgmr.msrb.gmra.mxu2 %v20363_v2  ;;  %22166 = vst [vmem:[#allocation5_spill] sm:$0xff] %v20390_v47  ;;  %v11951_v52 = vpop.f32.mrf.mxu0  ;;  %v11965_v61 = vpop.f32.mrf.mxu1 }
 0x40b   : > { %12250 = vmatpush.bf16.msra.mxu2 %v15551_v53  ;;  %12216 = vmatmul.bf16.vlgmr.msrb.gmra.mxu3 %v20371_v17  ;;  %v15590_v53 = vld [vmem:[%s19746_s27 + $0xdc0] sm:$0xf]  ;;  %v11952_v56 = vadd.f32 %v11951_v52, %v20313_v62  ;;  %v17571_v62 = vld [vmem:[%s19746_s27 + $0xd34] sm:$0xf0]  ;;  %v15374_v52 = vld [vmem:[%s19746_s27 + $0xc10] sm:$0xf] }
 0x40c   : > { %12264 = vmatpush.bf16.msra.mxu3 %v15615_v58  ;;  %v15463_v58 = vor.u32 %v17557_v48, %v15462_v44  ;;  %v15519_v31 = vor.u32 %v17571_v62, %v15518_v22  ;;  %v17585_v48 = vld [vmem:[%s19746_s27 + $0xda4] sm:$0xf0]  ;;  %v15430_v62 = vld [vmem:[%s19746_s27 + $0xc80] sm:$0xf] }
 0x40d   : > { %12223 = vmatpush.bf16.msra.mxu0 %v15415_v18  ;;  %v15591_v18 = vor.u32 %v17589_v55, %v15590_v53 }
 0x40e   : > { %12237 = vmatpush.bf16.msra.mxu1 %v15479_v19  ;;  %v11966_v19 = vadd.f32 %v11965_v61, %v11952_v56  ;;  %v15511_v56 = vor.u32 %v17569_v42, %v15510_v41  ;;  %v17627_v41 = vld [vmem:[%s19746_s27 + $0xef4] sm:$0xf0]  ;;  %v15806_v42 = vld [vmem:[%s19746_s27 + $0xf70] sm:$0xf] }
 0x40f   : > { %12251 = vmatpush.bf16.msra.mxu2 %v15543_v21  ;;  %v17555_v21 = vld [vmem:[%s19746_s27 + $0xcb4] sm:$0xf0] }
 0x410   : > { %12265 = vmatpush.bf16.msra.mxu3 %v15607_v28  ;;  %v15391_v28 = vor.u32 %v17539_v6, %v15390_v63  ;;  %v15455_v30 = vor.u32 %v17555_v21, %v15454_v11  ;;  %v15502_v63 = vld [vmem:[%s19746_s27 + $0xd10] sm:$0xf]  ;;  %v17567_v6 = vld [vmem:[%s19746_s27 + $0xd14] sm:$0xf0]  ;;  %v17533_v21 = vld [vmem:[%s19746_s27 + $0xc04] sm:$0xf0] }
 0x411   : > { %12224 = vmatpush.bf16.msra.mxu0 %v15407_v36  ;;  %v15583_v36 = vor.u32 %v17587_v26, %v15582_v23  ;;  %v11993_v49 = vpop.f32.mrf.mxu3  ;;  %v15566_v11 = vld [vmem:[%s19746_s27 + $0xd90] sm:$0xf]  ;;  %v17549_v23 = vld [vmem:[%s19746_s27 + $0xc84] sm:$0xf0]  ;;  %v15494_v26 = vld [vmem:[%s19746_s27 + $0xd00] sm:$0xf] }
 0x412   : > { %12238 = vmatpush.bf16.msra.mxu1 %v15471_v39  ;;  %v11979_v39 = vpop.f32.mrf.mxu2 }
 0x413   : > { %12252 = vmatpush.bf16.msra.mxu2 %v15535_v40  ;;  %v17553_v40 = vld [vmem:[%s19746_s27 + $0xca4] sm:$0xf0]  ;;  %v11980_v44 = vadd.f32 %v11979_v39, %v11966_v19  ;;  %v15366_v19 = vld [vmem:[%s19746_s27 + $0xc00] sm:$0xf]  ;;  %v17611_v39 = vld [vmem:[%s19746_s27 + $0xe74] sm:$0xf0] }
 0x414   : > { %12266 = vmatpush.bf16.msra.mxu3 %v15599_v45  ;;  %v15574_v45 = vld [vmem:[%s19746_s27 + $0xda0] sm:$0xf]  ;;  %v15447_v55 = vor.u32 %v17553_v40, %v15446_v35  ;;  %v15678_v35 = vld [vmem:[%s19746_s27 + $0xe70] sm:$0xf] }
 0x415   : > { %12225 = vmatpush.bf16.msra.mxu0 %v15399_v57  ;;  %v20415_v53 = vadd.f32 %v11993_v49, %v11980_v44  ;;  %v17535_v57 = vld [vmem:[%s19746_s27 + $0xc14] sm:$0xf0]  ;;  %v15575_v61 = vor.u32 %v17585_v48, %v15574_v45  ;;  %v15742_v40 = vld [vmem:[%s19746_s27 + $0xef0] sm:$0xf]  ;;  %v15367_v48 = vor.u32 %v17533_v21, %v15366_v19 }
 0x416   : > { %12239 = vmatpush.bf16.msra.mxu1 %v15463_v58  ;;  %v15438_v58 = vld [vmem:[%s19746_s27 + $0xc90] sm:$0xf]  ;;  %v15375_v22 = vor.u32 %v17535_v57, %v15374_v52  ;;  %v17643_v44 = vld [vmem:[%s19746_s27 + $0xf74] sm:$0xf0]  ;;  %v15743_v19 = vor.u32 %v17627_v41, %v15742_v40  ;;  %v17657_v40 = vld [vmem:[%s19746_s27 + $0xfe4] sm:$0xf0]  ;;  %v20480_v41 = vpop.f32.mrf.mxu1 }
 0x417   : > { %12253 = vmatpush.bf16.msra.mxu2 %v15527_v60  ;;  %v17551_v60 = vld [vmem:[%s19746_s27 + $0xc94] sm:$0xf0]  ;;  %v15870_v45 = vld [vmem:[%s19746_s27 + $0xff0] sm:$0xf]  ;;  %v15807_v21 = vor.u32 %v17643_v44, %v15806_v42  ;;  %22168 = vst [vmem:[#allocation7_spill] sm:$0xff] %v20480_v41 }
 0x418   : > { %12267 = vmatpush.bf16.msra.mxu3 %v15591_v18  ;;  %v17583_v18 = vld [vmem:[%s19746_s27 + $0xd94] sm:$0xf0] }
 0x419   : > { %12226 = vmatpush.bf16.msra.mxu0 %v15391_v28  ;;  %v17565_v28 = vld [vmem:[%s19746_s27 + $0xd04] sm:$0xf0]  ;;  %v17659_v49 = vld [vmem:[%s19746_s27 + $0xff4] sm:$0xf0] }
 0x41a   : > { %12240 = vmatpush.bf16.msra.mxu1 %v15455_v30  ;;  %v15439_v30 = vor.u32 %v17551_v60, %v15438_v58  ;;  %v17135_v52 = vld [vmem:[%s22137_s0 + $0x124] sm:$0xf0]  ;;  %v17136_v58 = vld [vmem:[%s22137_s0 + $0x12c] sm:$0xf0]  ;;  %v17110_v60 = vld [vmem:[%s22137_s0 + $0x64] sm:$0xf] }
 0x41b   : > { %12254 = vmatpush.bf16.msra.mxu2 %v15519_v31  ;;  %v15503_v31 = vor.u32 %v17567_v6, %v15502_v63  ;;  %v13734_v57 = vld [vmem:[%s22137_s0 + $0x68] sm:$0xf]  ;;  %v15679_v63 = vor.u32 %v17611_v39, %v15678_v35  ;;  %v13728_v6 = vld [vmem:[%s22137_s0 + $0x128] sm:$0xf0]  ;;  %v15862_v39 = vld [vmem:[%s19746_s27 + $0xfe0] sm:$0xf] }
 0x41c   : > { %12268 = vmatpush.bf16.msra.mxu3 %v15583_v36  ;;  %v15567_v36 = vor.u32 %v17583_v18, %v15566_v11  ;;  %v17111_v11 = vld [vmem:[%s22137_s0 + $0x6c] sm:$0xf]  ;;  %v13736_v18 = vld [vmem:[%s22137_s0 + $0x130] sm:$0xf0]  ;;  %v20474_v35 = vor.u32 %v17136_v58, %v13734_v57  ;;  %v15790_v57 = vld [vmem:[%s19746_s27 + $0xf50] sm:$0xf] }
 0x41d   : > { %12227 = vmatpush.bf16.msra.mxu0 %v15383_v51  ;;  %v13726_v51 = vld [vmem:[%s22137_s0 + $0x60] sm:$0xf]  ;;  %v20482_v42 = vor.u32 %v17111_v11, %v13736_v18  ;;  %v17639_v58 = vld [vmem:[%s19746_s27 + $0xf54] sm:$0xf0]  ;;  %v15654_v18 = vld [vmem:[%s19746_s27 + $0xe40] sm:$0xf] }
 0x41e   : > { %12241 = vmatpush.bf16.msra.mxu1 %v15447_v55  ;;  %v15431_v55 = vor.u32 %v17549_v23, %v15430_v62  ;;  %v17609_v62 = vld [vmem:[%s19746_s27 + $0xe64] sm:$0xf0]  ;;  %v15734_v23 = vld [vmem:[%s19746_s27 + $0xee0] sm:$0xf]  ;;  %v15791_v11 = vor.u32 %v17639_v58, %v15790_v57 }
 0x41f   : > { %12255 = vmatpush.bf16.msra.mxu2 %v15511_v56  ;;  %v15495_v56 = vor.u32 %v17565_v28, %v15494_v26  ;;  %v15871_v26 = vor.u32 %v17659_v49, %v15870_v45  ;;  %v20467_v28 = vor.u32 %v17135_v52, %v13726_v51  ;;  %v15662_v49 = vld [vmem:[%s19746_s27 + $0xe50] sm:$0xf]  ;;  %v17607_v51 = vld [vmem:[%s19746_s27 + $0xe54] sm:$0xf0] }
 0x420   : > { %12269 = vmatpush.bf16.msra.mxu3 %v15575_v61  ;;  %v15559_v61 = vor.u32 %v17581_v33, %v15558_v32  ;;  %v17641_v32 = vld [vmem:[%s19746_s27 + $0xf64] sm:$0xf0]  ;;  %v20472_v33 = vpop.f32.mrf.mxu0  ;;  %v15726_v52 = vld [vmem:[%s19746_s27 + $0xed0] sm:$0xf] }
 0x421   : > { %12228 = vmatpush.bf16.msra.mxu0 %v15375_v22  ;;  %v15670_v22 = vld [vmem:[%s19746_s27 + $0xe60] sm:$0xf]  ;;  %22167 = vst [vmem:[#allocation6_spill] sm:$0xff] %v20472_v33  ;;  %v17723_v33 = vld [vmem:[%s19746_s27 + $0x11f4] sm:$0xf0] }
 0x422   : > { %12242 = vmatpush.bf16.msra.mxu1 %v15439_v30  ;;  %v17625_v30 = vld [vmem:[%s19746_s27 + $0xee4] sm:$0xf0]  ;;  %v15671_v44 = vor.u32 %v17609_v62, %v15670_v22  ;;  %v20499_v22 = vpop.f32.mrf.mxu2 }
 0x423   : > { %12256 = vmatpush.bf16.msra.mxu2 %v15503_v31  ;;  %v15798_v31 = vld [vmem:[%s19746_s27 + $0xf60] sm:$0xf]  ;;  %v15735_v45 = vor.u32 %v17625_v30, %v15734_v23  ;;  %22169 = vst [vmem:[#allocation8_spill] sm:$0xff] %v20499_v22  ;;  %v17621_v23 = vld [vmem:[%s19746_s27 + $0xec4] sm:$0xf0] }
 0x424   : > { %12270 = vmatpush.bf16.msra.mxu3 %v15567_v36  ;;  %v20476_v36 = vor.u32 %v17110_v60, %v13728_v6  ;;  %v15854_v60 = vld [vmem:[%s19746_s27 + $0xfd0] sm:$0xf]  ;;  %v17637_v30 = vld [vmem:[%s19746_s27 + $0xf44] sm:$0xf0] }
 0x425   : > { %12229 = vmatpush.bf16.msra.mxu0 %v15367_v48  ;;  %v15799_v48 = vor.u32 %v17641_v32, %v15798_v31  ;;  %v20504_v31 = vpop.f32.mrf.mxu3  ;;  %v16126_v22 = vld [vmem:[%s19746_s27 + $0x11f0] sm:$0xf] }
 0x426   : > { %12243 = vmatpush.bf16.msra.mxu1 %v15431_v55  ;;  %v15863_v55 = vor.u32 %v17657_v40, %v15862_v39  ;;  %22170 = vst [vmem:[#allocation9_spill] sm:$0xff] %v20504_v31  ;;  %v15846_v39 = vld [vmem:[%s19746_s27 + $0xfc0] sm:$0xf]  ;;  %v17653_v40 = vld [vmem:[%s19746_s27 + $0xfc4] sm:$0xf0] }
 0x427   : > { %12257 = vmatpush.bf16.msra.mxu2 %v15495_v56  ;;  %v17623_v56 = vld [vmem:[%s19746_s27 + $0xed4] sm:$0xf0]  ;;  %v15847_v57 = vor.u32 %v17653_v40, %v15846_v39  ;;  %v15766_v39 = vld [vmem:[%s19746_s27 + $0xf20] sm:$0xf]  ;;  %v17633_v40 = vld [vmem:[%s19746_s27 + $0xf24] sm:$0xf0] }
 0x428   : > { %12271 = vmatpush.bf16.msra.mxu3 %v15559_v61  ;;  %12230 = vmatmul.bf16.vlgmr.msra.gmra.mxu0 %v20467_v28  ;;  %v17655_v61 = vld [vmem:[%s19746_s27 + $0xfd4] sm:$0xf0]  ;;  %v15727_v6 = vor.u32 %v17623_v56, %v15726_v52  ;;  %v12007_v32 = vpop.f32.mrf.mxu0  ;;  %v15646_v52 = vld [vmem:[%s19746_s27 + $0xe30] sm:$0xf] }
 0x429   : > { %12278 = vmatpush.bf16.msrb.mxu0 %v15679_v63  ;;  %12244 = vmatmul.bf16.vlgmr.msra.gmra.mxu1 %v20476_v36  ;;  %v15663_v63 = vor.u32 %v17607_v51, %v15662_v49  ;;  %v15855_v62 = vor.u32 %v17655_v61, %v15854_v60  ;;  %v15710_v56 = vld [vmem:[%s19746_s27 + $0xeb0] sm:$0xf]  ;;  %v17619_v60 = vld [vmem:[%s19746_s27 + $0xeb4] sm:$0xf0] }
 0x42a   : > { %12292 = vmatpush.bf16.msrb.mxu1 %v15743_v19  ;;  %12258 = vmatmul.bf16.vlgmr.msra.gmra.mxu2 %v20474_v35  ;;  %v17605_v19 = vld [vmem:[%s19746_s27 + $0xe44] sm:$0xf0]  ;;  %v15774_v61 = vld [vmem:[%s19746_s27 + $0xf30] sm:$0xf]  ;;  %v17707_v31 = vld [vmem:[%s19746_s27 + $0x1174] sm:$0xf0] }
 0x42b   : > { %12306 = vmatpush.bf16.msrb.mxu2 %v15807_v21  ;;  %12272 = vmatmul.bf16.vlgmr.msra.gmra.mxu3 %v20482_v42  ;;  %v15718_v21 = vld [vmem:[%s19746_s27 + $0xec0] sm:$0xf] }
 0x42c   : > { %12320 = vmatpush.bf16.msrb.mxu3 %v15871_v26  ;;  %v15782_v26 = vld [vmem:[%s19746_s27 + $0xf40] sm:$0xf]  ;;  %v15719_v49 = vor.u32 %v17621_v23, %v15718_v21 }
 0x42d   : > { %12279 = vmatpush.bf16.msrb.mxu0 %v15671_v44  ;;  %v12008_v44 = vadd.f32 %v12007_v32, %v20415_v53  ;;  %v15783_v51 = vor.u32 %v17637_v30, %v15782_v26  ;;  %v17635_v53 = vld [vmem:[%s19746_s27 + $0xf34] sm:$0xf0]  ;;  %v15638_v21 = vld [vmem:[%s19746_s27 + $0xe20] sm:$0xf]  ;;  %v12035_v30 = vpop.f32.mrf.mxu2  ;;  %v17617_v32 = vld [vmem:[%s19746_s27 + $0xea4] sm:$0xf0] }
 0x42e   : > { %12293 = vmatpush.bf16.msrb.mxu1 %v15735_v45  ;;  %v15655_v45 = vor.u32 %v17605_v19, %v15654_v18  ;;  %v15711_v18 = vor.u32 %v17619_v60, %v15710_v56  ;;  %v15775_v19 = vor.u32 %v17635_v53, %v15774_v61  ;;  %v15702_v23 = vld [vmem:[%s19746_s27 + $0xea0] sm:$0xf]  ;;  %v15694_v60 = vld [vmem:[%s19746_s27 + $0xe90] sm:$0xf]  ;;  %v17615_v61 = vld [vmem:[%s19746_s27 + $0xe94] sm:$0xf0] }
 0x42f   : > { %12307 = vmatpush.bf16.msrb.mxu2 %v15799_v48  ;;  %v12021_v48 = vpop.f32.mrf.mxu1  ;;  %v15703_v56 = vor.u32 %v17617_v32, %v15702_v23  ;;  %v15686_v23 = vld [vmem:[%s19746_s27 + $0xe80] sm:$0xf]  ;;  %v17629_v32 = vld [vmem:[%s19746_s27 + $0xf04] sm:$0xf0] }
 0x430   : > { %12321 = vmatpush.bf16.msrb.mxu3 %v15863_v55  ;;  %v17603_v55 = vld [vmem:[%s19746_s27 + $0xe34] sm:$0xf0]  ;;  %v12022_v58 = vadd.f32 %v12021_v48, %v12008_v44  ;;  %v15830_v48 = vld [vmem:[%s19746_s27 + $0xfa0] sm:$0xf] }
 0x431   : > { %12280 = vmatpush.bf16.msrb.mxu0 %v15663_v63  ;;  %v15838_v63 = vld [vmem:[%s19746_s27 + $0xfb0] sm:$0xf] }
 0x432   : > { %12294 = vmatpush.bf16.msrb.mxu1 %v15727_v6  ;;  %v17651_v6 = vld [vmem:[%s19746_s27 + $0xfb4] sm:$0xf0]  ;;  %v12036_v44 = vadd.f32 %v12035_v30, %v12022_v58  ;;  %v17613_v30 = vld [vmem:[%s19746_s27 + $0xe84] sm:$0xf0] }
 0x433   : > { %12308 = vmatpush.bf16.msrb.mxu2 %v15791_v11  ;;  %v15647_v11 = vor.u32 %v17603_v55, %v15646_v52  ;;  %v15839_v26 = vor.u32 %v17651_v6, %v15838_v63  ;;  %v15630_v52 = vld [vmem:[%s19746_s27 + $0xe10] sm:$0xf]  ;;  %v17599_v58 = vld [vmem:[%s19746_s27 + $0xe14] sm:$0xf0] }
 0x434   : > { %12322 = vmatpush.bf16.msrb.mxu3 %v15855_v62  ;;  %v17601_v62 = vld [vmem:[%s19746_s27 + $0xe24] sm:$0xf0]  ;;  %v15758_v63 = vld [vmem:[%s19746_s27 + $0xf10] sm:$0xf]  ;;  %v17631_v6 = vld [vmem:[%s19746_s27 + $0xf14] sm:$0xf0] }
 0x435   : > { %12281 = vmatpush.bf16.msrb.mxu0 %v15655_v45  ;;  %v12049_v45 = vpop.f32.mrf.mxu3 }
 0x436   : > { %12295 = vmatpush.bf16.msrb.mxu1 %v15719_v49  ;;  %v17649_v49 = vld [vmem:[%s19746_s27 + $0xfa4] sm:$0xf0]  ;;  %v20526_v55 = vadd.f32 %v12049_v45, %v12036_v44  ;;  %v15814_v44 = vld [vmem:[%s19746_s27 + $0xf80] sm:$0xf] }
 0x437   : > { %12309 = vmatpush.bf16.msrb.mxu2 %v15783_v51  ;;  %v15639_v51 = vor.u32 %v17601_v62, %v15638_v21  ;;  %v15831_v53 = vor.u32 %v17649_v49, %v15830_v48  ;;  %v17597_v21 = vld [vmem:[%s19746_s27 + $0xe04] sm:$0xf0]  ;;  %v15631_v62 = vor.u32 %v17599_v58, %v15630_v52  ;;  %v15934_v48 = vld [vmem:[%s19746_s27 + $0x1070] sm:$0xf]  ;;  %v17691_v58 = vld [vmem:[%s19746_s27 + $0x10f4] sm:$0xf0] }
 0x438   : > { %12323 = vmatpush.bf16.msrb.mxu3 %v15847_v57  ;;  %v15767_v57 = vor.u32 %v17633_v40, %v15766_v39  ;;  %v15695_v39 = vor.u32 %v17615_v61, %v15694_v60  ;;  %v15759_v40 = vor.u32 %v17631_v6, %v15758_v63  ;;  %v17645_v45 = vld [vmem:[%s19746_s27 + $0xf84] sm:$0xf0]  ;;  %v15998_v52 = vld [vmem:[%s19746_s27 + $0x10f0] sm:$0xf]  ;;  %v15687_v60 = vor.u32 %v17613_v30, %v15686_v23  ;;  %v17112_v6 = vld [vmem:[%s22137_s0 + $0x74] sm:$0xf] }
 0x439   : > { %12282 = vmatpush.bf16.msrb.mxu0 %v15647_v11  ;;  %v15822_v11 = vld [vmem:[%s19746_s27 + $0xf90] sm:$0xf]  ;;  %v15999_v23 = vor.u32 %v17691_v58, %v15998_v52  ;;  %v16063_v30 = vor.u32 %v17707_v31, %v16062_v46  ;;  %v16118_v31 = vld [vmem:[%s19746_s27 + $0x11e0] sm:$0xf]  ;;  %v17721_v58 = vld [vmem:[%s19746_s27 + $0x11e4] sm:$0xf0] }
 0x43a   : > { %12296 = vmatpush.bf16.msrb.mxu1 %v15711_v18  ;;  %v17647_v18 = vld [vmem:[%s19746_s27 + $0xf94] sm:$0xf0]  ;;  %v17138_v63 = vld [vmem:[%s22137_s0 + $0x13c] sm:$0xf0] }
 0x43b   : > { %12310 = vmatpush.bf16.msrb.mxu2 %v15775_v19  ;;  %v15622_v19 = vld [vmem:[%s19746_s27 + $0xe00] sm:$0xf]  ;;  %v15823_v49 = vor.u32 %v17647_v18, %v15822_v11  ;;  %v15815_v11 = vor.u32 %v17645_v45, %v15814_v44  ;;  %v17689_v45 = vld [vmem:[%s19746_s27 + $0x10e4] sm:$0xf0] }
 0x43c   : > { %12324 = vmatpush.bf16.msrb.mxu3 %v15839_v26  ;;  %v15750_v26 = vld [vmem:[%s19746_s27 + $0xf00] sm:$0xf]  ;;  %v15623_v41 = vor.u32 %v17597_v21, %v15622_v19  ;;  %v13744_v19 = vld [vmem:[%s22137_s0 + $0x138] sm:$0xf0] }
 0x43d   : > { %12283 = vmatpush.bf16.msrb.mxu0 %v15639_v51  ;;  %v17675_v51 = vld [vmem:[%s19746_s27 + $0x1074] sm:$0xf0]  ;;  %v15751_v61 = vor.u32 %v17629_v32, %v15750_v26  ;;  %v17113_v21 = vld [vmem:[%s22137_s0 + $0x7c] sm:$0xf]  ;;  %v15926_v26 = vld [vmem:[%s19746_s27 + $0x1060] sm:$0xf]  ;;  %v20587_v46 = vor.u32 %v17112_v6, %v13744_v19 }
 0x43e   : > { %12297 = vmatpush.bf16.msrb.mxu1 %v15703_v56  ;;  %v13742_v56 = vld [vmem:[%s22137_s0 + $0x70] sm:$0xf]  ;;  %v15935_v18 = vor.u32 %v17675_v51, %v15934_v48  ;;  %v17673_v32 = vld [vmem:[%s19746_s27 + $0x1064] sm:$0xf0]  ;;  %v20583_v51 = vpop.f32.mrf.mxu0  ;;  %v17687_v6 = vld [vmem:[%s19746_s27 + $0x10d4] sm:$0xf0] }
 0x43f   : > { %12311 = vmatpush.bf16.msrb.mxu2 %v15767_v57  ;;  %v17137_v57 = vld [vmem:[%s22137_s0 + $0x134] sm:$0xf0]  ;;  %v16054_v48 = vld [vmem:[%s19746_s27 + $0x1160] sm:$0xf]  ;;  %22171 = vst [vmem:[#allocation10_spill] sm:$0xff] %v20583_v51 }
 0x440   : > { %12325 = vmatpush.bf16.msrb.mxu3 %v15831_v53  ;;  %v13750_v53 = vld [vmem:[%s22137_s0 + $0x78] sm:$0xf]  ;;  %v20578_v44 = vor.u32 %v17137_v57, %v13742_v56  ;;  %v16110_v19 = vld [vmem:[%s19746_s27 + $0x11d0] sm:$0xf] }
 0x441   : > { %12284 = vmatpush.bf16.msrb.mxu0 %v15631_v62  ;;  %v13752_v62 = vld [vmem:[%s22137_s0 + $0x140] sm:$0xf0]  ;;  %v20585_v52 = vor.u32 %v17138_v63, %v13750_v53  ;;  %v15982_v53 = vld [vmem:[%s19746_s27 + $0x10d0] sm:$0xf]  ;;  %v16119_v63 = vor.u32 %v17721_v58, %v16118_v31  ;;  %v17701_v31 = vld [vmem:[%s19746_s27 + $0x1144] sm:$0xf0]  ;;  %v20615_v58 = vpop.f32.mrf.mxu3 }
 0x442   : > { %12298 = vmatpush.bf16.msrb.mxu1 %v15695_v39  ;;  %v15990_v39 = vld [vmem:[%s19746_s27 + $0x10e0] sm:$0xf]  ;;  %22176 = vst [vmem:[#allocation15_spill] sm:$0xff] %v20615_v58  ;;  %v17683_v58 = vld [vmem:[%s19746_s27 + $0x10b4] sm:$0xf0] }
 0x443   : > { %12312 = vmatpush.bf16.msrb.mxu2 %v15759_v40  ;;  %v16127_v40 = vor.u32 %v17723_v33, %v16126_v22  ;;  %22172 = vst [vmem:[#allocation11_spill] sm:$0xff] %v20585_v52  ;;  %v20591_v33 = vpop.f32.mrf.mxu1  ;;  %v15927_v22 = vor.u32 %v17673_v32, %v15926_v26  ;;  %v15991_v56 = vor.u32 %v17689_v45, %v15990_v39  ;;  %v15910_v26 = vld [vmem:[%s19746_s27 + $0x1040] sm:$0xf]  ;;  %v17669_v32 = vld [vmem:[%s19746_s27 + $0x1044] sm:$0xf0] }
 0x444   : > { %12326 = vmatpush.bf16.msrb.mxu3 %v15823_v49  ;;  %v17705_v49 = vld [vmem:[%s19746_s27 + $0x1164] sm:$0xf0]  ;;  %22173 = vst [vmem:[#allocation12_spill] sm:$0xff] %v20591_v33  ;;  %v15974_v39 = vld [vmem:[%s19746_s27 + $0x10c0] sm:$0xf] }
 0x445   : > { %12285 = vmatpush.bf16.msrb.mxu0 %v15623_v41  ;;  %v20593_v41 = vor.u32 %v17113_v21, %v13752_v62  ;;  %v16055_v57 = vor.u32 %v17705_v49, %v16054_v48  ;;  %v17719_v21 = vld [vmem:[%s19746_s27 + $0x11d4] sm:$0xf0]  ;;  %v17685_v48 = vld [vmem:[%s19746_s27 + $0x10c4] sm:$0xf0]  ;;  %v16038_v49 = vld [vmem:[%s19746_s27 + $0x1140] sm:$0xf] }
 0x446   : > { %12299 = vmatpush.bf16.msrb.mxu1 %v15687_v60  ;;  %v15918_v60 = vld [vmem:[%s19746_s27 + $0x1050] sm:$0xf]  ;;  %v16111_v45 = vor.u32 %v17719_v21, %v16110_v19  ;;  %v17739_v33 = vld [vmem:[%s19746_s27 + $0x1274] sm:$0xf0] }
 0x447   : > { %12313 = vmatpush.bf16.msrb.mxu2 %v15751_v61  ;;  %22174 = vst [vmem:[#allocation13_spill] sm:$0xff] %v20593_v41  ;;  %v17671_v61 = vld [vmem:[%s19746_s27 + $0x1054] sm:$0xf0]  ;;  %v15966_v19 = vld [vmem:[%s19746_s27 + $0x10b0] sm:$0xf] }
 0x448   : > { %12327 = vmatpush.bf16.msrb.mxu3 %v15815_v11  ;;  %12286 = vmatmul.bf16.vlgmr.msrb.gmra.mxu0 %v20578_v44  ;;  %v16046_v11 = vld [vmem:[%s19746_s27 + $0x1150] sm:$0xf]  ;;  %v15919_v62 = vor.u32 %v17671_v61, %v15918_v60  ;;  %v15911_v61 = vor.u32 %v17669_v32, %v15910_v26  ;;  %v15967_v32 = vor.u32 %v17683_v58, %v15966_v19  ;;  %v17713_v58 = vld [vmem:[%s19746_s27 + $0x11a4] sm:$0xf0] }
 0x449   : > { %12334 = vmatpush.bf16.msra.mxu0 %v15935_v18  ;;  %v17703_v18 = vld [vmem:[%s19746_s27 + $0x1154] sm:$0xf0]  ;;  %12300 = vmatmul.bf16.vlgmr.msrb.gmra.mxu1 %v20587_v46  ;;  %v16094_v26 = vld [vmem:[%s19746_s27 + $0x11b0] sm:$0xf] }
 0x44a   : > { %12348 = vmatpush.bf16.msra.mxu1 %v15999_v23  ;;  %12314 = vmatmul.bf16.vlgmr.msrb.gmra.mxu2 %v20585_v52  ;;  %v15983_v23 = vor.u32 %v17687_v6, %v15982_v53  ;;  %v16039_v6 = vor.u32 %v17701_v31, %v16038_v49  ;;  %v15958_v49 = vld [vmem:[%s19746_s27 + $0x10a0] sm:$0xf]  ;;  %v16318_v51 = vld [vmem:[%s19746_s27 + $0x1370] sm:$0xf] }
 0x44b   : > { %12362 = vmatpush.bf16.msra.mxu2 %v16063_v30  ;;  %12328 = vmatmul.bf16.vlgmr.msrb.gmra.mxu3 %v20593_v41  ;;  %v16047_v30 = vor.u32 %v17703_v18, %v16046_v11  ;;  %v12077_v53 = vpop.f32.mrf.mxu1  ;;  %v15902_v11 = vld [vmem:[%s19746_s27 + $0x1030] sm:$0xf]  ;;  %v17667_v18 = vld [vmem:[%s19746_s27 + $0x1034] sm:$0xf0] }
 0x44c   : > { %12376 = vmatpush.bf16.msra.mxu3 %v16127_v40  ;;  %v20610_v40 = vpop.f32.mrf.mxu2  ;;  %v17771_v41 = vld [vmem:[%s19746_s27 + $0x1374] sm:$0xf0]  ;;  %v16382_v52 = vld [vmem:[%s19746_s27 + $0x13f0] sm:$0xf] }
 0x44d   : > { %12335 = vmatpush.bf16.msra.mxu0 %v15927_v22  ;;  %22175 = vst [vmem:[#allocation14_spill] sm:$0xff] %v20610_v40  ;;  %v12063_v22 = vpop.f32.mrf.mxu0  ;;  %v16030_v40 = vld [vmem:[%s19746_s27 + $0x1130] sm:$0xf] }
 0x44e   : > { %12349 = vmatpush.bf16.msra.mxu1 %v15991_v56  ;;  %v16102_v56 = vld [vmem:[%s19746_s27 + $0x11c0] sm:$0xf]  ;;  %v12064_v60 = vadd.f32 %v12063_v22, %v20526_v55  ;;  %v17699_v55 = vld [vmem:[%s19746_s27 + $0x1134] sm:$0xf0] }
 0x44f   : > { %12363 = vmatpush.bf16.msra.mxu2 %v16055_v57  ;;  %v17717_v57 = vld [vmem:[%s19746_s27 + $0x11c4] sm:$0xf0] }
 0x450   : > { %12377 = vmatpush.bf16.msra.mxu3 %v16119_v63  ;;  %v15975_v63 = vor.u32 %v17685_v48, %v15974_v39  ;;  %v16103_v21 = vor.u32 %v17717_v57, %v16102_v56  ;;  %v16031_v39 = vor.u32 %v17699_v55, %v16030_v40  ;;  %v17665_v48 = vld [vmem:[%s19746_s27 + $0x1024] sm:$0xf0]  ;;  %v16022_v57 = vld [vmem:[%s19746_s27 + $0x1120] sm:$0xf]  ;;  %v17679_v55 = vld [vmem:[%s19746_s27 + $0x1094] sm:$0xf0] }
 0x451   : > { %12336 = vmatpush.bf16.msra.mxu0 %v15919_v62  ;;  %v12078_v62 = vadd.f32 %v12077_v53, %v12064_v60  ;;  %v17681_v56 = vld [vmem:[%s19746_s27 + $0x10a4] sm:$0xf0]  ;;  %v12105_v53 = vpop.f32.mrf.mxu3 }
 0x452   : > { %12350 = vmatpush.bf16.msra.mxu1 %v15983_v23  ;;  %v17715_v23 = vld [vmem:[%s19746_s27 + $0x11b4] sm:$0xf0]  ;;  %v17697_v60 = vld [vmem:[%s19746_s27 + $0x1124] sm:$0xf0] }
 0x453   : > { %12364 = vmatpush.bf16.msra.mxu2 %v16047_v30  ;;  %v15903_v30 = vor.u32 %v17667_v18, %v15902_v11  ;;  %v16095_v31 = vor.u32 %v17715_v23, %v16094_v26  ;;  %v15959_v18 = vor.u32 %v17681_v56, %v15958_v49  ;;  %v16023_v19 = vor.u32 %v17697_v60, %v16022_v57  ;;  %v16014_v23 = vld [vmem:[%s19746_s27 + $0x1110] sm:$0xf]  ;;  %v17677_v56 = vld [vmem:[%s19746_s27 + $0x1084] sm:$0xf0] }
 0x454   : > { %12378 = vmatpush.bf16.msra.mxu3 %v16111_v45  ;;  %v15894_v45 = vld [vmem:[%s19746_s27 + $0x1020] sm:$0xf]  ;;  %v12091_v22 = vpop.f32.mrf.mxu2  ;;  %v17693_v57 = vld [vmem:[%s19746_s27 + $0x1104] sm:$0xf0] }
 0x455   : > { %12337 = vmatpush.bf16.msra.mxu0 %v15911_v61  ;;  %v12092_v61 = vadd.f32 %v12091_v22, %v12078_v62  ;;  %v15895_v40 = vor.u32 %v17665_v48, %v15894_v45  ;;  %v15950_v62 = vld [vmem:[%s19746_s27 + $0x1090] sm:$0xf]  ;;  %v17661_v48 = vld [vmem:[%s19746_s27 + $0x1004] sm:$0xf0]  ;;  %v15942_v22 = vld [vmem:[%s19746_s27 + $0x1080] sm:$0xf] }
 0x456   : > { %12351 = vmatpush.bf16.msra.mxu1 %v15975_v63  ;;  %v16086_v63 = vld [vmem:[%s19746_s27 + $0x11a0] sm:$0xf]  ;;  %v16078_v45 = vld [vmem:[%s19746_s27 + $0x1190] sm:$0xf]  ;;  %v15951_v60 = vor.u32 %v17679_v55, %v15950_v62  ;;  %v15943_v62 = vor.u32 %v17677_v56, %v15942_v22  ;;  %v16319_v56 = vor.u32 %v17771_v41, %v16318_v51 }
 0x457   : > { %12365 = vmatpush.bf16.msra.mxu2 %v16039_v6  ;;  %v15886_v6 = vld [vmem:[%s19746_s27 + $0x1010] sm:$0xf]  ;;  %v20637_v11 = vadd.f32 %v12105_v53, %v12092_v61  ;;  %v16087_v26 = vor.u32 %v17713_v58, %v16086_v63  ;;  %v16070_v53 = vld [vmem:[%s19746_s27 + $0x1180] sm:$0xf]  ;;  %v17709_v63 = vld [vmem:[%s19746_s27 + $0x1184] sm:$0xf0] }
 0x458   : > { %12379 = vmatpush.bf16.msra.mxu3 %v16103_v21  ;;  %v17663_v21 = vld [vmem:[%s19746_s27 + $0x1014] sm:$0xf0]  ;;  %v16190_v58 = vld [vmem:[%s19746_s27 + $0x1270] sm:$0xf]  ;;  %v16374_v41 = vld [vmem:[%s19746_s27 + $0x13e0] sm:$0xf] }
 0x459   : > { %12338 = vmatpush.bf16.msra.mxu0 %v15903_v30  ;;  %v17695_v30 = vld [vmem:[%s19746_s27 + $0x1114] sm:$0xf0]  ;;  %v15887_v49 = vor.u32 %v17663_v21, %v15886_v6  ;;  %v16254_v6 = vld [vmem:[%s19746_s27 + $0x12f0] sm:$0xf] }
 0x45a   : > { %12352 = vmatpush.bf16.msra.mxu1 %v15967_v32  ;;  %v17711_v32 = vld [vmem:[%s19746_s27 + $0x1194] sm:$0xf0]  ;;  %v16015_v61 = vor.u32 %v17695_v30, %v16014_v23  ;;  %v17140_v23 = vld [vmem:[%s22137_s0 + $0x14c] sm:$0xf0]  ;;  %v17114_v30 = vld [vmem:[%s22137_s0 + $0x84] sm:$0xf] }
 0x45b   : > { %12366 = vmatpush.bf16.msra.mxu2 %v16031_v39  ;;  %v15878_v39 = vld [vmem:[%s19746_s27 + $0x1000] sm:$0xf]  ;;  %v17755_v21 = vld [vmem:[%s19746_s27 + $0x12f4] sm:$0xf0] }
 0x45c   : > { %12380 = vmatpush.bf16.msra.mxu3 %v16095_v31  ;;  %v16006_v31 = vld [vmem:[%s19746_s27 + $0x1100] sm:$0xf]  ;;  %v15879_v47 = vor.u32 %v17661_v48, %v15878_v39  ;;  %v13760_v39 = vld [vmem:[%s22137_s0 + $0x148] sm:$0xf0]  ;;  %v16255_v22 = vor.u32 %v17755_v21, %v16254_v6  ;;  %v17785_v21 = vld [vmem:[%s19746_s27 + $0x13e4] sm:$0xf0] }
 0x45d   : > { %12339 = vmatpush.bf16.msra.mxu0 %v15895_v40  ;;  %v16079_v40 = vor.u32 %v17711_v32, %v16078_v45  ;;  %v16007_v55 = vor.u32 %v17693_v57, %v16006_v31  ;;  %v16071_v45 = vor.u32 %v17709_v63, %v16070_v53  ;;  %v16191_v32 = vor.u32 %v17739_v33, %v16190_v58  ;;  %v17115_v48 = vld [vmem:[%s22137_s0 + $0x8c] sm:$0xf]  ;;  %v16182_v31 = vld [vmem:[%s19746_s27 + $0x1260] sm:$0xf]  ;;  %v17737_v57 = vld [vmem:[%s19746_s27 + $0x1264] sm:$0xf0] }
 0x45e   : > { %12353 = vmatpush.bf16.msra.mxu1 %v15959_v18  ;;  %v13758_v18 = vld [vmem:[%s22137_s0 + $0x80] sm:$0xf]  ;;  %v16383_v33 = vor.u32 %v17787_v38, %v16382_v52  ;;  %v17753_v53 = vld [vmem:[%s19746_s27 + $0x12e4] sm:$0xf0]  ;;  %v16310_v63 = vld [vmem:[%s19746_s27 + $0x1360] sm:$0xf]  ;;  %v20698_v51 = vor.u32 %v17114_v30, %v13760_v39  ;;  %v20702_v38 = vpop.f32.mrf.mxu1  ;;  %v16183_v52 = vor.u32 %v17737_v57, %v16182_v31 }
 0x45f   : > { %12367 = vmatpush.bf16.msra.mxu2 %v16023_v19  ;;  %v17139_v19 = vld [vmem:[%s22137_s0 + $0x144] sm:$0xf0]  ;;  %v17769_v58 = vld [vmem:[%s19746_s27 + $0x1364] sm:$0xf0]  ;;  %22181 = vst [vmem:[#allocation20_spill] sm:$0xff] %v20702_v38 }
 0x460   : > { %12381 = vmatpush.bf16.msra.mxu3 %v16087_v26  ;;  %v13766_v26 = vld [vmem:[%s22137_s0 + $0x88] sm:$0xf]  ;;  %22180 = vst [vmem:[#allocation19_spill] sm:$0xff] %v20698_v51  ;;  %v16366_v39 = vld [vmem:[%s19746_s27 + $0x13d0] sm:$0xf] }
 0x461   : > { %12340 = vmatpush.bf16.msra.mxu0 %v15887_v49  ;;  %v13768_v49 = vld [vmem:[%s22137_s0 + $0x150] sm:$0xf0]  ;;  %v20696_v6 = vor.u32 %v17140_v23, %v13766_v26  ;;  %v16238_v26 = vld [vmem:[%s19746_s27 + $0x12d0] sm:$0xf]  ;;  %v16375_v23 = vor.u32 %v17785_v21, %v16374_v41  ;;  %v17751_v30 = vld [vmem:[%s19746_s27 + $0x12d4] sm:$0xf0]  ;;  %v20726_v21 = vpop.f32.mrf.mxu3 }
 0x462   : > { %12354 = vmatpush.bf16.msra.mxu1 %v15951_v60  ;;  %v16246_v60 = vld [vmem:[%s19746_s27 + $0x12e0] sm:$0xf]  ;;  %v17733_v57 = vld [vmem:[%s19746_s27 + $0x1244] sm:$0xf0]  ;;  %22184 = vst [vmem:[#allocation23_spill] sm:$0xff] %v20726_v21 }
 0x463   : > { %12368 = vmatpush.bf16.msra.mxu2 %v16015_v61  ;;  %v20689_v61 = vor.u32 %v17139_v19, %v13758_v18  ;;  %22179 = vst [vmem:[#allocation18_spill] sm:$0xff] %v20696_v6  ;;  %v16247_v18 = vor.u32 %v17753_v53, %v16246_v60  ;;  %v16311_v19 = vor.u32 %v17769_v58, %v16310_v63  ;;  %v16166_v31 = vld [vmem:[%s19746_s27 + $0x1240] sm:$0xf]  ;;  %v17749_v63 = vld [vmem:[%s19746_s27 + $0x12c4] sm:$0xf0] }
 0x464   : > { %12382 = vmatpush.bf16.msra.mxu3 %v16079_v40  ;;  %v20694_v40 = vpop.f32.mrf.mxu0  ;;  %v16230_v60 = vld [vmem:[%s19746_s27 + $0x12c0] sm:$0xf]  ;;  %v17765_v41 = vld [vmem:[%s19746_s27 + $0x1344] sm:$0xf0]  ;;  %v17747_v21 = vld [vmem:[%s19746_s27 + $0x12b4] sm:$0xf0] }
 0x465   : > { %12341 = vmatpush.bf16.msra.mxu0 %v15879_v47  ;;  %22177 = vst [vmem:[#allocation16_spill] sm:$0xff] %v20689_v61  ;;  %v20704_v47 = vor.u32 %v17115_v48, %v13768_v49  ;;  %v17783_v48 = vld [vmem:[%s19746_s27 + $0x13d4] sm:$0xf0]  ;;  %v16294_v58 = vld [vmem:[%s19746_s27 + $0x1340] sm:$0xf] }
 0x466   : > { %22178 = vst [vmem:[#allocation17_spill] sm:$0xff] %v20694_v40  ;;  %12355 = vmatpush.bf16.msra.mxu1 %v15943_v62  ;;  %v16174_v62 = vld [vmem:[%s19746_s27 + $0x1250] sm:$0xf]  ;;  %v16367_v53 = vor.u32 %v17783_v48, %v16366_v39  ;;  %v17835_v38 = vld [vmem:[%s19746_s27 + $0x1574] sm:$0xf0] }
 0x467   : > { %12369 = vmatpush.bf16.msra.mxu2 %v16007_v55  ;;  %22182 = vst [vmem:[#allocation21_spill] sm:$0xff] %v20704_v47  ;;  %v17735_v55 = vld [vmem:[%s19746_s27 + $0x1254] sm:$0xf0]  ;;  %v16222_v39 = vld [vmem:[%s19746_s27 + $0x12b0] sm:$0xf] }
 0x468   : > { %12383 = vmatpush.bf16.msra.mxu3 %v16071_v45  ;;  %12342 = vmatmul.bf16.vlgmr.msra.gmra.mxu0 %v20689_v61  ;;  %v16302_v45 = vld [vmem:[%s19746_s27 + $0x1350] sm:$0xf]  ;;  %v16175_v49 = vor.u32 %v17735_v55, %v16174_v62  ;;  %v16167_v55 = vor.u32 %v17733_v57, %v16166_v31  ;;  %v16223_v57 = vor.u32 %v17747_v21, %v16222_v39  ;;  %v17777_v21 = vld [vmem:[%s19746_s27 + $0x13a4] sm:$0xf0]  ;;  %v17851_v61 = vld [vmem:[%s19746_s27 + $0x15f4] sm:$0xf0] }
 0x469   : > { %12390 = vmatpush.bf16.msrb.mxu0 %v16191_v32  ;;  %v17767_v32 = vld [vmem:[%s19746_s27 + $0x1354] sm:$0xf0]  ;;  %12356 = vmatmul.bf16.vlgmr.msra.gmra.mxu1 %v20698_v51  ;;  %v16350_v31 = vld [vmem:[%s19746_s27 + $0x13b0] sm:$0xf] }
 0x46a   : > { %12404 = vmatpush.bf16.msrb.mxu1 %v16255_v22  ;;  %12370 = vmatmul.bf16.vlgmr.msra.gmra.mxu2 %v20696_v6  ;;  %v16239_v22 = vor.u32 %v17751_v30, %v16238_v26  ;;  %v12133_v26 = vpop.f32.mrf.mxu1  ;;  %v16295_v30 = vor.u32 %v17765_v41, %v16294_v58  ;;  %v16214_v58 = vld [vmem:[%s19746_s27 + $0x12a0] sm:$0xf]  ;;  %v16574_v6 = vld [vmem:[%s19746_s27 + $0x1570] sm:$0xf] }
 0x46b   : > { %12418 = vmatpush.bf16.msrb.mxu2 %v16319_v56  ;;  %12384 = vmatmul.bf16.vlgmr.msra.gmra.mxu3 %v20704_v47  ;;  %v16303_v56 = vor.u32 %v17767_v32, %v16302_v45  ;;  %v16158_v45 = vld [vmem:[%s19746_s27 + $0x1230] sm:$0xf]  ;;  %v17731_v32 = vld [vmem:[%s19746_s27 + $0x1234] sm:$0xf0] }
 0x46c   : > { %12432 = vmatpush.bf16.msrb.mxu3 %v16383_v33  ;;  %v20721_v33 = vpop.f32.mrf.mxu2  ;;  %v17803_v47 = vld [vmem:[%s19746_s27 + $0x1474] sm:$0xf0]  ;;  %v16638_v40 = vld [vmem:[%s19746_s27 + $0x15f0] sm:$0xf] }
 0x46d   : > { %12391 = vmatpush.bf16.msrb.mxu0 %v16183_v52  ;;  %22183 = vst [vmem:[#allocation22_spill] sm:$0xff] %v20721_v33  ;;  %v12119_v52 = vpop.f32.mrf.mxu0  ;;  %v16286_v33 = vld [vmem:[%s19746_s27 + $0x1330] sm:$0xf] }
 0x46e   : > { %12405 = vmatpush.bf16.msrb.mxu1 %v16247_v18  ;;  %v16358_v18 = vld [vmem:[%s19746_s27 + $0x13c0] sm:$0xf]  ;;  %v12120_v62 = vadd.f32 %v12119_v52, %v20637_v11  ;;  %v17763_v11 = vld [vmem:[%s19746_s27 + $0x1334] sm:$0xf0] }
 0x46f   : > { %12419 = vmatpush.bf16.msrb.mxu2 %v16311_v19  ;;  %v17781_v19 = vld [vmem:[%s19746_s27 + $0x13c4] sm:$0xf0] }
 0x470   : > { %12433 = vmatpush.bf16.msrb.mxu3 %v16375_v23  ;;  %v16231_v23 = vor.u32 %v17749_v63, %v16230_v60  ;;  %v16359_v48 = vor.u32 %v17781_v19, %v16358_v18  ;;  %v16287_v60 = vor.u32 %v17763_v11, %v16286_v33  ;;  %v17729_v63 = vld [vmem:[%s19746_s27 + $0x1224] sm:$0xf0]  ;;  %v16278_v19 = vld [vmem:[%s19746_s27 + $0x1320] sm:$0xf]  ;;  %v17743_v11 = vld [vmem:[%s19746_s27 + $0x1294] sm:$0xf0] }
 0x471   : > { %12392 = vmatpush.bf16.msrb.mxu0 %v16175_v49  ;;  %v12134_v49 = vadd.f32 %v12133_v26, %v12120_v62  ;;  %v17745_v18 = vld [vmem:[%s19746_s27 + $0x12a4] sm:$0xf0]  ;;  %v12161_v26 = vpop.f32.mrf.mxu3 }
 0x472   : > { %12406 = vmatpush.bf16.msrb.mxu1 %v16239_v22  ;;  %v17779_v22 = vld [vmem:[%s19746_s27 + $0x13b4] sm:$0xf0]  ;;  %v17761_v62 = vld [vmem:[%s19746_s27 + $0x1324] sm:$0xf0] }
 0x473   : > { %12420 = vmatpush.bf16.msrb.mxu2 %v16303_v56  ;;  %v16159_v56 = vor.u32 %v17731_v32, %v16158_v45  ;;  %v16351_v41 = vor.u32 %v17779_v22, %v16350_v31  ;;  %v16215_v32 = vor.u32 %v17745_v18, %v16214_v58  ;;  %v16279_v39 = vor.u32 %v17761_v62, %v16278_v19  ;;  %v16270_v22 = vld [vmem:[%s19746_s27 + $0x1310] sm:$0xf]  ;;  %v17741_v18 = vld [vmem:[%s19746_s27 + $0x1284] sm:$0xf0] }
 0x474   : > { %12434 = vmatpush.bf16.msrb.mxu3 %v16367_v53  ;;  %v16150_v53 = vld [vmem:[%s19746_s27 + $0x1220] sm:$0xf]  ;;  %v12147_v52 = vpop.f32.mrf.mxu2  ;;  %v17757_v19 = vld [vmem:[%s19746_s27 + $0x1304] sm:$0xf0] }
 0x475   : > { %12393 = vmatpush.bf16.msrb.mxu0 %v16167_v55  ;;  %v12148_v55 = vadd.f32 %v12147_v52, %v12134_v49  ;;  %v16151_v33 = vor.u32 %v17729_v63, %v16150_v53  ;;  %v16206_v49 = vld [vmem:[%s19746_s27 + $0x1290] sm:$0xf]  ;;  %v17725_v63 = vld [vmem:[%s19746_s27 + $0x1204] sm:$0xf0]  ;;  %v16198_v52 = vld [vmem:[%s19746_s27 + $0x1280] sm:$0xf] }
 0x476   : > { %12407 = vmatpush.bf16.msrb.mxu1 %v16231_v23  ;;  %v16342_v23 = vld [vmem:[%s19746_s27 + $0x13a0] sm:$0xf]  ;;  %v16334_v53 = vld [vmem:[%s19746_s27 + $0x1390] sm:$0xf]  ;;  %v16207_v62 = vor.u32 %v17743_v11, %v16206_v49  ;;  %v16199_v49 = vor.u32 %v17741_v18, %v16198_v52  ;;  %v16575_v18 = vor.u32 %v17835_v38, %v16574_v6 }
 0x477   : > { %12421 = vmatpush.bf16.msrb.mxu2 %v16295_v30  ;;  %v16142_v30 = vld [vmem:[%s19746_s27 + $0x1210] sm:$0xf]  ;;  %v20748_v45 = vadd.f32 %v12161_v26, %v12148_v55  ;;  %v16343_v31 = vor.u32 %v17777_v21, %v16342_v23  ;;  %v16326_v26 = vld [vmem:[%s19746_s27 + $0x1380] sm:$0xf]  ;;  %v17773_v23 = vld [vmem:[%s19746_s27 + $0x1384] sm:$0xf0] }
 0x478   : > { %12435 = vmatpush.bf16.msrb.mxu3 %v16359_v48  ;;  %v17727_v48 = vld [vmem:[%s19746_s27 + $0x1214] sm:$0xf0]  ;;  %v16446_v21 = vld [vmem:[%s19746_s27 + $0x1470] sm:$0xf]  ;;  %v16630_v38 = vld [vmem:[%s19746_s27 + $0x15e0] sm:$0xf] }
 0x479   : > { %12394 = vmatpush.bf16.msrb.mxu0 %v16159_v56  ;;  %v17759_v56 = vld [vmem:[%s19746_s27 + $0x1314] sm:$0xf0]  ;;  %v16143_v58 = vor.u32 %v17727_v48, %v16142_v30  ;;  %v16510_v30 = vld [vmem:[%s19746_s27 + $0x14f0] sm:$0xf] }
 0x47a   : > { %12408 = vmatpush.bf16.msrb.mxu1 %v16223_v57  ;;  %v17775_v57 = vld [vmem:[%s19746_s27 + $0x1394] sm:$0xf0]  ;;  %v16271_v55 = vor.u32 %v17759_v56, %v16270_v22  ;;  %v17142_v22 = vld [vmem:[%s22137_s0 + $0x15c] sm:$0xf0]  ;;  %v17116_v56 = vld [vmem:[%s22137_s0 + $0x94] sm:$0xf] }
 0x47b   : > { %12422 = vmatpush.bf16.msrb.mxu2 %v16287_v60  ;;  %v16134_v60 = vld [vmem:[%s19746_s27 + $0x1200] sm:$0xf]  ;;  %v17819_v48 = vld [vmem:[%s19746_s27 + $0x14f4] sm:$0xf0] }
 0x47c   : > { %12436 = vmatpush.bf16.msrb.mxu3 %v16351_v41  ;;  %v16262_v41 = vld [vmem:[%s19746_s27 + $0x1300] sm:$0xf]  ;;  %v16135_v51 = vor.u32 %v17725_v63, %v16134_v60  ;;  %v13776_v60 = vld [vmem:[%s22137_s0 + $0x158] sm:$0xf0]  ;;  %v16511_v52 = vor.u32 %v17819_v48, %v16510_v30  ;;  %v17849_v48 = vld [vmem:[%s19746_s27 + $0x15e4] sm:$0xf0] }
 0x47d   : > { %12395 = vmatpush.bf16.msrb.mxu0 %v16151_v33  ;;  %v16335_v33 = vor.u32 %v17775_v57, %v16334_v53  ;;  %v16263_v11 = vor.u32 %v17757_v19, %v16262_v41  ;;  %v16327_v53 = vor.u32 %v17773_v23, %v16326_v26  ;;  %v16447_v57 = vor.u32 %v17803_v47, %v16446_v21  ;;  %v17117_v63 = vld [vmem:[%s22137_s0 + $0x9c] sm:$0xf]  ;;  %v16438_v41 = vld [vmem:[%s19746_s27 + $0x1460] sm:$0xf]  ;;  %v17801_v19 = vld [vmem:[%s19746_s27 + $0x1464] sm:$0xf0] }
 0x47e   : > { %12409 = vmatpush.bf16.msrb.mxu1 %v16215_v32  ;;  %v13774_v32 = vld [vmem:[%s22137_s0 + $0x90] sm:$0xf]  ;;  %v16639_v47 = vor.u32 %v17851_v61, %v16638_v40  ;;  %v17817_v26 = vld [vmem:[%s19746_s27 + $0x14e4] sm:$0xf0]  ;;  %v20809_v6 = vor.u32 %v17116_v56, %v13776_v60  ;;  %v20813_v61 = vpop.f32.mrf.mxu1  ;;  %v17815_v56 = vld [vmem:[%s19746_s27 + $0x14d4] sm:$0xf0] }
 0x47f   : > { %12423 = vmatpush.bf16.msrb.mxu2 %v16279_v39  ;;  %v17141_v39 = vld [vmem:[%s22137_s0 + $0x154] sm:$0xf0]  ;;  %v16566_v23 = vld [vmem:[%s19746_s27 + $0x1560] sm:$0xf]  ;;  %22189 = vst [vmem:[#allocation28_spill] sm:$0xff] %v20813_v61 }
 0x480   : > { %12437 = vmatpush.bf16.msrb.mxu3 %v16343_v31  ;;  %v13782_v31 = vld [vmem:[%s22137_s0 + $0x98] sm:$0xf]  ;;  %22188 = vst [vmem:[#allocation27_spill] sm:$0xff] %v20809_v6  ;;  %v16622_v60 = vld [vmem:[%s19746_s27 + $0x15d0] sm:$0xf] }
 0x481   : > { %12396 = vmatpush.bf16.msrb.mxu0 %v16143_v58  ;;  %v13784_v58 = vld [vmem:[%s22137_s0 + $0x160] sm:$0xf0]  ;;  %v17833_v21 = vld [vmem:[%s19746_s27 + $0x1564] sm:$0xf0]  ;;  %v20807_v30 = vor.u32 %v17142_v22, %v13782_v31  ;;  %v16494_v31 = vld [vmem:[%s19746_s27 + $0x14d0] sm:$0xf]  ;;  %v16631_v22 = vor.u32 %v17849_v48, %v16630_v38  ;;  %v20837_v48 = vpop.f32.mrf.mxu3 }
 0x482   : > { %12410 = vmatpush.bf16.msrb.mxu1 %v16207_v62  ;;  %v16502_v62 = vld [vmem:[%s19746_s27 + $0x14e0] sm:$0xf]  ;;  %v20815_v40 = vor.u32 %v17117_v63, %v13784_v58  ;;  %v17847_v63 = vld [vmem:[%s19746_s27 + $0x15d4] sm:$0xf0]  ;;  %v17829_v38 = vld [vmem:[%s19746_s27 + $0x1544] sm:$0xf0] }
 0x483   : > { %12424 = vmatpush.bf16.msrb.mxu2 %v16271_v55  ;;  %v20800_v55 = vor.u32 %v17141_v39, %v13774_v32  ;;  %22187 = vst [vmem:[#allocation26_spill] sm:$0xff] %v20807_v30  ;;  %v16503_v32 = vor.u32 %v17817_v26, %v16502_v62  ;;  %v16567_v39 = vor.u32 %v17833_v21, %v16566_v23  ;;  %v16486_v62 = vld [vmem:[%s19746_s27 + $0x14c0] sm:$0xf]  ;;  %v17813_v23 = vld [vmem:[%s19746_s27 + $0x14c4] sm:$0xf0] }
 0x484   : > { %12438 = vmatpush.bf16.msrb.mxu3 %v16335_v33  ;;  %v20805_v33 = vpop.f32.mrf.mxu0  ;;  %22190 = vst [vmem:[#allocation29_spill] sm:$0xff] %v20815_v40  ;;  %v16623_v26 = vor.u32 %v17847_v63, %v16622_v60  ;;  %v16550_v21 = vld [vmem:[%s19746_s27 + $0x1540] sm:$0xf]  ;;  %v16478_v60 = vld [vmem:[%s19746_s27 + $0x14b0] sm:$0xf] }
 0x485   : > { %12397 = vmatpush.bf16.msrb.mxu0 %v16135_v51  ;;  %22185 = vst [vmem:[#allocation24_spill] sm:$0xff] %v20800_v55  ;;  %v16439_v51 = vor.u32 %v17801_v19, %v16438_v41  ;;  %v16422_v41 = vld [vmem:[%s19746_s27 + $0x1440] sm:$0xf]  ;;  %v17797_v19 = vld [vmem:[%s19746_s27 + $0x1444] sm:$0xf0] }
 0x486   : > { %22186 = vst [vmem:[#allocation25_spill] sm:$0xff] %v20805_v33  ;;  %12411 = vmatpush.bf16.msrb.mxu1 %v16199_v49  ;;  %v16430_v49 = vld [vmem:[%s19746_s27 + $0x1450] sm:$0xf]  ;;  %v17899_v61 = vld [vmem:[%s19746_s27 + $0x1774] sm:$0xf0] }
 0x487   : > { %12425 = vmatpush.bf16.msrb.mxu2 %v16263_v11  ;;  %v17799_v11 = vld [vmem:[%s19746_s27 + $0x1454] sm:$0xf0]  ;;  %22192 = vst [vmem:[#allocation31_spill] sm:$0xff] %v20837_v48  ;;  %v16894_v33 = vld [vmem:[%s19746_s27 + $0x17f0] sm:$0xf] }
 0x488   : > { %12439 = vmatpush.bf16.msrb.mxu3 %v16327_v53  ;;  %12398 = vmatmul.bf16.vlgmr.msrb.gmra.mxu0 %v20800_v55  ;;  %v16558_v53 = vld [vmem:[%s19746_s27 + $0x1550] sm:$0xf]  ;;  %v16431_v58 = vor.u32 %v17799_v11, %v16430_v49  ;;  %v16423_v11 = vor.u32 %v17797_v19, %v16422_v41  ;;  %v17867_v48 = vld [vmem:[%s19746_s27 + $0x1674] sm:$0xf0] }
 0x489   : > { %12446 = vmatpush.bf16.msra.mxu0 %v16447_v57  ;;  %v17831_v57 = vld [vmem:[%s19746_s27 + $0x1554] sm:$0xf0]  ;;  %12412 = vmatmul.bf16.vlgmr.msrb.gmra.mxu1 %v20809_v6  ;;  %v16606_v41 = vld [vmem:[%s19746_s27 + $0x15b0] sm:$0xf] }
 0x48a   : > { %12460 = vmatpush.bf16.msra.mxu1 %v16511_v52  ;;  %12426 = vmatmul.bf16.vlgmr.msrb.gmra.mxu2 %v20807_v30  ;;  %v16495_v52 = vor.u32 %v17815_v56, %v16494_v31  ;;  %v12189_v31 = vpop.f32.mrf.mxu1  ;;  %v16551_v56 = vor.u32 %v17829_v38, %v16550_v21  ;;  %v16542_v30 = vld [vmem:[%s19746_s27 + $0x1530] sm:$0xf]  ;;  %v16470_v21 = vld [vmem:[%s19746_s27 + $0x14a0] sm:$0xf]  ;;  %v17915_v55 = vld [vmem:[%s19746_s27 + $0x17f4] sm:$0xf0] }
 0x48b   : > { %12474 = vmatpush.bf16.msra.mxu2 %v16575_v18  ;;  %12440 = vmatmul.bf16.vlgmr.msrb.gmra.mxu3 %v20815_v40  ;;  %v16559_v18 = vor.u32 %v17831_v57, %v16558_v53  ;;  %v16414_v53 = vld [vmem:[%s19746_s27 + $0x1430] sm:$0xf]  ;;  %v17795_v57 = vld [vmem:[%s19746_s27 + $0x1434] sm:$0xf0] }
 0x48c   : > { %12488 = vmatpush.bf16.msra.mxu3 %v16639_v47  ;;  %v20832_v47 = vpop.f32.mrf.mxu2  ;;  %v17811_v40 = vld [vmem:[%s19746_s27 + $0x14b4] sm:$0xf0] }
 0x48d   : > { %12447 = vmatpush.bf16.msra.mxu0 %v16439_v51  ;;  %22191 = vst [vmem:[#allocation30_spill] sm:$0xff] %v20832_v47  ;;  %v12175_v51 = vpop.f32.mrf.mxu0  ;;  %v16479_v19 = vor.u32 %v17811_v40, %v16478_v60  ;;  %v17841_v40 = vld [vmem:[%s19746_s27 + $0x15a4] sm:$0xf0]  ;;  %v16830_v47 = vld [vmem:[%s19746_s27 + $0x1770] sm:$0xf] }
 0x48e   : > { %12461 = vmatpush.bf16.msra.mxu1 %v16503_v32  ;;  %v16614_v32 = vld [vmem:[%s19746_s27 + $0x15c0] sm:$0xf]  ;;  %v12176_v49 = vadd.f32 %v12175_v51, %v20748_v45  ;;  %v17827_v45 = vld [vmem:[%s19746_s27 + $0x1534] sm:$0xf0] }
 0x48f   : > { %12475 = vmatpush.bf16.msra.mxu2 %v16567_v39  ;;  %v17845_v39 = vld [vmem:[%s19746_s27 + $0x15c4] sm:$0xf0] }
 0x490   : > { %12489 = vmatpush.bf16.msra.mxu3 %v16631_v22  ;;  %v16487_v22 = vor.u32 %v17813_v23, %v16486_v62  ;;  %v16615_v63 = vor.u32 %v17845_v39, %v16614_v32  ;;  %v16543_v62 = vor.u32 %v17827_v45, %v16542_v30  ;;  %v17793_v23 = vld [vmem:[%s19746_s27 + $0x1424] sm:$0xf0]  ;;  %v16534_v39 = vld [vmem:[%s19746_s27 + $0x1520] sm:$0xf]  ;;  %v17807_v45 = vld [vmem:[%s19746_s27 + $0x1494] sm:$0xf0] }
 0x491   : > { %12448 = vmatpush.bf16.msra.mxu0 %v16431_v58  ;;  %v12190_v58 = vadd.f32 %v12189_v31, %v12176_v49  ;;  %v17809_v32 = vld [vmem:[%s19746_s27 + $0x14a4] sm:$0xf0]  ;;  %v12217_v31 = vpop.f32.mrf.mxu3 }
 0x492   : > { %12462 = vmatpush.bf16.msra.mxu1 %v16495_v52  ;;  %v17843_v52 = vld [vmem:[%s19746_s27 + $0x15b4] sm:$0xf0]  ;;  %v17825_v49 = vld [vmem:[%s19746_s27 + $0x1524] sm:$0xf0] }
 0x493   : > { %12476 = vmatpush.bf16.msra.mxu2 %v16559_v18  ;;  %v16415_v18 = vor.u32 %v17795_v57, %v16414_v53  ;;  %v16607_v38 = vor.u32 %v17843_v52, %v16606_v41  ;;  %v16471_v57 = vor.u32 %v17809_v32, %v16470_v21  ;;  %v16535_v60 = vor.u32 %v17825_v49, %v16534_v39  ;;  %v16526_v52 = vld [vmem:[%s19746_s27 + $0x1510] sm:$0xf]  ;;  %v17805_v32 = vld [vmem:[%s19746_s27 + $0x1484] sm:$0xf0] }
 0x494   : > { %12490 = vmatpush.bf16.msra.mxu3 %v16623_v26  ;;  %v16406_v26 = vld [vmem:[%s19746_s27 + $0x1420] sm:$0xf]  ;;  %v12203_v51 = vpop.f32.mrf.mxu2  ;;  %v17821_v39 = vld [vmem:[%s19746_s27 + $0x1504] sm:$0xf0] }
 0x495   : > { %12449 = vmatpush.bf16.msra.mxu0 %v16423_v11  ;;  %v12204_v11 = vadd.f32 %v12203_v51, %v12190_v58  ;;  %v16407_v30 = vor.u32 %v17793_v23, %v16406_v26  ;;  %v16462_v58 = vld [vmem:[%s19746_s27 + $0x1490] sm:$0xf]  ;;  %v17789_v23 = vld [vmem:[%s19746_s27 + $0x1404] sm:$0xf0]  ;;  %v16454_v51 = vld [vmem:[%s19746_s27 + $0x1480] sm:$0xf] }
 0x496   : > { %12463 = vmatpush.bf16.msra.mxu1 %v16487_v22  ;;  %v16598_v22 = vld [vmem:[%s19746_s27 + $0x15a0] sm:$0xf]  ;;  %v16590_v26 = vld [vmem:[%s19746_s27 + $0x1590] sm:$0xf]  ;;  %v16463_v49 = vor.u32 %v17807_v45, %v16462_v58  ;;  %v16455_v58 = vor.u32 %v17805_v32, %v16454_v51  ;;  %v16831_v32 = vor.u32 %v17899_v61, %v16830_v47 }
 0x497   : > { %12477 = vmatpush.bf16.msra.mxu2 %v16551_v56  ;;  %v16398_v56 = vld [vmem:[%s19746_s27 + $0x1410] sm:$0xf]  ;;  %v20859_v53 = vadd.f32 %v12217_v31, %v12204_v11  ;;  %v16599_v41 = vor.u32 %v17841_v40, %v16598_v22  ;;  %v16582_v31 = vld [vmem:[%s19746_s27 + $0x1580] sm:$0xf]  ;;  %v17837_v22 = vld [vmem:[%s19746_s27 + $0x1584] sm:$0xf0] }
 0x498   : > { %12491 = vmatpush.bf16.msra.mxu3 %v16615_v63  ;;  %v17791_v63 = vld [vmem:[%s19746_s27 + $0x1414] sm:$0xf0]  ;;  %v16702_v40 = vld [vmem:[%s19746_s27 + $0x1670] sm:$0xf]  ;;  %v16886_v47 = vld [vmem:[%s19746_s27 + $0x17e0] sm:$0xf] }
 0x499   : > { %12450 = vmatpush.bf16.msra.mxu0 %v16415_v18  ;;  %v17823_v18 = vld [vmem:[%s19746_s27 + $0x1514] sm:$0xf0]  ;;  %v16399_v21 = vor.u32 %v17791_v63, %v16398_v56  ;;  %v16766_v56 = vld [vmem:[%s19746_s27 + $0x16f0] sm:$0xf] }
 0x49a   : > { %12464 = vmatpush.bf16.msra.mxu1 %v16479_v19  ;;  %v17839_v19 = vld [vmem:[%s19746_s27 + $0x1594] sm:$0xf0]  ;;  %v16527_v11 = vor.u32 %v17823_v18, %v16526_v52  ;;  %v17144_v52 = vld [vmem:[%s22137_s0 + $0x16c] sm:$0xf0]  ;;  %v17118_v18 = vld [vmem:[%s22137_s0 + $0xa4] sm:$0xf] }
 0x49b   : > { %12478 = vmatpush.bf16.msra.mxu2 %v16543_v62  ;;  %v16390_v62 = vld [vmem:[%s19746_s27 + $0x1400] sm:$0xf]  ;;  %v17883_v63 = vld [vmem:[%s19746_s27 + $0x16f4] sm:$0xf0] }
 0x49c   : > { %12492 = vmatpush.bf16.msra.mxu3 %v16607_v38  ;;  %v16518_v38 = vld [vmem:[%s19746_s27 + $0x1500] sm:$0xf]  ;;  %v16391_v6 = vor.u32 %v17789_v23, %v16390_v62  ;;  %v13792_v62 = vld [vmem:[%s22137_s0 + $0x168] sm:$0xf0]  ;;  %v16767_v51 = vor.u32 %v17883_v63, %v16766_v56  ;;  %v17913_v63 = vld [vmem:[%s19746_s27 + $0x17e4] sm:$0xf0] }
 0x49d   : > { %12451 = vmatpush.bf16.msra.mxu0 %v16407_v30  ;;  %v16591_v30 = vor.u32 %v17839_v19, %v16590_v26  ;;  %v16519_v45 = vor.u32 %v17821_v39, %v16518_v38  ;;  %v16583_v26 = vor.u32 %v17837_v22, %v16582_v31  ;;  %v16703_v19 = vor.u32 %v17867_v48, %v16702_v40  ;;  %v17119_v23 = vld [vmem:[%s22137_s0 + $0xac] sm:$0xf]  ;;  %v16694_v38 = vld [vmem:[%s19746_s27 + $0x1660] sm:$0xf]  ;;  %v17865_v39 = vld [vmem:[%s19746_s27 + $0x1664] sm:$0xf0] }
 0x49e   : > { %12465 = vmatpush.bf16.msra.mxu1 %v16471_v57  ;;  %v13790_v57 = vld [vmem:[%s22137_s0 + $0xa0] sm:$0xf]  ;;  %v16895_v48 = vor.u32 %v17915_v55, %v16894_v33  ;;  %v17881_v31 = vld [vmem:[%s19746_s27 + $0x16e4] sm:$0xf0]  ;;  %v16822_v22 = vld [vmem:[%s19746_s27 + $0x1760] sm:$0xf]  ;;  %v20920_v61 = vor.u32 %v17118_v18, %v13792_v62  ;;  %v20924_v55 = vpop.f32.mrf.mxu1 }
 0x49f   : > { %12479 = vmatpush.bf16.msra.mxu2 %v16535_v60  ;;  %v17143_v60 = vld [vmem:[%s22137_s0 + $0x164] sm:$0xf0]  ;;  %v17897_v40 = vld [vmem:[%s19746_s27 + $0x1764] sm:$0xf0]  ;;  %22197 = vst [vmem:[#allocation36_spill] sm:$0xff] %v20924_v55 }
 0x4a0   : > { %12493 = vmatpush.bf16.msra.mxu3 %v16599_v41  ;;  %v13798_v41 = vld [vmem:[%s22137_s0 + $0xa8] sm:$0xf]  ;;  %22196 = vst [vmem:[#allocation35_spill] sm:$0xff] %v20920_v61  ;;  %v16878_v62 = vld [vmem:[%s19746_s27 + $0x17d0] sm:$0xf] }
 0x4a1   : > { %12452 = vmatpush.bf16.msra.mxu0 %v16399_v21  ;;  %v13800_v21 = vld [vmem:[%s22137_s0 + $0x170] sm:$0xf0]  ;;  %v20918_v56 = vor.u32 %v17144_v52, %v13798_v41  ;;  %v16750_v41 = vld [vmem:[%s19746_s27 + $0x16d0] sm:$0xf]  ;;  %v16887_v52 = vor.u32 %v17913_v63, %v16886_v47  ;;  %v17879_v18 = vld [vmem:[%s19746_s27 + $0x16d4] sm:$0xf0]  ;;  %v20948_v63 = vpop.f32.mrf.mxu3 }
 0x4a2   : > { %12466 = vmatpush.bf16.msra.mxu1 %v16463_v49  ;;  %v16758_v49 = vld [vmem:[%s19746_s27 + $0x16e0] sm:$0xf]  ;;  %v20926_v33 = vor.u32 %v17119_v23, %v13800_v21  ;;  %v17911_v23 = vld [vmem:[%s19746_s27 + $0x17d4] sm:$0xf0]  ;;  %v17893_v47 = vld [vmem:[%s19746_s27 + $0x1744] sm:$0xf0] }
 0x4a3   : > { %12480 = vmatpush.bf16.msra.mxu2 %v16527_v11  ;;  %v20911_v11 = vor.u32 %v17143_v60, %v13790_v57  ;;  %22195 = vst [vmem:[#allocation34_spill] sm:$0xff] %v20918_v56  ;;  %v16759_v57 = vor.u32 %v17881_v31, %v16758_v49  ;;  %v16823_v60 = vor.u32 %v17897_v40, %v16822_v22  ;;  %v16742_v49 = vld [vmem:[%s19746_s27 + $0x16c0] sm:$0xf]  ;;  %v17877_v22 = vld [vmem:[%s19746_s27 + $0x16c4] sm:$0xf0] }
 0x4a4   : > { %12494 = vmatpush.bf16.msra.mxu3 %v16591_v30  ;;  %v20916_v30 = vpop.f32.mrf.mxu0  ;;  %22198 = vst [vmem:[#allocation37_spill] sm:$0xff] %v20926_v33  ;;  %v16879_v31 = vor.u32 %v17911_v23, %v16878_v62  ;;  %v16806_v40 = vld [vmem:[%s19746_s27 + $0x1740] sm:$0xf]  ;;  %v16734_v62 = vld [vmem:[%s19746_s27 + $0x16b0] sm:$0xf] }
 0x4a5   : > { %12453 = vmatpush.bf16.msra.mxu0 %v16391_v6  ;;  %22193 = vst [vmem:[#allocation32_spill] sm:$0xff] %v20911_v11  ;;  %v16695_v6 = vor.u32 %v17865_v39, %v16694_v38  ;;  %v16678_v38 = vld [vmem:[%s19746_s27 + $0x1640] sm:$0xf]  ;;  %v17861_v39 = vld [vmem:[%s19746_s27 + $0x1644] sm:$0xf0] }
 0x4a6   : > { %22194 = vst [vmem:[#allocation33_spill] sm:$0xff] %v20916_v30  ;;  %12467 = vmatpush.bf16.msra.mxu1 %v16455_v58  ;;  %v16686_v58 = vld [vmem:[%s19746_s27 + $0x1650] sm:$0xf]  ;;  %v13952_v30 = vld [vmem:[%s19746_s27 + $0xf8] sm:$0xf0] }
 0x4a7   : > { %12481 = vmatpush.bf16.msra.mxu2 %v16519_v45  ;;  %v17863_v45 = vld [vmem:[%s19746_s27 + $0x1654] sm:$0xf0]  ;;  %22200 = vst [vmem:[#allocation39_spill] sm:$0xff] %v20948_v63  ;;  %v13888_v63 = vld [vmem:[%s19746_s27 + $0x78] sm:$0xf0] }
 0x4a8   : > { %12495 = vmatpush.bf16.msra.mxu3 %v16583_v26  ;;  %12454 = vmatmul.bf16.vlgmr.msra.gmra.mxu0 %v20911_v11  ;;  %v16814_v26 = vld [vmem:[%s19746_s27 + $0x1750] sm:$0xf]  ;;  %v16687_v21 = vor.u32 %v17863_v45, %v16686_v58  ;;  %v16679_v45 = vor.u32 %v17861_v39, %v16678_v38  ;;  %v17162_v11 = vld [vmem:[%s19746_s27 + $0x74] sm:$0xf] }
 0x4a9   : > { %12502 = vmatpush.bf16.msrb.mxu0 %v16703_v19  ;;  %v17895_v19 = vld [vmem:[%s19746_s27 + $0x1754] sm:$0xf0]  ;;  %12468 = vmatmul.bf16.vlgmr.msra.gmra.mxu1 %v20920_v61  ;;  %v16862_v38 = vld [vmem:[%s19746_s27 + $0x17b0] sm:$0xf] }
 0x4aa   : > { %12516 = vmatpush.bf16.msrb.mxu1 %v16767_v51  ;;  %12482 = vmatmul.bf16.vlgmr.msra.gmra.mxu2 %v20918_v56  ;;  %v16751_v51 = vor.u32 %v17879_v18, %v16750_v41  ;;  %v12245_v41 = vpop.f32.mrf.mxu1  ;;  %v16807_v18 = vor.u32 %v17893_v47, %v16806_v40  ;;  %v16798_v56 = vld [vmem:[%s19746_s27 + $0x1730] sm:$0xf]  ;;  %v16726_v40 = vld [vmem:[%s19746_s27 + $0x16a0] sm:$0xf]  ;;  %v17931_v61 = vld [vmem:[%s19746_s27 + $0x1874] sm:$0xf0] }
 0x4ab   : > { %12530 = vmatpush.bf16.msrb.mxu2 %v16831_v32  ;;  %12496 = vmatmul.bf16.vlgmr.msra.gmra.mxu3 %v20926_v33  ;;  %v16815_v32 = vor.u32 %v17895_v19, %v16814_v26  ;;  %v16670_v26 = vld [vmem:[%s19746_s27 + $0x1630] sm:$0xf]  ;;  %v17859_v19 = vld [vmem:[%s19746_s27 + $0x1634] sm:$0xf0] }
 0x4ac   : > { %12544 = vmatpush.bf16.msrb.mxu3 %v16895_v48  ;;  %v20943_v48 = vpop.f32.mrf.mxu2  ;;  %v17875_v33 = vld [vmem:[%s19746_s27 + $0x16b4] sm:$0xf0] }
 0x4ad   : > { %12503 = vmatpush.bf16.msrb.mxu0 %v16695_v6  ;;  %22199 = vst [vmem:[#allocation38_spill] sm:$0xff] %v20943_v48  ;;  %v12231_v6 = vpop.f32.mrf.mxu0  ;;  %v16735_v39 = vor.u32 %v17875_v33, %v16734_v62  ;;  %v17905_v33 = vld [vmem:[%s19746_s27 + $0x17a4] sm:$0xf0]  ;;  %v17178_v48 = vld [vmem:[%s19746_s27 + $0xf4] sm:$0xf] }
 0x4ae   : > { %12517 = vmatpush.bf16.msrb.mxu1 %v16759_v57  ;;  %v16870_v57 = vld [vmem:[%s19746_s27 + $0x17c0] sm:$0xf]  ;;  %v12232_v58 = vadd.f32 %v12231_v6, %v20859_v53  ;;  %v17891_v53 = vld [vmem:[%s19746_s27 + $0x1734] sm:$0xf0] }
 0x4af   : > { %12531 = vmatpush.bf16.msrb.mxu2 %v16823_v60  ;;  %v17909_v60 = vld [vmem:[%s19746_s27 + $0x17c4] sm:$0xf0] }
 0x4b0   : > { %12545 = vmatpush.bf16.msrb.mxu3 %v16887_v52  ;;  %v16743_v52 = vor.u32 %v17877_v22, %v16742_v49  ;;  %v16871_v23 = vor.u32 %v17909_v60, %v16870_v57  ;;  %v16799_v49 = vor.u32 %v17891_v53, %v16798_v56  ;;  %v17857_v22 = vld [vmem:[%s19746_s27 + $0x1624] sm:$0xf0]  ;;  %v16790_v60 = vld [vmem:[%s19746_s27 + $0x1720] sm:$0xf]  ;;  %v17871_v53 = vld [vmem:[%s19746_s27 + $0x1694] sm:$0xf0] }
 0x4b1   : > { %12504 = vmatpush.bf16.msrb.mxu0 %v16687_v21  ;;  %v12246_v21 = vadd.f32 %v12245_v41, %v12232_v58  ;;  %v17873_v57 = vld [vmem:[%s19746_s27 + $0x16a4] sm:$0xf0]  ;;  %v12273_v41 = vpop.f32.mrf.mxu3 }
 0x4b2   : > { %12518 = vmatpush.bf16.msrb.mxu1 %v16751_v51  ;;  %v17907_v51 = vld [vmem:[%s19746_s27 + $0x17b4] sm:$0xf0]  ;;  %v17889_v58 = vld [vmem:[%s19746_s27 + $0x1724] sm:$0xf0] }
 0x4b3   : > { %12532 = vmatpush.bf16.msrb.mxu2 %v16815_v32  ;;  %v16671_v32 = vor.u32 %v17859_v19, %v16670_v26  ;;  %v16863_v47 = vor.u32 %v17907_v51, %v16862_v38  ;;  %v16727_v19 = vor.u32 %v17873_v57, %v16726_v40  ;;  %v16791_v62 = vor.u32 %v17889_v58, %v16790_v60  ;;  %v16782_v51 = vld [vmem:[%s19746_s27 + $0x1710] sm:$0xf]  ;;  %v17869_v57 = vld [vmem:[%s19746_s27 + $0x1684] sm:$0xf0] }
 0x4b4   : > { %12546 = vmatpush.bf16.msrb.mxu3 %v16879_v31  ;;  %v16662_v31 = vld [vmem:[%s19746_s27 + $0x1620] sm:$0xf]  ;;  %v12259_v6 = vpop.f32.mrf.mxu2  ;;  %v17885_v60 = vld [vmem:[%s19746_s27 + $0x1704] sm:$0xf0] }
 0x4b5   : > { %12505 = vmatpush.bf16.msrb.mxu0 %v16679_v45  ;;  %v12260_v45 = vadd.f32 %v12259_v6, %v12246_v21  ;;  %v16663_v56 = vor.u32 %v17857_v22, %v16662_v31  ;;  %v16718_v21 = vld [vmem:[%s19746_s27 + $0x1690] sm:$0xf]  ;;  %v17853_v22 = vld [vmem:[%s19746_s27 + $0x1604] sm:$0xf0]  ;;  %v16710_v6 = vld [vmem:[%s19746_s27 + $0x1680] sm:$0xf] }
 0x4b6   : > { %12519 = vmatpush.bf16.msrb.mxu1 %v16743_v52  ;;  %v16854_v52 = vld [vmem:[%s19746_s27 + $0x17a0] sm:$0xf]  ;;  %v16846_v31 = vld [vmem:[%s19746_s27 + $0x1790] sm:$0xf]  ;;  %v16719_v58 = vor.u32 %v17871_v53, %v16718_v21  ;;  %v16711_v21 = vor.u32 %v17869_v57, %v16710_v6  ;;  %v13891_v57 = vor.u32 %v17162_v11, %v13888_v63  ;;  %v17176_v63 = vld [vmem:[%s19746_s27 + $0xe4] sm:$0xf] }
 0x4b7   : > { %12533 = vmatpush.bf16.msrb.mxu2 %v16807_v18  ;;  %v16654_v18 = vld [vmem:[%s19746_s27 + $0x1610] sm:$0xf]  ;;  %v20970_v26 = vadd.f32 %v12273_v41, %v12260_v45  ;;  %v16855_v38 = vor.u32 %v17905_v33, %v16854_v52  ;;  %v16838_v41 = vld [vmem:[%s19746_s27 + $0x1780] sm:$0xf]  ;;  %v17901_v52 = vld [vmem:[%s19746_s27 + $0x1784] sm:$0xf0] }
 0x4b8   : > { %12547 = vmatpush.bf16.msrb.mxu3 %v16871_v23  ;;  %v17855_v23 = vld [vmem:[%s19746_s27 + $0x1614] sm:$0xf0]  ;;  %v16958_v33 = vld [vmem:[%s19746_s27 + $0x1870] sm:$0xf] }
 0x4b9   : > { %12506 = vmatpush.bf16.msrb.mxu0 %v16671_v32  ;;  %v17887_v32 = vld [vmem:[%s19746_s27 + $0x1714] sm:$0xf0]  ;;  %v16655_v40 = vor.u32 %v17855_v23, %v16654_v18  ;;  %v17022_v18 = vld [vmem:[%s19746_s27 + $0x18f0] sm:$0xf] }
 0x4ba   : > { %12520 = vmatpush.bf16.msrb.mxu1 %v16735_v39  ;;  %v17903_v39 = vld [vmem:[%s19746_s27 + $0x1794] sm:$0xf0]  ;;  %v16783_v45 = vor.u32 %v17887_v32, %v16782_v51  ;;  %v17146_v51 = vld [vmem:[%s22137_s0 + $0x17c] sm:$0xf0]  ;;  %v17120_v32 = vld [vmem:[%s22137_s0 + $0xb4] sm:$0xf] }
 0x4bb   : > { %12534 = vmatpush.bf16.msrb.mxu2 %v16799_v49  ;;  %v16646_v49 = vld [vmem:[%s19746_s27 + $0x1600] sm:$0xf]  ;;  %v17947_v23 = vld [vmem:[%s19746_s27 + $0x18f4] sm:$0xf0] }
 0x4bc   : > { %12548 = vmatpush.bf16.msrb.mxu3 %v16863_v47  ;;  %v16774_v47 = vld [vmem:[%s19746_s27 + $0x1700] sm:$0xf]  ;;  %v16647_v55 = vor.u32 %v17853_v22, %v16646_v49  ;;  %v13808_v49 = vld [vmem:[%s22137_s0 + $0x178] sm:$0xf0]  ;;  %v17023_v6 = vor.u32 %v17947_v23, %v17022_v18 }
 0x4bd   : > { %12507 = vmatpush.bf16.msrb.mxu0 %v16663_v56  ;;  %v16847_v56 = vor.u32 %v17903_v39, %v16846_v31  ;;  %v16775_v53 = vor.u32 %v17885_v60, %v16774_v47  ;;  %v16839_v31 = vor.u32 %v17901_v52, %v16838_v41  ;;  %v16959_v39 = vor.u32 %v17931_v61, %v16958_v33  ;;  %v17121_v22 = vld [vmem:[%s22137_s0 + $0xbc] sm:$0xf]  ;;  %v16950_v47 = vld [vmem:[%s19746_s27 + $0x1860] sm:$0xf]  ;;  %v17929_v60 = vld [vmem:[%s19746_s27 + $0x1864] sm:$0xf0] }
 0x4be   : > { %12521 = vmatpush.bf16.msrb.mxu1 %v16727_v19  ;;  %v13806_v19 = vld [vmem:[%s22137_s0 + $0xb0] sm:$0xf]  ;;  %v13955_v61 = vor.u32 %v17178_v48, %v13952_v30  ;;  %v17945_v41 = vld [vmem:[%s19746_s27 + $0x18e4] sm:$0xf0]  ;;  %v17160_v52 = vld [vmem:[%s19746_s27 + $0x64] sm:$0xf]  ;;  %v21031_v11 = vor.u32 %v17120_v32, %v13808_v49  ;;  %v21035_v30 = vpop.f32.mrf.mxu1  ;;  %v16951_v48 = vor.u32 %v17929_v60, %v16950_v47 }
 0x4bf   : > { %12535 = vmatpush.bf16.msrb.mxu2 %v16791_v62  ;;  %v17145_v62 = vld [vmem:[%s22137_s0 + $0x174] sm:$0xf0]  ;;  %v13880_v33 = vld [vmem:[%s19746_s27 + $0x68] sm:$0xf0]  ;;  %v17943_v32 = vld [vmem:[%s19746_s27 + $0x18d4] sm:$0xf0] }
 0x4c0   : > { %12549 = vmatpush.bf16.msrb.mxu3 %v16855_v38  ;;  %v13814_v38 = vld [vmem:[%s22137_s0 + $0xb8] sm:$0xf]  ;;  %22203 = vst [vmem:[#allocation42_spill] sm:$0xff] %v21031_v11  ;;  %v13944_v23 = vld [vmem:[%s19746_s27 + $0xe8] sm:$0xf0] }
 0x4c1   : > { %12508 = vmatpush.bf16.msrb.mxu0 %v16655_v40  ;;  %v13816_v40 = vld [vmem:[%s22137_s0 + $0x180] sm:$0xf0]  ;;  %v21029_v18 = vor.u32 %v17146_v51, %v13814_v38  ;;  %v17006_v38 = vld [vmem:[%s19746_s27 + $0x18d0] sm:$0xf]  ;;  %v13947_v51 = vor.u32 %v17176_v63, %v13944_v23  ;;  %v16934_v47 = vld [vmem:[%s19746_s27 + $0x1840] sm:$0xf]  ;;  %v21059_v23 = vpop.f32.mrf.mxu3 }
 0x4c2   : > { %12522 = vmatpush.bf16.msrb.mxu1 %v16719_v58  ;;  %v17014_v58 = vld [vmem:[%s19746_s27 + $0x18e0] sm:$0xf]  ;;  %v17174_v49 = vld [vmem:[%s19746_s27 + $0xd4] sm:$0xf]  ;;  %v17925_v60 = vld [vmem:[%s19746_s27 + $0x1844] sm:$0xf0] }
 0x4c3   : > { %12536 = vmatpush.bf16.msrb.mxu2 %v16783_v45  ;;  %v21022_v45 = vor.u32 %v17145_v62, %v13806_v19  ;;  %22202 = vst [vmem:[#allocation41_spill] sm:$0xff] %v21029_v18  ;;  %v17015_v19 = vor.u32 %v17945_v41, %v17014_v58  ;;  %v13883_v62 = vor.u32 %v17160_v52, %v13880_v33  ;;  %v16998_v58 = vld [vmem:[%s19746_s27 + $0x18c0] sm:$0xf]  ;;  %v17941_v52 = vld [vmem:[%s19746_s27 + $0x18c4] sm:$0xf0] }
 0x4c4   : > { %12550 = vmatpush.bf16.msrb.mxu3 %v16847_v56  ;;  %v21027_v56 = vpop.f32.mrf.mxu0  ;;  %v17156_v33 = vld [vmem:[%s19746_s27 + $0x44] sm:$0xf]  ;;  %v13864_v63 = vld [vmem:[%s19746_s27 + $0x48] sm:$0xf0] }
 0x4c5   : > { %12509 = vmatpush.bf16.msrb.mxu0 %v16647_v55  ;;  %22201 = vst [vmem:[#allocation40_spill] sm:$0xff] %v21022_v45  ;;  %v21037_v55 = vor.u32 %v17121_v22, %v13816_v40  ;;  %v13936_v22 = vld [vmem:[%s19746_s27 + $0xd8] sm:$0xf0] }
 0x4c6   : > { %12523 = vmatpush.bf16.msrb.mxu1 %v16711_v21  ;;  %v16942_v21 = vld [vmem:[%s19746_s27 + $0x1850] sm:$0xf]  ;;  %v13939_v41 = vor.u32 %v17174_v49, %v13936_v22 }
 0x4c7   : > { %12537 = vmatpush.bf16.msrb.mxu2 %v16775_v53  ;;  %22204 = vst [vmem:[#allocation43_spill] sm:$0xff] %v21037_v55  ;;  %v17927_v53 = vld [vmem:[%s19746_s27 + $0x1854] sm:$0xf0]  ;;  %v16990_v49 = vld [vmem:[%s19746_s27 + $0x18b0] sm:$0xf] }
 0x4c8   : > { %12551 = vmatpush.bf16.msrb.mxu3 %v16839_v31  ;;  %12510 = vmatmul.bf16.vlgmr.msrb.gmra.mxu0 %v21022_v45  ;;  %v17158_v31 = vld [vmem:[%s19746_s27 + $0x54] sm:$0xf]  ;;  %v16943_v40 = vor.u32 %v17927_v53, %v16942_v21  ;;  %v16935_v53 = vor.u32 %v17925_v60, %v16934_v47  ;;  %v14144_v45 = vld [vmem:[%s19746_s27 + $0x278] sm:$0xf0] }
 0x4c9   : > { %12558 = vmatpush.bf16.msra.mxu0 %v16959_v39  ;;  %v13872_v39 = vld [vmem:[%s19746_s27 + $0x58] sm:$0xf0]  ;;  %12524 = vmatmul.bf16.vlgmr.msrb.gmra.mxu1 %v21031_v11  ;;  %v17170_v47 = vld [vmem:[%s19746_s27 + $0xb4] sm:$0xf] }
 0x4ca   : > { %12572 = vmatpush.bf16.msra.mxu1 %v17023_v6  ;;  %12538 = vmatmul.bf16.vlgmr.msrb.gmra.mxu2 %v21029_v18  ;;  %v17007_v6 = vor.u32 %v17943_v32, %v17006_v38  ;;  %v12301_v38 = vpop.f32.mrf.mxu1  ;;  %v13867_v32 = vor.u32 %v17156_v33, %v13864_v63  ;;  %v17154_v18 = vld [vmem:[%s19746_s27 + $0x34] sm:$0xf]  ;;  %v16982_v33 = vld [vmem:[%s19746_s27 + $0x18a0] sm:$0xf]  ;;  %v14080_v11 = vld [vmem:[%s19746_s27 + $0x1f8] sm:$0xf0] }
 0x4cb   : > { %12586 = vmatpush.bf16.msra.mxu2 %v13891_v57  ;;  %12552 = vmatmul.bf16.vlgmr.msrb.gmra.mxu3 %v21037_v55  ;;  %v13875_v57 = vor.u32 %v17158_v31, %v13872_v39  ;;  %v16926_v31 = vld [vmem:[%s19746_s27 + $0x1830] sm:$0xf]  ;;  %v17923_v39 = vld [vmem:[%s19746_s27 + $0x1834] sm:$0xf0] }
 0x4cc   : > { %12600 = vmatpush.bf16.msra.mxu3 %v13955_v61  ;;  %v21054_v61 = vpop.f32.mrf.mxu2  ;;  %v17939_v55 = vld [vmem:[%s19746_s27 + $0x18b4] sm:$0xf0] }
 0x4cd   : > { %12559 = vmatpush.bf16.msra.mxu0 %v16951_v48  ;;  %v12287_v48 = vpop.f32.mrf.mxu0  ;;  %v16991_v60 = vor.u32 %v17939_v55, %v16990_v49  ;;  %v13912_v55 = vld [vmem:[%s19746_s27 + $0xa8] sm:$0xf0]  ;;  %v16910_v49 = vld [vmem:[%s19746_s27 + $0x1810] sm:$0xf] }
 0x4ce   : > { %12573 = vmatpush.bf16.msra.mxu1 %v17015_v19  ;;  %v17172_v19 = vld [vmem:[%s19746_s27 + $0xc4] sm:$0xf]  ;;  %v12288_v21 = vadd.f32 %v12287_v48, %v20970_v26  ;;  %v13856_v26 = vld [vmem:[%s19746_s27 + $0x38] sm:$0xf0] }
 0x4cf   : > { %12587 = vmatpush.bf16.msra.mxu2 %v13883_v62  ;;  %v13928_v62 = vld [vmem:[%s19746_s27 + $0xc8] sm:$0xf0] }
 0x4d0   : > { %12601 = vmatpush.bf16.msra.mxu3 %v13947_v51  ;;  %v16999_v51 = vor.u32 %v17941_v52, %v16998_v58  ;;  %v13931_v22 = vor.u32 %v17172_v19, %v13928_v62  ;;  %v13859_v58 = vor.u32 %v17154_v18, %v13856_v26  ;;  %v17921_v52 = vld [vmem:[%s19746_s27 + $0x1824] sm:$0xf0]  ;;  %v17152_v62 = vld [vmem:[%s19746_s27 + $0x24] sm:$0xf] }
 0x4d1   : > { %12560 = vmatpush.bf16.msra.mxu0 %v16943_v40  ;;  %v12302_v40 = vadd.f32 %v12301_v38, %v12288_v21  ;;  %v17937_v19 = vld [vmem:[%s19746_s27 + $0x18a4] sm:$0xf0]  ;;  %v13848_v21 = vld [vmem:[%s19746_s27 + $0x28] sm:$0xf0]  ;;  %v12329_v38 = vpop.f32.mrf.mxu3 }
 0x4d2   : > { %12574 = vmatpush.bf16.msra.mxu1 %v17007_v6  ;;  %v13920_v6 = vld [vmem:[%s19746_s27 + $0xb8] sm:$0xf0] }
 0x4d3   : > { %12588 = vmatpush.bf16.msra.mxu2 %v13875_v57  ;;  %v16927_v57 = vor.u32 %v17923_v39, %v16926_v31  ;;  %v13923_v63 = vor.u32 %v17170_v47, %v13920_v6  ;;  %v16983_v31 = vor.u32 %v17937_v19, %v16982_v33  ;;  %v13851_v39 = vor.u32 %v17152_v62, %v13848_v21  ;;  %v17935_v47 = vld [vmem:[%s19746_s27 + $0x1894] sm:$0xf0]  ;;  %v17150_v6 = vld [vmem:[%s19746_s27 + $0x14] sm:$0xf]  ;;  %v17917_v33 = vld [vmem:[%s19746_s27 + $0x1804] sm:$0xf0] }
 0x4d4   : > { %12602 = vmatpush.bf16.msra.mxu3 %v13939_v41  ;;  %v16918_v41 = vld [vmem:[%s19746_s27 + $0x1820] sm:$0xf]  ;;  %v12315_v48 = vpop.f32.mrf.mxu2  ;;  %v17933_v62 = vld [vmem:[%s19746_s27 + $0x1884] sm:$0xf0]  ;;  %v17148_v21 = vld [vmem:[%s19746_s27 + $0x4] sm:$0xf] }
 0x4d5   : > { %12561 = vmatpush.bf16.msra.mxu0 %v16935_v53  ;;  %v12316_v53 = vadd.f32 %v12315_v48, %v12302_v40  ;;  %v16919_v18 = vor.u32 %v17921_v52, %v16918_v41  ;;  %v16974_v40 = vld [vmem:[%s19746_s27 + $0x1890] sm:$0xf]  ;;  %v16902_v52 = vld [vmem:[%s19746_s27 + $0x1800] sm:$0xf] }
 0x4d6   : > { %12575 = vmatpush.bf16.msra.mxu1 %v16999_v51  ;;  %v17168_v51 = vld [vmem:[%s19746_s27 + $0xa4] sm:$0xf]  ;;  %v16975_v48 = vor.u32 %v17935_v47, %v16974_v40  ;;  %v17242_v40 = vld [vmem:[%s19746_s27 + $0x2f4] sm:$0xf] }
 0x4d7   : > { %12589 = vmatpush.bf16.msra.mxu2 %v13867_v32  ;;  %v21080_v32 = vadd.f32 %v12329_v38, %v12316_v53  ;;  %v13915_v26 = vor.u32 %v17168_v51, %v13912_v55  ;;  %v13832_v53 = vld [vmem:[%s19746_s27 + $0x8] sm:$0xf0]  ;;  %v17164_v51 = vld [vmem:[%s19746_s27 + $0x84] sm:$0xf] }
 0x4d8   : > { %12603 = vmatpush.bf16.msra.mxu3 %v13931_v22  ;;  %v17919_v22 = vld [vmem:[%s19746_s27 + $0x1814] sm:$0xf0]  ;;  %v13896_v55 = vld [vmem:[%s19746_s27 + $0x88] sm:$0xf0] }
 0x4d9   : > { %12562 = vmatpush.bf16.msra.mxu0 %v16927_v57  ;;  %v13840_v57 = vld [vmem:[%s19746_s27 + $0x18] sm:$0xf0]  ;;  %v16911_v41 = vor.u32 %v17919_v22, %v16910_v49  ;;  %v17210_v22 = vld [vmem:[%s19746_s27 + $0x1f4] sm:$0xf] }
 0x4da   : > { %12576 = vmatpush.bf16.msra.mxu1 %v16991_v60  ;;  %v17166_v60 = vld [vmem:[%s19746_s27 + $0x94] sm:$0xf]  ;;  %v13843_v19 = vor.u32 %v17150_v6, %v13840_v57  ;;  %v14016_v49 = vld [vmem:[%s19746_s27 + $0x178] sm:$0xf0]  ;;  %v13822_v57 = vld [vmem:[%s22137_s0 + $0xc0] sm:$0xf] }
 0x4db   : > { %12590 = vmatpush.bf16.msra.mxu2 %v13859_v58  ;;  %v13904_v58 = vld [vmem:[%s19746_s27 + $0x98] sm:$0xf0] }
 0x4dc   : > { %12604 = vmatpush.bf16.msra.mxu3 %v13923_v63  ;;  %v16966_v63 = vld [vmem:[%s19746_s27 + $0x1880] sm:$0xf]  ;;  %v13907_v38 = vor.u32 %v17166_v60, %v13904_v58  ;;  %v14208_v6 = vld [vmem:[%s19746_s27 + $0x2f8] sm:$0xf0]  ;;  %v17147_v60 = vld [vmem:[%s22137_s0 + $0x184] sm:$0xf0]  ;;  %v13899_v58 = vor.u32 %v17164_v51, %v13896_v55 }
 0x4dd   : > { %12563 = vmatpush.bf16.msra.mxu0 %v16919_v18  ;;  %v17194_v18 = vld [vmem:[%s19746_s27 + $0x174] sm:$0xf]  ;;  %v16967_v47 = vor.u32 %v17933_v62, %v16966_v63  ;;  %v14083_v63 = vor.u32 %v17210_v22, %v14080_v11  ;;  %v14008_v62 = vld [vmem:[%s19746_s27 + $0x168] sm:$0xf0]  ;;  %v17224_v55 = vld [vmem:[%s19746_s27 + $0x264] sm:$0xf] }
 0x4de   : > { %12577 = vmatpush.bf16.msra.mxu1 %v16983_v31  ;;  %v16903_v31 = vor.u32 %v17917_v33, %v16902_v52  ;;  %v17122_v52 = vld [vmem:[%s22137_s0 + $0xc4] sm:$0xf]  ;;  %v13824_v33 = vld [vmem:[%s22137_s0 + $0x188] sm:$0xf0]  ;;  %v14072_v51 = vld [vmem:[%s19746_s27 + $0x1e8] sm:$0xf0] }
 0x4df   : > { %12591 = vmatpush.bf16.msra.mxu2 %v13851_v39  ;;  %v17226_v39 = vld [vmem:[%s19746_s27 + $0x274] sm:$0xf]  ;;  %v21128_v11 = vor.u32 %v17122_v52, %v13824_v33  ;;  %v14200_v22 = vld [vmem:[%s19746_s27 + $0x2e8] sm:$0xf0]  ;;  %v14064_v52 = vld [vmem:[%s19746_s27 + $0x1d8] sm:$0xf0] }
 0x4e0   : > { %12605 = vmatpush.bf16.msra.mxu3 %v13915_v26  ;;  %v13835_v26 = vor.u32 %v17148_v21, %v13832_v53  ;;  %v17208_v21 = vld [vmem:[%s19746_s27 + $0x1e4] sm:$0xf]  ;;  %v14211_v53 = vor.u32 %v17242_v40, %v14208_v6  ;;  %v17238_v33 = vld [vmem:[%s19746_s27 + $0x2d4] sm:$0xf] }
 0x4e1   : > { %12564 = vmatpush.bf16.msra.mxu0 %v16911_v41  ;;  %v14019_v41 = vor.u32 %v17194_v18, %v14016_v49  ;;  %v14136_v18 = vld [vmem:[%s19746_s27 + $0x268] sm:$0xf0]  ;;  %v21126_v49 = vpop.f32.mrf.mxu0  ;;  %22207 = vst [vmem:[#allocation46_spill] sm:$0xff] %v21128_v11  ;;  %v14075_v40 = vor.u32 %v17208_v21, %v14072_v51  ;;  %v17188_v21 = vld [vmem:[%s19746_s27 + $0x144] sm:$0xf] }
 0x4e2   : > { %12578 = vmatpush.bf16.msra.mxu1 %v16975_v48  ;;  %v14147_v48 = vor.u32 %v17226_v39, %v14144_v45  ;;  %22206 = vst [vmem:[#allocation45_spill] sm:$0xff] %v21126_v49  ;;  %v17240_v45 = vld [vmem:[%s19746_s27 + $0x2e4] sm:$0xf]  ;;  %v14139_v6 = vor.u32 %v17224_v55, %v14136_v18  ;;  %v21149_v55 = vpop.f32.mrf.mxu2  ;;  %v14328_v49 = vld [vmem:[%s19746_s27 + $0x3e8] sm:$0xf0] }
 0x4e3   : > { %12592 = vmatpush.bf16.msra.mxu2 %v13843_v19  ;;  %v17192_v19 = vld [vmem:[%s19746_s27 + $0x164] sm:$0xf]  ;;  %22209 = vst [vmem:[#allocation48_spill] sm:$0xff] %v21149_v55  ;;  %v14264_v55 = vld [vmem:[%s19746_s27 + $0x368] sm:$0xf0] }
 0x4e4   : > { %12606 = vmatpush.bf16.msra.mxu3 %v13907_v38  ;;  %v21121_v38 = vor.u32 %v17147_v60, %v13822_v57  ;;  %v14011_v39 = vor.u32 %v17192_v19, %v14008_v62  ;;  %v17206_v57 = vld [vmem:[%s19746_s27 + $0x1d4] sm:$0xf]  ;;  %v14203_v60 = vor.u32 %v17240_v45, %v14200_v22  ;;  %v17204_v51 = vld [vmem:[%s19746_s27 + $0x1c4] sm:$0xf]  ;;  %v14120_v22 = vld [vmem:[%s19746_s27 + $0x248] sm:$0xf0] }
 0x4e5   : > { %12565 = vmatpush.bf16.msra.mxu0 %v16903_v31  ;;  %v21132_v31 = vpop.f32.mrf.mxu1  ;;  %v14067_v19 = vor.u32 %v17206_v57, %v14064_v52  ;;  %v17220_v45 = vld [vmem:[%s19746_s27 + $0x244] sm:$0xf] }
 0x4e6   : > { %22205 = vst [vmem:[#allocation44_spill] sm:$0xff] %v21121_v38  ;;  %12579 = vmatpush.bf16.msra.mxu1 %v16967_v47  ;;  %v17190_v47 = vld [vmem:[%s19746_s27 + $0x154] sm:$0xf]  ;;  %v14123_v52 = vor.u32 %v17220_v45, %v14120_v22  ;;  %v17200_v45 = vld [vmem:[%s19746_s27 + $0x1a4] sm:$0xf] }
 0x4e7   : > { %12593 = vmatpush.bf16.msra.mxu2 %v13835_v26  ;;  %22208 = vst [vmem:[#allocation47_spill] sm:$0xff] %v21132_v31  ;;  %v14000_v26 = vld [vmem:[%s19746_s27 + $0x158] sm:$0xf0]  ;;  %v17272_v31 = vld [vmem:[%s19746_s27 + $0x3e4] sm:$0xf] }
 0x4e8   : > { %12607 = vmatpush.bf16.msra.mxu3 %v13899_v58  ;;  %12566 = vmatmul.bf16.vlgmr.msra.gmra.mxu0 %v21121_v38  ;;  %v17222_v58 = vld [vmem:[%s19746_s27 + $0x254] sm:$0xf] }
 0x4e9   : > { %12614 = vmatpush.bf16.msrb.mxu0 %v14019_v41  ;;  %v14128_v41 = vld [vmem:[%s19746_s27 + $0x258] sm:$0xf0]  ;;  %12580 = vmatmul.bf16.vlgmr.msra.gmra.mxu1 %v21128_v11  ;;  %v17218_v38 = vld [vmem:[%s19746_s27 + $0x234] sm:$0xf] }
 0x4ea   : > { %12628 = vmatpush.bf16.msrb.mxu1 %v14083_v63  ;;  %v14192_v63 = vld [vmem:[%s19746_s27 + $0x2d8] sm:$0xf0]  ;;  %12594 = vmatmul.bf16.vlgmr.msra.gmra.mxu2 %v19840_v27  ;;  %v14131_v62 = vor.u32 %v17222_v58, %v14128_v41  ;;  %v14056_v27 = vld [vmem:[%s19746_s27 + $0x1c8] sm:$0xf0]  ;;  %v17186_v58 = vld [vmem:[%s19746_s27 + $0x134] sm:$0xf] }
 0x4eb   : > { %12642 = vmatpush.bf16.msrb.mxu2 %v14147_v48  ;;  %v14003_v48 = vor.u32 %v17190_v47, %v14000_v26  ;;  %12608 = vmatmul.bf16.vlgmr.msra.gmra.mxu3 %v19864_v43  ;;  %v14195_v18 = vor.u32 %v17238_v33, %v14192_v63  ;;  %v21154_v43 = vpop.f32.mrf.mxu3  ;;  %v13984_v41 = vld [vmem:[%s19746_s27 + $0x138] sm:$0xf0]  ;;  %v17202_v33 = vld [vmem:[%s19746_s27 + $0x1b4] sm:$0xf] }
 0x4ec   : > { %12656 = vmatpush.bf16.msrb.mxu3 %v14211_v53  ;;  %v13992_v53 = vld [vmem:[%s19746_s27 + $0x148] sm:$0xf0]  ;;  %22210 = vst [vmem:[#allocation49_spill] sm:$0xff] %v21154_v43  ;;  %v14048_v11 = vld [vmem:[%s19746_s27 + $0x1b8] sm:$0xf0] }
 0x4ed   : > { %12615 = vmatpush.bf16.msrb.mxu0 %v14011_v39  ;;  %v12343_v39 = vpop.f32.mrf.mxu0  ;;  %v13995_v26 = vor.u32 %v17188_v21, %v13992_v53  ;;  %v12357_v57 = vpop.f32.mrf.mxu1  ;;  %v17234_v21 = vld [vmem:[%s19746_s27 + $0x2b4] sm:$0xf]  ;;  %v14051_v53 = vor.u32 %v17202_v33, %v14048_v11  ;;  %v14168_v11 = vld [vmem:[%s19746_s27 + $0x2a8] sm:$0xf0]  ;;  %v17256_v43 = vld [vmem:[%s19746_s27 + $0x364] sm:$0xf] }
 0x4ee   : > { %12629 = vmatpush.bf16.msrb.mxu1 %v14075_v40  ;;  %v17236_v40 = vld [vmem:[%s19746_s27 + $0x2c4] sm:$0xf]  ;;  %v12344_v47 = vadd.f32 %v12343_v39, %v21080_v32  ;;  %v14112_v32 = vld [vmem:[%s19746_s27 + $0x238] sm:$0xf0]  ;;  %v12371_v39 = vpop.f32.mrf.mxu2  ;;  %v17182_v33 = vld [vmem:[%s19746_s27 + $0x114] sm:$0xf] }
 0x4ef   : > { %12643 = vmatpush.bf16.msrb.mxu2 %v14139_v6  ;;  %v14184_v6 = vld [vmem:[%s19746_s27 + $0x2c8] sm:$0xf0] }
 0x4f0   : > { %12657 = vmatpush.bf16.msrb.mxu3 %v14203_v60  ;;  %v14059_v60 = vor.u32 %v17204_v51, %v14056_v27  ;;  %v14187_v63 = vor.u32 %v17236_v40, %v14184_v6  ;;  %v14115_v51 = vor.u32 %v17218_v38, %v14112_v32  ;;  %v13976_v27 = vld [vmem:[%s19746_s27 + $0x128] sm:$0xf0]  ;;  %v17216_v6 = vld [vmem:[%s19746_s27 + $0x224] sm:$0xf] }
 0x4f1   : > { %12616 = vmatpush.bf16.msrb.mxu0 %v14003_v48  ;;  %v12358_v48 = vadd.f32 %v12357_v57, %v12344_v47  ;;  %v14040_v40 = vld [vmem:[%s19746_s27 + $0x1a8] sm:$0xf0] }
 0x4f2   : > { %12630 = vmatpush.bf16.msrb.mxu1 %v14067_v19  ;;  %v14176_v19 = vld [vmem:[%s19746_s27 + $0x2b8] sm:$0xf0]  ;;  %v14104_v47 = vld [vmem:[%s19746_s27 + $0x228] sm:$0xf0] }
 0x4f3   : > { %12644 = vmatpush.bf16.msrb.mxu2 %v14131_v62  ;;  %v13987_v62 = vor.u32 %v17186_v58, %v13984_v41  ;;  %v14179_v22 = vor.u32 %v17234_v21, %v14176_v19  ;;  %v12385_v57 = vpop.f32.mrf.mxu3  ;;  %v14043_v58 = vor.u32 %v17200_v45, %v14040_v40  ;;  %v14107_v41 = vor.u32 %v17216_v6, %v14104_v47  ;;  %v14032_v21 = vld [vmem:[%s19746_s27 + $0x198] sm:$0xf0]  ;;  %v17214_v19 = vld [vmem:[%s19746_s27 + $0x214] sm:$0xf]  ;;  %v13960_v45 = vld [vmem:[%s19746_s27 + $0x108] sm:$0xf0] }
 0x4f4   : > { %12658 = vmatpush.bf16.msrb.mxu3 %v14195_v18  ;;  %v17184_v18 = vld [vmem:[%s19746_s27 + $0x124] sm:$0xf]  ;;  %v14024_v6 = vld [vmem:[%s19746_s27 + $0x188] sm:$0xf0] }
 0x4f5   : > { %12617 = vmatpush.bf16.msrb.mxu0 %v13995_v26  ;;  %v12372_v26 = vadd.f32 %v12371_v39, %v12358_v48  ;;  %v13979_v38 = vor.u32 %v17184_v18, %v13976_v27  ;;  %v17198_v48 = vld [vmem:[%s19746_s27 + $0x194] sm:$0xf]  ;;  %v17180_v27 = vld [vmem:[%s19746_s27 + $0x104] sm:$0xf] }
 0x4f6   : > { %12631 = vmatpush.bf16.msrb.mxu1 %v14059_v60  ;;  %v17232_v60 = vld [vmem:[%s19746_s27 + $0x2a4] sm:$0xf] }
 0x4f7   : > { %12645 = vmatpush.bf16.msrb.mxu2 %v14123_v52  ;;  %v21175_v52 = vadd.f32 %v12385_v57, %v12372_v26  ;;  %v14171_v32 = vor.u32 %v17232_v60, %v14168_v11  ;;  %v17196_v40 = vld [vmem:[%s19746_s27 + $0x184] sm:$0xf]  ;;  %v14088_v57 = vld [vmem:[%s19746_s27 + $0x208] sm:$0xf0] }
 0x4f8   : > { %12659 = vmatpush.bf16.msrb.mxu3 %v14187_v63  ;;  %v13968_v63 = vld [vmem:[%s19746_s27 + $0x118] sm:$0xf0]  ;;  %v17212_v47 = vld [vmem:[%s19746_s27 + $0x204] sm:$0xf]  ;;  %v14152_v11 = vld [vmem:[%s19746_s27 + $0x288] sm:$0xf0] }
 0x4f9   : > { %12618 = vmatpush.bf16.msrb.mxu0 %v13987_v62  ;;  %v14096_v62 = vld [vmem:[%s19746_s27 + $0x218] sm:$0xf0]  ;;  %v13971_v18 = vor.u32 %v17182_v33, %v13968_v63  ;;  %v17228_v60 = vld [vmem:[%s19746_s27 + $0x284] sm:$0xf]  ;;  %v17274_v63 = vld [vmem:[%s19746_s27 + $0x3f4] sm:$0xf] }
 0x4fa   : > { %12632 = vmatpush.bf16.msrb.mxu1 %v14051_v53  ;;  %v17230_v53 = vld [vmem:[%s19746_s27 + $0x294] sm:$0xf]  ;;  %v14099_v39 = vor.u32 %v17214_v19, %v14096_v62  ;;  %v14272_v33 = vld [vmem:[%s19746_s27 + $0x378] sm:$0xf0]  ;;  %v14091_v19 = vor.u32 %v17212_v47, %v14088_v57  ;;  %v17304_v47 = vld [vmem:[%s19746_s27 + $0x4e4] sm:$0xf]  ;;  %v21211_v57 = vpop.f32.mrf.mxu1 }
 0x4fb   : > { %12646 = vmatpush.bf16.msrb.mxu2 %v14115_v51  ;;  %v14160_v51 = vld [vmem:[%s19746_s27 + $0x298] sm:$0xf0]  ;;  %v17306_v62 = vld [vmem:[%s19746_s27 + $0x4f4] sm:$0xf] }
 0x4fc   : > { %12660 = vmatpush.bf16.msrb.mxu3 %v14179_v22  ;;  %v14035_v22 = vor.u32 %v17198_v48, %v14032_v21  ;;  %v14163_v26 = vor.u32 %v17230_v53, %v14160_v51  ;;  %v17290_v48 = vld [vmem:[%s19746_s27 + $0x474] sm:$0xf]  ;;  %v14400_v21 = vld [vmem:[%s19746_s27 + $0x478] sm:$0xf0]  ;;  %v14155_v51 = vor.u32 %v17228_v60, %v14152_v11  ;;  %v14267_v60 = vor.u32 %v17256_v43, %v14264_v55 }
 0x4fd   : > { %12619 = vmatpush.bf16.msrb.mxu0 %v13979_v38  ;;  %v17258_v38 = vld [vmem:[%s19746_s27 + $0x374] sm:$0xf]  ;;  %v14464_v53 = vld [vmem:[%s19746_s27 + $0x4f8] sm:$0xf0]  ;;  %v14331_v11 = vor.u32 %v17272_v31, %v14328_v49 }
 0x4fe   : > { %12633 = vmatpush.bf16.msrb.mxu1 %v14043_v58  ;;  %v13963_v58 = vor.u32 %v17180_v27, %v13960_v45  ;;  %v14403_v45 = vor.u32 %v17290_v48, %v14400_v21  ;;  %v14320_v48 = vld [vmem:[%s19746_s27 + $0x3d8] sm:$0xf0]  ;;  %v17286_v21 = vld [vmem:[%s19746_s27 + $0x454] sm:$0xf] }
 0x4ff   : > { %12647 = vmatpush.bf16.msrb.mxu2 %v14107_v41  ;;  %v14336_v41 = vld [vmem:[%s19746_s27 + $0x3f8] sm:$0xf0]  ;;  %v17302_v49 = vld [vmem:[%s19746_s27 + $0x4d4] sm:$0xf] }
 0x500   : > { %12661 = vmatpush.bf16.msrb.mxu3 %v14171_v32  ;;  %v14027_v32 = vor.u32 %v17196_v40, %v14024_v6  ;;  %v14339_v27 = vor.u32 %v17274_v63, %v14336_v41  ;;  %v14392_v40 = vld [vmem:[%s19746_s27 + $0x468] sm:$0xf0]  ;;  %v21207_v6 = vpop.f32.mrf.mxu0  ;;  %v14256_v63 = vld [vmem:[%s19746_s27 + $0x358] sm:$0xf0] }
 0x501   : > { %12620 = vmatpush.bf16.msrb.mxu0 %v13971_v18  ;;  %v14275_v18 = vor.u32 %v17258_v38, %v14272_v33  ;;  %v17254_v33 = vld [vmem:[%s19746_s27 + $0x354] sm:$0xf]  ;;  %v14448_v31 = vld [vmem:[%s19746_s27 + $0x4d8] sm:$0xf0] }
 0x502   : > { %12634 = vmatpush.bf16.msrb.mxu1 %v14035_v22  ;;  %v14467_v22 = vor.u32 %v17306_v62, %v14464_v53  ;;  %v14248_v62 = vld [vmem:[%s19746_s27 + $0x348] sm:$0xf0]  ;;  %v21228_v53 = vpop.f32.mrf.mxu2 }
 0x503   : > { %12648 = vmatpush.bf16.msrb.mxu2 %v14099_v39  ;;  %v17288_v39 = vld [vmem:[%s19746_s27 + $0x464] sm:$0xf] }
 0x504   : > { %12662 = vmatpush.bf16.msrb.mxu3 %v14163_v26  ;;  %v14456_v26 = vld [vmem:[%s19746_s27 + $0x4e8] sm:$0xf0]  ;;  %v14395_v38 = vor.u32 %v17288_v39, %v14392_v40 }
 0x505   : > { %12621 = vmatpush.bf16.msrb.mxu0 %v13963_v58  ;;  %v17270_v58 = vld [vmem:[%s19746_s27 + $0x3d4] sm:$0xf]  ;;  %v14459_v41 = vor.u32 %v17304_v47, %v14456_v26  ;;  %v14440_v39 = vld [vmem:[%s19746_s27 + $0x4c8] sm:$0xf0] }
 0x506   : > { %12635 = vmatpush.bf16.msrb.mxu1 %v14027_v32  ;;  %v14384_v32 = vld [vmem:[%s19746_s27 + $0x458] sm:$0xf0]  ;;  %v14323_v55 = vor.u32 %v17270_v58, %v14320_v48  ;;  %v12413_v26 = vpop.f32.mrf.mxu1 }
 0x507   : > { %12649 = vmatpush.bf16.msrb.mxu2 %v14091_v19  ;;  %v14387_v43 = vor.u32 %v17286_v21, %v14384_v32  ;;  %v17252_v19 = vld [vmem:[%s19746_s27 + $0x344] sm:$0xf]  ;;  %v14304_v48 = vld [vmem:[%s19746_s27 + $0x3b8] sm:$0xf0]  ;;  %v17282_v21 = vld [vmem:[%s19746_s27 + $0x434] sm:$0xf] }
 0x508   : > { %12663 = vmatpush.bf16.msrb.mxu3 %v14155_v51  ;;  %12622 = vmatmul.bf16.vlgmr.msrb.gmra.mxu0 %v19848_v34  ;;  %v14259_v34 = vor.u32 %v17254_v33, %v14256_v63  ;;  %v14312_v51 = vld [vmem:[%s19746_s27 + $0x3c8] sm:$0xf0]  ;;  %v14251_v47 = vor.u32 %v17252_v19, %v14248_v62  ;;  %v14240_v33 = vld [vmem:[%s19746_s27 + $0x338] sm:$0xf0]  ;;  %v17266_v63 = vld [vmem:[%s19746_s27 + $0x3b4] sm:$0xf] }
 0x509   : > { %12670 = vmatpush.bf16.msra.mxu0 %v14275_v18  ;;  %12636 = vmatmul.bf16.vlgmr.msrb.gmra.mxu1 %v19872_v50  ;;  %v14451_v50 = vor.u32 %v17302_v49, %v14448_v31  ;;  %v17284_v18 = vld [vmem:[%s19746_s27 + $0x444] sm:$0xf]  ;;  %v17298_v32 = vld [vmem:[%s19746_s27 + $0x4b4] sm:$0xf]  ;;  %v14432_v49 = vld [vmem:[%s19746_s27 + $0x4b8] sm:$0xf0] }
 0x50a   : > { %12684 = vmatpush.bf16.msra.mxu1 %v14339_v27  ;;  %12650 = vmatmul.bf16.vlgmr.msrb.gmra.mxu2 %v19948_v8  ;;  %v17268_v8 = vld [vmem:[%s19746_s27 + $0x3c4] sm:$0xf]  ;;  %v21233_v27 = vpop.f32.mrf.mxu3  ;;  %v14232_v19 = vld [vmem:[%s19746_s27 + $0x328] sm:$0xf0] }
 0x50b   : > { %12698 = vmatpush.bf16.msra.mxu2 %v14403_v45  ;;  %12664 = vmatmul.bf16.vlgmr.msrb.gmra.mxu3 %v19955_v13  ;;  %v14376_v13 = vld [vmem:[%s19746_s27 + $0x448] sm:$0xf0]  ;;  %v12399_v45 = vpop.f32.mrf.mxu0  ;;  %v17264_v62 = vld [vmem:[%s19746_s27 + $0x3a4] sm:$0xf] }
 0x50c   : > { %12712 = vmatpush.bf16.msra.mxu3 %v14467_v22  ;;  %v17300_v22 = vld [vmem:[%s19746_s27 + $0x4c4] sm:$0xf]  ;;  %v12400_v40 = vadd.f32 %v12399_v45, %v21175_v52  ;;  %v14368_v52 = vld [vmem:[%s19746_s27 + $0x438] sm:$0xf0] }
 0x50d   : > { %12671 = vmatpush.bf16.msra.mxu0 %v14267_v60  ;;  %v14315_v60 = vor.u32 %v17268_v8, %v14312_v51  ;;  %v14443_v58 = vor.u32 %v17300_v22, %v14440_v39  ;;  %v14435_v8 = vor.u32 %v17298_v32, %v14432_v49  ;;  %v14296_v51 = vld [vmem:[%s19746_s27 + $0x3a8] sm:$0xf0]  ;;  %v17296_v39 = vld [vmem:[%s19746_s27 + $0x4a4] sm:$0xf]  ;;  %v14416_v32 = vld [vmem:[%s19746_s27 + $0x498] sm:$0xf0] }
 0x50e   : > { %12685 = vmatpush.bf16.msra.mxu1 %v14331_v11  ;;  %v14379_v11 = vor.u32 %v17284_v18, %v14376_v13  ;;  %v17280_v18 = vld [vmem:[%s19746_s27 + $0x424] sm:$0xf]  ;;  %v14360_v13 = vld [vmem:[%s19746_s27 + $0x428] sm:$0xf0] }
 0x50f   : > { %12699 = vmatpush.bf16.msra.mxu2 %v14395_v38  ;;  %v17250_v38 = vld [vmem:[%s19746_s27 + $0x334] sm:$0xf] }
 0x510   : > { %12713 = vmatpush.bf16.msra.mxu3 %v14459_v41  ;;  %v12414_v41 = vadd.f32 %v12413_v26, %v12400_v40  ;;  %v14243_v31 = vor.u32 %v17250_v38, %v14240_v33  ;;  %v14424_v40 = vld [vmem:[%s19746_s27 + $0x4a8] sm:$0xf0]  ;;  %v17246_v38 = vld [vmem:[%s19746_s27 + $0x314] sm:$0xf]  ;;  %v14224_v33 = vld [vmem:[%s19746_s27 + $0x318] sm:$0xf0] }
 0x511   : > { %12672 = vmatpush.bf16.msra.mxu0 %v14259_v34  ;;  %v14307_v34 = vor.u32 %v17266_v63, %v14304_v48  ;;  %v17262_v63 = vld [vmem:[%s19746_s27 + $0x394] sm:$0xf]  ;;  %v14227_v49 = vor.u32 %v17246_v38, %v14224_v33 }
 0x512   : > { %12686 = vmatpush.bf16.msra.mxu1 %v14323_v55  ;;  %v14371_v55 = vor.u32 %v17282_v21, %v14368_v52  ;;  %v12441_v22 = vpop.f32.mrf.mxu3  ;;  %v17278_v48 = vld [vmem:[%s19746_s27 + $0x414] sm:$0xf]  ;;  %v14352_v21 = vld [vmem:[%s19746_s27 + $0x418] sm:$0xf0] }
 0x513   : > { %12700 = vmatpush.bf16.msra.mxu2 %v14387_v43  ;;  %v17248_v43 = vld [vmem:[%s19746_s27 + $0x324] sm:$0xf]  ;;  %v17294_v52 = vld [vmem:[%s19746_s27 + $0x494] sm:$0xf] }
 0x514   : > { %12714 = vmatpush.bf16.msra.mxu3 %v14451_v50  ;;  %v12427_v50 = vpop.f32.mrf.mxu2 }
 0x515   : > { %12673 = vmatpush.bf16.msra.mxu0 %v14251_v47  ;;  %v12428_v45 = vadd.f32 %v12427_v50, %v12414_v41  ;;  %v14235_v47 = vor.u32 %v17248_v43, %v14232_v19  ;;  %v14288_v41 = vld [vmem:[%s19746_s27 + $0x398] sm:$0xf0]  ;;  %v14355_v43 = vor.u32 %v17278_v48, %v14352_v21  ;;  %v17260_v19 = vld [vmem:[%s19746_s27 + $0x384] sm:$0xf]  ;;  %v14419_v50 = vor.u32 %v17294_v52, %v14416_v32 }
 0x516   : > { %12687 = vmatpush.bf16.msra.mxu1 %v14315_v60  ;;  %v14299_v60 = vor.u32 %v17264_v62, %v14296_v51  ;;  %v14280_v62 = vld [vmem:[%s19746_s27 + $0x388] sm:$0xf0]  ;;  %v17320_v32 = vld [vmem:[%s19746_s27 + $0x564] sm:$0xf] }
 0x517   : > { %12701 = vmatpush.bf16.msra.mxu2 %v14379_v11  ;;  %v21254_v26 = vadd.f32 %v12441_v22, %v12428_v45  ;;  %v14363_v11 = vor.u32 %v17280_v18, %v14360_v13  ;;  %v14344_v51 = vld [vmem:[%s19746_s27 + $0x408] sm:$0xf0]  ;;  %v17292_v18 = vld [vmem:[%s19746_s27 + $0x484] sm:$0xf]  ;;  %v17322_v45 = vld [vmem:[%s19746_s27 + $0x574] sm:$0xf]  ;;  %v14283_v38 = vor.u32 %v17260_v19, %v14280_v62  ;;  %v21286_v62 = vpop.f32.mrf.mxu0 }
 0x518   : > { %12715 = vmatpush.bf16.msra.mxu3 %v14443_v58  ;;  %v14427_v58 = vor.u32 %v17296_v39, %v14424_v40  ;;  %v14408_v13 = vld [vmem:[%s19746_s27 + $0x488] sm:$0xf0]  ;;  %v14528_v22 = vld [vmem:[%s19746_s27 + $0x578] sm:$0xf0]  ;;  %v17338_v39 = vld [vmem:[%s19746_s27 + $0x5f4] sm:$0xf] }
 0x519   : > { %12674 = vmatpush.bf16.msra.mxu0 %v14243_v31  ;;  %v17244_v31 = vld [vmem:[%s19746_s27 + $0x304] sm:$0xf]  ;;  %v14531_v48 = vor.u32 %v17322_v45, %v14528_v22  ;;  %v14648_v19 = vld [vmem:[%s19746_s27 + $0x668] sm:$0xf0]  ;;  %v17318_v22 = vld [vmem:[%s19746_s27 + $0x554] sm:$0xf] }
 0x51a   : > { %12688 = vmatpush.bf16.msra.mxu1 %v14307_v34  ;;  %v14216_v34 = vld [vmem:[%s19746_s27 + $0x308] sm:$0xf0] }
 0x51b   : > { %12702 = vmatpush.bf16.msra.mxu2 %v14371_v55  ;;  %v14291_v55 = vor.u32 %v17262_v63, %v14288_v41  ;;  %v14219_v40 = vor.u32 %v17244_v31, %v14216_v34  ;;  %v17370_v63 = vld [vmem:[%s19746_s27 + $0x6f4] sm:$0xf]  ;;  %v14411_v41 = vor.u32 %v17292_v18, %v14408_v13  ;;  %v17336_v31 = vld [vmem:[%s19746_s27 + $0x5e4] sm:$0xf] }
 0x51c   : > { %12716 = vmatpush.bf16.msra.mxu3 %v14435_v8  ;;  %v17276_v8 = vld [vmem:[%s19746_s27 + $0x404] sm:$0xf] }
 0x51d   : > { %12675 = vmatpush.bf16.msra.mxu0 %v14235_v47  ;;  %v14592_v47 = vld [vmem:[%s19746_s27 + $0x5f8] sm:$0xf0]  ;;  %v14347_v33 = vor.u32 %v17276_v8, %v14344_v51  ;;  %v17368_v8 = vld [vmem:[%s19746_s27 + $0x6e4] sm:$0xf]  ;;  %v21290_v51 = vpop.f32.mrf.mxu1 }
 0x51e   : > { %12689 = vmatpush.bf16.msra.mxu1 %v14299_v60  ;;  %v17354_v60 = vld [vmem:[%s19746_s27 + $0x674] sm:$0xf]  ;;  %v14595_v21 = vor.u32 %v17338_v39, %v14592_v47  ;;  %v14512_v39 = vld [vmem:[%s19746_s27 + $0x558] sm:$0xf0] }
 0x51f   : > { %12703 = vmatpush.bf16.msra.mxu2 %v14363_v11  ;;  %v14656_v11 = vld [vmem:[%s19746_s27 + $0x678] sm:$0xf0] }
 0x520   : > { %12717 = vmatpush.bf16.msra.mxu3 %v14427_v58  ;;  %v14720_v58 = vld [vmem:[%s19746_s27 + $0x6f8] sm:$0xf0]  ;;  %v14659_v52 = vor.u32 %v17354_v60, %v14656_v11  ;;  %v17350_v11 = vld [vmem:[%s19746_s27 + $0x654] sm:$0xf] }
 0x521   : > { %12676 = vmatpush.bf16.msra.mxu0 %v14227_v49  ;;  %v14520_v49 = vld [vmem:[%s19746_s27 + $0x568] sm:$0xf0]  ;;  %v14723_v34 = vor.u32 %v17370_v63, %v14720_v58  ;;  %v14576_v60 = vld [vmem:[%s19746_s27 + $0x5d8] sm:$0xf0] }
 0x522   : > { %12690 = vmatpush.bf16.msra.mxu1 %v14291_v55  ;;  %v14584_v55 = vld [vmem:[%s19746_s27 + $0x5e8] sm:$0xf0]  ;;  %v14523_v18 = vor.u32 %v17320_v32, %v14520_v49  ;;  %v14704_v63 = vld [vmem:[%s19746_s27 + $0x6d8] sm:$0xf0]  ;;  %v17348_v49 = vld [vmem:[%s19746_s27 + $0x644] sm:$0xf] }
 0x523   : > { %12704 = vmatpush.bf16.msra.mxu2 %v14355_v43  ;;  %v17352_v43 = vld [vmem:[%s19746_s27 + $0x664] sm:$0xf]  ;;  %v14587_v13 = vor.u32 %v17336_v31, %v14584_v55  ;;  %v14568_v32 = vld [vmem:[%s19746_s27 + $0x5c8] sm:$0xf0]  ;;  %v21312_v31 = vpop.f32.mrf.mxu3 }
 0x524   : > { %12718 = vmatpush.bf16.msra.mxu3 %v14419_v50  ;;  %v14712_v50 = vld [vmem:[%s19746_s27 + $0x6e8] sm:$0xf0]  ;;  %v14651_v45 = vor.u32 %v17352_v43, %v14648_v19  ;;  %v17364_v55 = vld [vmem:[%s19746_s27 + $0x6c4] sm:$0xf] }
 0x525   : > { %12677 = vmatpush.bf16.msra.mxu0 %v14219_v40  ;;  %v17334_v40 = vld [vmem:[%s19746_s27 + $0x5d4] sm:$0xf]  ;;  %v14715_v47 = vor.u32 %v17368_v8, %v14712_v50  ;;  %v14696_v43 = vld [vmem:[%s19746_s27 + $0x6c8] sm:$0xf0] }
 0x526   : > { %12691 = vmatpush.bf16.msra.mxu1 %v14283_v38  ;;  %v14640_v38 = vld [vmem:[%s19746_s27 + $0x658] sm:$0xf0]  ;;  %v14579_v58 = vor.u32 %v17334_v40, %v14576_v60  ;;  %v12469_v50 = vpop.f32.mrf.mxu1  ;;  %v14699_v40 = vor.u32 %v17364_v55, %v14696_v43  ;;  %v17360_v43 = vld [vmem:[%s19746_s27 + $0x6a4] sm:$0xf] }
 0x527   : > { %12705 = vmatpush.bf16.msra.mxu2 %v14347_v33  ;;  %v17366_v33 = vld [vmem:[%s19746_s27 + $0x6d4] sm:$0xf]  ;;  %v14560_v60 = vld [vmem:[%s19746_s27 + $0x5b8] sm:$0xf0] }
 0x528   : > { %12719 = vmatpush.bf16.msra.mxu3 %v14411_v41  ;;  %12678 = vmatmul.bf16.vlgmr.msra.gmra.mxu0 %v19953_v12  ;;  %v14515_v12 = vor.u32 %v17318_v22, %v14512_v39  ;;  %v14643_v41 = vor.u32 %v17350_v11, %v14640_v38  ;;  %v14496_v22 = vld [vmem:[%s19746_s27 + $0x538] sm:$0xf0]  ;;  %v17330_v39 = vld [vmem:[%s19746_s27 + $0x5b4] sm:$0xf] }
 0x529   : > { %12726 = vmatpush.bf16.msrb.mxu0 %v14531_v48  ;;  %12692 = vmatmul.bf16.vlgmr.msra.gmra.mxu1 %v19959_v16  ;;  %v17316_v48 = vld [vmem:[%s19746_s27 + $0x544] sm:$0xf]  ;;  %v14707_v16 = vor.u32 %v17366_v33, %v14704_v63  ;;  %v17346_v11 = vld [vmem:[%s19746_s27 + $0x634] sm:$0xf]  ;;  %v14688_v33 = vld [vmem:[%s19746_s27 + $0x6b8] sm:$0xf0] }
 0x52a   : > { %12740 = vmatpush.bf16.msrb.mxu1 %v14595_v21  ;;  %12706 = vmatmul.bf16.vlgmr.msra.gmra.mxu2 %v20048_v0  ;;  %v14504_v21 = vld [vmem:[%s19746_s27 + $0x548] sm:$0xf0]  ;;  %v17332_v0 = vld [vmem:[%s19746_s27 + $0x5c4] sm:$0xf]  ;;  %v17362_v38 = vld [vmem:[%s19746_s27 + $0x6b4] sm:$0xf] }
 0x52b   : > { %12754 = vmatpush.bf16.msrb.mxu2 %v14659_v52  ;;  %12720 = vmatmul.bf16.vlgmr.msra.gmra.mxu3 %v20055_v5  ;;  %v21307_v52 = vpop.f32.mrf.mxu2  ;;  %v14632_v5 = vld [vmem:[%s19746_s27 + $0x648] sm:$0xf0]  ;;  %v14507_v8 = vor.u32 %v17316_v48, %v14504_v21  ;;  %v17328_v21 = vld [vmem:[%s19746_s27 + $0x5a4] sm:$0xf] }
 0x52c   : > { %12768 = vmatpush.bf16.msrb.mxu3 %v14723_v34  ;;  %v12455_v34 = vpop.f32.mrf.mxu0  ;;  %v14488_v48 = vld [vmem:[%s19746_s27 + $0x528] sm:$0xf0] }
 0x52d   : > { %12727 = vmatpush.bf16.msrb.mxu0 %v14523_v18  ;;  %v12456_v19 = vadd.f32 %v12455_v34, %v21254_v26  ;;  %v14571_v18 = vor.u32 %v17332_v0, %v14568_v32  ;;  %v14624_v26 = vld [vmem:[%s19746_s27 + $0x638] sm:$0xf0]  ;;  %v14691_v0 = vor.u32 %v17362_v38, %v14688_v33  ;;  %v14552_v32 = vld [vmem:[%s19746_s27 + $0x5a8] sm:$0xf0] }
 0x52e   : > { %12741 = vmatpush.bf16.msrb.mxu1 %v14587_v13  ;;  %v14635_v13 = vor.u32 %v17348_v49, %v14632_v5  ;;  %v17344_v49 = vld [vmem:[%s19746_s27 + $0x624] sm:$0xf]  ;;  %v14616_v5 = vld [vmem:[%s19746_s27 + $0x628] sm:$0xf0]  ;;  %v12497_v55 = vpop.f32.mrf.mxu3  ;;  %v14672_v38 = vld [vmem:[%s19746_s27 + $0x698] sm:$0xf0] }
 0x52f   : > { %12755 = vmatpush.bf16.msrb.mxu2 %v14651_v45  ;;  %v17314_v45 = vld [vmem:[%s19746_s27 + $0x534] sm:$0xf] }
 0x530   : > { %12769 = vmatpush.bf16.msrb.mxu3 %v14715_v47  ;;  %v12470_v47 = vadd.f32 %v12469_v50, %v12456_v19  ;;  %v14499_v63 = vor.u32 %v17314_v45, %v14496_v22  ;;  %v14680_v19 = vld [vmem:[%s19746_s27 + $0x6a8] sm:$0xf0]  ;;  %v17310_v45 = vld [vmem:[%s19746_s27 + $0x514] sm:$0xf]  ;;  %v14480_v22 = vld [vmem:[%s19746_s27 + $0x518] sm:$0xf0] }
 0x531   : > { %12728 = vmatpush.bf16.msrb.mxu0 %v14515_v12  ;;  %v14563_v12 = vor.u32 %v17330_v39, %v14560_v60  ;;  %v17326_v39 = vld [vmem:[%s19746_s27 + $0x594] sm:$0xf]  ;;  %v14483_v33 = vor.u32 %v17310_v45, %v14480_v22 }
 0x532   : > { %12742 = vmatpush.bf16.msrb.mxu1 %v14579_v58  ;;  %v14627_v58 = vor.u32 %v17346_v11, %v14624_v26  ;;  %v17342_v60 = vld [vmem:[%s19746_s27 + $0x614] sm:$0xf]  ;;  %v14608_v11 = vld [vmem:[%s19746_s27 + $0x618] sm:$0xf0] }
 0x533   : > { %12756 = vmatpush.bf16.msrb.mxu2 %v14643_v41  ;;  %v17312_v41 = vld [vmem:[%s19746_s27 + $0x524] sm:$0xf]  ;;  %v17358_v26 = vld [vmem:[%s19746_s27 + $0x694] sm:$0xf] }
 0x534   : > { %12770 = vmatpush.bf16.msrb.mxu3 %v14707_v16  ;;  %v12483_v16 = vpop.f32.mrf.mxu2 }
 0x535   : > { %12729 = vmatpush.bf16.msrb.mxu0 %v14507_v8  ;;  %v12484_v34 = vadd.f32 %v12483_v16, %v12470_v47  ;;  %v14491_v8 = vor.u32 %v17312_v41, %v14488_v48  ;;  %v14544_v47 = vld [vmem:[%s19746_s27 + $0x598] sm:$0xf0]  ;;  %v14611_v41 = vor.u32 %v17342_v60, %v14608_v11  ;;  %v17324_v48 = vld [vmem:[%s19746_s27 + $0x584] sm:$0xf]  ;;  %v14675_v16 = vor.u32 %v17358_v26, %v14672_v38 }
 0x536   : > { %12743 = vmatpush.bf16.msrb.mxu1 %v14571_v18  ;;  %v14555_v18 = vor.u32 %v17328_v21, %v14552_v32  ;;  %v14536_v21 = vld [vmem:[%s19746_s27 + $0x588] sm:$0xf0]  ;;  %v17384_v38 = vld [vmem:[%s19746_s27 + $0x764] sm:$0xf] }
 0x537   : > { %12757 = vmatpush.bf16.msrb.mxu2 %v14635_v13  ;;  %v21333_v50 = vadd.f32 %v12497_v55, %v12484_v34  ;;  %v14619_v13 = vor.u32 %v17344_v49, %v14616_v5  ;;  %v14600_v32 = vld [vmem:[%s19746_s27 + $0x608] sm:$0xf0]  ;;  %v17356_v49 = vld [vmem:[%s19746_s27 + $0x684] sm:$0xf]  ;;  %v17386_v34 = vld [vmem:[%s19746_s27 + $0x774] sm:$0xf]  ;;  %v14539_v45 = vor.u32 %v17324_v48, %v14536_v21  ;;  %v21365_v21 = vpop.f32.mrf.mxu0 }
 0x538   : > { %12771 = vmatpush.bf16.msrb.mxu3 %v14699_v40  ;;  %v14683_v40 = vor.u32 %v17360_v43, %v14680_v19  ;;  %v14664_v5 = vld [vmem:[%s19746_s27 + $0x688] sm:$0xf0]  ;;  %v14784_v55 = vld [vmem:[%s19746_s27 + $0x778] sm:$0xf0]  ;;  %v17402_v43 = vld [vmem:[%s19746_s27 + $0x7f4] sm:$0xf] }
 0x539   : > { %12730 = vmatpush.bf16.msrb.mxu0 %v14499_v63  ;;  %v17308_v63 = vld [vmem:[%s19746_s27 + $0x504] sm:$0xf]  ;;  %v14787_v60 = vor.u32 %v17386_v34, %v14784_v55  ;;  %v14904_v48 = vld [vmem:[%s19746_s27 + $0x868] sm:$0xf0]  ;;  %v17382_v55 = vld [vmem:[%s19746_s27 + $0x754] sm:$0xf] }
 0x53a   : > { %12744 = vmatpush.bf16.msrb.mxu1 %v14563_v12  ;;  %v14472_v12 = vld [vmem:[%s19746_s27 + $0x508] sm:$0xf0] }
 0x53b   : > { %12758 = vmatpush.bf16.msrb.mxu2 %v14627_v58  ;;  %v14547_v58 = vor.u32 %v17326_v39, %v14544_v47  ;;  %v14475_v19 = vor.u32 %v17308_v63, %v14472_v12  ;;  %v17434_v39 = vld [vmem:[%s19746_s27 + $0x8f4] sm:$0xf]  ;;  %v14667_v47 = vor.u32 %v17356_v49, %v14664_v5  ;;  %v17400_v63 = vld [vmem:[%s19746_s27 + $0x7e4] sm:$0xf] }
 0x53c   : > { %12772 = vmatpush.bf16.msrb.mxu3 %v14691_v0  ;;  %v17340_v0 = vld [vmem:[%s19746_s27 + $0x604] sm:$0xf] }
 0x53d   : > { %12731 = vmatpush.bf16.msrb.mxu0 %v14491_v8  ;;  %v14848_v8 = vld [vmem:[%s19746_s27 + $0x7f8] sm:$0xf0]  ;;  %v14603_v22 = vor.u32 %v17340_v0, %v14600_v32  ;;  %v17432_v0 = vld [vmem:[%s19746_s27 + $0x8e4] sm:$0xf]  ;;  %v21369_v32 = vpop.f32.mrf.mxu1 }
 0x53e   : > { %12745 = vmatpush.bf16.msrb.mxu1 %v14555_v18  ;;  %v17418_v18 = vld [vmem:[%s19746_s27 + $0x874] sm:$0xf]  ;;  %v14851_v11 = vor.u32 %v17402_v43, %v14848_v8  ;;  %v14768_v43 = vld [vmem:[%s19746_s27 + $0x758] sm:$0xf0] }
 0x53f   : > { %12759 = vmatpush.bf16.msrb.mxu2 %v14619_v13  ;;  %v14912_v13 = vld [vmem:[%s19746_s27 + $0x878] sm:$0xf0] }
 0x540   : > { %12773 = vmatpush.bf16.msrb.mxu3 %v14683_v40  ;;  %v14976_v40 = vld [vmem:[%s19746_s27 + $0x8f8] sm:$0xf0]  ;;  %v14915_v26 = vor.u32 %v17418_v18, %v14912_v13  ;;  %v17414_v13 = vld [vmem:[%s19746_s27 + $0x854] sm:$0xf] }
 0x541   : > { %12732 = vmatpush.bf16.msrb.mxu0 %v14483_v33  ;;  %v14776_v33 = vld [vmem:[%s19746_s27 + $0x768] sm:$0xf0]  ;;  %v14979_v12 = vor.u32 %v17434_v39, %v14976_v40  ;;  %v14832_v18 = vld [vmem:[%s19746_s27 + $0x7d8] sm:$0xf0] }
 0x542   : > { %12746 = vmatpush.bf16.msrb.mxu1 %v14547_v58  ;;  %v14840_v58 = vld [vmem:[%s19746_s27 + $0x7e8] sm:$0xf0]  ;;  %v14779_v49 = vor.u32 %v17384_v38, %v14776_v33  ;;  %v14960_v39 = vld [vmem:[%s19746_s27 + $0x8d8] sm:$0xf0]  ;;  %v17412_v33 = vld [vmem:[%s19746_s27 + $0x844] sm:$0xf] }
 0x543   : > { %12760 = vmatpush.bf16.msrb.mxu2 %v14611_v41  ;;  %v17416_v41 = vld [vmem:[%s19746_s27 + $0x864] sm:$0xf]  ;;  %v14843_v5 = vor.u32 %v17400_v63, %v14840_v58  ;;  %v14824_v38 = vld [vmem:[%s19746_s27 + $0x7c8] sm:$0xf0]  ;;  %v21391_v63 = vpop.f32.mrf.mxu3 }
 0x544   : > { %12774 = vmatpush.bf16.msrb.mxu3 %v14675_v16  ;;  %v14968_v16 = vld [vmem:[%s19746_s27 + $0x8e8] sm:$0xf0]  ;;  %v14907_v34 = vor.u32 %v17416_v41, %v14904_v48  ;;  %v17428_v58 = vld [vmem:[%s19746_s27 + $0x8c4] sm:$0xf] }
 0x545   : > { %12733 = vmatpush.bf16.msrb.mxu0 %v14475_v19  ;;  %v17398_v19 = vld [vmem:[%s19746_s27 + $0x7d4] sm:$0xf]  ;;  %v14971_v8 = vor.u32 %v17432_v0, %v14968_v16  ;;  %v14952_v41 = vld [vmem:[%s19746_s27 + $0x8c8] sm:$0xf0] }
 0x546   : > { %12747 = vmatpush.bf16.msrb.mxu1 %v14539_v45  ;;  %v14896_v45 = vld [vmem:[%s19746_s27 + $0x858] sm:$0xf0]  ;;  %v14835_v40 = vor.u32 %v17398_v19, %v14832_v18  ;;  %v12525_v16 = vpop.f32.mrf.mxu1  ;;  %v14955_v19 = vor.u32 %v17428_v58, %v14952_v41  ;;  %v17424_v41 = vld [vmem:[%s19746_s27 + $0x8a4] sm:$0xf] }
 0x547   : > { %12761 = vmatpush.bf16.msrb.mxu2 %v14603_v22  ;;  %v17430_v22 = vld [vmem:[%s19746_s27 + $0x8d4] sm:$0xf]  ;;  %v14816_v18 = vld [vmem:[%s19746_s27 + $0x7b8] sm:$0xf0] }
 0x548   : > { %12775 = vmatpush.bf16.msrb.mxu3 %v14667_v47  ;;  %12734 = vmatmul.bf16.vlgmr.msrb.gmra.mxu0 %v20053_v4  ;;  %v14771_v4 = vor.u32 %v17382_v55, %v14768_v43  ;;  %v14899_v47 = vor.u32 %v17414_v13, %v14896_v45  ;;  %v14752_v55 = vld [vmem:[%s19746_s27 + $0x738] sm:$0xf0]  ;;  %v17394_v43 = vld [vmem:[%s19746_s27 + $0x7b4] sm:$0xf] }
 0x549   : > { %12782 = vmatpush.bf16.msra.mxu0 %v14787_v60  ;;  %12748 = vmatmul.bf16.vlgmr.msrb.gmra.mxu1 %v20059_v9  ;;  %v17380_v60 = vld [vmem:[%s19746_s27 + $0x744] sm:$0xf]  ;;  %v14963_v9 = vor.u32 %v17430_v22, %v14960_v39  ;;  %v17410_v13 = vld [vmem:[%s19746_s27 + $0x834] sm:$0xf]  ;;  %v14944_v22 = vld [vmem:[%s19746_s27 + $0x8b8] sm:$0xf0] }
 0x54a   : > { %12796 = vmatpush.bf16.msra.mxu1 %v14851_v11  ;;  %12762 = vmatmul.bf16.vlgmr.msrb.gmra.mxu2 %v20148_v1  ;;  %v14760_v11 = vld [vmem:[%s19746_s27 + $0x748] sm:$0xf0]  ;;  %v17396_v1 = vld [vmem:[%s19746_s27 + $0x7c4] sm:$0xf]  ;;  %v17426_v45 = vld [vmem:[%s19746_s27 + $0x8b4] sm:$0xf] }
 0x54b   : > { %12810 = vmatpush.bf16.msra.mxu2 %v14915_v26  ;;  %12776 = vmatmul.bf16.vlgmr.msrb.gmra.mxu3 %v20155_v10  ;;  %v21386_v26 = vpop.f32.mrf.mxu2  ;;  %v14888_v10 = vld [vmem:[%s19746_s27 + $0x848] sm:$0xf0]  ;;  %v14763_v0 = vor.u32 %v17380_v60, %v14760_v11  ;;  %v17392_v11 = vld [vmem:[%s19746_s27 + $0x7a4] sm:$0xf] }
 0x54c   : > { %12824 = vmatpush.bf16.msra.mxu3 %v14979_v12  ;;  %v12511_v12 = vpop.f32.mrf.mxu0  ;;  %v14744_v60 = vld [vmem:[%s19746_s27 + $0x728] sm:$0xf0] }
 0x54d   : > { %12783 = vmatpush.bf16.msra.mxu0 %v14779_v49  ;;  %v12512_v48 = vadd.f32 %v12511_v12, %v21333_v50  ;;  %v14827_v49 = vor.u32 %v17396_v1, %v14824_v38  ;;  %v14880_v50 = vld [vmem:[%s19746_s27 + $0x838] sm:$0xf0]  ;;  %v14947_v1 = vor.u32 %v17426_v45, %v14944_v22  ;;  %v14808_v38 = vld [vmem:[%s19746_s27 + $0x7a8] sm:$0xf0] }
 0x54e   : > { %12797 = vmatpush.bf16.msra.mxu1 %v14843_v5  ;;  %v14891_v5 = vor.u32 %v17412_v33, %v14888_v10  ;;  %v17408_v33 = vld [vmem:[%s19746_s27 + $0x824] sm:$0xf]  ;;  %v14872_v10 = vld [vmem:[%s19746_s27 + $0x828] sm:$0xf0]  ;;  %v12553_v58 = vpop.f32.mrf.mxu3  ;;  %v14928_v45 = vld [vmem:[%s19746_s27 + $0x898] sm:$0xf0] }
 0x54f   : > { %12811 = vmatpush.bf16.msra.mxu2 %v14907_v34  ;;  %v17378_v34 = vld [vmem:[%s19746_s27 + $0x734] sm:$0xf] }
 0x550   : > { %12825 = vmatpush.bf16.msra.mxu3 %v14971_v8  ;;  %v12526_v8 = vadd.f32 %v12525_v16, %v12512_v48  ;;  %v14755_v39 = vor.u32 %v17378_v34, %v14752_v55  ;;  %v14936_v48 = vld [vmem:[%s19746_s27 + $0x8a8] sm:$0xf0]  ;;  %v17374_v34 = vld [vmem:[%s19746_s27 + $0x714] sm:$0xf]  ;;  %v14736_v55 = vld [vmem:[%s19746_s27 + $0x718] sm:$0xf0] }
 0x551   : > { %12784 = vmatpush.bf16.msra.mxu0 %v14771_v4  ;;  %v14819_v4 = vor.u32 %v17394_v43, %v14816_v18  ;;  %v17390_v43 = vld [vmem:[%s19746_s27 + $0x794] sm:$0xf]  ;;  %v14739_v22 = vor.u32 %v17374_v34, %v14736_v55 }
 0x552   : > { %12798 = vmatpush.bf16.msra.mxu1 %v14835_v40  ;;  %v14883_v40 = vor.u32 %v17410_v13, %v14880_v50  ;;  %v17406_v18 = vld [vmem:[%s19746_s27 + $0x814] sm:$0xf]  ;;  %v14864_v13 = vld [vmem:[%s19746_s27 + $0x818] sm:$0xf0] }
 0x553   : > { %12812 = vmatpush.bf16.msra.mxu2 %v14899_v47  ;;  %v17376_v47 = vld [vmem:[%s19746_s27 + $0x724] sm:$0xf]  ;;  %v17422_v50 = vld [vmem:[%s19746_s27 + $0x894] sm:$0xf] }
 0x554   : > { %12826 = vmatpush.bf16.msra.mxu3 %v14963_v9  ;;  %v12539_v9 = vpop.f32.mrf.mxu2 }
 0x555   : > { %12785 = vmatpush.bf16.msra.mxu0 %v14763_v0  ;;  %v12540_v12 = vadd.f32 %v12539_v9, %v12526_v8  ;;  %v14747_v0 = vor.u32 %v17376_v47, %v14744_v60  ;;  %v14800_v8 = vld [vmem:[%s19746_s27 + $0x798] sm:$0xf0]  ;;  %v14867_v47 = vor.u32 %v17406_v18, %v14864_v13  ;;  %v17388_v60 = vld [vmem:[%s19746_s27 + $0x784] sm:$0xf]  ;;  %v14931_v9 = vor.u32 %v17422_v50, %v14928_v45 }
 0x556   : > { %12799 = vmatpush.bf16.msra.mxu1 %v14827_v49  ;;  %v14811_v49 = vor.u32 %v17392_v11, %v14808_v38  ;;  %v14792_v11 = vld [vmem:[%s19746_s27 + $0x788] sm:$0xf0]  ;;  %v17448_v45 = vld [vmem:[%s19746_s27 + $0x964] sm:$0xf] }
 0x557   : > { %12813 = vmatpush.bf16.msra.mxu2 %v14891_v5  ;;  %v21412_v16 = vadd.f32 %v12553_v58, %v12540_v12  ;;  %v14875_v5 = vor.u32 %v17408_v33, %v14872_v10  ;;  %v14856_v38 = vld [vmem:[%s19746_s27 + $0x808] sm:$0xf0]  ;;  %v17420_v33 = vld [vmem:[%s19746_s27 + $0x884] sm:$0xf]  ;;  %v17450_v12 = vld [vmem:[%s19746_s27 + $0x974] sm:$0xf]  ;;  %v14795_v34 = vor.u32 %v17388_v60, %v14792_v11  ;;  %v21444_v11 = vpop.f32.mrf.mxu0 }
 0x558   : > { %12827 = vmatpush.bf16.msra.mxu3 %v14955_v19  ;;  %v14939_v19 = vor.u32 %v17424_v41, %v14936_v48  ;;  %v14920_v10 = vld [vmem:[%s19746_s27 + $0x888] sm:$0xf0]  ;;  %v15040_v58 = vld [vmem:[%s19746_s27 + $0x978] sm:$0xf0]  ;;  %v17466_v41 = vld [vmem:[%s19746_s27 + $0x9f4] sm:$0xf] }
 0x559   : > { %12786 = vmatpush.bf16.msra.mxu0 %v14755_v39  ;;  %v17372_v39 = vld [vmem:[%s19746_s27 + $0x704] sm:$0xf]  ;;  %v15043_v18 = vor.u32 %v17450_v12, %v15040_v58  ;;  %v15160_v60 = vld [vmem:[%s19746_s27 + $0xa68] sm:$0xf0]  ;;  %v17446_v58 = vld [vmem:[%s19746_s27 + $0x954] sm:$0xf] }
 0x55a   : > { %12800 = vmatpush.bf16.msra.mxu1 %v14819_v4  ;;  %v14728_v4 = vld [vmem:[%s19746_s27 + $0x708] sm:$0xf0] }
 0x55b   : > { %12814 = vmatpush.bf16.msra.mxu2 %v14883_v40  ;;  %v14803_v40 = vor.u32 %v17390_v43, %v14800_v8  ;;  %v14731_v48 = vor.u32 %v17372_v39, %v14728_v4  ;;  %v17498_v43 = vld [vmem:[%s19746_s27 + $0xaf4] sm:$0xf]  ;;  %v14923_v8 = vor.u32 %v17420_v33, %v14920_v10  ;;  %v17464_v39 = vld [vmem:[%s19746_s27 + $0x9e4] sm:$0xf] }
 0x55c   : > { %12828 = vmatpush.bf16.msra.mxu3 %v14947_v1  ;;  %v17404_v1 = vld [vmem:[%s19746_s27 + $0x804] sm:$0xf] }
 0x55d   : > { %12787 = vmatpush.bf16.msra.mxu0 %v14747_v0  ;;  %v15104_v0 = vld [vmem:[%s19746_s27 + $0x9f8] sm:$0xf0]  ;;  %v14859_v55 = vor.u32 %v17404_v1, %v14856_v38  ;;  %v17496_v1 = vld [vmem:[%s19746_s27 + $0xae4] sm:$0xf]  ;;  %v21448_v38 = vpop.f32.mrf.mxu1 }
 0x55e   : > { %12801 = vmatpush.bf16.msra.mxu1 %v14811_v49  ;;  %v17482_v49 = vld [vmem:[%s19746_s27 + $0xa74] sm:$0xf]  ;;  %v15107_v13 = vor.u32 %v17466_v41, %v15104_v0  ;;  %v15024_v41 = vld [vmem:[%s19746_s27 + $0x958] sm:$0xf0] }
 0x55f   : > { %12815 = vmatpush.bf16.msra.mxu2 %v14875_v5  ;;  %v15168_v5 = vld [vmem:[%s19746_s27 + $0xa78] sm:$0xf0] }
 0x560   : > { %12829 = vmatpush.bf16.msra.mxu3 %v14939_v19  ;;  %v15232_v19 = vld [vmem:[%s19746_s27 + $0xaf8] sm:$0xf0]  ;;  %v15171_v50 = vor.u32 %v17482_v49, %v15168_v5  ;;  %v17478_v5 = vld [vmem:[%s19746_s27 + $0xa54] sm:$0xf] }
 0x561   : > { %12788 = vmatpush.bf16.msra.mxu0 %v14739_v22  ;;  %v15032_v22 = vld [vmem:[%s19746_s27 + $0x968] sm:$0xf0]  ;;  %v15235_v4 = vor.u32 %v17498_v43, %v15232_v19  ;;  %v15088_v49 = vld [vmem:[%s19746_s27 + $0x9d8] sm:$0xf0] }
 0x562   : > { %12802 = vmatpush.bf16.msra.mxu1 %v14803_v40  ;;  %v15096_v40 = vld [vmem:[%s19746_s27 + $0x9e8] sm:$0xf0]  ;;  %v15035_v33 = vor.u32 %v17448_v45, %v15032_v22  ;;  %v15216_v43 = vld [vmem:[%s19746_s27 + $0xad8] sm:$0xf0]  ;;  %v17476_v22 = vld [vmem:[%s19746_s27 + $0xa44] sm:$0xf] }
 0x563   : > { %12816 = vmatpush.bf16.msra.mxu2 %v14867_v47  ;;  %v17480_v47 = vld [vmem:[%s19746_s27 + $0xa64] sm:$0xf]  ;;  %v15099_v10 = vor.u32 %v17464_v39, %v15096_v40  ;;  %v15080_v45 = vld [vmem:[%s19746_s27 + $0x9c8] sm:$0xf0] }
 0x564   : > { %12830 = vmatpush.bf16.msra.mxu3 %v14931_v9  ;;  %v15224_v9 = vld [vmem:[%s19746_s27 + $0xae8] sm:$0xf0]  ;;  %v15163_v12 = vor.u32 %v17480_v47, %v15160_v60  ;;  %v21472_v47 = vpop.f32.mrf.mxu3 }
 0x565   : > { %12789 = vmatpush.bf16.msra.mxu0 %v14731_v48  ;;  %v17462_v48 = vld [vmem:[%s19746_s27 + $0x9d4] sm:$0xf]  ;;  %v15227_v0 = vor.u32 %v17496_v1, %v15224_v9  ;;  %v12567_v39 = vpop.f32.mrf.mxu0  ;;  %v15208_v40 = vld [vmem:[%s19746_s27 + $0xac8] sm:$0xf0]  ;;  %22211 = vst [vmem:[#allocation50_spill] sm:$0xff] %v21472_v47 }
 0x566   : > { %12803 = vmatpush.bf16.msra.mxu1 %v14795_v34  ;;  %v15152_v34 = vld [vmem:[%s19746_s27 + $0xa58] sm:$0xf0]  ;;  %v15091_v19 = vor.u32 %v17462_v48, %v15088_v49  ;;  %v12568_v60 = vadd.f32 %v12567_v39, %v21412_v16  ;;  %v12581_v9 = vpop.f32.mrf.mxu1  ;;  %v17474_v49 = vld [vmem:[%s19746_s27 + $0xa34] sm:$0xf]  ;;  %v15128_v39 = vld [vmem:[%s19746_s27 + $0xa28] sm:$0xf0] }
 0x567   : > { %12817 = vmatpush.bf16.msra.mxu2 %v14859_v55  ;;  %v17494_v55 = vld [vmem:[%s19746_s27 + $0xad4] sm:$0xf]  ;;  %v15072_v16 = vld [vmem:[%s19746_s27 + $0x9b8] sm:$0xf0]  ;;  %v15352_v47 = vld [vmem:[%s19746_s27 + $0xbe8] sm:$0xf0] }
 0x568   : > { %12831 = vmatpush.bf16.msra.mxu3 %v14923_v8  ;;  %12790 = vmatmul.bf16.vlgmr.msra.gmra.mxu0 %v20153_v7  ;;  %v15027_v7 = vor.u32 %v17446_v58, %v15024_v41  ;;  %v15155_v8 = vor.u32 %v17478_v5, %v15152_v34  ;;  %v15008_v58 = vld [vmem:[%s19746_s27 + $0x938] sm:$0xf0]  ;;  %v17458_v41 = vld [vmem:[%s19746_s27 + $0x9b4] sm:$0xf] }
 0x569   : > { %12838 = vmatpush.bf16.msrb.mxu0 %v15043_v18  ;;  %12804 = vmatmul.bf16.vlgmr.msra.gmra.mxu1 %v20159_v15  ;;  %v17444_v18 = vld [vmem:[%s19746_s27 + $0x944] sm:$0xf]  ;;  %v15219_v15 = vor.u32 %v17494_v55, %v15216_v43  ;;  %v15136_v5 = vld [vmem:[%s19746_s27 + $0xa38] sm:$0xf0]  ;;  %v17490_v34 = vld [vmem:[%s19746_s27 + $0xab4] sm:$0xf] }
 0x56a   : > { %12852 = vmatpush.bf16.msrb.mxu1 %v15107_v13  ;;  %12818 = vmatmul.bf16.vlgmr.msra.gmra.mxu2 %v20248_v20  ;;  %v15016_v13 = vld [vmem:[%s19746_s27 + $0x948] sm:$0xf0]  ;;  %v17460_v20 = vld [vmem:[%s19746_s27 + $0x9c4] sm:$0xf]  ;;  %v15200_v55 = vld [vmem:[%s19746_s27 + $0xab8] sm:$0xf0] }
 0x56b   : > { %12866 = vmatpush.bf16.msrb.mxu2 %v15171_v50  ;;  %12832 = vmatmul.bf16.vlgmr.msra.gmra.mxu3 %v20255_v25  ;;  %v21465_v50 = vpop.f32.mrf.mxu2  ;;  %v15144_v25 = vld [vmem:[%s19746_s27 + $0xa48] sm:$0xf0]  ;;  %v15019_v1 = vor.u32 %v17444_v18, %v15016_v13  ;;  %v21486_v43 = vld [vmem:[%s19739_s15] sm:$0x3]  ;;  %v15139_v18 = vor.u32 %v17474_v49, %v15136_v5  ;;  %v17440_v13 = vld [vmem:[%s19746_s27 + $0x924] sm:$0xf] }
 0x56c   : > { %12880 = vmatpush.bf16.msrb.mxu3 %v15235_v4  ;;  %v17492_v4 = vld [vmem:[%s19746_s27 + $0xac4] sm:$0xf]  ;;  %v15056_v5 = vld [vmem:[%s19746_s27 + $0x998] sm:$0xf0] }
 0x56d   : > { %12839 = vmatpush.bf16.msrb.mxu0 %v15035_v33  ;;  %v15083_v33 = vor.u32 %v17460_v20, %v15080_v45  ;;  %v15211_v48 = vor.u32 %v17492_v4, %v15208_v40  ;;  %v15000_v20 = vld [vmem:[%s19746_s27 + $0x928] sm:$0xf0]  ;;  %v15203_v45 = vor.u32 %v17490_v34, %v15200_v55  ;;  %v17488_v40 = vld [vmem:[%s19746_s27 + $0xaa4] sm:$0xf]  ;;  %v17470_v34 = vld [vmem:[%s19746_s27 + $0xa14] sm:$0xf] }
 0x56e   : > { %12853 = vmatpush.bf16.msrb.mxu1 %v15099_v10  ;;  %v15147_v10 = vor.u32 %v17476_v22, %v15144_v25  ;;  %v15064_v22 = vld [vmem:[%s19746_s27 + $0x9a8] sm:$0xf0]  ;;  %v17472_v25 = vld [vmem:[%s19746_s27 + $0xa24] sm:$0xf]  ;;  %v15120_v55 = vld [vmem:[%s19746_s27 + $0xa18] sm:$0xf0] }
 0x56f   : > { %12867 = vmatpush.bf16.msrb.mxu2 %v15163_v12  ;;  %v17442_v12 = vld [vmem:[%s19746_s27 + $0x934] sm:$0xf] }
 0x570   : > { %12881 = vmatpush.bf16.msrb.mxu3 %v15227_v0  ;;  %v21478_v0 = vadd.f32 %v12581_v9, %v12568_v60  ;;  %v15192_v60 = vld [vmem:[%s19746_s27 + $0xaa8] sm:$0xf0]  ;;  %v15003_v9 = vor.u32 %v17440_v13, %v15000_v20  ;;  %v17436_v13 = vld [vmem:[%s19746_s27 + $0x904] sm:$0xf] }
 0x571   : > { %12840 = vmatpush.bf16.msrb.mxu0 %v15027_v7  ;;  %v22164_v7 = vperm.slane %v21486_v43, 1  ;;  %v15195_v49 = vor.u32 %v17488_v40, %v15192_v60  ;;  %v14984_v20 = vld [vmem:[%s19746_s27 + $0x908] sm:$0xf0]  ;;  %v17484_v60 = vld [vmem:[%s19746_s27 + $0xa84] sm:$0xf] }
 0x572   : > { %12854 = vmatpush.bf16.msrb.mxu1 %v15091_v19  ;;  %22212 = vst [vmem:[#allocation51_spill] sm:$0xff] %v21478_v0  ;;  %v15011_v19 = vor.u32 %v17442_v12, %v15008_v58  ;;  %v15131_v12 = vor.u32 %v17472_v25, %v15128_v39  ;;  %v17438_v58 = vld [vmem:[%s19746_s27 + $0x914] sm:$0xf]  ;;  %v15048_v25 = vld [vmem:[%s19746_s27 + $0x988] sm:$0xf0] }
 0x573   : > { %12868 = vmatpush.bf16.msrb.mxu2 %v15155_v8  ;;  %v15075_v8 = vor.u32 %v17458_v41, %v15072_v16  ;;  %v12595_v4 = vpop.f32.mrf.mxu2  ;;  %v14992_v41 = vld [vmem:[%s19746_s27 + $0x918] sm:$0xf0]  ;;  %v17468_v39 = vld [vmem:[%s19746_s27 + $0xa04] sm:$0xf]  ;;  %v15112_v40 = vld [vmem:[%s19746_s27 + $0xa08] sm:$0xf0] }
 0x574   : > { %12882 = vmatpush.bf16.msrb.mxu3 %v15219_v15  ;;  %v17456_v15 = vld [vmem:[%s19746_s27 + $0x9a4] sm:$0xf] }
 0x575   : > { %12841 = vmatpush.bf16.msrb.mxu0 %v15019_v1  ;;  %v12596_v1 = vadd.f32 %v12595_v4, %v22164_v7  ;;  %v15288_v7 = vld [vmem:[%s19746_s27 + $0xb68] sm:$0xf0]  ;;  %v17528_v0 = vld [vmem:[%s19746_s27 + $0xbe4] sm:$0xf] }
 0x576   : > { %12855 = vmatpush.bf16.msrb.mxu1 %v15083_v33  ;;  %v12609_v33 = vpop.f32.mrf.mxu3 }
 0x577   : > { %12869 = vmatpush.bf16.msrb.mxu2 %v15147_v10  ;;  %v15067_v10 = vor.u32 %v17456_v15, %v15064_v22  ;;  %v21502_v16 = vadd.f32 %v12609_v33, %v12596_v1  ;;  %v17452_v22 = vld [vmem:[%s19746_s27 + $0x984] sm:$0xf]  ;;  %v15176_v1 = vld [vmem:[%s19746_s27 + $0xa88] sm:$0xf0]  ;;  %v15296_v33 = vld [vmem:[%s19746_s27 + $0xb78] sm:$0xf0] }
 0x578   : > { %12883 = vmatpush.bf16.msrb.mxu3 %v15211_v48  ;;  %v17454_v48 = vld [vmem:[%s19746_s27 + $0x994] sm:$0xf] }
 0x579   : > { %12842 = vmatpush.bf16.msrb.mxu0 %v15011_v19  ;;  %v17486_v19 = vld [vmem:[%s19746_s27 + $0xa94] sm:$0xf]  ;;  %v15059_v15 = vor.u32 %v17454_v48, %v15056_v5  ;;  %v15424_v48 = vld [vmem:[%s19746_s27 + $0xc78] sm:$0xf0]  ;;  %v15115_v5 = vor.u32 %v17468_v39, %v15112_v40  ;;  %v17560_v39 = vld [vmem:[%s19746_s27 + $0xce4] sm:$0xf]  ;;  %v21535_v40 = vpop.f32.mrf.mxu1 }
 0x57a   : > { %12856 = vmatpush.bf16.msrb.mxu1 %v15075_v8  ;;  %v15184_v8 = vld [vmem:[%s19746_s27 + $0xa98] sm:$0xf0] }
 0x57b   : > { %12870 = vmatpush.bf16.msrb.mxu2 %v15139_v18  ;;  %v14995_v18 = vor.u32 %v17438_v58, %v14992_v41  ;;  %v15187_v4 = vor.u32 %v17486_v19, %v15184_v8  ;;  %v17530_v58 = vld [vmem:[%s19746_s27 + $0xbf4] sm:$0xf]  ;;  %v15179_v19 = vor.u32 %v17484_v60, %v15176_v1  ;;  %v15355_v1 = vor.u32 %v17528_v0, %v15352_v47  ;;  %v15472_v47 = vld [vmem:[%s19746_s27 + $0xcd8] sm:$0xf0]  ;;  %v12597_v0 = vpop.f32.mrf.mxu2 }
 0x57c   : > { %12884 = vmatpush.bf16.msrb.mxu3 %v15203_v45  ;;  %v15123_v45 = vor.u32 %v17470_v34, %v15120_v55  ;;  %v17546_v41 = vld [vmem:[%s19746_s27 + $0xc74] sm:$0xf]  ;;  %v15488_v55 = vld [vmem:[%s19746_s27 + $0xcf8] sm:$0xf0] }
 0x57d   : > { %12843 = vmatpush.bf16.msrb.mxu0 %v15003_v9  ;;  %v17514_v9 = vld [vmem:[%s19746_s27 + $0xb74] sm:$0xf] }
 0x57e   : > { %12857 = vmatpush.bf16.msrb.mxu1 %v15067_v10  ;;  %v14987_v10 = vor.u32 %v17436_v13, %v14984_v20  ;;  %v17562_v34 = vld [vmem:[%s19746_s27 + $0xcf4] sm:$0xf]  ;;  %v15299_v8 = vor.u32 %v17514_v9, %v15296_v33  ;;  %v15427_v13 = vor.u32 %v17546_v41, %v15424_v48  ;;  %v17512_v20 = vld [vmem:[%s19746_s27 + $0xb64] sm:$0xf]  ;;  %v15344_v41 = vld [vmem:[%s19746_s27 + $0xbd8] sm:$0xf0] }
 0x57f   : > { %12871 = vmatpush.bf16.msrb.mxu2 %v15131_v12  ;;  %v15360_v12 = vld [vmem:[%s19746_s27 + $0xbf8] sm:$0xf0]  ;;  %v15291_v60 = vor.u32 %v17512_v20, %v15288_v7  ;;  %v17510_v33 = vld [vmem:[%s19746_s27 + $0xb54] sm:$0xf] }
 0x580   : > { %12885 = vmatpush.bf16.msrb.mxu3 %v15195_v49  ;;  %v15051_v49 = vor.u32 %v17452_v22, %v15048_v25  ;;  %v15416_v22 = vld [vmem:[%s19746_s27 + $0xc68] sm:$0xf0]  ;;  %v21531_v25 = vpop.f32.mrf.mxu0  ;;  %v17542_v48 = vld [vmem:[%s19746_s27 + $0xc54] sm:$0xf] }
 0x581   : > { %12844 = vmatpush.bf16.msrb.mxu0 %v14995_v18  ;;  %v15363_v18 = vor.u32 %v17530_v58, %v15360_v12  ;;  %v15280_v58 = vld [vmem:[%s19746_s27 + $0xb58] sm:$0xf0]  ;;  %v17558_v7 = vld [vmem:[%s19746_s27 + $0xcd4] sm:$0xf] }
 0x582   : > { %12858 = vmatpush.bf16.msrb.mxu1 %v15059_v15  ;;  %v15491_v15 = vor.u32 %v17562_v34, %v15488_v55  ;;  %v12611_v55 = vpop.f32.mrf.mxu3 }
 0x583   : > { %12872 = vmatpush.bf16.msrb.mxu2 %v15123_v45  ;;  %v17544_v45 = vld [vmem:[%s19746_s27 + $0xc64] sm:$0xf] }
 0x584   : > { %12886 = vmatpush.bf16.msrb.mxu3 %v15187_v4  ;;  %v15480_v4 = vld [vmem:[%s19746_s27 + $0xce8] sm:$0xf0]  ;;  %v15419_v9 = vor.u32 %v17544_v45, %v15416_v22 }
 0x585   : > { %12845 = vmatpush.bf16.msrb.mxu0 %v14987_v10  ;;  %v17526_v10 = vld [vmem:[%s19746_s27 + $0xbd4] sm:$0xf]  ;;  %v15483_v12 = vor.u32 %v17560_v39, %v15480_v4  ;;  %v15464_v45 = vld [vmem:[%s19746_s27 + $0xcc8] sm:$0xf0] }
 0x586   : > { %12859 = vmatpush.bf16.msrb.mxu1 %v15051_v49  ;;  %v15408_v49 = vld [vmem:[%s19746_s27 + $0xc58] sm:$0xf0]  ;;  %v12637_v4 = vpop.f32.mrf.mxu1 }
 0x587   : > { %12873 = vmatpush.bf16.msrb.mxu2 %v15115_v5  ;;  %v15347_v5 = vor.u32 %v17526_v10, %v15344_v41  ;;  %v15411_v34 = vor.u32 %v17542_v48, %v15408_v49  ;;  %v15264_v10 = vld [vmem:[%s19746_s27 + $0xb38] sm:$0xf0]  ;;  %v17538_v49 = vld [vmem:[%s19746_s27 + $0xc34] sm:$0xf] }
 0x588   : > { %12887 = vmatpush.bf16.msrb.mxu3 %v15179_v19  ;;  %12846 = vmatmul.bf16.vlgmr.msrb.gmra.mxu0 %v20253_v24  ;;  %v15283_v24 = vor.u32 %v17510_v33, %v15280_v58  ;;  %v15272_v19 = vld [vmem:[%s19746_s27 + $0xb48] sm:$0xf0]  ;;  %v12623_v20 = vpop.f32.mrf.mxu0  ;;  %v17506_v58 = vld [vmem:[%s19746_s27 + $0xb34] sm:$0xf]  ;;  %v15328_v48 = vld [vmem:[%s19746_s27 + $0xbb8] sm:$0xf0] }
 0x589   : > { %12894 = vmatpush.bf16.msra.mxu0 %v15299_v8  ;;  %12860 = vmatmul.bf16.vlgmr.msrb.gmra.mxu1 %v20259_v29  ;;  %v17524_v29 = vld [vmem:[%s19746_s27 + $0xbc4] sm:$0xf]  ;;  %v15475_v8 = vor.u32 %v17558_v7, %v15472_v47  ;;  %v12624_v22 = vadd.f32 %v12623_v20, %v21502_v16  ;;  %v15392_v7 = vld [vmem:[%s19746_s27 + $0xc38] sm:$0xf0]  ;;  %v17554_v47 = vld [vmem:[%s19746_s27 + $0xcb4] sm:$0xf] }
 0x58a   : > { %12908 = vmatpush.bf16.msra.mxu1 %v15363_v18  ;;  %12874 = vmatmul.bf16.vlgmr.msrb.gmra.mxu2 %v20358_v59  ;;  %v17508_v59 = vld [vmem:[%s19746_s27 + $0xb44] sm:$0xf]  ;;  %v15336_v18 = vld [vmem:[%s19746_s27 + $0xbc8] sm:$0xf0] }
 0x58b   : > { %12922 = vmatpush.bf16.msra.mxu2 %v15427_v13  ;;  %12888 = vmatmul.bf16.vlgmr.msrb.gmra.mxu3 %v20365_v3  ;;  %v17540_v3 = vld [vmem:[%s19746_s27 + $0xc44] sm:$0xf]  ;;  %v15400_v13 = vld [vmem:[%s19746_s27 + $0xc48] sm:$0xf0]  ;;  %v15275_v39 = vor.u32 %v17508_v59, %v15272_v19  ;;  %v12638_v16 = vadd.f32 %v12637_v4, %v12624_v22  ;;  %v15395_v59 = vor.u32 %v17538_v49, %v15392_v7  ;;  %v17534_v49 = vld [vmem:[%s19746_s27 + $0xc14] sm:$0xf] }
 0x58c   : > { %12936 = vmatpush.bf16.msra.mxu3 %v15491_v15  ;;  %v17556_v15 = vld [vmem:[%s19746_s27 + $0xcc4] sm:$0xf]  ;;  %v15403_v33 = vor.u32 %v17540_v3, %v15400_v13  ;;  %v15256_v19 = vld [vmem:[%s19746_s27 + $0xb28] sm:$0xf0]  ;;  %v15376_v7 = vld [vmem:[%s19746_s27 + $0xc18] sm:$0xf0] }
 0x58d   : > { %12895 = vmatpush.bf16.msra.mxu0 %v15291_v60  ;;  %v22213_v60 = vperm.slane %v21486_v43, 1  ;;  %v15467_v41 = vor.u32 %v17556_v15, %v15464_v45  ;;  %v15267_v43 = vor.u32 %v17506_v58, %v15264_v10  ;;  %v12651_v3 = vpop.f32.mrf.mxu2  ;;  %v17536_v13 = vld [vmem:[%s19746_s27 + $0xc24] sm:$0xf]  ;;  %v15384_v20 = vld [vmem:[%s19746_s27 + $0xc28] sm:$0xf0] }
 0x58e   : > { %12909 = vmatpush.bf16.msra.mxu1 %v15355_v1  ;;  %v12652_v15 = vadd.f32 %v12651_v3, %v12638_v16  ;;  %v17552_v22 = vld [vmem:[%s19746_s27 + $0xca4] sm:$0xf]  ;;  %v17502_v58 = vld [vmem:[%s19746_s27 + $0xb14] sm:$0xf]  ;;  %v15248_v10 = vld [vmem:[%s19746_s27 + $0xb18] sm:$0xf0]  ;;  %v12639_v16 = vpop.f32.mrf.mxu1 }
 0x58f   : > { %12923 = vmatpush.bf16.msra.mxu2 %v15419_v9  ;;  %v12598_v1 = vadd.f32 %v12597_v0, %v22213_v60  ;;  %v15339_v9 = vor.u32 %v17524_v29, %v15336_v18  ;;  %v17504_v0 = vld [vmem:[%s19746_s27 + $0xb24] sm:$0xf] }
 0x590   : > { %12937 = vmatpush.bf16.msra.mxu3 %v15483_v12  ;;  %v17522_v12 = vld [vmem:[%s19746_s27 + $0xbb4] sm:$0xf]  ;;  %v17520_v29 = vld [vmem:[%s19746_s27 + $0xba4] sm:$0xf]  ;;  %v12625_v45 = vpop.f32.mrf.mxu0  ;;  %v15259_v4 = vor.u32 %v17504_v0, %v15256_v19  ;;  %v15379_v19 = vor.u32 %v17534_v49, %v15376_v7  ;;  %v15744_v49 = vld [vmem:[%s19746_s27 + $0xef8] sm:$0xf0] }
 0x591   : > { %12896 = vmatpush.bf16.msra.mxu0 %v15283_v24  ;;  %v15456_v24 = vld [vmem:[%s19746_s27 + $0xcb8] sm:$0xf0]  ;;  %v17500_v0 = vld [vmem:[%s19746_s27 + $0xb04] sm:$0xf] }
 0x592   : > { %12910 = vmatpush.bf16.msra.mxu1 %v15347_v5  ;;  %v12612_v5 = vadd.f32 %v12611_v55, %v12598_v1  ;;  %v15459_v18 = vor.u32 %v17554_v47, %v15456_v24  ;;  %v12665_v55 = vpop.f32.mrf.mxu3  ;;  %v17550_v47 = vld [vmem:[%s19746_s27 + $0xc94] sm:$0xf]  ;;  %v15440_v24 = vld [vmem:[%s19746_s27 + $0xc98] sm:$0xf0] }
 0x593   : > { %12924 = vmatpush.bf16.msra.mxu2 %v15411_v34  ;;  %v15331_v34 = vor.u32 %v17522_v12, %v15328_v48  ;;  %v17518_v12 = vld [vmem:[%s19746_s27 + $0xb94] sm:$0xf]  ;;  %v15312_v48 = vld [vmem:[%s19746_s27 + $0xb98] sm:$0xf0]  ;;  %v15443_v3 = vor.u32 %v17550_v47, %v15440_v24 }
 0x594   : > { %12938 = vmatpush.bf16.msra.mxu3 %v15475_v8  ;;  %v15320_v8 = vld [vmem:[%s19746_s27 + $0xba8] sm:$0xf0]  ;;  %v12626_v1 = vadd.f32 %v12625_v45, %v12612_v5 }
 0x595   : > { %12897 = vmatpush.bf16.msra.mxu0 %v15275_v39  ;;  %v15448_v39 = vld [vmem:[%s19746_s27 + $0xca8] sm:$0xf0]  ;;  %v15323_v60 = vor.u32 %v17520_v29, %v15320_v8  ;;  %v17516_v29 = vld [vmem:[%s19746_s27 + $0xb84] sm:$0xf] }
 0x596   : > { %12911 = vmatpush.bf16.msra.mxu1 %v15339_v9  ;;  %v21576_v9 = vadd.f32 %v12665_v55, %v12652_v15  ;;  %v15240_v5 = vld [vmem:[%s19746_s27 + $0xb08] sm:$0xf0]  ;;  %v17548_v15 = vld [vmem:[%s19746_s27 + $0xc84] sm:$0xf] }
 0x597   : > { %12925 = vmatpush.bf16.msra.mxu2 %v15403_v33  ;;  %v15387_v33 = vor.u32 %v17536_v13, %v15384_v20  ;;  %v15304_v8 = vld [vmem:[%s19746_s27 + $0xb88] sm:$0xf0]  ;;  %v12653_v13 = vpop.f32.mrf.mxu2 }
 0x598   : > { %12939 = vmatpush.bf16.msra.mxu3 %v15467_v41  ;;  %v15451_v41 = vor.u32 %v17552_v22, %v15448_v39  ;;  %v15368_v20 = vld [vmem:[%s19746_s27 + $0xc08] sm:$0xf0]  ;;  %v17578_v39 = vld [vmem:[%s19746_s27 + $0xd74] sm:$0xf] }
 0x599   : > { %12898 = vmatpush.bf16.msra.mxu0 %v15267_v43  ;;  %v15251_v43 = vor.u32 %v17502_v58, %v15248_v10  ;;  %v15432_v45 = vld [vmem:[%s19746_s27 + $0xc88] sm:$0xf0]  ;;  %v17610_v58 = vld [vmem:[%s19746_s27 + $0xe74] sm:$0xf]  ;;  %v15680_v10 = vld [vmem:[%s19746_s27 + $0xe78] sm:$0xf0] }
 0x59a   : > { %12912 = vmatpush.bf16.msra.mxu1 %v15331_v34  ;;  %v12640_v34 = vadd.f32 %v12639_v16, %v12626_v1  ;;  %v12667_v22 = vpop.f32.mrf.mxu3  ;;  %v15243_v1 = vor.u32 %v17500_v0, %v15240_v5  ;;  %v15435_v7 = vor.u32 %v17548_v15, %v15432_v45  ;;  %v17576_v0 = vld [vmem:[%s19746_s27 + $0xd64] sm:$0xf]  ;;  %v15544_v5 = vld [vmem:[%s19746_s27 + $0xd68] sm:$0xf0]  ;;  %v17574_v45 = vld [vmem:[%s19746_s27 + $0xd54] sm:$0xf] }
 0x59b   : > { %12926 = vmatpush.bf16.msra.mxu2 %v15395_v59  ;;  %v15315_v59 = vor.u32 %v17518_v12, %v15312_v48  ;;  %v17626_v48 = vld [vmem:[%s19746_s27 + $0xef4] sm:$0xf] }
 0x59c   : > { %12940 = vmatpush.bf16.msra.mxu3 %v15459_v18  ;;  %v17532_v18 = vld [vmem:[%s19746_s27 + $0xc04] sm:$0xf]  ;;  %v12654_v55 = vadd.f32 %v12653_v13, %v12640_v34  ;;  %v15547_v13 = vor.u32 %v17576_v0, %v15544_v5 }
 0x59d   : > { %12899 = vmatpush.bf16.msra.mxu0 %v15259_v4  ;;  %v15552_v4 = vld [vmem:[%s19746_s27 + $0xd78] sm:$0xf0]  ;;  %v15371_v16 = vor.u32 %v17532_v18, %v15368_v20  ;;  %v17592_v34 = vld [vmem:[%s19746_s27 + $0xde4] sm:$0xf] }
 0x59e   : > { %12913 = vmatpush.bf16.msra.mxu1 %v15323_v60  ;;  %v17594_v60 = vld [vmem:[%s19746_s27 + $0xdf4] sm:$0xf]  ;;  %v21600_v12 = vadd.f32 %v12667_v22, %v12654_v55  ;;  %v15555_v47 = vor.u32 %v17578_v39, %v15552_v4  ;;  %v17624_v18 = vld [vmem:[%s19746_s27 + $0xee4] sm:$0xf]  ;;  %v15536_v55 = vld [vmem:[%s19746_s27 + $0xd58] sm:$0xf0] }
 0x59f   : > { %12927 = vmatpush.bf16.msra.mxu2 %v15387_v33  ;;  %v15616_v33 = vld [vmem:[%s19746_s27 + $0xdf8] sm:$0xf0]  ;;  %v17590_v22 = vld [vmem:[%s19746_s27 + $0xdd4] sm:$0xf] }
 0x5a0   : > { %12941 = vmatpush.bf16.msra.mxu3 %v15451_v41  ;;  %v15307_v41 = vor.u32 %v17516_v29, %v15304_v8  ;;  %v15619_v24 = vor.u32 %v17594_v60, %v15616_v33  ;;  %v17608_v29 = vld [vmem:[%s19746_s27 + $0xe64] sm:$0xf]  ;;  %v15672_v8 = vld [vmem:[%s19746_s27 + $0xe68] sm:$0xf0]  ;;  %v15600_v4 = vld [vmem:[%s19746_s27 + $0xdd8] sm:$0xf0] }
 0x5a1   : > { %12900 = vmatpush.bf16.msra.mxu0 %v15251_v43  ;;  %v15683_v43 = vor.u32 %v17610_v58, %v15680_v10  ;;  %v15675_v15 = vor.u32 %v17608_v29, %v15672_v8  ;;  %v17606_v60 = vld [vmem:[%s19746_s27 + $0xe54] sm:$0xf]  ;;  %v15728_v58 = vld [vmem:[%s19746_s27 + $0xed8] sm:$0xf0]  ;;  %v15603_v10 = vor.u32 %v17590_v22, %v15600_v4 }
 0x5a2   : > { %12914 = vmatpush.bf16.msra.mxu1 %v15315_v59  ;;  %v15747_v59 = vor.u32 %v17626_v48, %v15744_v49  ;;  %v17622_v33 = vld [vmem:[%s19746_s27 + $0xed4] sm:$0xf]  ;;  %v15528_v48 = vld [vmem:[%s19746_s27 + $0xd48] sm:$0xf0]  ;;  %v15520_v8 = vld [vmem:[%s19746_s27 + $0xd38] sm:$0xf0] }
 0x5a3   : > { %12928 = vmatpush.bf16.msra.mxu2 %v15379_v19  ;;  %v15608_v19 = vld [vmem:[%s19746_s27 + $0xde8] sm:$0xf0]  ;;  %v17570_v29 = vld [vmem:[%s19746_s27 + $0xd34] sm:$0xf] }
 0x5a4   : > { %12942 = vmatpush.bf16.msra.mxu3 %v15443_v3  ;;  %v15736_v3 = vld [vmem:[%s19746_s27 + $0xee8] sm:$0xf0]  ;;  %v15611_v20 = vor.u32 %v17592_v34, %v15608_v19  ;;  %v15523_v22 = vor.u32 %v17570_v29, %v15520_v8  ;;  %v15568_v8 = vld [vmem:[%s19746_s27 + $0xd98] sm:$0xf0] }
 0x5a5   : > { %12901 = vmatpush.bf16.msra.mxu0 %v15243_v1  ;;  %v15739_v39 = vor.u32 %v17624_v18, %v15736_v3  ;;  %v15664_v1 = vld [vmem:[%s19746_s27 + $0xe58] sm:$0xf0]  ;;  %v15592_v49 = vld [vmem:[%s19746_s27 + $0xdc8] sm:$0xf0]  ;;  %v17586_v18 = vld [vmem:[%s19746_s27 + $0xdb4] sm:$0xf] }
 0x5a6   : > { %12915 = vmatpush.bf16.msra.mxu1 %v15307_v41  ;;  %v15667_v41 = vor.u32 %v17606_v60, %v15664_v1  ;;  %v12693_v34 = vpop.f32.mrf.mxu1  ;;  %v17568_v60 = vld [vmem:[%s19746_s27 + $0xd24] sm:$0xf]  ;;  %v15512_v1 = vld [vmem:[%s19746_s27 + $0xd28] sm:$0xf0] }
 0x5a7   : > { %12929 = vmatpush.bf16.msra.mxu2 %v15371_v16  ;;  %v17572_v16 = vld [vmem:[%s19746_s27 + $0xd44] sm:$0xf] }
 0x5a8   : > { %12943 = vmatpush.bf16.msra.mxu3 %v15435_v7  ;;  %12902 = vmatmul.bf16.vlgmr.msra.gmra.mxu0 %v20363_v2  ;;  %v15539_v2 = vor.u32 %v17574_v45, %v15536_v55  ;;  %v17604_v7 = vld [vmem:[%s19746_s27 + $0xe44] sm:$0xf]  ;;  %v15531_v5 = vor.u32 %v17572_v16, %v15528_v48  ;;  %v17618_v45 = vld [vmem:[%s19746_s27 + $0xeb4] sm:$0xf]  ;;  %v15712_v55 = vld [vmem:[%s19746_s27 + $0xeb8] sm:$0xf0] }
 0x5a9   : > { %12950 = vmatpush.bf16.msrb.mxu0 %v15555_v47  ;;  %12916 = vmatmul.bf16.vlgmr.msra.gmra.mxu1 %v20371_v17  ;;  %v15731_v17 = vor.u32 %v17622_v33, %v15728_v58  ;;  %v15656_v47 = vld [vmem:[%s19746_s27 + $0xe48] sm:$0xf0]  ;;  %v17584_v33 = vld [vmem:[%s19746_s27 + $0xda4] sm:$0xf]  ;;  %v15715_v58 = vor.u32 %v17618_v45, %v15712_v55 }
 0x5aa   : > { %12964 = vmatpush.bf16.msrb.mxu1 %v15619_v24  ;;  %12930 = vmatmul.bf16.vlgmr.msra.gmra.mxu2 %v20467_v28  ;;  %v17588_v28 = vld [vmem:[%s19746_s27 + $0xdc4] sm:$0xf]  ;;  %v15659_v19 = vor.u32 %v17604_v7, %v15656_v47  ;;  %v15640_v16 = vld [vmem:[%s19746_s27 + $0xe28] sm:$0xf0] }
 0x5ab   : > { %12978 = vmatpush.bf16.msrb.mxu2 %v15683_v43  ;;  %12944 = vmatmul.bf16.vlgmr.msra.gmra.mxu3 %v20476_v36  ;;  %v12679_v36 = vpop.f32.mrf.mxu0  ;;  %v17620_v24 = vld [vmem:[%s19746_s27 + $0xec4] sm:$0xf]  ;;  %v15720_v43 = vld [vmem:[%s19746_s27 + $0xec8] sm:$0xf0] }
 0x5ac   : > { %12992 = vmatpush.bf16.msrb.mxu3 %v15747_v59  ;;  %v12680_v0 = vadd.f32 %v12679_v36, %v21576_v9  ;;  %v15595_v59 = vor.u32 %v17588_v28, %v15592_v49  ;;  %v15723_v3 = vor.u32 %v17620_v24, %v15720_v43  ;;  %v15648_v9 = vld [vmem:[%s19746_s27 + $0xe38] sm:$0xf0]  ;;  %v17616_v49 = vld [vmem:[%s19746_s27 + $0xea4] sm:$0xf]  ;;  %v15704_v7 = vld [vmem:[%s19746_s27 + $0xea8] sm:$0xf0]  ;;  %v15515_v36 = vor.u32 %v17568_v60, %v15512_v1 }
 0x5ad   : > { %12951 = vmatpush.bf16.msrb.mxu0 %v15547_v13  ;;  %v15707_v29 = vor.u32 %v17616_v49, %v15704_v7  ;;  %v15496_v45 = vld [vmem:[%s19746_s27 + $0xd08] sm:$0xf0]  ;;  %v17596_v60 = vld [vmem:[%s19746_s27 + $0xe04] sm:$0xf]  ;;  %v15872_v7 = vld [vmem:[%s19746_s27 + $0xff8] sm:$0xf0] }
 0x5ae   : > { %12965 = vmatpush.bf16.msrb.mxu1 %v15611_v20  ;;  %v12694_v13 = vadd.f32 %v12693_v34, %v12680_v0  ;;  %v15584_v20 = vld [vmem:[%s19746_s27 + $0xdb8] sm:$0xf0]  ;;  %v12695_v24 = vpop.f32.mrf.mxu1  ;;  %v17566_v34 = vld [vmem:[%s19746_s27 + $0xd14] sm:$0xf] }
 0x5af   : > { %12979 = vmatpush.bf16.msrb.mxu2 %v15675_v15  ;;  %v17602_v15 = vld [vmem:[%s19746_s27 + $0xe34] sm:$0xf] }
 0x5b0   : > { %12993 = vmatpush.bf16.msrb.mxu3 %v15739_v39  ;;  %v15587_v39 = vor.u32 %v17586_v18, %v15584_v20  ;;  %v15651_v4 = vor.u32 %v17602_v15, %v15648_v9  ;;  %v17598_v18 = vld [vmem:[%s19746_s27 + $0xe14] sm:$0xf]  ;;  %v15696_v20 = vld [vmem:[%s19746_s27 + $0xe98] sm:$0xf0]  ;;  %v17564_v9 = vld [vmem:[%s19746_s27 + $0xd04] sm:$0xf] }
 0x5b1   : > { %12952 = vmatpush.bf16.msrb.mxu0 %v15539_v2  ;;  %v12707_v2 = vpop.f32.mrf.mxu2  ;;  %v15499_v49 = vor.u32 %v17564_v9, %v15496_v45  ;;  %v17672_v9 = vld [vmem:[%s19746_s27 + $0x1064] sm:$0xf]  ;;  %v15928_v45 = vld [vmem:[%s19746_s27 + $0x1068] sm:$0xf0] }
 0x5b2   : > { %12966 = vmatpush.bf16.msrb.mxu1 %v15603_v10  ;;  %v15576_v10 = vld [vmem:[%s19746_s27 + $0xda8] sm:$0xf0]  ;;  %v12708_v48 = vadd.f32 %v12707_v2, %v12694_v13  ;;  %v17614_v13 = vld [vmem:[%s19746_s27 + $0xe94] sm:$0xf]  ;;  %v17612_v2 = vld [vmem:[%s19746_s27 + $0xe84] sm:$0xf] }
 0x5b3   : > { %12980 = vmatpush.bf16.msrb.mxu2 %v15667_v41  ;;  %v17600_v41 = vld [vmem:[%s19746_s27 + $0xe24] sm:$0xf]  ;;  %v12681_v28 = vpop.f32.mrf.mxu0  ;;  %v15579_v0 = vor.u32 %v17584_v33, %v15576_v10  ;;  %v15699_v1 = vor.u32 %v17614_v13, %v15696_v20  ;;  %v15688_v10 = vld [vmem:[%s19746_s27 + $0xe88] sm:$0xf0] }
 0x5b4   : > { %12994 = vmatpush.bf16.msrb.mxu3 %v15731_v17  ;;  %v12721_v17 = vpop.f32.mrf.mxu3  ;;  %v12682_v47 = vadd.f32 %v12681_v28, %v21600_v12  ;;  %v15808_v28 = vld [vmem:[%s19746_s27 + $0xf78] sm:$0xf0]  ;;  %v17656_v13 = vld [vmem:[%s19746_s27 + $0xfe4] sm:$0xf] }
 0x5b5   : > { %12953 = vmatpush.bf16.msrb.mxu0 %v15531_v5  ;;  %v21650_v43 = vadd.f32 %v12721_v17, %v12708_v48  ;;  %v15643_v5 = vor.u32 %v17600_v41, %v15640_v16  ;;  %v17642_v48 = vld [vmem:[%s19746_s27 + $0xf74] sm:$0xf] }
 0x5b6   : > { %12967 = vmatpush.bf16.msrb.mxu1 %v15595_v59  ;;  %v15504_v59 = vld [vmem:[%s19746_s27 + $0xd18] sm:$0xf0]  ;;  %v12696_v12 = vadd.f32 %v12695_v24, %v12682_v47  ;;  %v17658_v17 = vld [vmem:[%s19746_s27 + $0xff4] sm:$0xf] }
 0x5b7   : > { %12981 = vmatpush.bf16.msrb.mxu2 %v15659_v19  ;;  %v17582_v19 = vld [vmem:[%s19746_s27 + $0xd94] sm:$0xf]  ;;  %v15507_v15 = vor.u32 %v17566_v34, %v15504_v59  ;;  %v16000_v59 = vld [vmem:[%s19746_s27 + $0x10f8] sm:$0xf0] }
 0x5b8   : > { %12995 = vmatpush.bf16.msrb.mxu3 %v15723_v3  ;;  %v15632_v3 = vld [vmem:[%s19746_s27 + $0xe18] sm:$0xf0]  ;;  %v15571_v55 = vor.u32 %v17582_v19, %v15568_v8  ;;  %v17674_v47 = vld [vmem:[%s19746_s27 + $0x1074] sm:$0xf]  ;;  %v15691_v19 = vor.u32 %v17612_v2, %v15688_v10 }
 0x5b9   : > { %12954 = vmatpush.bf16.msrb.mxu0 %v15523_v22  ;;  %v15635_v22 = vor.u32 %v17598_v18, %v15632_v3  ;;  %v12709_v33 = vpop.f32.mrf.mxu2  ;;  %v17690_v34 = vld [vmem:[%s19746_s27 + $0x10f4] sm:$0xf]  ;;  %v17640_v18 = vld [vmem:[%s19746_s27 + $0xf64] sm:$0xf]  ;;  %v15800_v3 = vld [vmem:[%s19746_s27 + $0xf68] sm:$0xf0] }
 0x5ba   : > { %12968 = vmatpush.bf16.msrb.mxu1 %v15587_v39  ;;  %v17580_v39 = vld [vmem:[%s19746_s27 + $0xd84] sm:$0xf]  ;;  %v12710_v41 = vadd.f32 %v12709_v33, %v12696_v12  ;;  %v15875_v12 = vor.u32 %v17658_v17, %v15872_v7  ;;  %v16003_v20 = vor.u32 %v17690_v34, %v16000_v59  ;;  %v15792_v33 = vld [vmem:[%s19746_s27 + $0xf58] sm:$0xf0]  ;;  %v15976_v59 = vld [vmem:[%s19746_s27 + $0x10c8] sm:$0xf0] }
 0x5bb   : > { %12982 = vmatpush.bf16.msrb.mxu2 %v15651_v4  ;;  %v15560_v4 = vld [vmem:[%s19746_s27 + $0xd88] sm:$0xf0]  ;;  %v15856_v10 = vld [vmem:[%s19746_s27 + $0xfd8] sm:$0xf0]  ;;  %v17636_v7 = vld [vmem:[%s19746_s27 + $0xf44] sm:$0xf] }
 0x5bc   : > { %12996 = vmatpush.bf16.msrb.mxu3 %v15715_v58  ;;  %v15624_v58 = vld [vmem:[%s19746_s27 + $0xe08] sm:$0xf0]  ;;  %v12723_v16 = vpop.f32.mrf.mxu3  ;;  %v17684_v34 = vld [vmem:[%s19746_s27 + $0x10c4] sm:$0xf] }
 0x5bd   : > { %12955 = vmatpush.bf16.msrb.mxu0 %v15515_v36  ;;  %v15936_v36 = vld [vmem:[%s19746_s27 + $0x1078] sm:$0xf0]  ;;  %v21674_v24 = vadd.f32 %v12723_v16, %v12710_v41  ;;  %v17670_v41 = vld [vmem:[%s19746_s27 + $0x1054] sm:$0xf] }
 0x5be   : > { %12969 = vmatpush.bf16.msrb.mxu1 %v15579_v0  ;;  %v15563_v0 = vor.u32 %v17580_v39, %v15560_v4  ;;  %v15939_v8 = vor.u32 %v17674_v47, %v15936_v36  ;;  %v15803_v39 = vor.u32 %v17640_v18, %v15800_v3  ;;  %v15920_v16 = vld [vmem:[%s19746_s27 + $0x1058] sm:$0xf0]  ;;  %v15784_v47 = vld [vmem:[%s19746_s27 + $0xf48] sm:$0xf0]  ;;  %v17634_v3 = vld [vmem:[%s19746_s27 + $0xf34] sm:$0xf] }
 0x5bf   : > { %12983 = vmatpush.bf16.msrb.mxu2 %v15643_v5  ;;  %v15627_v5 = vor.u32 %v17596_v60, %v15624_v58  ;;  %v15931_v60 = vor.u32 %v17672_v9, %v15928_v45  ;;  %v17654_v58 = vld [vmem:[%s19746_s27 + $0xfd4] sm:$0xf]  ;;  %v15848_v36 = vld [vmem:[%s19746_s27 + $0xfc8] sm:$0xf0]  ;;  %v15840_v45 = vld [vmem:[%s19746_s27 + $0xfb8] sm:$0xf0] }
 0x5c0   : > { %12997 = vmatpush.bf16.msrb.mxu3 %v15707_v29  ;;  %v15811_v29 = vor.u32 %v17642_v48, %v15808_v28  ;;  %v17686_v48 = vld [vmem:[%s19746_s27 + $0x10d4] sm:$0xf]  ;;  %v15984_v28 = vld [vmem:[%s19746_s27 + $0x10d8] sm:$0xf0]  ;;  %v15859_v17 = vor.u32 %v17654_v58, %v15856_v10  ;;  %v15768_v58 = vld [vmem:[%s19746_s27 + $0xf28] sm:$0xf0] }
 0x5c1   : > { %12956 = vmatpush.bf16.msrb.mxu0 %v15507_v15  ;;  %v15864_v15 = vld [vmem:[%s19746_s27 + $0xfe8] sm:$0xf0] }
 0x5c2   : > { %12970 = vmatpush.bf16.msrb.mxu1 %v15571_v55  ;;  %v17688_v55 = vld [vmem:[%s19746_s27 + $0x10e4] sm:$0xf]  ;;  %v15867_v4 = vor.u32 %v17656_v13, %v15864_v15  ;;  %v15776_v13 = vld [vmem:[%s19746_s27 + $0xf38] sm:$0xf0]  ;;  %v15979_v15 = vor.u32 %v17684_v34, %v15976_v59  ;;  %v17630_v34 = vld [vmem:[%s19746_s27 + $0xf14] sm:$0xf] }
 0x5c3   : > { %12984 = vmatpush.bf16.msrb.mxu2 %v15635_v22  ;;  %v15992_v22 = vld [vmem:[%s19746_s27 + $0x10e8] sm:$0xf0]  ;;  %v15760_v59 = vld [vmem:[%s19746_s27 + $0xf18] sm:$0xf0] }
 0x5c4   : > { %12998 = vmatpush.bf16.msrb.mxu3 %v15699_v1  ;;  %v17638_v1 = vld [vmem:[%s19746_s27 + $0xf54] sm:$0xf]  ;;  %v15995_v2 = vor.u32 %v17688_v55, %v15992_v22 }
 0x5c5   : > { %12957 = vmatpush.bf16.msrb.mxu0 %v15499_v49  ;;  %v15923_v49 = vor.u32 %v17670_v41, %v15920_v16  ;;  %v17666_v55 = vld [vmem:[%s19746_s27 + $0x1034] sm:$0xf]  ;;  %v15832_v16 = vld [vmem:[%s19746_s27 + $0xfa8] sm:$0xf0] }
 0x5c6   : > { %12971 = vmatpush.bf16.msrb.mxu1 %v15563_v0  ;;  %v17668_v0 = vld [vmem:[%s19746_s27 + $0x1044] sm:$0xf]  ;;  %v17682_v22 = vld [vmem:[%s19746_s27 + $0x10b4] sm:$0xf] }
 0x5c7   : > { %12985 = vmatpush.bf16.msrb.mxu2 %v15627_v5  ;;  %v15912_v5 = vld [vmem:[%s19746_s27 + $0x1048] sm:$0xf0] }
 0x5c8   : > { %12999 = vmatpush.bf16.msrb.mxu3 %v15691_v19  ;;  %12958 = vmatmul.bf16.vlgmr.msrb.gmra.mxu0 %v20474_v35  ;;  %v15795_v35 = vor.u32 %v17638_v1, %v15792_v33  ;;  %v15915_v18 = vor.u32 %v17668_v0, %v15912_v5  ;;  %v17632_v33 = vld [vmem:[%s19746_s27 + $0xf24] sm:$0xf] }
 0x5c9   : > { %13006 = vmatpush.bf16.msra.mxu0 %v15811_v29  ;;  %12972 = vmatmul.bf16.vlgmr.msrb.gmra.mxu1 %v20482_v42  ;;  %v15987_v42 = vor.u32 %v17686_v48, %v15984_v28  ;;  %v15787_v29 = vor.u32 %v17636_v7, %v15784_v47  ;;  %v17664_v48 = vld [vmem:[%s19746_s27 + $0x1024] sm:$0xf]  ;;  %v15896_v28 = vld [vmem:[%s19746_s27 + $0x1028] sm:$0xf0] }
 0x5ca   : > { %13020 = vmatpush.bf16.msra.mxu1 %v15875_v12  ;;  %12986 = vmatmul.bf16.vlgmr.msrb.gmra.mxu2 %v20578_v44  ;;  %v17652_v44 = vld [vmem:[%s19746_s27 + $0xfc4] sm:$0xf]  ;;  %v12749_v12 = vpop.f32.mrf.mxu1  ;;  %v15960_v47 = vld [vmem:[%s19746_s27 + $0x10a8] sm:$0xf0] }
 0x5cb   : > { %13034 = vmatpush.bf16.msra.mxu2 %v15939_v8  ;;  %13000 = vmatmul.bf16.vlgmr.msrb.gmra.mxu3 %v20587_v46  ;;  %v12735_v46 = vpop.f32.mrf.mxu0  ;;  %v15851_v8 = vor.u32 %v17652_v44, %v15848_v36  ;;  %v17680_v7 = vld [vmem:[%s19746_s27 + $0x10a4] sm:$0xf] }
 0x5cc   : > { %13048 = vmatpush.bf16.msra.mxu3 %v16003_v20  ;;  %v12736_v19 = vadd.f32 %v12735_v46, %v21650_v43  ;;  %v17650_v20 = vld [vmem:[%s19746_s27 + $0xfb4] sm:$0xf]  ;;  %v15904_v43 = vld [vmem:[%s19746_s27 + $0x1038] sm:$0xf0]  ;;  %v15899_v46 = vor.u32 %v17664_v48, %v15896_v28 }
 0x5cd   : > { %13007 = vmatpush.bf16.msra.mxu0 %v15803_v39  ;;  %v15968_v39 = vld [vmem:[%s19746_s27 + $0x10b8] sm:$0xf0]  ;;  %v15907_v1 = vor.u32 %v17666_v55, %v15904_v43  ;;  %v12763_v41 = vpop.f32.mrf.mxu2  ;;  %v17644_v43 = vld [vmem:[%s19746_s27 + $0xf84] sm:$0xf]  ;;  %v17722_v28 = vld [vmem:[%s19746_s27 + $0x11f4] sm:$0xf] }
 0x5ce   : > { %13021 = vmatpush.bf16.msra.mxu1 %v15867_v4  ;;  %v12750_v9 = vadd.f32 %v12749_v12, %v12736_v19  ;;  %v15779_v4 = vor.u32 %v17634_v3, %v15776_v13  ;;  %v15971_v10 = vor.u32 %v17682_v22, %v15968_v39  ;;  %v17646_v19 = vld [vmem:[%s19746_s27 + $0xf94] sm:$0xf]  ;;  %v15963_v12 = vor.u32 %v17680_v7, %v15960_v47  ;;  %v15888_v13 = vld [vmem:[%s19746_s27 + $0x1018] sm:$0xf0]  ;;  %v15816_v22 = vld [vmem:[%s19746_s27 + $0xf88] sm:$0xf0] }
 0x5cf   : > { %13035 = vmatpush.bf16.msra.mxu2 %v15931_v60  ;;  %v15843_v60 = vor.u32 %v17650_v20, %v15840_v45  ;;  %v17662_v3 = vld [vmem:[%s19746_s27 + $0x1014] sm:$0xf]  ;;  %v17628_v45 = vld [vmem:[%s19746_s27 + $0xf04] sm:$0xf]  ;;  %v16064_v48 = vld [vmem:[%s19746_s27 + $0x1178] sm:$0xf0]  ;;  %v15819_v47 = vor.u32 %v17644_v43, %v15816_v22 }
 0x5d0   : > { %13049 = vmatpush.bf16.msra.mxu3 %v15995_v2  ;;  %v17648_v2 = vld [vmem:[%s19746_s27 + $0xfa4] sm:$0xf]  ;;  %v17678_v20 = vld [vmem:[%s19746_s27 + $0x1094] sm:$0xf]  ;;  %v15891_v55 = vor.u32 %v17662_v3, %v15888_v13  ;;  %v16120_v3 = vld [vmem:[%s19746_s27 + $0x11e8] sm:$0xf0] }
 0x5d1   : > { %13008 = vmatpush.bf16.msra.mxu0 %v15795_v35  ;;  %v12764_v35 = vadd.f32 %v12763_v41, %v12750_v9  ;;  %v15835_v5 = vor.u32 %v17648_v2, %v15832_v16  ;;  %v15763_v9 = vor.u32 %v17630_v34, %v15760_v59  ;;  %v17660_v39 = vld [vmem:[%s19746_s27 + $0x1004] sm:$0xf]  ;;  %v15944_v2 = vld [vmem:[%s19746_s27 + $0x1088] sm:$0xf0]  ;;  %v17706_v16 = vld [vmem:[%s19746_s27 + $0x1174] sm:$0xf] }
 0x5d2   : > { %13022 = vmatpush.bf16.msra.mxu1 %v15859_v17  ;;  %v12751_v36 = vpop.f32.mrf.mxu1  ;;  %v16067_v59 = vor.u32 %v17706_v16, %v16064_v48  ;;  %v17736_v13 = vld [vmem:[%s19746_s27 + $0x1264] sm:$0xf]  ;;  %v17702_v22 = vld [vmem:[%s19746_s27 + $0x1154] sm:$0xf]  ;;  %v16240_v48 = vld [vmem:[%s19746_s27 + $0x12d8] sm:$0xf0] }
 0x5d3   : > { %13036 = vmatpush.bf16.msra.mxu2 %v15923_v49  ;;  %v12737_v17 = vpop.f32.mrf.mxu0  ;;  %v12777_v49 = vpop.f32.mrf.mxu3  ;;  %v17750_v16 = vld [vmem:[%s19746_s27 + $0x12d4] sm:$0xf] }
 0x5d4   : > { %13050 = vmatpush.bf16.msra.mxu3 %v15987_v42  ;;  %v12738_v44 = vadd.f32 %v12737_v17, %v21674_v24  ;;  %v15771_v42 = vor.u32 %v17632_v33, %v15768_v58  ;;  %v21724_v0 = vadd.f32 %v12777_v49, %v12764_v35  ;;  %v15880_v33 = vld [vmem:[%s19746_s27 + $0x1008] sm:$0xf0]  ;;  %v17676_v58 = vld [vmem:[%s19746_s27 + $0x1084] sm:$0xf]  ;;  %v16128_v17 = vld [vmem:[%s19746_s27 + $0x11f8] sm:$0xf0] }
 0x5d5   : > { %13009 = vmatpush.bf16.msra.mxu0 %v15787_v29  ;;  %v22214_v29 = vperm.slane %v20265_v37, 0  ;;  %v15752_v37 = vld [vmem:[%s19746_s27 + $0xf08] sm:$0xf0]  ;;  %v17738_v49 = vld [vmem:[%s19746_s27 + $0x1274] sm:$0xf]  ;;  %v15947_v34 = vor.u32 %v17676_v58, %v15944_v2 }
 0x5d6   : > { %13023 = vmatpush.bf16.msra.mxu1 %v15851_v8  ;;  %v12752_v8 = vadd.f32 %v12751_v36, %v12738_v44  ;;  %v15755_v35 = vor.u32 %v17628_v45, %v15752_v37  ;;  %v15883_v44 = vor.u32 %v17660_v39, %v15880_v33  ;;  %v16256_v36 = vld [vmem:[%s19746_s27 + $0x12f8] sm:$0xf0]  ;;  %v22216_v45 = vld [vmem:[#allocation5_spill] sm:$0xff]  ;;  %v17734_v58 = vld [vmem:[%s19746_s27 + $0x1254] sm:$0xf] }
 0x5d7   : > { %13037 = vmatpush.bf16.msra.mxu2 %v15915_v18  ;;  %v11898_v24 = vadd.f32 %v20353_v54, %v22214_v29  ;;  %v15824_v18 = vld [vmem:[%s19746_s27 + $0xf98] sm:$0xf0] }
 0x5d8   : > { %13051 = vmatpush.bf16.msra.mxu3 %v15979_v15  ;;  %v15952_v15 = vld [vmem:[%s19746_s27 + $0x1098] sm:$0xf0]  ;;  %v15827_v54 = vor.u32 %v17646_v19, %v15824_v18  ;;  %v16131_v19 = vor.u32 %v17722_v28, %v16128_v17  ;;  %v22220_v28 = vld [vmem:[#allocation6_spill] sm:$0xff] }
 0x5d9   : > { %13010 = vmatpush.bf16.msra.mxu0 %v15779_v4  ;;  %v11912_v4 = vadd.f32 %v20369_v14, %v11898_v24  ;;  %v16192_v14 = vld [vmem:[%s19746_s27 + $0x1278] sm:$0xf0]  ;;  %v17704_v24 = vld [vmem:[%s19746_s27 + $0x1164] sm:$0xf] }
 0x5da   : > { %13024 = vmatpush.bf16.msra.mxu1 %v15843_v60  ;;  %v15955_v60 = vor.u32 %v17678_v20, %v15952_v15  ;;  %v16195_v29 = vor.u32 %v17738_v49, %v16192_v14  ;;  %v16184_v20 = vld [vmem:[%s19746_s27 + $0x1268] sm:$0xf0]  ;;  %v17752_v15 = vld [vmem:[%s19746_s27 + $0x12e4] sm:$0xf]  ;;  %v16048_v39 = vld [vmem:[%s19746_s27 + $0x1158] sm:$0xf0] }
 0x5db   : > { %13038 = vmatpush.bf16.msra.mxu2 %v15907_v1  ;;  %v12765_v1 = vpop.f32.mrf.mxu2  ;;  %v12779_v41 = vpop.f32.mrf.mxu3  ;;  %v16187_v43 = vor.u32 %v17736_v13, %v16184_v20  ;;  %v16112_v33 = vld [vmem:[%s19746_s27 + $0x11d8] sm:$0xf0]  ;;  %v16051_v49 = vor.u32 %v17702_v22, %v16048_v39  ;;  %v17730_v39 = vld [vmem:[%s19746_s27 + $0x1234] sm:$0xf] }
 0x5dc   : > { %13052 = vmatpush.bf16.msra.mxu3 %v15971_v10  ;;  %v12766_v10 = vadd.f32 %v12765_v1, %v12752_v8  ;;  %v17720_v8 = vld [vmem:[%s19746_s27 + $0x11e4] sm:$0xf]  ;;  %v16176_v2 = vld [vmem:[%s19746_s27 + $0x1258] sm:$0xf0] }
 0x5dd   : > { %13011 = vmatpush.bf16.msra.mxu0 %v15771_v42  ;;  %v17754_v42 = vld [vmem:[%s19746_s27 + $0x12f4] sm:$0xf]  ;;  %v22221_v17 = vld [vmem:[#allocation19_spill] sm:$0xff] }
 0x5de   : > { %13025 = vmatpush.bf16.msra.mxu1 %v15835_v5  ;;  %v21752_v7 = vadd.f32 %v12779_v41, %v12766_v10  ;;  %v22215_v5 = vld [vmem:[#allocation4_spill] sm:$0xff]  ;;  %v16259_v18 = vor.u32 %v17754_v42, %v16256_v36  ;;  %v22219_v41 = vld [vmem:[#allocation13_spill] sm:$0xff]  ;;  %v16096_v22 = vld [vmem:[%s19746_s27 + $0x11b8] sm:$0xf0] }
 0x5df   : > { %13039 = vmatpush.bf16.msra.mxu2 %v15899_v46  ;;  %v11926_v46 = vadd.f32 %v22215_v5, %v11912_v4  ;;  %v17718_v4 = vld [vmem:[%s19746_s27 + $0x11d4] sm:$0xf]  ;;  %v22218_v10 = vld [vmem:[#allocation16_spill] sm:$0xff]  ;;  %v16040_v42 = vld [vmem:[%s19746_s27 + $0x1148] sm:$0xf0]  ;;  %v16243_v5 = vor.u32 %v17750_v16, %v16240_v48 }
 0x5e0   : > { %13053 = vmatpush.bf16.msra.mxu3 %v15963_v12  ;;  %v16056_v12 = vld [vmem:[%s19746_s27 + $0x1168] sm:$0xf0]  ;;  %v16115_v14 = vor.u32 %v17718_v4, %v16112_v33  ;;  %v17716_v36 = vld [vmem:[%s19746_s27 + $0x11c4] sm:$0xf]  ;;  %v16160_v4 = vld [vmem:[%s19746_s27 + $0x1238] sm:$0xf0] }
 0x5e1   : > { %13012 = vmatpush.bf16.msra.mxu0 %v15763_v9  ;;  %v16248_v9 = vld [vmem:[%s19746_s27 + $0x12e8] sm:$0xf0]  ;;  %v11940_v37 = vadd.f32 %v22216_v45, %v11926_v46  ;;  %v16032_v45 = vld [vmem:[%s19746_s27 + $0x1138] sm:$0xf0]  ;;  %v17712_v16 = vld [vmem:[%s19746_s27 + $0x11a4] sm:$0xf] }
 0x5e2   : > { %13026 = vmatpush.bf16.msra.mxu1 %v15827_v54  ;;  %v16059_v54 = vor.u32 %v17704_v24, %v16056_v12  ;;  %v16251_v1 = vor.u32 %v17752_v15, %v16248_v9  ;;  %v16104_v46 = vld [vmem:[%s19746_s27 + $0x11c8] sm:$0xf0]  ;;  %v22222_v12 = vld [vmem:[#allocation7_spill] sm:$0xff]  ;;  %v17698_v9 = vld [vmem:[%s19746_s27 + $0x1134] sm:$0xf] }
 0x5e3   : > { %13040 = vmatpush.bf16.msra.mxu2 %v15891_v55  ;;  %v16123_v55 = vor.u32 %v17720_v8, %v16120_v3  ;;  %v16232_v24 = vld [vmem:[%s19746_s27 + $0x12c8] sm:$0xf0]  ;;  %v16107_v20 = vor.u32 %v17716_v36, %v16104_v46  ;;  %v16035_v33 = vor.u32 %v17698_v9, %v16032_v45  ;;  %v16080_v9 = vld [vmem:[%s19746_s27 + $0x1198] sm:$0xf0]  ;;  %v17726_v45 = vld [vmem:[%s19746_s27 + $0x1214] sm:$0xf] }
 0x5e4   : > { %13054 = vmatpush.bf16.msra.mxu3 %v15955_v60  ;;  %v22217_v60 = vld [vmem:[#allocation11_spill] sm:$0xff]  ;;  %v22224_v48 = vld [vmem:[#allocation9_spill] sm:$0xff] }
 0x5e5   : > { %13013 = vmatpush.bf16.msra.mxu0 %v15755_v35  ;;  %v11954_v35 = vadd.f32 %v22220_v28, %v11940_v37  ;;  %v17714_v37 = vld [vmem:[%s19746_s27 + $0x11b4] sm:$0xf]  ;;  %v16216_v46 = vld [vmem:[%s19746_s27 + $0x12a8] sm:$0xf0] }
 0x5e6   : > { %13027 = vmatpush.bf16.msra.mxu1 %v15819_v47  ;;  %v16179_v47 = vor.u32 %v17734_v58, %v16176_v2  ;;  %v12805_v13 = vpop.f32.mrf.mxu1  ;;  %v16099_v58 = vor.u32 %v17714_v37, %v16096_v22  ;;  %v16163_v2 = vor.u32 %v17730_v39, %v16160_v4  ;;  %v16144_v37 = vld [vmem:[%s19746_s27 + $0x1218] sm:$0xf0]  ;;  %v17692_v39 = vld [vmem:[%s19746_s27 + $0x1104] sm:$0xf]  ;;  %v16008_v4 = vld [vmem:[%s19746_s27 + $0x1108] sm:$0xf0] }
 0x5e7   : > { %13041 = vmatpush.bf16.msra.mxu2 %v15883_v44  ;;  %v17700_v44 = vld [vmem:[%s19746_s27 + $0x1144] sm:$0xf]  ;;  %v11968_v8 = vadd.f32 %v22222_v12, %v11954_v35 }
 0x5e8   : > { %13055 = vmatpush.bf16.msra.mxu3 %v15947_v34  ;;  %13014 = vmatmul.bf16.vlgmr.msra.gmra.mxu0 %v22217_v60  ;;  %v17732_v34 = vld [vmem:[%s19746_s27 + $0x1244] sm:$0xf]  ;;  %v16043_v3 = vor.u32 %v17700_v44, %v16040_v42  ;;  %v17746_v60 = vld [vmem:[%s19746_s27 + $0x12b4] sm:$0xf] }
 0x5e9   : > { %13062 = vmatpush.bf16.msrb.mxu0 %v16067_v59  ;;  %13028 = vmatmul.bf16.vlgmr.msra.gmra.mxu1 %v22219_v41  ;;  %v16168_v59 = vld [vmem:[%s19746_s27 + $0x1248] sm:$0xf0] }
 0x5ea   : > { %13076 = vmatpush.bf16.msrb.mxu1 %v16131_v19  ;;  %13042 = vmatmul.bf16.vlgmr.msra.gmra.mxu2 %v22218_v10  ;;  %v12791_v19 = vpop.f32.mrf.mxu0  ;;  %v16171_v15 = vor.u32 %v17732_v34, %v16168_v59  ;;  %v17696_v10 = vld [vmem:[%s19746_s27 + $0x1124] sm:$0xf]  ;;  %v16024_v41 = vld [vmem:[%s19746_s27 + $0x1128] sm:$0xf0]  ;;  %v22225_v34 = vld [vmem:[#allocation10_spill] sm:$0xff] }
 0x5eb   : > { %13090 = vmatpush.bf16.msrb.mxu2 %v16195_v29  ;;  %13056 = vmatmul.bf16.vlgmr.msra.gmra.mxu3 %v22221_v17  ;;  %v17748_v29 = vld [vmem:[%s19746_s27 + $0x12c4] sm:$0xf] }
 0x5ec   : > { %13104 = vmatpush.bf16.msrb.mxu3 %v16259_v18  ;;  %v12792_v18 = vadd.f32 %v12791_v19, %v21724_v0 }
 0x5ed   : > { %13063 = vmatpush.bf16.msrb.mxu0 %v16059_v54  ;;  %v22223_v54 = vld [vmem:[#allocation8_spill] sm:$0xff]  ;;  %v12819_v17 = vpop.f32.mrf.mxu2 }
 0x5ee   : > { %13077 = vmatpush.bf16.msrb.mxu1 %v16123_v55  ;;  %v11982_v55 = vadd.f32 %v22223_v54, %v11968_v8  ;;  %v12806_v0 = vadd.f32 %v12805_v13, %v12792_v18  ;;  %v12833_v36 = vpop.f32.mrf.mxu3  ;;  %v16016_v13 = vld [vmem:[%s19746_s27 + $0x1118] sm:$0xf0]  ;;  %v17742_v54 = vld [vmem:[%s19746_s27 + $0x1294] sm:$0xf] }
 0x5ef   : > { %13091 = vmatpush.bf16.msrb.mxu2 %v16187_v43  ;;  %v16235_v43 = vor.u32 %v17748_v29, %v16232_v24  ;;  %v16027_v29 = vor.u32 %v17696_v10, %v16024_v41  ;;  %v12807_v24 = vpop.f32.mrf.mxu1  ;;  %v22227_v10 = vld [vmem:[#allocation14_spill] sm:$0xff] }
 0x5f0   : > { %13105 = vmatpush.bf16.msrb.mxu3 %v16251_v1  ;;  %v16224_v1 = vld [vmem:[%s19746_s27 + $0x12b8] sm:$0xf0]  ;;  %v11996_v28 = vadd.f32 %v22224_v48, %v11982_v55  ;;  %v12820_v44 = vadd.f32 %v12819_v17, %v12806_v0  ;;  %v16200_v17 = vld [vmem:[%s19746_s27 + $0x1288] sm:$0xf0] }
 0x5f1   : > { %13064 = vmatpush.bf16.msrb.mxu0 %v16051_v49  ;;  %v16227_v35 = vor.u32 %v17746_v60, %v16224_v1  ;;  %v16088_v49 = vld [vmem:[%s19746_s27 + $0x11a8] sm:$0xf0]  ;;  %v16208_v55 = vld [vmem:[%s19746_s27 + $0x1298] sm:$0xf0]  ;;  %v16147_v1 = vor.u32 %v17726_v45, %v16144_v37  ;;  %v17784_v37 = vld [vmem:[%s19746_s27 + $0x13e4] sm:$0xf] }
 0x5f2   : > { %13078 = vmatpush.bf16.msrb.mxu1 %v16115_v14  ;;  %v17728_v14 = vld [vmem:[%s19746_s27 + $0x1224] sm:$0xf]  ;;  %v12793_v42 = vpop.f32.mrf.mxu0  ;;  %v12010_v59 = vadd.f32 %v22225_v34, %v11996_v28  ;;  %v21809_v12 = vadd.f32 %v12833_v36, %v12820_v44  ;;  %v16091_v8 = vor.u32 %v17712_v16, %v16088_v49  ;;  %v16211_v16 = vor.u32 %v17742_v54, %v16208_v55  ;;  %v16136_v28 = vld [vmem:[%s19746_s27 + $0x1208] sm:$0xf0]  ;;  %v16320_v44 = vld [vmem:[%s19746_s27 + $0x1378] sm:$0xf0] }
 0x5f3   : > { %13092 = vmatpush.bf16.msrb.mxu2 %v16179_v47  ;;  %v16152_v47 = vld [vmem:[%s19746_s27 + $0x1228] sm:$0xf0]  ;;  %v12794_v19 = vadd.f32 %v12793_v42, %v21752_v7  ;;  %v17786_v42 = vld [vmem:[%s19746_s27 + $0x13f4] sm:$0xf]  ;;  %v16011_v36 = vor.u32 %v17692_v39, %v16008_v4  ;;  %v16448_v34 = vld [vmem:[%s19746_s27 + $0x1478] sm:$0xf0] }
 0x5f4   : > { %13106 = vmatpush.bf16.msrb.mxu3 %v16243_v5  ;;  %v17744_v5 = vld [vmem:[%s19746_s27 + $0x12a4] sm:$0xf]  ;;  %v16155_v18 = vor.u32 %v17728_v14, %v16152_v47  ;;  %v17770_v47 = vld [vmem:[%s19746_s27 + $0x1374] sm:$0xf]  ;;  %v16312_v45 = vld [vmem:[%s19746_s27 + $0x1368] sm:$0xf0] }
 0x5f5   : > { %13065 = vmatpush.bf16.msrb.mxu0 %v16043_v3  ;;  %v17694_v3 = vld [vmem:[%s19746_s27 + $0x1114] sm:$0xf]  ;;  %v12808_v7 = vadd.f32 %v12807_v24, %v12794_v19  ;;  %v12821_v48 = vpop.f32.mrf.mxu2  ;;  %v22229_v54 = vld [vmem:[#allocation17_spill] sm:$0xff]  ;;  %v17816_v4 = vld [vmem:[%s19746_s27 + $0x14e4] sm:$0xf] }
 0x5f6   : > { %13079 = vmatpush.bf16.msrb.mxu1 %v16107_v20  ;;  %v17710_v20 = vld [vmem:[%s19746_s27 + $0x1194] sm:$0xf]  ;;  %v16019_v22 = vor.u32 %v17694_v3, %v16016_v13  ;;  %v12835_v14 = vpop.f32.mrf.mxu3  ;;  %v16440_v39 = vld [vmem:[%s19746_s27 + $0x1468] sm:$0xf0] }
 0x5f7   : > { %13093 = vmatpush.bf16.msrb.mxu2 %v16171_v15  ;;  %v16219_v15 = vor.u32 %v17744_v5, %v16216_v46  ;;  %v16083_v60 = vor.u32 %v17710_v20, %v16080_v9  ;;  %v12822_v49 = vadd.f32 %v12821_v48, %v12808_v7  ;;  %v16384_v5 = vld [vmem:[%s19746_s27 + $0x13f8] sm:$0xf0]  ;;  %v17802_v46 = vld [vmem:[%s19746_s27 + $0x1474] sm:$0xf]  ;;  %v16323_v20 = vor.u32 %v17770_v47, %v16320_v44  ;;  %v17768_v9 = vld [vmem:[%s19746_s27 + $0x1364] sm:$0xf] }
 0x5f8   : > { %13107 = vmatpush.bf16.msrb.mxu3 %v16235_v43  ;;  %v22226_v43 = vld [vmem:[#allocation12_spill] sm:$0xff]  ;;  %v17818_v24 = vld [vmem:[%s19746_s27 + $0x14f4] sm:$0xf]  ;;  %v16451_v7 = vor.u32 %v17802_v46, %v16448_v34  ;;  %v22233_v44 = vld [vmem:[#allocation21_spill] sm:$0xff] }
 0x5f9   : > { %13066 = vmatpush.bf16.msrb.mxu0 %v16035_v33  ;;  %v12024_v0 = vadd.f32 %v22226_v43, %v12010_v59  ;;  %v17708_v33 = vld [vmem:[%s19746_s27 + $0x1184] sm:$0xf]  ;;  %v21835_v59 = vadd.f32 %v12835_v14, %v12822_v49  ;;  %v17798_v49 = vld [vmem:[%s19746_s27 + $0x1454] sm:$0xf]  ;;  %v16432_v14 = vld [vmem:[%s19746_s27 + $0x1458] sm:$0xf0] }
 0x5fa   : > { %13080 = vmatpush.bf16.msrb.mxu1 %v16099_v58  ;;  %v16072_v58 = vld [vmem:[%s19746_s27 + $0x1188] sm:$0xf0]  ;;  %v22232_v47 = vld [vmem:[#allocation24_spill] sm:$0xff]  ;;  %v22235_v34 = vld [vmem:[#allocation27_spill] sm:$0xff] }
 0x5fb   : > { %13094 = vmatpush.bf16.msrb.mxu2 %v16163_v2  ;;  %v17724_v2 = vld [vmem:[%s19746_s27 + $0x1204] sm:$0xf]  ;;  %v12038_v41 = vadd.f32 %v22227_v10, %v12024_v0  ;;  %v16075_v19 = vor.u32 %v17708_v33, %v16072_v58  ;;  %v16376_v0 = vld [vmem:[%s19746_s27 + $0x13e8] sm:$0xf0]  ;;  %v16304_v10 = vld [vmem:[%s19746_s27 + $0x1358] sm:$0xf0] }
 0x5fc   : > { %13108 = vmatpush.bf16.msrb.mxu3 %v16227_v35  ;;  %v17740_v35 = vld [vmem:[%s19746_s27 + $0x1284] sm:$0xf]  ;;  %v16379_v33 = vor.u32 %v17784_v37, %v16376_v0  ;;  %v16488_v37 = vld [vmem:[%s19746_s27 + $0x14c8] sm:$0xf0] }
 0x5fd   : > { %13067 = vmatpush.bf16.msrb.mxu0 %v16027_v29  ;;  %v16139_v29 = vor.u32 %v17724_v2, %v16136_v28  ;;  %v16203_v13 = vor.u32 %v17740_v35, %v16200_v17  ;;  %v17766_v2 = vld [vmem:[%s19746_s27 + $0x1354] sm:$0xf]  ;;  %v16368_v17 = vld [vmem:[%s19746_s27 + $0x13d8] sm:$0xf0] }
 0x5fe   : > { %13081 = vmatpush.bf16.msrb.mxu1 %v16091_v8  ;;  %v16512_v8 = vld [vmem:[%s19746_s27 + $0x14f8] sm:$0xf0]  ;;  %v22231_v28 = vld [vmem:[#allocation18_spill] sm:$0xff] }
 0x5ff   : > { %13095 = vmatpush.bf16.msrb.mxu2 %v16155_v18  ;;  %v22228_v18 = vld [vmem:[#allocation15_spill] sm:$0xff]  ;;  %v16515_v43 = vor.u32 %v17818_v24, %v16512_v8  ;;  %v16435_v24 = vor.u32 %v17798_v49, %v16432_v14  ;;  %v17764_v8 = vld [vmem:[%s19746_s27 + $0x1344] sm:$0xf] }
 0x600   : > { %13109 = vmatpush.bf16.msrb.mxu3 %v16219_v15  ;;  %v12052_v3 = vadd.f32 %v22228_v18, %v12038_v41  ;;  %v16387_v15 = vor.u32 %v17786_v42, %v16384_v5  ;;  %v17782_v41 = vld [vmem:[%s19746_s27 + $0x13d4] sm:$0xf]  ;;  %v16296_v18 = vld [vmem:[%s19746_s27 + $0x1348] sm:$0xf0] }
 0x601   : > { %13068 = vmatpush.bf16.msrb.mxu0 %v16019_v22  ;;  %v17800_v22 = vld [vmem:[%s19746_s27 + $0x1464] sm:$0xf]  ;;  %v17814_v42 = vld [vmem:[%s19746_s27 + $0x14d4] sm:$0xf]  ;;  %v16299_v0 = vor.u32 %v17764_v8, %v16296_v18 }
 0x602   : > { %13082 = vmatpush.bf16.msrb.mxu1 %v16083_v60  ;;  %v12066_v55 = vadd.f32 %v22229_v54, %v12052_v3  ;;  %v16504_v60 = vld [vmem:[%s19746_s27 + $0x14e8] sm:$0xf0]  ;;  %v16443_v58 = vor.u32 %v17800_v22, %v16440_v39  ;;  %v22234_v5 = vld [vmem:[#allocation22_spill] sm:$0xff]  ;;  %v17780_v3 = vld [vmem:[%s19746_s27 + $0x13c4] sm:$0xf] }
 0x603   : > { %13096 = vmatpush.bf16.msrb.mxu2 %v16147_v1  ;;  %v16315_v1 = vor.u32 %v17768_v9, %v16312_v45  ;;  %v16507_v35 = vor.u32 %v17816_v4, %v16504_v60  ;;  %v17812_v45 = vld [vmem:[%s19746_s27 + $0x14c4] sm:$0xf]  ;;  %v22236_v54 = vld [vmem:[#allocation23_spill] sm:$0xff]  ;;  %v17762_v60 = vld [vmem:[%s19746_s27 + $0x1334] sm:$0xf] }
 0x604   : > { %13110 = vmatpush.bf16.msrb.mxu3 %v16211_v16  ;;  %v22230_v16 = vld [vmem:[#allocation20_spill] sm:$0xff] }
 0x605   : > { %13069 = vmatpush.bf16.msrb.mxu0 %v16011_v36  ;;  %v12080_v48 = vadd.f32 %v22230_v16, %v12066_v55  ;;  %v16496_v36 = vld [vmem:[%s19746_s27 + $0x14d8] sm:$0xf0]  ;;  %v12847_v9 = vpop.f32.mrf.mxu0  ;;  %v17794_v16 = vld [vmem:[%s19746_s27 + $0x1434] sm:$0xf] }
 0x606   : > { %13083 = vmatpush.bf16.msrb.mxu1 %v16075_v19  ;;  %v16307_v19 = vor.u32 %v17766_v2, %v16304_v10  ;;  %v12861_v22 = vpop.f32.mrf.mxu1  ;;  %v16491_v10 = vor.u32 %v17812_v45, %v16488_v37 }
 0x607   : > { %13097 = vmatpush.bf16.msrb.mxu2 %v16139_v29  ;;  %v12094_v46 = vadd.f32 %v22234_v5, %v12080_v48  ;;  %v16371_v29 = vor.u32 %v17782_v41, %v16368_v17  ;;  %v16352_v41 = vld [vmem:[%s19746_s27 + $0x13b8] sm:$0xf0] }
 0x608   : > { %13111 = vmatpush.bf16.msrb.mxu3 %v16203_v13  ;;  %13070 = vmatmul.bf16.vlgmr.msrb.gmra.mxu0 %v22231_v28  ;;  %v16499_v13 = vor.u32 %v17814_v42, %v16496_v36  ;;  %v16416_v48 = vld [vmem:[%s19746_s27 + $0x1438] sm:$0xf0]  ;;  %v17810_v28 = vld [vmem:[%s19746_s27 + $0x14b4] sm:$0xf]  ;;  %v17776_v42 = vld [vmem:[%s19746_s27 + $0x13a4] sm:$0xf] }
 0x609   : > { %13118 = vmatpush.bf16.msra.mxu0 %v16323_v20  ;;  %13084 = vmatmul.bf16.vlgmr.msrb.gmra.mxu1 %v22233_v44  ;;  %v16360_v20 = vld [vmem:[%s19746_s27 + $0x13c8] sm:$0xf0]  ;;  %v12108_v55 = vadd.f32 %v22236_v54, %v12094_v46  ;;  %v16419_v14 = vor.u32 %v17794_v16, %v16416_v48  ;;  %v22238_v36 = vld [vmem:[#allocation28_spill] sm:$0xff]  ;;  %v17758_v54 = vld [vmem:[%s19746_s27 + $0x1314] sm:$0xf] }
 0x60a   : > { %13132 = vmatpush.bf16.msra.mxu1 %v16387_v15  ;;  %13098 = vmatmul.bf16.vlgmr.msrb.gmra.mxu2 %v22232_v47  ;;  %v17796_v15 = vld [vmem:[%s19746_s27 + $0x1444] sm:$0xf]  ;;  %v16363_v39 = vor.u32 %v17780_v3, %v16360_v20  ;;  %v16280_v44 = vld [vmem:[%s19746_s27 + $0x1328] sm:$0xf0]  ;;  %v22239_v20 = vld [vmem:[#allocation30_spill] sm:$0xff] }
 0x60b   : > { %13146 = vmatpush.bf16.msra.mxu2 %v16451_v7  ;;  %13112 = vmatmul.bf16.vlgmr.msrb.gmra.mxu3 %v22235_v34  ;;  %v16424_v7 = vld [vmem:[%s19746_s27 + $0x1448] sm:$0xf0]  ;;  %v17760_v47 = vld [vmem:[%s19746_s27 + $0x1324] sm:$0xf] }
 0x60c   : > { %13160 = vmatpush.bf16.msra.mxu3 %v16515_v43  ;;  %v12848_v43 = vadd.f32 %v12847_v9, %v21809_v12  ;;  %v16427_v4 = vor.u32 %v17796_v15, %v16424_v7  ;;  %v17808_v3 = vld [vmem:[%s19746_s27 + $0x14a4] sm:$0xf]  ;;  %v16283_v7 = vor.u32 %v17760_v47, %v16280_v44  ;;  %v16456_v47 = vld [vmem:[%s19746_s27 + $0x1488] sm:$0xf0] }
 0x60d   : > { %13119 = vmatpush.bf16.msra.mxu0 %v16315_v1  ;;  %v16288_v1 = vld [vmem:[%s19746_s27 + $0x1338] sm:$0xf0]  ;;  %v12875_v34 = vpop.f32.mrf.mxu2  ;;  %v17772_v48 = vld [vmem:[%s19746_s27 + $0x1384] sm:$0xf]  ;;  %v22241_v44 = vld [vmem:[#allocation33_spill] sm:$0xff] }
 0x60e   : > { %13133 = vmatpush.bf16.msra.mxu1 %v16379_v33  ;;  %v17778_v33 = vld [vmem:[%s19746_s27 + $0x13b4] sm:$0xf]  ;;  %v12862_v12 = vadd.f32 %v12861_v22, %v12848_v43  ;;  %v16291_v17 = vor.u32 %v17762_v60, %v16288_v1  ;;  %v12889_v18 = vpop.f32.mrf.mxu3  ;;  %v16336_v22 = vld [vmem:[%s19746_s27 + $0x1398] sm:$0xf0] }
 0x60f   : > { %13147 = vmatpush.bf16.msra.mxu2 %v16443_v58  ;;  %v22237_v58 = vld [vmem:[#allocation25_spill] sm:$0xff]  ;;  %v16355_v49 = vor.u32 %v17778_v33, %v16352_v41  ;;  %v17774_v43 = vld [vmem:[%s19746_s27 + $0x1394] sm:$0xf]  ;;  %v16464_v1 = vld [vmem:[%s19746_s27 + $0x1498] sm:$0xf0] }
 0x610   : > { %13161 = vmatpush.bf16.msra.mxu3 %v16507_v35  ;;  %v12122_v2 = vadd.f32 %v22237_v58, %v12108_v55  ;;  %v16480_v35 = vld [vmem:[%s19746_s27 + $0x14b8] sm:$0xf0]  ;;  %v12876_v8 = vadd.f32 %v12875_v34, %v12862_v12  ;;  %v17806_v60 = vld [vmem:[%s19746_s27 + $0x1494] sm:$0xf]  ;;  %v17756_v58 = vld [vmem:[%s19746_s27 + $0x1304] sm:$0xf]  ;;  %v16339_v41 = vor.u32 %v17774_v43, %v16336_v22 }
 0x611   : > { %13120 = vmatpush.bf16.msra.mxu0 %v16307_v19  ;;  %v16483_v46 = vor.u32 %v17810_v28, %v16480_v35  ;;  %v16344_v19 = vld [vmem:[%s19746_s27 + $0x13a8] sm:$0xf0]  ;;  %v16272_v55 = vld [vmem:[%s19746_s27 + $0x1318] sm:$0xf0]  ;;  %v17788_v35 = vld [vmem:[%s19746_s27 + $0x1404] sm:$0xf] }
 0x612   : > { %13134 = vmatpush.bf16.msra.mxu1 %v16371_v29  ;;  %v12136_v5 = vadd.f32 %v22238_v36, %v12122_v2  ;;  %v17792_v29 = vld [vmem:[%s19746_s27 + $0x1424] sm:$0xf]  ;;  %v21892_v9 = vadd.f32 %v12889_v18, %v12876_v8  ;;  %v16347_v45 = vor.u32 %v17776_v42, %v16344_v19  ;;  %v16275_v33 = vor.u32 %v17758_v54, %v16272_v55  ;;  %v16264_v2 = vld [vmem:[%s19746_s27 + $0x1308] sm:$0xf0]  ;;  %v17834_v36 = vld [vmem:[%s19746_s27 + $0x1574] sm:$0xf] }
 0x613   : > { %13148 = vmatpush.bf16.msra.mxu2 %v16435_v24  ;;  %v16408_v24 = vld [vmem:[%s19746_s27 + $0x1428] sm:$0xf0]  ;;  %v16267_v34 = vor.u32 %v17756_v58, %v16264_v2  ;;  %v16640_v19 = vld [vmem:[%s19746_s27 + $0x15f8] sm:$0xf0]  ;;  %v17832_v55 = vld [vmem:[%s19746_s27 + $0x1564] sm:$0xf] }
 0x614   : > { %13162 = vmatpush.bf16.msra.mxu3 %v16499_v13  ;;  %v16472_v13 = vld [vmem:[%s19746_s27 + $0x14a8] sm:$0xf0]  ;;  %v12150_v15 = vadd.f32 %v22239_v20, %v12136_v5  ;;  %v16411_v37 = vor.u32 %v17792_v29, %v16408_v24  ;;  %v16576_v5 = vld [vmem:[%s19746_s27 + $0x1578] sm:$0xf0]  ;;  %v17866_v29 = vld [vmem:[%s19746_s27 + $0x1674] sm:$0xf] }
 0x615   : > { %13121 = vmatpush.bf16.msra.mxu0 %v16299_v0  ;;  %v16475_v0 = vor.u32 %v17808_v3, %v16472_v13  ;;  %v16328_v28 = vld [vmem:[%s19746_s27 + $0x1388] sm:$0xf0]  ;;  %v16704_v24 = vld [vmem:[%s19746_s27 + $0x1678] sm:$0xf0]  ;;  %v17882_v3 = vld [vmem:[%s19746_s27 + $0x16f4] sm:$0xf] }
 0x616   : > { %13135 = vmatpush.bf16.msra.mxu1 %v16363_v39  ;;  %v17790_v39 = vld [vmem:[%s19746_s27 + $0x1414] sm:$0xf]  ;;  %v16331_v8 = vor.u32 %v17772_v48, %v16328_v28  ;;  %v16768_v13 = vld [vmem:[%s19746_s27 + $0x16f8] sm:$0xf0]  ;;  %v16707_v54 = vor.u32 %v17866_v29, %v16704_v24  ;;  %v16568_v43 = vld [vmem:[%s19746_s27 + $0x1568] sm:$0xf0] }
 0x617   : > { %13149 = vmatpush.bf16.msra.mxu2 %v16427_v4  ;;  %v16400_v4 = vld [vmem:[%s19746_s27 + $0x1418] sm:$0xf0]  ;;  %v16771_v22 = vor.u32 %v17882_v3, %v16768_v13  ;;  %v17880_v58 = vld [vmem:[%s19746_s27 + $0x16e4] sm:$0xf]  ;;  %v16760_v2 = vld [vmem:[%s19746_s27 + $0x16e8] sm:$0xf0] }
 0x618   : > { %13163 = vmatpush.bf16.msra.mxu3 %v16491_v10  ;;  %v22240_v10 = vld [vmem:[#allocation31_spill] sm:$0xff]  ;;  %v16403_v16 = vor.u32 %v17790_v39, %v16400_v4  ;;  %v16632_v39 = vld [vmem:[%s19746_s27 + $0x15e8] sm:$0xf0]  ;;  %v17864_v4 = vld [vmem:[%s19746_s27 + $0x1664] sm:$0xf] }
 0x619   : > { %13122 = vmatpush.bf16.msra.mxu0 %v16291_v17  ;;  %v12164_v12 = vadd.f32 %v22240_v10, %v12150_v15  ;;  %v16467_v17 = vor.u32 %v17806_v60, %v16464_v1  ;;  %v16579_v15 = vor.u32 %v17834_v36, %v16576_v5  ;;  %v16696_v60 = vld [vmem:[%s19746_s27 + $0x1668] sm:$0xf0]  ;;  %v22243_v1 = vld [vmem:[#allocation38_spill] sm:$0xff]  ;;  %v16571_v10 = vor.u32 %v17832_v55, %v16568_v43  ;;  %v16560_v48 = vld [vmem:[%s19746_s27 + $0x1558] sm:$0xf0] }
 0x61a   : > { %13136 = vmatpush.bf16.msra.mxu1 %v16355_v49  ;;  %v16392_v49 = vld [vmem:[%s19746_s27 + $0x1408] sm:$0xf0]  ;;  %v17846_v28 = vld [vmem:[%s19746_s27 + $0x15d4] sm:$0xf]  ;;  %v22246_v36 = vld [vmem:[#allocation32_spill] sm:$0xff] }
 0x61b   : > { %13150 = vmatpush.bf16.msra.mxu2 %v16419_v14  ;;  %v17804_v14 = vld [vmem:[%s19746_s27 + $0x1484] sm:$0xf]  ;;  %v12178_v42 = vadd.f32 %v22241_v44, %v12164_v12  ;;  %v16395_v18 = vor.u32 %v17788_v35, %v16392_v49  ;;  %v22244_v35 = vld [vmem:[#allocation26_spill] sm:$0xff]  ;;  %v16624_v49 = vld [vmem:[%s19746_s27 + $0x15d8] sm:$0xf0] }
 0x61c   : > { %13164 = vmatpush.bf16.msra.mxu3 %v16483_v46  ;;  %v17850_v46 = vld [vmem:[%s19746_s27 + $0x15f4] sm:$0xf]  ;;  %v16459_v20 = vor.u32 %v17804_v14, %v16456_v47  ;;  %v16688_v47 = vld [vmem:[%s19746_s27 + $0x1658] sm:$0xf0]  ;;  %v22247_v5 = vld [vmem:[#allocation29_spill] sm:$0xff] }
 0x61d   : > { %13123 = vmatpush.bf16.msra.mxu0 %v16283_v7  ;;  %v22242_v7 = vld [vmem:[#allocation36_spill] sm:$0xff]  ;;  %v17862_v14 = vld [vmem:[%s19746_s27 + $0x1654] sm:$0xf]  ;;  %v22245_v44 = vld [vmem:[#allocation39_spill] sm:$0xff] }
 0x61e   : > { %13137 = vmatpush.bf16.msra.mxu1 %v16347_v45  ;;  %v12192_v45 = vadd.f32 %v22242_v7, %v12178_v42  ;;  %v17828_v3 = vld [vmem:[%s19746_s27 + $0x1544] sm:$0xf]  ;;  %v16552_v13 = vld [vmem:[%s19746_s27 + $0x1548] sm:$0xf0] }
 0x61f   : > { %13151 = vmatpush.bf16.msra.mxu2 %v16411_v37  ;;  %v16643_v37 = vor.u32 %v17850_v46, %v16640_v19  ;;  %v17878_v46 = vld [vmem:[%s19746_s27 + $0x16d4] sm:$0xf]  ;;  %v22248_v19 = vld [vmem:[#allocation35_spill] sm:$0xff]  ;;  %v16616_v7 = vld [vmem:[%s19746_s27 + $0x15c8] sm:$0xf0]  ;;  %v16555_v55 = vor.u32 %v17828_v3, %v16552_v13 }
 0x620   : > { %13165 = vmatpush.bf16.msra.mxu3 %v16475_v0  ;;  %v17848_v0 = vld [vmem:[%s19746_s27 + $0x15e4] sm:$0xf]  ;;  %v16592_v3 = vld [vmem:[%s19746_s27 + $0x1598] sm:$0xf0]  ;;  %v17854_v13 = vld [vmem:[%s19746_s27 + $0x1614] sm:$0xf] }
 0x621   : > { %13124 = vmatpush.bf16.msra.mxu0 %v16275_v33  ;;  %v12206_v33 = vadd.f32 %v22243_v1, %v12192_v45  ;;  %v16635_v12 = vor.u32 %v17848_v0, %v16632_v39  ;;  %v17860_v45 = vld [vmem:[%s19746_s27 + $0x1644] sm:$0xf]  ;;  %v17826_v39 = vld [vmem:[%s19746_s27 + $0x1534] sm:$0xf] }
 0x622   : > { %13138 = vmatpush.bf16.msra.mxu1 %v16339_v41  ;;  %v16699_v41 = vor.u32 %v17864_v4, %v16696_v60  ;;  %v16544_v4 = vld [vmem:[%s19746_s27 + $0x1538] sm:$0xf0]  ;;  %v17842_v60 = vld [vmem:[%s19746_s27 + $0x15b4] sm:$0xf] }
 0x623   : > { %13152 = vmatpush.bf16.msra.mxu2 %v16403_v16  ;;  %v17830_v16 = vld [vmem:[%s19746_s27 + $0x1554] sm:$0xf]  ;;  %v12220_v42 = vadd.f32 %v22245_v44, %v12206_v33  ;;  %v16608_v33 = vld [vmem:[%s19746_s27 + $0x15b8] sm:$0xf0] }
 0x624   : > { %13166 = vmatpush.bf16.msra.mxu3 %v16467_v17  ;;  %v16763_v17 = vor.u32 %v17880_v58, %v16760_v2  ;;  %v16563_v29 = vor.u32 %v17830_v16, %v16560_v48  ;;  %v17858_v58 = vld [vmem:[%s19746_s27 + $0x1634] sm:$0xf]  ;;  %v16672_v2 = vld [vmem:[%s19746_s27 + $0x1638] sm:$0xf0]  ;;  %v16611_v16 = vor.u32 %v17842_v60, %v16608_v33  ;;  %v17868_v33 = vld [vmem:[%s19746_s27 + $0x1684] sm:$0xf] }
 0x625   : > { %13125 = vmatpush.bf16.msra.mxu0 %v16267_v34  ;;  %v16752_v34 = vld [vmem:[%s19746_s27 + $0x16d8] sm:$0xf0]  ;;  %v12234_v24 = vadd.f32 %v21027_v56, %v12220_v42  ;;  %v16744_v56 = vld [vmem:[%s19746_s27 + $0x16c8] sm:$0xf0]  ;;  %v16675_v48 = vor.u32 %v17858_v58, %v16672_v2  ;;  %v17872_v42 = vld [vmem:[%s19746_s27 + $0x16a4] sm:$0xf] }
 0x626   : > { %13139 = vmatpush.bf16.msra.mxu1 %v16331_v8  ;;  %v16627_v8 = vor.u32 %v17846_v28, %v16624_v49  ;;  %v17824_v28 = vld [vmem:[%s19746_s27 + $0x1524] sm:$0xf]  ;;  %v16712_v58 = vld [vmem:[%s19746_s27 + $0x1688] sm:$0xf0] }
 0x627   : > { %13153 = vmatpush.bf16.msra.mxu2 %v16395_v18  ;;  %v16691_v18 = vor.u32 %v17862_v14, %v16688_v47  ;;  %v12248_v43 = vadd.f32 %v21035_v30, %v12234_v24  ;;  %v17874_v30 = vld [vmem:[%s19746_s27 + $0x16b4] sm:$0xf]  ;;  %v17856_v14 = vld [vmem:[%s19746_s27 + $0x1624] sm:$0xf]  ;;  %v16664_v47 = vld [vmem:[%s19746_s27 + $0x1628] sm:$0xf0] }
 0x628   : > { %13167 = vmatpush.bf16.msra.mxu3 %v16459_v20  ;;  %13126 = vmatmul.bf16.vlgmr.msra.gmra.mxu0 %v22244_v35  ;;  %v17844_v20 = vld [vmem:[%s19746_s27 + $0x15c4] sm:$0xf]  ;;  %v16536_v35 = vld [vmem:[%s19746_s27 + $0x1528] sm:$0xf0]  ;;  %v17822_v24 = vld [vmem:[%s19746_s27 + $0x1514] sm:$0xf] }
 0x629   : > { %13174 = vmatpush.bf16.msrb.mxu0 %v16579_v15  ;;  %13140 = vmatmul.bf16.vlgmr.msra.gmra.mxu1 %v22247_v5  ;;  %v16755_v15 = vor.u32 %v17878_v46, %v16752_v34  ;;  %v16619_v0 = vor.u32 %v17844_v20, %v16616_v7  ;;  %v16539_v5 = vor.u32 %v17824_v28, %v16536_v35  ;;  %v22249_v46 = vld [vmem:[#allocation45_spill] sm:$0xff]  ;;  %v16656_v20 = vld [vmem:[%s19746_s27 + $0x1618] sm:$0xf0]  ;;  %v22251_v2 = vld [vmem:[#allocation48_spill] sm:$0xff] }
 0x62a   : > { %13188 = vmatpush.bf16.msrb.mxu1 %v16643_v37  ;;  %13154 = vmatmul.bf16.vlgmr.msra.gmra.mxu2 %v22246_v36  ;;  %v16680_v37 = vld [vmem:[%s19746_s27 + $0x1648] sm:$0xf0]  ;;  %v16720_v7 = vld [vmem:[%s19746_s27 + $0x1698] sm:$0xf0]  ;;  %v17930_v28 = vld [vmem:[%s19746_s27 + $0x1874] sm:$0xf] }
 0x62b   : > { %13202 = vmatpush.bf16.msrb.mxu2 %v16707_v54  ;;  %13168 = vmatmul.bf16.vlgmr.msra.gmra.mxu3 %v22248_v19  ;;  %v17876_v54 = vld [vmem:[%s19746_s27 + $0x16c4] sm:$0xf]  ;;  %v16728_v36 = vld [vmem:[%s19746_s27 + $0x16a8] sm:$0xf0]  ;;  %v16960_v35 = vld [vmem:[%s19746_s27 + $0x1878] sm:$0xf0] }
 0x62c   : > { %13216 = vmatpush.bf16.msrb.mxu3 %v16771_v22  ;;  %v16683_v22 = vor.u32 %v17860_v45, %v16680_v37  ;;  %v16747_v1 = vor.u32 %v17876_v54, %v16744_v56  ;;  %v17820_v37 = vld [vmem:[%s19746_s27 + $0x1504] sm:$0xf]  ;;  %v16520_v54 = vld [vmem:[%s19746_s27 + $0x1508] sm:$0xf0]  ;;  %v22250_v56 = vld [vmem:[#allocation47_spill] sm:$0xff] }
 0x62d   : > { %13175 = vmatpush.bf16.msrb.mxu0 %v16571_v10  ;;  %v12262_v10 = vadd.f32 %v21054_v61, %v12248_v43  ;;  %v16600_v61 = vld [vmem:[%s19746_s27 + $0x15a8] sm:$0xf0] }
 0x62e   : > { %13189 = vmatpush.bf16.msrb.mxu1 %v16635_v12  ;;  %v16736_v12 = vld [vmem:[%s19746_s27 + $0x16b8] sm:$0xf0] }
 0x62f   : > { %13203 = vmatpush.bf16.msrb.mxu2 %v16699_v41  ;;  %v16547_v41 = vor.u32 %v17826_v39, %v16544_v4  ;;  %v16739_v49 = vor.u32 %v17874_v30, %v16736_v12  ;;  %v12276_v44 = vadd.f32 %v21059_v23, %v12262_v10  ;;  %v16731_v23 = vor.u32 %v17872_v42, %v16728_v36  ;;  %v16584_v39 = vld [vmem:[%s19746_s27 + $0x1588] sm:$0xf0]  ;;  %v17852_v4 = vld [vmem:[%s19746_s27 + $0x1604] sm:$0xf]  ;;  %v17898_v30 = vld [vmem:[%s19746_s27 + $0x1774] sm:$0xf] }
 0x630   : > { %13217 = vmatpush.bf16.msrb.mxu3 %v16763_v17  ;;  %v17840_v17 = vld [vmem:[%s19746_s27 + $0x15a4] sm:$0xf]  ;;  %v16832_v12 = vld [vmem:[%s19746_s27 + $0x1778] sm:$0xf0]  ;;  %v22252_v42 = vld [vmem:[#allocation49_spill] sm:$0xff] }
 0x631   : > { %13176 = vmatpush.bf16.msrb.mxu0 %v16563_v29  ;;  %v12290_v34 = vadd.f32 %v22249_v46, %v12276_v44  ;;  %v16603_v19 = vor.u32 %v17840_v17, %v16600_v61  ;;  %v16667_v29 = vor.u32 %v17856_v14, %v16664_v47  ;;  %v17946_v61 = vld [vmem:[%s19746_s27 + $0x18f4] sm:$0xf]  ;;  %v17024_v14 = vld [vmem:[%s19746_s27 + $0x18f8] sm:$0xf0]  ;;  %v16715_v47 = vor.u32 %v17868_v33, %v16712_v58 }
 0x632   : > { %13190 = vmatpush.bf16.msrb.mxu1 %v16627_v8  ;;  %v16528_v8 = vld [vmem:[%s19746_s27 + $0x1518] sm:$0xf0]  ;;  %v16835_v44 = vor.u32 %v17898_v30, %v16832_v12  ;;  %v16963_v46 = vor.u32 %v17930_v28, %v16960_v35  ;;  %v22256_v58 = vld [vmem:[#allocation42_spill] sm:$0xff]  ;;  %v17892_v12 = vld [vmem:[%s19746_s27 + $0x1744] sm:$0xf] }
 0x633   : > { %13204 = vmatpush.bf16.msrb.mxu2 %v16691_v18  ;;  %v17838_v18 = vld [vmem:[%s19746_s27 + $0x1594] sm:$0xf]  ;;  %v16531_v45 = vor.u32 %v17822_v24, %v16528_v8  ;;  %v17027_v24 = vor.u32 %v17946_v61, %v17024_v14  ;;  %v16888_v8 = vld [vmem:[%s19746_s27 + $0x17e8] sm:$0xf0]  ;;  %v17008_v33 = vld [vmem:[%s19746_s27 + $0x18d8] sm:$0xf0] }
 0x634   : > { %13218 = vmatpush.bf16.msrb.mxu3 %v16755_v15  ;;  %v17870_v15 = vld [vmem:[%s19746_s27 + $0x1694] sm:$0xf]  ;;  %v16595_v43 = vor.u32 %v17838_v18, %v16592_v3  ;;  %v17928_v18 = vld [vmem:[%s19746_s27 + $0x1864] sm:$0xf]  ;;  %v16872_v28 = vld [vmem:[%s19746_s27 + $0x17c8] sm:$0xf0] }
 0x635   : > { %13177 = vmatpush.bf16.msrb.mxu0 %v16555_v55  ;;  %v12304_v55 = vadd.f32 %v22250_v56, %v12290_v34  ;;  %v16723_v60 = vor.u32 %v17870_v15, %v16720_v7  ;;  %v17896_v34 = vld [vmem:[%s19746_s27 + $0x1764] sm:$0xf]  ;;  %v17910_v56 = vld [vmem:[%s19746_s27 + $0x17d4] sm:$0xf] }
 0x636   : > { %13191 = vmatpush.bf16.msrb.mxu1 %v16619_v0  ;;  %v16659_v0 = vor.u32 %v17854_v13, %v16656_v20  ;;  %v17944_v13 = vld [vmem:[%s19746_s27 + $0x18e4] sm:$0xf]  ;;  %v17016_v20 = vld [vmem:[%s19746_s27 + $0x18e8] sm:$0xf0] }
 0x637   : > { %13205 = vmatpush.bf16.msrb.mxu2 %v16683_v22  ;;  %v17836_v22 = vld [vmem:[%s19746_s27 + $0x1584] sm:$0xf]  ;;  %v12318_v10 = vadd.f32 %v22251_v2, %v12304_v55  ;;  %v17019_v55 = vor.u32 %v17944_v13, %v17016_v20  ;;  %v16792_v20 = vld [vmem:[%s19746_s27 + $0x1728] sm:$0xf0] }
 0x638   : > { %13219 = vmatpush.bf16.msrb.mxu3 %v16747_v1  ;;  %v16648_v1 = vld [vmem:[%s19746_s27 + $0x1608] sm:$0xf0]  ;;  %v16587_v17 = vor.u32 %v17836_v22, %v16584_v39  ;;  %v16944_v22 = vld [vmem:[%s19746_s27 + $0x1858] sm:$0xf0]  ;;  %v17924_v35 = vld [vmem:[%s19746_s27 + $0x1844] sm:$0xf] }
 0x639   : > { %13178 = vmatpush.bf16.msrb.mxu0 %v16547_v41  ;;  %v17914_v41 = vld [vmem:[%s19746_s27 + $0x17f4] sm:$0xf]  ;;  %v12332_v36 = vadd.f32 %v22252_v42, %v12318_v10  ;;  %v17888_v13 = vld [vmem:[%s19746_s27 + $0x1724] sm:$0xf] }
 0x63a   : > { %13192 = vmatpush.bf16.msrb.mxu1 %v16611_v16  ;;  %v16523_v16 = vor.u32 %v17820_v37, %v16520_v54  ;;  %v17894_v37 = vld [vmem:[%s19746_s27 + $0x1754] sm:$0xf]  ;;  %v16816_v54 = vld [vmem:[%s19746_s27 + $0x1758] sm:$0xf0] }
 0x63b   : > { %13206 = vmatpush.bf16.msrb.mxu2 %v16675_v48  ;;  %v16896_v48 = vld [vmem:[%s19746_s27 + $0x17f8] sm:$0xf0]  ;;  %v12346_v3 = vadd.f32 %v21207_v6, %v12332_v36  ;;  %v22253_v6 = vld [vmem:[#allocation34_spill] sm:$0xff]  ;;  %v16819_v2 = vor.u32 %v17894_v37, %v16816_v54  ;;  %v16920_v37 = vld [vmem:[%s19746_s27 + $0x1828] sm:$0xf0] }
 0x63c   : > { %13220 = vmatpush.bf16.msrb.mxu3 %v16739_v49  ;;  %v16651_v49 = vor.u32 %v17852_v4, %v16648_v1  ;;  %v22254_v4 = vld [vmem:[#allocation40_spill] sm:$0xff]  ;;  %v17942_v1 = vld [vmem:[%s19746_s27 + $0x18d4] sm:$0xf]  ;;  %v16800_v36 = vld [vmem:[%s19746_s27 + $0x1738] sm:$0xf0] }
 0x63d   : > { %13179 = vmatpush.bf16.msrb.mxu0 %v16539_v5  ;;  %v16899_v5 = vor.u32 %v17914_v41, %v16896_v48  ;;  %v12360_v39 = vadd.f32 %v21211_v57, %v12346_v3  ;;  %v16808_v41 = vld [vmem:[%s19746_s27 + $0x1748] sm:$0xf0]  ;;  %v17011_v48 = vor.u32 %v17942_v1, %v17008_v33  ;;  %v17890_v42 = vld [vmem:[%s19746_s27 + $0x1734] sm:$0xf]  ;;  %v16848_v1 = vld [vmem:[%s19746_s27 + $0x1798] sm:$0xf0] }
 0x63e   : > { %13193 = vmatpush.bf16.msrb.mxu1 %v16603_v19  ;;  %v16824_v19 = vld [vmem:[%s19746_s27 + $0x1768] sm:$0xf0]  ;;  %v16811_v61 = vor.u32 %v17892_v12, %v16808_v41  ;;  %v17918_v33 = vld [vmem:[%s19746_s27 + $0x1814] sm:$0xf]  ;;  %v17884_v41 = vld [vmem:[%s19746_s27 + $0x1704] sm:$0xf] }
 0x63f   : > { %13207 = vmatpush.bf16.msrb.mxu2 %v16667_v29  ;;  %v17912_v29 = vld [vmem:[%s19746_s27 + $0x17e4] sm:$0xf]  ;;  %v16827_v15 = vor.u32 %v17896_v34, %v16824_v19  ;;  %v12374_v10 = vadd.f32 %v21228_v53, %v12360_v39  ;;  %v17000_v53 = vld [vmem:[%s19746_s27 + $0x18c8] sm:$0xf0]  ;;  %v16864_v34 = vld [vmem:[%s19746_s27 + $0x17b8] sm:$0xf0] }
 0x640   : > { %13221 = vmatpush.bf16.msrb.mxu3 %v16731_v23  ;;  %v16952_v23 = vld [vmem:[%s19746_s27 + $0x1868] sm:$0xf0]  ;;  %v16891_v7 = vor.u32 %v17912_v29, %v16888_v8  ;;  %v17922_v19 = vld [vmem:[%s19746_s27 + $0x1834] sm:$0xf]  ;;  %v16928_v29 = vld [vmem:[%s19746_s27 + $0x1838] sm:$0xf0] }
 0x641   : > { %13180 = vmatpush.bf16.msrb.mxu0 %v16531_v45  ;;  %v16955_v45 = vor.u32 %v17928_v18, %v16952_v23  ;;  %v12388_v14 = vadd.f32 %v21233_v27, %v12374_v10  ;;  %v17938_v27 = vld [vmem:[%s19746_s27 + $0x18b4] sm:$0xf]  ;;  %v16992_v8 = vld [vmem:[%s19746_s27 + $0x18b8] sm:$0xf0]  ;;  %v16803_v18 = vor.u32 %v17890_v42, %v16800_v36  ;;  %v16931_v3 = vor.u32 %v17922_v19, %v16928_v29  ;;  %v17955_v36 = vld [vmem:[%s19744_s25 + $0x38] sm:$0xff] }
 0x642   : > { %13194 = vmatpush.bf16.msrb.mxu1 %v16595_v43  ;;  %v16880_v43 = vld [vmem:[%s19746_s27 + $0x17d8] sm:$0xf0]  ;;  %v17886_v39 = vld [vmem:[%s19746_s27 + $0x1714] sm:$0xf]  ;;  %v22259_v29 = vld [vmem:[#allocation44_spill] sm:$0xff] }
 0x643   : > { %13208 = vmatpush.bf16.msrb.mxu2 %v16659_v0  ;;  %v17926_v0 = vld [vmem:[%s19746_s27 + $0x1854] sm:$0xf]  ;;  %v16883_v57 = vor.u32 %v17910_v56, %v16880_v43  ;;  %v17936_v56 = vld [vmem:[%s19746_s27 + $0x18a4] sm:$0xf]  ;;  %v22258_v19 = vld [vmem:[#allocation43_spill] sm:$0xff] }
 0x644   : > { %13222 = vmatpush.bf16.msrb.mxu3 %v16723_v60  ;;  %v22255_v60 = vld [vmem:[#allocation37_spill] sm:$0xff]  ;;  %v16947_v30 = vor.u32 %v17926_v0, %v16944_v22 }
 0x645   : > { %13181 = vmatpush.bf16.msrb.mxu0 %v16523_v16  ;;  %v17908_v16 = vld [vmem:[%s19746_s27 + $0x17c4] sm:$0xf] }
 0x646   : > { %13195 = vmatpush.bf16.msrb.mxu1 %v16587_v17  ;;  %v16936_v17 = vld [vmem:[%s19746_s27 + $0x1848] sm:$0xf0] }
 0x647   : > { %13209 = vmatpush.bf16.msrb.mxu2 %v16651_v49  ;;  %v17940_v49 = vld [vmem:[%s19746_s27 + $0x18c4] sm:$0xf] }
 0x648   : > { %13223 = vmatpush.bf16.msrb.mxu3 %v16715_v47  ;;  %13182 = vmatmul.bf16.vlgmr.msrb.gmra.mxu0 %v22253_v6  ;;  %v16875_v47 = vor.u32 %v17908_v16, %v16872_v28  ;;  %v16984_v6 = vld [vmem:[%s19746_s27 + $0x18a8] sm:$0xf0] }
 0x649   : > { %13230 = vmatpush.bf16.msra.mxu0 %v16835_v44  ;;  %13196 = vmatmul.bf16.vlgmr.msrb.gmra.mxu1 %v22255_v60  ;;  %v16939_v44 = vor.u32 %v17924_v35, %v16936_v17  ;;  %v17902_v60 = vld [vmem:[%s19746_s27 + $0x1794] sm:$0xf]  ;;  %v16776_v16 = vld [vmem:[%s19746_s27 + $0x1708] sm:$0xf0]  ;;  %v17916_v17 = vld [vmem:[%s19746_s27 + $0x1804] sm:$0xf] }
 0x64a   : > { %13244 = vmatpush.bf16.msra.mxu1 %v16899_v5  ;;  %13210 = vmatmul.bf16.vlgmr.msrb.gmra.mxu2 %v22254_v4  ;;  %v17906_v5 = vld [vmem:[%s19746_s27 + $0x17b4] sm:$0xf]  ;;  %v16784_v4 = vld [vmem:[%s19746_s27 + $0x1718] sm:$0xf0]  ;;  %v16840_v35 = vld [vmem:[%s19746_s27 + $0x1788] sm:$0xf0] }
 0x64b   : > { %13258 = vmatpush.bf16.msra.mxu2 %v16963_v46  ;;  %13224 = vmatmul.bf16.vlgmr.msrb.gmra.mxu3 %v22256_v58  ;;  %v17003_v46 = vor.u32 %v17940_v49, %v17000_v53  ;;  %v16867_v23 = vor.u32 %v17906_v5, %v16864_v34  ;;  %v16912_v58 = vld [vmem:[%s19746_s27 + $0x1818] sm:$0xf0]  ;;  %v16787_v10 = vor.u32 %v17886_v39, %v16784_v4  ;;  %v16904_v49 = vld [vmem:[%s19746_s27 + $0x1808] sm:$0xf0] }
 0x64c   : > { %13272 = vmatpush.bf16.msra.mxu3 %v17027_v24  ;;  %v12402_v24 = vadd.f32 %v21286_v62, %v12388_v14  ;;  %v16856_v62 = vld [vmem:[%s19746_s27 + $0x17a8] sm:$0xf0]  ;;  %v16915_v12 = vor.u32 %v17918_v33, %v16912_v58 }
 0x64d   : > { %13231 = vmatpush.bf16.msra.mxu0 %v16827_v15  ;;  %v17904_v15 = vld [vmem:[%s19746_s27 + $0x17a4] sm:$0xf]  ;;  %v16968_v14 = vld [vmem:[%s19746_s27 + $0x1888] sm:$0xf0] }
 0x64e   : > { %13245 = vmatpush.bf16.msra.mxu1 %v16891_v7  ;;  %v16995_v7 = vor.u32 %v17938_v27, %v16992_v8  ;;  %v12416_v54 = vadd.f32 %v21290_v51, %v12402_v24  ;;  %v16859_v0 = vor.u32 %v17904_v15, %v16856_v62  ;;  %v16987_v51 = vor.u32 %v17936_v56, %v16984_v6  ;;  %v22257_v34 = vld [vmem:[#allocation41_spill] sm:$0xff]  ;;  %v17953_v27 = vld [vmem:[%s19744_s25 + $0x28] sm:$0xff]  ;;  %v17952_v8 = vld [vmem:[%s19744_s25 + $0x20] sm:$0xff] }
 0x64f   : > { %13259 = vmatpush.bf16.msra.mxu2 %v16955_v45  ;;  %v17920_v45 = vld [vmem:[%s19746_s27 + $0x1824] sm:$0xf]  ;;  %v22261_v15 = vld [vmem:[#allocation50_spill] sm:$0xff] }
 0x650   : > { %13273 = vmatpush.bf16.msra.mxu3 %v17019_v55  ;;  %v16795_v55 = vor.u32 %v17888_v13, %v16792_v20  ;;  %v12430_v43 = vadd.f32 %v21307_v52, %v12416_v54  ;;  %v16923_v22 = vor.u32 %v17920_v45, %v16920_v37  ;;  %v16976_v52 = vld [vmem:[%s19746_s27 + $0x1898] sm:$0xf0]  ;;  %v17951_v13 = vld [vmem:[%s19744_s25 + $0x18] sm:$0xff]  ;;  %v12863_v20 = vpop.f32.mrf.mxu1  ;;  %v12877_v45 = vpop.f32.mrf.mxu2 }
 0x651   : > { %13232 = vmatpush.bf16.msra.mxu0 %v16819_v2  ;;  %v17934_v2 = vld [vmem:[%s19746_s27 + $0x1894] sm:$0xf]  ;;  %v17949_v54 = vld [vmem:[%s19744_s25 + $0x8] sm:$0xff] }
 0x652   : > { %13246 = vmatpush.bf16.msra.mxu1 %v16883_v57  ;;  %v12444_v57 = vadd.f32 %v21312_v31, %v12430_v43  ;;  %v16979_v28 = vor.u32 %v17934_v2, %v16976_v52  ;;  %v16779_v31 = vor.u32 %v17884_v41, %v16776_v16 }
 0x653   : > { %13260 = vmatpush.bf16.msra.mxu2 %v16947_v30  ;;  %v16851_v30 = vor.u32 %v17902_v60, %v16848_v1 }
 0x654   : > { %13274 = vmatpush.bf16.msra.mxu3 %v17011_v48  ;;  %v17900_v48 = vld [vmem:[%s19746_s27 + $0x1784] sm:$0xf]  ;;  %v12458_v53 = vadd.f32 %v21365_v21, %v12444_v57 }
 0x655   : > { %13233 = vmatpush.bf16.msra.mxu0 %v16811_v61  ;;  %v17932_v61 = vld [vmem:[%s19746_s27 + $0x1884] sm:$0xf] }
 0x656   : > { %13247 = vmatpush.bf16.msra.mxu1 %v16875_v47  ;;  %v16843_v47 = vor.u32 %v17900_v48, %v16840_v35  ;;  %v16971_v42 = vor.u32 %v17932_v61, %v16968_v14  ;;  %v12472_v5 = vadd.f32 %v21369_v32, %v12458_v53  ;;  %v17954_v21 = vld [vmem:[%s19744_s25 + $0x30] sm:$0xff]  ;;  %v22260_v32 = vld [vmem:[#allocation46_spill] sm:$0xff] }
 0x657   : > { %13261 = vmatpush.bf16.msra.mxu2 %v16939_v44  ;;  %v16907_v44 = vor.u32 %v17916_v17, %v16904_v49 }
 0x658   : > { %13275 = vmatpush.bf16.msra.mxu3 %v17003_v46  ;;  %v12486_v46 = vadd.f32 %v21386_v26, %v12472_v5  ;;  %v12917_v56 = vpop.f32.mrf.mxu1 }
 0x659   : > { %13234 = vmatpush.bf16.msra.mxu0 %v16803_v18 }
 0x65a   : > { %13248 = vmatpush.bf16.msra.mxu1 %v16867_v23  ;;  %v12500_v24 = vadd.f32 %v21391_v63, %v12486_v46  ;;  %v12849_v23 = vpop.f32.mrf.mxu0 }
 0x65b   : > { %13262 = vmatpush.bf16.msra.mxu2 %v16931_v3 }
 0x65c   : > { %13276 = vmatpush.bf16.msra.mxu3 %v16995_v7  ;;  %v12514_v26 = vadd.f32 %v21444_v11, %v12500_v24  ;;  %v17950_v7 = vld [vmem:[%s19744_s25 + $0x10] sm:$0xff]  ;;  %v12891_v11 = vpop.f32.mrf.mxu3 }
 0x65d   : > { %13235 = vmatpush.bf16.msra.mxu0 %v16795_v55  ;;  %v12931_v55 = vpop.f32.mrf.mxu2 }
 0x65e   : > { %13249 = vmatpush.bf16.msra.mxu1 %v16859_v0  ;;  %v12528_v18 = vadd.f32 %v21448_v38, %v12514_v26  ;;  %v22262_v0 = vld [vmem:[#allocation51_spill] sm:$0xff] }
 0x65f   : > { %13263 = vmatpush.bf16.msra.mxu2 %v16923_v22  ;;  %v13286_v22 = vmax.f32 %v22262_v0, 0.0 }
 0x660   : > { %13277 = vmatpush.bf16.msra.mxu3 %v16987_v51  ;;  %v12542_v3 = vadd.f32 %v21465_v50, %v12528_v18  ;;  %v17948_v50 = vld [vmem:[%s19744_s25] sm:$0xff]  ;;  %v12919_v60 = vpop.f32.mrf.mxu1 }
 0x661   : > { %13236 = vmatpush.bf16.msra.mxu0 %v16787_v10  ;;  %v12850_v10 = vadd.f32 %v12849_v23, %v21835_v59 }
 0x662   : > { %13250 = vmatpush.bf16.msra.mxu1 %v16851_v30  ;;  %v12556_v63 = vadd.f32 %v22261_v15, %v12542_v3  ;;  %v12903_v37 = vpop.f32.mrf.mxu0  ;;  %v17963_v3 = vld [vmem:[%s19744_s25 + $0x78] sm:$0xff]  ;;  %v17962_v15 = vld [vmem:[%s19744_s25 + $0x70] sm:$0xff] }
 0x663   : > { %13264 = vmatpush.bf16.msra.mxu2 %v16915_v12  ;;  %v12864_v41 = vadd.f32 %v12863_v20, %v12850_v10  ;;  %v17958_v10 = vld [vmem:[%s19744_s25 + $0x50] sm:$0xff] }
 0x664   : > { %13278 = vmatpush.bf16.msra.mxu3 %v16979_v28  ;;  %v12570_v62 = vadd.f32 %v21531_v25, %v12556_v63  ;;  %v12945_v43 = vpop.f32.mrf.mxu3  ;;  %v12904_v28 = vadd.f32 %v12903_v37, %v21892_v9 }
 0x665   : > { %13237 = vmatpush.bf16.msra.mxu0 %v16779_v31  ;;  %v12933_v25 = vpop.f32.mrf.mxu2  ;;  %v12878_v48 = vadd.f32 %v12877_v45, %v12864_v41 }
 0x666   : > { %13251 = vmatpush.bf16.msra.mxu1 %v16843_v47  ;;  %v12584_v38 = vadd.f32 %v21535_v40, %v12570_v62  ;;  %v12918_v53 = vadd.f32 %v12917_v56, %v12904_v28 }
 0x667   : > { %13265 = vmatpush.bf16.msra.mxu2 %v16907_v44  ;;  %v12892_v17 = vadd.f32 %v12891_v11, %v12878_v48  ;;  %v17957_v48 = vld [vmem:[%s19744_s25 + $0x48] sm:$0xff] }
 0x668   : > { %13279 = vmatpush.bf16.msra.mxu3 %v16971_v42  ;;  %13238 = vmatmul.bf16.vlgmr.msra.gmra.mxu0 %v22257_v34  ;;  %v13288_v6 = vmax.f32 %v12584_v38, 0.0  ;;  %v12973_v33 = vpop.f32.mrf.mxu1  ;;  %v12932_v31 = vadd.f32 %v12931_v55, %v12918_v53  ;;  %v17961_v55 = vld [vmem:[%s19744_s25 + $0x68] sm:$0xff]  ;;  %v17956_v53 = vld [vmem:[%s19744_s25 + $0x40] sm:$0xff] }
 0x669   : > { %13422 = vmatpush.bf16.msrb.mxu0 %v17955_v36  ;;  %13252 = vmatmul.bf16.vlgmr.msra.gmra.mxu1 %v22258_v19 }
 0x66a   : > { %13266 = vmatmul.bf16.vlgmr.msra.gmra.mxu2 %v22259_v29  ;;  %v12905_v39 = vpop.f32.mrf.mxu0  ;;  %v13292_v4 = vpack.c.bf16 %v13288_v6, %v13286_v22  ;;  %v12946_v42 = vadd.f32 %v12945_v43, %v12932_v31  ;;  %13436 = vmatpush.bf16.msrb.mxu1 %v17963_v3  ;;  %v17960_v22 = vld [vmem:[%s19744_s25 + $0x60] sm:$0xff] }
 0x66b   : > { %13280 = vmatmul.bf16.vlgmr.msra.gmra.mxu3 %v22260_v32  ;;  %v12906_v61 = vadd.f32 %v12905_v39, %v12892_v17 }
 0x66c   : > { %v12947_v51 = vpop.f32.mrf.mxu3 }
 0x66d   : > { %13423 = vmatpush.bf16.msrb.mxu0 %v17954_v21  ;;  %v12987_v58 = vpop.f32.mrf.mxu2  ;;  %v12920_v44 = vadd.f32 %v12919_v60, %v12906_v61 }
 0x66e   : > { %13437 = vmatpush.bf16.msrb.mxu1 %v17962_v15 }
 0x66f   : > { %v12934_v36 = vadd.f32 %v12933_v25, %v12920_v44 }
 0x670   : > { %v12975_v52 = vpop.f32.mrf.mxu1 }
 0x671   : > { %13424 = vmatpush.bf16.msrb.mxu0 %v17953_v27  ;;  %v12948_v34 = vadd.f32 %v12947_v51, %v12934_v36 }
 0x672   : > { %v12959_v1 = vpop.f32.mrf.mxu0  ;;  %13438 = vmatpush.bf16.msrb.mxu1 %v17961_v55 }
 0x673   : > { %v12960_v5 = vadd.f32 %v12959_v1, %v12946_v42 }
 0x674   : > { %v13001_v2 = vpop.f32.mrf.mxu3 }
 0x675   : > { %13425 = vmatpush.bf16.msrb.mxu0 %v17952_v8  ;;  %v12989_v57 = vpop.f32.mrf.mxu2  ;;  %v12974_v9 = vadd.f32 %v12973_v33, %v12960_v5  ;;  %v17959_v33 = vld [vmem:[%s19744_s25 + $0x58] sm:$0xff] }
 0x676   : > { %13439 = vmatpush.bf16.msrb.mxu1 %v17960_v22 }
 0x677   : > { %v12988_v24 = vadd.f32 %v12987_v58, %v12974_v9 }
 0x678   : > { %v13029_v16 = vpop.f32.mrf.mxu1 }
 0x679   : > { %13426 = vmatpush.bf16.msrb.mxu0 %v17951_v13  ;;  %v13002_v8 = vadd.f32 %v13001_v2, %v12988_v24 }
 0x67a   : > { %v12961_v40 = vpop.f32.mrf.mxu0  ;;  %13440 = vmatpush.bf16.msrb.mxu1 %v17959_v33 }
 0x67b   : > { %v12962_v29 = vadd.f32 %v12961_v40, %v12948_v34 }
 0x67c   : > { %v13003_v30 = vpop.f32.mrf.mxu3 }
 0x67d   : > { %13427 = vmatpush.bf16.msrb.mxu0 %v17950_v7  ;;  %v13043_v35 = vpop.f32.mrf.mxu2  ;;  %v12976_v27 = vadd.f32 %v12975_v52, %v12962_v29 }
 0x67e   : > { %13441 = vmatpush.bf16.msrb.mxu1 %v17958_v10 }
 0x67f   : > { %v12990_v18 = vadd.f32 %v12989_v57, %v12976_v27 }
 0x680   : > { %v13031_v47 = vpop.f32.mrf.mxu1 }
 0x681   : > { %13428 = vmatpush.bf16.msrb.mxu0 %v17949_v54  ;;  %v13004_v63 = vadd.f32 %v13003_v30, %v12990_v18 }
 0x682   : > { %v13015_v12 = vpop.f32.mrf.mxu0  ;;  %13442 = vmatpush.bf16.msrb.mxu1 %v17957_v48 }
 0x683   : > { %v13016_v13 = vadd.f32 %v13015_v12, %v13002_v8 }
 0x684   : > { %v13057_v49 = vpop.f32.mrf.mxu3 }
 0x685   : > { %13429 = vmatpush.bf16.msrb.mxu0 %v17948_v50  ;;  %v13045_v59 = vpop.f32.mrf.mxu2  ;;  %v13030_v7 = vadd.f32 %v13029_v16, %v13016_v13 }
 0x686   : > { %13443 = vmatpush.bf16.msrb.mxu1 %v17956_v53 }
 0x687   : > { %v13044_v11 = vadd.f32 %v13043_v35, %v13030_v7 }
 0x688   : > { %13430 = vmatmul.bf16.vlgmr.msrb.gmra.mxu0 %v13292_v4  ;;  %v13085_v19 = vpop.f32.mrf.mxu1 }
 0x689   : > { %v13058_v50 = vadd.f32 %v13057_v49, %v13044_v11 }
 0x68a   : > { %v13017_v14 = vpop.f32.mrf.mxu0 }
 0x68b   : > { %v13018_v62 = vadd.f32 %v13017_v14, %v13004_v63 }
 0x68c   : > { %v13059_v46 = vpop.f32.mrf.mxu3 }
 0x68d   : > { %v13099_v32 = vpop.f32.mrf.mxu2  ;;  %v13032_v38 = vadd.f32 %v13031_v47, %v13018_v62 }
 0x68f   : > { %v13046_v6 = vadd.f32 %v13045_v59, %v13032_v38 }
 0x690   : > { %v13087_v20 = vpop.f32.mrf.mxu1 }
 0x691   : > { %v13060_v39 = vadd.f32 %v13059_v46, %v13046_v6 }
 0x692   : > { %v13071_v21 = vpop.f32.mrf.mxu0 }
 0x693   : > { %v13072_v43 = vadd.f32 %v13071_v21, %v13058_v50 }
 0x694   : > { %v13113_v26 = vpop.f32.mrf.mxu3 }
 0x695   : > { %v13101_v45 = vpop.f32.mrf.mxu2  ;;  %v13086_v60 = vadd.f32 %v13085_v19, %v13072_v43  ;;  %v13290_v43 = vld [vmem:[#allocation2] sm:$0xff] }
 0x697   : > { %v13100_v1 = vadd.f32 %v13099_v32, %v13086_v60  ;;  %v13291_v60 = vld [vmem:[#allocation2 + $0x8] sm:$0xff] }
 0x699   : > { %v13114_v40 = vadd.f32 %v13113_v26, %v13100_v1 }
 0x69a   : > { %v13073_v23 = vpop.f32.mrf.mxu0 }
 0x69b   : > { %v13074_v25 = vadd.f32 %v13073_v23, %v13060_v39 }
 0x69c   : > { %v13115_v37 = vpop.f32.mrf.mxu3 }
 0x69d   : > { %v13088_v2 = vadd.f32 %v13087_v20, %v13074_v25 }
 0x69f   : > { %v13102_v52 = vadd.f32 %v13101_v45, %v13088_v2 }
 0x6a1   : > { %v13116_v16 = vadd.f32 %v13115_v37, %v13102_v52 }
 0x6a5   : > { %v13127_v54 = vpop.f32.mrf.mxu0 }
 0x6a6   : > { %v13141_v56 = vpop.f32.mrf.mxu1  ;;  %v13128_v30 = vadd.f32 %v13127_v54, %v13114_v40 }
 0x6a8   : > { %v13142_v35 = vadd.f32 %v13141_v56, %v13128_v30 }
 0x6ad   : > { %v13155_v0 = vpop.f32.mrf.mxu2  ;;  %v13129_v51 = vpop.f32.mrf.mxu0 }
 0x6ae   : > { %v13169_v4 = vpop.f32.mrf.mxu3  ;;  %v13143_v58 = vpop.f32.mrf.mxu1  ;;  %v13130_v17 = vadd.f32 %v13129_v51, %v13116_v16  ;;  %v13156_v49 = vadd.f32 %v13155_v0, %v13142_v35 }
 0x6b0   : > { %v13144_v14 = vadd.f32 %v13143_v58, %v13130_v17  ;;  %v13170_v47 = vadd.f32 %v13169_v4, %v13156_v49 }
 0x6b5   : > { %v13157_v57 = vpop.f32.mrf.mxu2 }
 0x6b6   : > { %v13171_v12 = vpop.f32.mrf.mxu3  ;;  %v13158_v44 = vadd.f32 %v13157_v57, %v13144_v14 }
 0x6b8   : > { %v13172_v5 = vadd.f32 %v13171_v12, %v13158_v44 }
 0x6c5   : > { %v13183_v41 = vpop.f32.mrf.mxu0 }
 0x6c6   : > { %v13197_v28 = vpop.f32.mrf.mxu1  ;;  %v13184_v36 = vadd.f32 %v13183_v41, %v13170_v47 }
 0x6c8   : > { %v13198_v46 = vadd.f32 %v13197_v28, %v13184_v36 }
 0x6cd   : > { %v13211_v61 = vpop.f32.mrf.mxu2  ;;  %v13185_v42 = vpop.f32.mrf.mxu0 }
 0x6ce   : > { %v13225_v31 = vpop.f32.mrf.mxu3  ;;  %v13199_v59 = vpop.f32.mrf.mxu1  ;;  %v13186_v21 = vadd.f32 %v13185_v42, %v13172_v5  ;;  %v13212_v19 = vadd.f32 %v13211_v61, %v13198_v46 }
 0x6d0   : > { %v13200_v24 = vadd.f32 %v13199_v59, %v13186_v21  ;;  %v13226_v27 = vadd.f32 %v13225_v31, %v13212_v19 }
 0x6d5   : > { %v13213_v34 = vpop.f32.mrf.mxu2 }
 0x6d6   : > { %v13227_v9 = vpop.f32.mrf.mxu3  ;;  %v13214_v26 = vadd.f32 %v13213_v34, %v13200_v24 }
 0x6d8   : > { %v13228_v23 = vadd.f32 %v13227_v9, %v13214_v26 }
 0x6e5   : > { %v13239_v29 = vpop.f32.mrf.mxu0 }
 0x6e6   : > { %v13253_v32 = vpop.f32.mrf.mxu1  ;;  %v13240_v8 = vadd.f32 %v13239_v29, %v13226_v27 }
 0x6e8   : > { %v13254_v20 = vadd.f32 %v13253_v32, %v13240_v8 }
 0x6ed   : > { %v13267_v18 = vpop.f32.mrf.mxu2  ;;  %v13241_v13 = vpop.f32.mrf.mxu0 }
 0x6ee   : > { %v13281_v3 = vpop.f32.mrf.mxu3  ;;  %v13242_v15 = vadd.f32 %v13241_v13, %v13228_v23  ;;  %v13268_v63 = vadd.f32 %v13267_v18, %v13254_v20  ;;  %v13255_v7 = vpop.f32.mrf.mxu1 }
 0x6f0   : > { %v13256_v62 = vadd.f32 %v13255_v7, %v13242_v15  ;;  %v13282_v11 = vadd.f32 %v13281_v3, %v13268_v63 }
 0x6f2   : > { %v13287_v56 = vmax.f32 %v13282_v11, 0.0 }
 0x6f5   : > { %v13269_v45 = vpop.f32.mrf.mxu2 }
 0x6f6   : > { %v13270_v37 = vadd.f32 %v13269_v45, %v13256_v62  ;;  %v13283_v54 = vpop.f32.mrf.mxu3 }
 0x6f8   : > { %v13284_v38 = vadd.f32 %v13283_v54, %v13270_v37 }
 0x6fa   : > { %v13289_v50 = vmax.f32 %v13284_v38, 0.0 }
 0x6fc   : > { %v13293_v6 = vpack.c.bf16 %v13289_v50, %v13287_v56 }
 0x6fe   : > { %13444 = vmatmul.bf16.vlgmr.msrb.gmra.mxu1 %v13293_v6 }
 0x705   : > { %v13431_v55 = vpop.f32.mrf.mxu0 }
 0x70d   : > { %v13433_v4 = vpop.f32.mrf.mxu0 }
 0x77b   : > { %v13445_v0 = vpop.f32.mrf.mxu1 }
 0x77c   : > { %v13446_v22 = vadd.f32 %v13445_v0, %v13431_v55 }
 0x77e   : > { %v13450_v39 = vadd.f32 %v13446_v22, %v13290_v43 }
 0x780   : > { %13453 = vst.msk [vmem:[#allocation2] sm:$0xff] %vm13452_vm1, %v13450_v39 }
 0x783   : > { %v13447_v25 = vpop.f32.mrf.mxu1 }
 0x784   : > { %v13448_v51 = vadd.f32 %v13447_v25, %v13433_v4  ;;  %13458 = sbr.rel (%p17092_p12) target bundleno = 2066 (0x812), region = 100 }
 0x786   : > { %v13451_v1 = vadd.f32 %v13448_v51, %v13291_v60 }
 0x788   : > { %13454 = vst.msk [vmem:[#allocation2 + $0x8] sm:$0xff] %vm13452_vm1, %v13451_v1 }
 0x789   : > { %v13459_v33 = vld [vmem:[#allocation2] sm:$0xff]  ;;  %v13467_v2 = vlaneseq  ;;  %v18053_v49 = vmov 7.0  }
 0x78a   : > { %v18009_v58 = vld [vmem:[%s22141_s4] ss:$0 sm:$0xff]  ;;  %18010 = vrcp.f32 %v18053_v49 }
 0x78b   : > { %v13465_v40 = vadd.f32 %v18009_v58, %v13459_v33  ;;  %v13468_v52 = vand.u32 127, %v13467_v2 }
 0x78d   : > { %vm13487_vm2 = vcmp.eq.s32.totalorder %v13468_v52, 7  ;;  %vm13469_vm3 = vcmp.lt.s32.totalorder %v13468_v52, 7 }
 0x78e   : > { %v13488_v57 = vsel %vm13487_vm2, %v13465_v40, 0.0  ;;  %v13470_v30 = vsel %vm13469_vm3, %v13465_v40, 0.0 }
 0x78f   : > { %v13460_v10 = vld [vmem:[#allocation2 + $0x8] sm:$0xff]  ;;  %v13490_v41 = vsel %vm13452_vm1, %v13488_v57, 0.0  ;;  %v13472_v16 = vsel %vm13452_vm1, %v13470_v30, 0.0 }
 0x790   : > { %v13466_v12 = vadd.f32 %v18009_v58, %v13460_v10  ;;  %13491 = vadd.xlane.f32.xlu1 %v13490_v41  ;;  %13473 = vadd.xlane.f32.xlu0 %v13472_v16  ;;  %v18011_v53 = vpop.eup %18010 }
 0x791   : > { %v13479_v61 = vmul.f32 7.0, %v18011_v53  ;;  %vm13483_vm4 = vweird.f32 %v18011_v53 }
 0x792   : > { %v13489_v48 = vsel %vm13487_vm2, %v13466_v12, 0.0  ;;  %v13471_v28 = vsel %vm13469_vm3, %v13466_v12, 0.0 }
 0x793   : > { %v13493_v35 = vsel %vm13452_vm1, %v13489_v48, 0.0  ;;  %v13475_v17 = vsel %vm13452_vm1, %v13471_v28, 0.0  ;;  %v13480_v14 = vsub.f32 1.0, %v13479_v61 }
 0x795   : > { %v13481_v31 = vmul.f32 %v18011_v53, %v13480_v14 }
 0x797   : > { %v13482_v47 = vadd.f32 %v18011_v53, %v13481_v31 }
 0x798   : > { %13494 = vadd.xlane.f32.xlu1 %v13493_v35  ;;  %13476 = vadd.xlane.f32.xlu0 %v13475_v17 }
 0x799   : > { %v13484_v44 = vsel %vm13483_vm4, %v18011_v53, %v13482_v47 }
 0x803   : > { %v13492_v42 = vpop.xlane.xlu1 %13491  ;;  %v13474_v36 = vpop.xlane.xlu0 %13473 }
 0x804   : > { %v13496_v59 = vadd.f32 %v13492_v42, %v13465_v40  ;;  %v13485_v5 = vmul.f32 %v13484_v44, %v13474_v36 }
 0x806   : > { %v13498_v46 = vsub.f32 %v13496_v59, %v13485_v5 }
 0x808   : > { %v13500_v21 = vsel %vm13469_vm3, %v13498_v46, 0.0 }
 0x809   : > { %13502 = vst.msk [vmem:[%s22142_s5] sm:$0xff] %vm13452_vm1, %v13500_v21 }
 0x80b   : > { %v13495_v34 = vpop.xlane.xlu1 %13494  ;;  %v13477_v19 = vpop.xlane.xlu0 %13476 }
 0x80c   : > { %v13497_v9 = vadd.f32 %v13495_v34, %v13466_v12  ;;  %v13486_v29 = vmul.f32 %v13484_v44, %v13477_v19 }
 0x80e   : > { %v13499_v24 = vsub.f32 %v13497_v9, %v13486_v29 }
 0x810   : > { %v13501_v32 = vsel %vm13469_vm3, %v13499_v24, 0.0 }
 0x811   : > { %13503 = vst.msk [vmem:[%s22142_s5 + $0x8] sm:$0xff] %vm13452_vm1, %v13501_v32 }
 0x812 PF: > { %s15_s22 = sadd.s32 1, %s18050_s22   ;;  %s22263_s18 = smov %s18038_s19 }
 0x813   : > { %p12_p13 = scmp.ge.s32.totalorder %s15_s22, 6   ;;  %s22264_s19 = smov %s18119_s26 }
 0x814   : > { %s22265_s20 = smov %s18046_s21  ;;  %s22266_s21 = smov %s22268_s23 }
 0x815   :  { %14 = sbr.rel (!%p12_p13) target bundleno = 3 (0x3), region = 150 }

</bundles_post_ra>
